<compile_context>
chip_gen: v5e
topology: v5e:2x2
jax: 0.10.0
libtpu: 0.0.40
codegen_flags: <defaults>
</compile_context>

<pallas_src>
import functools

import numpy as np
import jax
import jax.numpy as jnp
from jax.experimental import pallas as pl
from jax.experimental.pallas import tpu as pltpu


# ----------------------------------------------------------------------------
# Fused per-timestep kernel: UNet (in-conv + resblocks + out-conv) + DDIM update
# ----------------------------------------------------------------------------
def _fused_step_kernel(coef_ref, x_ref, w_in_ref, b_in_ref,
                       w1_ref, bemb_c_ref, w2_ref, b2_ref,
                       w_out_ref, b_out_ref, *rest,
                       num_blocks, hidden, use_guidance):
    if use_guidance:
        bemb_u_ref, x_out_ref, feat_ref = rest
    else:
        x_out_ref, feat_ref = rest

    x = x_ref[...]                      # (TM, CP) lane-dense padded latent
    w_in = w_in_ref[...]                # (CP, H)
    b_in = b_in_ref[...]                # (1, H)
    w_out = w_out_ref[...]              # (H, CP)  (cols >= C are zero)
    b_out = b_out_ref[...]              # (1, CP)

    def unet_pass(bemb_ref, save_feats):
        h = jnp.maximum(
            jnp.dot(x, w_in, preferred_element_type=jnp.float32) + b_in, 0.0)
        feats = []
        for b in range(num_blocks):       # static unroll: weights VMEM-resident
            h1 = jnp.maximum(
                jnp.dot(h, w1_ref[b], preferred_element_type=jnp.float32)
                + bemb_ref[b], 0.0)
            h = h + jnp.dot(h1, w2_ref[b], preferred_element_type=jnp.float32) + b2_ref[b]
            if save_feats:
                feats.append(h)
        eps = jnp.dot(h, w_out, preferred_element_type=jnp.float32) + b_out
        return eps, feats

    eps, feats = unet_pass(bemb_c_ref, True)       # feats saved from the cond pass
    if use_guidance:
        eps_u, _ = unet_pass(bemb_u_ref, False)
        g = coef_ref[2]
        eps = eps_u + g * (eps - eps_u)

    # single lane-dense store of the concatenated block features
    feat_ref[...] = jnp.concatenate(feats, axis=-1)
    # DDIM (eta=0) update applied in place; eps never touches HBM
    x_out_ref[...] = coef_ref[0] * x + coef_ref[1] * eps


def _pick_tm(m):
    if m <= 1024:
        return m
    for tm in (1024, 512, 256, 128, 64, 32, 16, 8):
        if m % tm == 0:
            return tm
    return m


def fused_denoise_step(coef, x_pad, w_in, b_in, w1, bemb_c, w2, b2, w_out, b_out,
                       bemb_u=None, *, num_blocks, hidden, use_guidance=False):
    """One denoising step: x_prev, feats = DDIM(UNet(x)).

    coef: (3,) f32 [c0, c1, guidance]  (lives in SMEM)
    x_pad: (M, CP) f32 latent, channels padded to CP (multiple of 128)
    """
    M, CP = x_pad.shape
    F = num_blocks * hidden
    tm = _pick_tm(M)

    kernel = functools.partial(_fused_step_kernel, num_blocks=num_blocks,
                               hidden=hidden, use_guidance=use_guidance)

    in_specs = [
        pl.BlockSpec(memory_space=pltpu.MemorySpace.SMEM),                       # coef
        pl.BlockSpec((tm, CP), lambda i: (i, 0)),                                # x
        pl.BlockSpec((CP, hidden), lambda i: (0, 0)),                            # w_in
        pl.BlockSpec((1, hidden), lambda i: (0, 0)),                             # b_in
        pl.BlockSpec((num_blocks, hidden, hidden), lambda i: (0, 0, 0)),         # w1 stack
        pl.BlockSpec((num_blocks, 1, hidden), lambda i: (0, 0, 0)),              # b1 + emb_c
        pl.BlockSpec((num_blocks, hidden, hidden), lambda i: (0, 0, 0)),         # w2 stack
        pl.BlockSpec((num_blocks, 1, hidden), lambda i: (0, 0, 0)),              # b2 stack
        pl.BlockSpec((hidden, CP), lambda i: (0, 0)),                            # w_out (padded)
        pl.BlockSpec((1, CP), lambda i: (0, 0)),                                 # b_out (padded)
    ]
    args = [coef, x_pad, w_in, b_in, w1, bemb_c, w2, b2, w_out, b_out]
    if use_guidance:
        in_specs.append(pl.BlockSpec((num_blocks, 1, hidden), lambda i: (0, 0, 0)))
        args.append(bemb_u)

    out_shape = (jax.ShapeDtypeStruct((M, CP), jnp.float32),
                 jax.ShapeDtypeStruct((M, F), jnp.float32))
    out_specs = (pl.BlockSpec((tm, CP), lambda i: (i, 0)),
                 pl.BlockSpec((tm, F), lambda i: (i, 0)))

    # NOTE: default scoped-VMEM limit is ample here (~3 MiB used); for real SD channel
    # widths set vmem_limit_bytes explicitly (especially on v7x's 64 MiB VMEM).
    return pl.pallas_call(
        kernel,
        out_shape=out_shape,
        grid_spec=pltpu.PrefetchScalarGridSpec(
            num_scalar_prefetch=0,
            grid=(M // tm,),
            in_specs=in_specs,
            out_specs=out_specs,
        ),
        compiler_params=pltpu.CompilerParams(dimension_semantics=("parallel",)),
    )(*args)


# ----------------------------------------------------------------------------
# DDIM scheduler (numpy, static)
# ----------------------------------------------------------------------------
class DDIMScheduler:
    def __init__(self, beta_start=0.00085, beta_end=0.012,
                 beta_schedule="scaled_linear", num_train_timesteps=1000):
        assert beta_schedule == "scaled_linear"
        betas = np.linspace(beta_start ** 0.5, beta_end ** 0.5,
                            num_train_timesteps, dtype=np.float64) ** 2
        self.alphas_cumprod = np.cumprod(1.0 - betas)
        self.num_train_timesteps = num_train_timesteps

    def set_timesteps(self, num_inference_steps):
        self.num_inference_steps = num_inference_steps
        self.step_ratio = self.num_train_timesteps // num_inference_steps
        self.timesteps = (np.arange(0, num_inference_steps) * self.step_ratio)[::-1].copy()

    def step_coeffs(self, t):
        """Return (c0, c1) such that x_prev = c0 * x_t + c1 * eps  (eta = 0)."""
        prev_t = t - self.step_ratio
        alpha_t = self.alphas_cumprod[t]
        alpha_prev = self.alphas_cumprod[prev_t] if prev_t >= 0 else 1.0
        c0 = float(np.sqrt(alpha_prev / alpha_t))
        c1 = float(np.sqrt(1.0 - alpha_prev) - c0 * np.sqrt(1.0 - alpha_t))
        return c0, c1


def timestep_embedding(t, dim):
    half = dim // 2
    freqs = np.exp(-np.log(10000.0) * np.arange(half, dtype=np.float64) / half)
    args = float(t) * freqs
    return np.concatenate([np.cos(args), np.sin(args)]).astype(np.float32)[None, :]  # (1, dim)


# ----------------------------------------------------------------------------
# DiffusionExtractor (generation mode)
# ----------------------------------------------------------------------------
class DiffusionExtractorPallas:
    def __init__(self, config):
        self.batch_size = config["batch_size"]
        self.in_channels = config["in_channels"]
        self.hidden = config["hidden"]
        self.num_blocks = config["num_blocks"]
        self.num_timesteps = config["num_timesteps"]
        self.save_timestep = config["save_timestep"]
        self.diffusion_mode = config.get("diffusion_mode", "generation")
        h_res = config["input_resolution"][0] // 8
        w_res = config["input_resolution"][1] // 8
        self.output_resolution = (h_res, w_res)
        self.latent_hw = (h_res, w_res)
        # latent channel axis padded to a full 128-lane vreg; padding is carried as zeros
        # through the whole denoise loop and stripped only at the output boundary.
        self.c_pad = max(128, ((self.in_channels + 127) // 128) * 128)

        self.scheduler = DDIMScheduler(beta_start=0.00085, beta_end=0.012,
                                       beta_schedule="scaled_linear",
                                       num_train_timesteps=1000)
        self.scheduler.set_timesteps(self.num_timesteps)

        # ---- deterministic synthetic parameters (stand-in for SD UNet / CLIP) ----
        key = jax.random.PRNGKey(config.get("seed", 0))
        ks = list(jax.random.split(key, 8 + 4 * self.num_blocks))
        ki = iter(ks)
        s = 0.05
        C, H, CP, NB = self.in_channels, self.hidden, self.c_pad, self.num_blocks

        w_in = s * jax.random.normal(next(ki), (C, H), jnp.float32)
        self.w_in_pad = jnp.zeros((CP, H), jnp.float32).at[:C].set(w_in)
        self.b_in = jnp.zeros((1, H), jnp.float32)
        w_out = s * jax.random.normal(next(ki), (H, C), jnp.float32)
        self.w_out_pad = jnp.zeros((H, CP), jnp.float32).at[:, :C].set(w_out)
        self.b_out_pad = jnp.zeros((1, CP), jnp.float32)
        self.w_time = s * jax.random.normal(next(ki), (H, H), jnp.float32)
        self.w_cond = s * jax.random.normal(next(ki), (H, H), jnp.float32)

        # synthetic "CLIP" text embeddings (same prompt expanded across batch)
        self.seq_len = config["cond_seq"]
        cond_prompt = s * jax.random.normal(next(ki), (1, self.seq_len, H), jnp.float32)
        uncond_prompt = s * jax.random.normal(next(ki), (1, self.seq_len, H), jnp.float32)
        self.cond = jnp.broadcast_to(cond_prompt, (self.batch_size, self.seq_len, H))
        self.uncond = jnp.broadcast_to(uncond_prompt, (self.batch_size, self.seq_len, H))

        w1s, w2s = [], []
        for _ in range(NB):
            w1s.append(s * jax.random.normal(next(ki), (H, H), jnp.float32))
            w2s.append(s * jax.random.normal(next(ki), (H, H), jnp.float32))
        self.w1 = jnp.stack(w1s)                                # (NB, H, H)
        self.w2 = jnp.stack(w2s)                                # (NB, H, H)
        self.b1 = jnp.zeros((NB, 1, H), jnp.float32)
        self.b2 = jnp.zeros((NB, 1, H), jnp.float32)
        # toy "idxs": one saved feature per resnet block
        self.idxs = list(range(NB))

        # ---- precomputed per-step conditioning + DDIM coefficients (tiny glue) ----
        temb = jnp.asarray(np.concatenate(
            [timestep_embedding(t, H) for t in self.scheduler.timesteps], axis=0))  # (T, H)
        pooled_c = jnp.mean(self.cond, axis=(0, 1))[None, :]    # (1, H)
        pooled_u = jnp.mean(self.uncond, axis=(0, 1))[None, :]  # (1, H)
        self.embs_c = (temb @ self.w_time + pooled_c @ self.w_cond)[:, None, :]  # (T, 1, H)
        self.embs_u = (temb @ self.w_time + pooled_u @ self.w_cond)[:, None, :]  # (T, 1, H)
        self.coefs2 = np.array([self.scheduler.step_coeffs(t)
                                for t in self.scheduler.timesteps], dtype=np.float32)  # (T, 2)

        self._gen_cache = {}

    # ---- jitted denoise loop: lax.scan over timesteps, one fused kernel per step ----
    def _get_gen_fn(self, use_guidance):
        if use_guidance not in self._gen_cache:
            nb, hd = self.num_blocks, self.hidden

            def gen(x0_pad, coefs, embs_c, embs_u,
                    w_in, b_in, w1, b1, w2, b2, w_out, b_out):
                def step(x, per_step):
                    coef, emb_c, emb_u = per_step
                    bemb_c = b1 + emb_c[None]                          # fold emb into b1
                    bemb_u = (b1 + emb_u[None]) if use_guidance else None
                    x_new, feat = fused_denoise_step(
                        coef, x, w_in, b_in, w1, bemb_c, w2, b2, w_out, b_out,
                        bemb_u=bemb_u, num_blocks=nb, hidden=hd,
                        use_guidance=use_guidance)
                    return x_new, (x_new, feat)

                _, (xs, feats) = jax.lax.scan(step, x0_pad, (coefs, embs_c, embs_u))
                return xs, feats

            self._gen_cache[use_guidance] = jax.jit(gen)
        return self._gen_cache[use_guidance]

    def run_generation(self, latents_nchw, guidance_scale=-1):
        B, C, Hs, Ws = latents_nchw.shape
        assert C == self.in_channels
        M = B * Hs * Ws
        CP = self.c_pad
        F = self.num_blocks * self.hidden

        # NCHW -> NHWC -> (M, C) -> pad channels to CP for lane-dense kernels
        x = jnp.transpose(latents_nchw, (0, 2, 3, 1)).reshape(M, C).astype(jnp.float32)
        x_pad = jnp.pad(x, ((0, 0), (0, CP - C)))

        g = float(guidance_scale)
        use_guidance = g > 0
        coefs = jnp.asarray(np.concatenate(
            [self.coefs2, np.full((self.coefs2.shape[0], 1), max(g, 0.0), np.float32)],
            axis=1))                                              # (T, 3): c0, c1, guidance

        gen = self._get_gen_fn(use_guidance)
        xs_scan, feats_all = gen(x_pad, coefs, self.embs_c, self.embs_u,
                                 self.w_in_pad, self.b_in, self.w1, self.b1,
                                 self.w2, self.b2, self.w_out_pad, self.b_out_pad)
        # xs_scan: (T, M, CP); feats_all: (T, M, F)

        def to_nchw(flat, ch):
            return jnp.transpose(flat.reshape(B, Hs, Ws, ch), (0, 3, 1, 2))

        xs_all = jnp.concatenate([x_pad[None], xs_scan], axis=0)[:, :, :C]   # strip pad
        outputs = jnp.stack([to_nchw(xs_all[i], C) for i in range(xs_all.shape[0])],
                            axis=0)                               # (steps+1, B, C, H, W)

        # collect_and_resize_feats: per-block features concatenated along channels (done
        # lane-dense inside the kernel), stacked over save_timestep at dim=1.
        # TODO(synk): real SD blocks live at multiple resolutions and would be bilinearly
        # resized to output_resolution; toy blocks already match it.
        feats_saved = feats_all[jnp.asarray(self.save_timestep, dtype=jnp.int32)]
        feats_out = jnp.stack([to_nchw(feats_saved[k], F)
                               for k in range(len(self.save_timestep))],
                              axis=1)                             # (B, T_save, C_feat, H, W)
        return feats_out, outputs

    def forward(self, latents=None, guidance_scale=-1):
        assert self.diffusion_mode == "generation"
        if latents is None:
            latents = jax.random.normal(
                jax.random.PRNGKey(0),
                (self.batch_size, self.in_channels, *self.latent_hw), jnp.float32)
        return self.run_generation(latents, guidance_scale)


# ----------------------------------------------------------------------------
if __name__ == "__main__":
    config = {
        "batch_size": 2,
        "in_channels": 4,
        "hidden": 32,
        "num_blocks": 4,
        "num_timesteps": 4,
        "save_timestep": [0, 2],
        "input_resolution": (128, 128),   # latent spatial = 16 x 16
        "cond_seq": 8,
        "diffusion_mode": "generation",
        "seed": 0,
    }
    extractor = DiffusionExtractorPallas(config)

    latents = jax.random.normal(jax.random.PRNGKey(0), (2, 4, 16, 16), jnp.float32)
    feats, outputs = extractor.forward(latents=latents, guidance_scale=-1)
    jax.block_until_ready(feats)
    jax.block_until_ready(outputs)

    assert feats.shape == (2, 2, 128, 16, 16), feats.shape
    assert outputs.shape == (5, 2, 4, 16, 16), outputs.shape
    assert bool(jnp.all(jnp.isfinite(feats))) and bool(jnp.all(jnp.isfinite(outputs)))
    print("KERNEL_OK")
</pallas_src>

<mosaic_0001>
module attributes {stable_mosaic.version = 11 : i64} {
  func.func @_fused_step_kernel(%arg0: i32, %arg1: memref<3xf32, #tpu.memory_space<smem>>, %arg2: memref<512x128xf32, #tpu.memory_space<vmem>>, %arg3: memref<128x32xf32, #tpu.memory_space<vmem>>, %arg4: memref<1x32xf32, #tpu.memory_space<vmem>>, %arg5: memref<4x32x32xf32, #tpu.memory_space<vmem>>, %arg6: memref<4x1x32xf32, #tpu.memory_space<vmem>>, %arg7: memref<4x32x32xf32, #tpu.memory_space<vmem>>, %arg8: memref<4x1x32xf32, #tpu.memory_space<vmem>>, %arg9: memref<32x128xf32, #tpu.memory_space<vmem>>, %arg10: memref<1x128xf32, #tpu.memory_space<vmem>>, %arg11: memref<512x128xf32, #tpu.memory_space<vmem>>, %arg12: memref<512x128xf32, #tpu.memory_space<vmem>>) attributes {dimension_semantics = [#tpu.dimension_semantics<parallel>], iteration_bounds = array<i64: 1>, scalar_prefetch = 0 : i64, scratch_operands = 0 : i64, tpu.core_type = #tpu.core_type<tc>, window_params = [{transform_indices = @transform_0, window_bounds = array<i64: 3>}, {transform_indices = @transform_1, window_bounds = array<i64: 512, 128>}, {pipeline_mode = #tpu.pipeline_mode<synchronous>, transform_indices = @transform_2, window_bounds = array<i64: 128, 32>}, {pipeline_mode = #tpu.pipeline_mode<synchronous>, transform_indices = @transform_3, window_bounds = array<i64: 1, 32>}, {pipeline_mode = #tpu.pipeline_mode<synchronous>, transform_indices = @transform_4, window_bounds = array<i64: 4, 32, 32>}, {pipeline_mode = #tpu.pipeline_mode<synchronous>, transform_indices = @transform_5, window_bounds = array<i64: 4, 1, 32>}, {pipeline_mode = #tpu.pipeline_mode<synchronous>, transform_indices = @transform_6, window_bounds = array<i64: 4, 32, 32>}, {pipeline_mode = #tpu.pipeline_mode<synchronous>, transform_indices = @transform_7, window_bounds = array<i64: 4, 1, 32>}, {pipeline_mode = #tpu.pipeline_mode<synchronous>, transform_indices = @transform_8, window_bounds = array<i64: 32, 128>}, {pipeline_mode = #tpu.pipeline_mode<synchronous>, transform_indices = @transform_9, window_bounds = array<i64: 1, 128>}, {transform_indices = @transform_10, window_bounds = array<i64: 512, 128>}, {transform_indices = @transform_11, window_bounds = array<i64: 512, 128>}]} {
    %c0 = arith.constant 0 : index
    %c0_0 = arith.constant 0 : index
    %0 = vector.load %arg2[%c0, %c0_0] : memref<512x128xf32, #tpu.memory_space<vmem>>, vector<512x128xf32>
    %c0_1 = arith.constant 0 : index
    %c0_2 = arith.constant 0 : index
    %1 = vector.load %arg3[%c0_1, %c0_2] : memref<128x32xf32, #tpu.memory_space<vmem>>, vector<128x32xf32>
    %c0_3 = arith.constant 0 : index
    %c0_4 = arith.constant 0 : index
    %2 = vector.load %arg4[%c0_3, %c0_4] : memref<1x32xf32, #tpu.memory_space<vmem>>, vector<1x32xf32>
    %c0_5 = arith.constant 0 : index
    %c0_6 = arith.constant 0 : index
    %3 = vector.load %arg9[%c0_5, %c0_6] : memref<32x128xf32, #tpu.memory_space<vmem>>, vector<32x128xf32>
    %c0_7 = arith.constant 0 : index
    %c0_8 = arith.constant 0 : index
    %4 = vector.load %arg10[%c0_7, %c0_8] : memref<1x128xf32, #tpu.memory_space<vmem>>, vector<1x128xf32>
    %cst = arith.constant dense<0.000000e+00> : vector<512x32xf32>
    %5 = tpu.matmul %0, %1, %cst {dimension_numbers = #tpu.dot_dimension_numbers<[1], [0], [0], [1], [0, 0, 1, 1], [], []>} : vector<512x128xf32>, vector<128x32xf32>, vector<512x32xf32> -> vector<512x32xf32>
    %6 = vector.broadcast %2 : vector<1x32xf32> to vector<512x32xf32>
    %7 = arith.addf %5, %6 : vector<512x32xf32>
    %cst_9 = arith.constant 0.000000e+00 : f32
    %8 = vector.broadcast %cst_9 : f32 to vector<512x32xf32>
    %9 = arith.maximumf %7, %8 : vector<512x32xf32>
    %c0_10 = arith.constant 0 : index
    %c0_11 = arith.constant 0 : index
    %c0_12 = arith.constant 0 : index
    %10 = vector.load %arg5[%c0_10, %c0_11, %c0_12] : memref<4x32x32xf32, #tpu.memory_space<vmem>>, vector<1x32x32xf32>
    %11 = vector.shape_cast %10 : vector<1x32x32xf32> to vector<32x32xf32>
    %cst_13 = arith.constant dense<0.000000e+00> : vector<512x32xf32>
    %12 = tpu.matmul %9, %11, %cst_13 {dimension_numbers = #tpu.dot_dimension_numbers<[1], [0], [0], [1], [0, 0, 1, 1], [], []>} : vector<512x32xf32>, vector<32x32xf32>, vector<512x32xf32> -> vector<512x32xf32>
    %c0_14 = arith.constant 0 : index
    %c0_15 = arith.constant 0 : index
    %c0_16 = arith.constant 0 : index
    %13 = vector.load %arg6[%c0_14, %c0_15, %c0_16] : memref<4x1x32xf32, #tpu.memory_space<vmem>>, vector<1x1x32xf32>
    %14 = vector.shape_cast %13 : vector<1x1x32xf32> to vector<1x32xf32>
    %15 = vector.broadcast %14 : vector<1x32xf32> to vector<512x32xf32>
    %16 = arith.addf %12, %15 : vector<512x32xf32>
    %cst_17 = arith.constant 0.000000e+00 : f32
    %17 = vector.broadcast %cst_17 : f32 to vector<512x32xf32>
    %18 = arith.maximumf %16, %17 : vector<512x32xf32>
    %c0_18 = arith.constant 0 : index
    %c0_19 = arith.constant 0 : index
    %c0_20 = arith.constant 0 : index
    %19 = vector.load %arg7[%c0_18, %c0_19, %c0_20] : memref<4x32x32xf32, #tpu.memory_space<vmem>>, vector<1x32x32xf32>
    %20 = vector.shape_cast %19 : vector<1x32x32xf32> to vector<32x32xf32>
    %cst_21 = arith.constant dense<0.000000e+00> : vector<512x32xf32>
    %21 = tpu.matmul %18, %20, %cst_21 {dimension_numbers = #tpu.dot_dimension_numbers<[1], [0], [0], [1], [0, 0, 1, 1], [], []>} : vector<512x32xf32>, vector<32x32xf32>, vector<512x32xf32> -> vector<512x32xf32>
    %22 = arith.addf %9, %21 : vector<512x32xf32>
    %c0_22 = arith.constant 0 : index
    %c0_23 = arith.constant 0 : index
    %c0_24 = arith.constant 0 : index
    %23 = vector.load %arg8[%c0_22, %c0_23, %c0_24] : memref<4x1x32xf32, #tpu.memory_space<vmem>>, vector<1x1x32xf32>
    %24 = vector.shape_cast %23 : vector<1x1x32xf32> to vector<1x32xf32>
    %25 = vector.broadcast %24 : vector<1x32xf32> to vector<512x32xf32>
    %26 = arith.addf %22, %25 : vector<512x32xf32>
    %c1 = arith.constant 1 : index
    %c0_25 = arith.constant 0 : index
    %c0_26 = arith.constant 0 : index
    %27 = vector.load %arg5[%c1, %c0_25, %c0_26] : memref<4x32x32xf32, #tpu.memory_space<vmem>>, vector<1x32x32xf32>
    %28 = vector.shape_cast %27 : vector<1x32x32xf32> to vector<32x32xf32>
    %cst_27 = arith.constant dense<0.000000e+00> : vector<512x32xf32>
    %29 = tpu.matmul %26, %28, %cst_27 {dimension_numbers = #tpu.dot_dimension_numbers<[1], [0], [0], [1], [0, 0, 1, 1], [], []>} : vector<512x32xf32>, vector<32x32xf32>, vector<512x32xf32> -> vector<512x32xf32>
    %c1_28 = arith.constant 1 : index
    %c0_29 = arith.constant 0 : index
    %c0_30 = arith.constant 0 : index
    %30 = vector.load %arg6[%c1_28, %c0_29, %c0_30] : memref<4x1x32xf32, #tpu.memory_space<vmem>>, vector<1x1x32xf32>
    %31 = vector.shape_cast %30 : vector<1x1x32xf32> to vector<1x32xf32>
    %32 = vector.broadcast %31 : vector<1x32xf32> to vector<512x32xf32>
    %33 = arith.addf %29, %32 : vector<512x32xf32>
    %cst_31 = arith.constant 0.000000e+00 : f32
    %34 = vector.broadcast %cst_31 : f32 to vector<512x32xf32>
    %35 = arith.maximumf %33, %34 : vector<512x32xf32>
    %c1_32 = arith.constant 1 : index
    %c0_33 = arith.constant 0 : index
    %c0_34 = arith.constant 0 : index
    %36 = vector.load %arg7[%c1_32, %c0_33, %c0_34] : memref<4x32x32xf32, #tpu.memory_space<vmem>>, vector<1x32x32xf32>
    %37 = vector.shape_cast %36 : vector<1x32x32xf32> to vector<32x32xf32>
    %cst_35 = arith.constant dense<0.000000e+00> : vector<512x32xf32>
    %38 = tpu.matmul %35, %37, %cst_35 {dimension_numbers = #tpu.dot_dimension_numbers<[1], [0], [0], [1], [0, 0, 1, 1], [], []>} : vector<512x32xf32>, vector<32x32xf32>, vector<512x32xf32> -> vector<512x32xf32>
    %39 = arith.addf %26, %38 : vector<512x32xf32>
    %c1_36 = arith.constant 1 : index
    %c0_37 = arith.constant 0 : index
    %c0_38 = arith.constant 0 : index
    %40 = vector.load %arg8[%c1_36, %c0_37, %c0_38] : memref<4x1x32xf32, #tpu.memory_space<vmem>>, vector<1x1x32xf32>
    %41 = vector.shape_cast %40 : vector<1x1x32xf32> to vector<1x32xf32>
    %42 = vector.broadcast %41 : vector<1x32xf32> to vector<512x32xf32>
    %43 = arith.addf %39, %42 : vector<512x32xf32>
    %c2 = arith.constant 2 : index
    %c0_39 = arith.constant 0 : index
    %c0_40 = arith.constant 0 : index
    %44 = vector.load %arg5[%c2, %c0_39, %c0_40] : memref<4x32x32xf32, #tpu.memory_space<vmem>>, vector<1x32x32xf32>
    %45 = vector.shape_cast %44 : vector<1x32x32xf32> to vector<32x32xf32>
    %cst_41 = arith.constant dense<0.000000e+00> : vector<512x32xf32>
    %46 = tpu.matmul %43, %45, %cst_41 {dimension_numbers = #tpu.dot_dimension_numbers<[1], [0], [0], [1], [0, 0, 1, 1], [], []>} : vector<512x32xf32>, vector<32x32xf32>, vector<512x32xf32> -> vector<512x32xf32>
    %c2_42 = arith.constant 2 : index
    %c0_43 = arith.constant 0 : index
    %c0_44 = arith.constant 0 : index
    %47 = vector.load %arg6[%c2_42, %c0_43, %c0_44] : memref<4x1x32xf32, #tpu.memory_space<vmem>>, vector<1x1x32xf32>
    %48 = vector.shape_cast %47 : vector<1x1x32xf32> to vector<1x32xf32>
    %49 = vector.broadcast %48 : vector<1x32xf32> to vector<512x32xf32>
    %50 = arith.addf %46, %49 : vector<512x32xf32>
    %cst_45 = arith.constant 0.000000e+00 : f32
    %51 = vector.broadcast %cst_45 : f32 to vector<512x32xf32>
    %52 = arith.maximumf %50, %51 : vector<512x32xf32>
    %c2_46 = arith.constant 2 : index
    %c0_47 = arith.constant 0 : index
    %c0_48 = arith.constant 0 : index
    %53 = vector.load %arg7[%c2_46, %c0_47, %c0_48] : memref<4x32x32xf32, #tpu.memory_space<vmem>>, vector<1x32x32xf32>
    %54 = vector.shape_cast %53 : vector<1x32x32xf32> to vector<32x32xf32>
    %cst_49 = arith.constant dense<0.000000e+00> : vector<512x32xf32>
    %55 = tpu.matmul %52, %54, %cst_49 {dimension_numbers = #tpu.dot_dimension_numbers<[1], [0], [0], [1], [0, 0, 1, 1], [], []>} : vector<512x32xf32>, vector<32x32xf32>, vector<512x32xf32> -> vector<512x32xf32>
    %56 = arith.addf %43, %55 : vector<512x32xf32>
    %c2_50 = arith.constant 2 : index
    %c0_51 = arith.constant 0 : index
    %c0_52 = arith.constant 0 : index
    %57 = vector.load %arg8[%c2_50, %c0_51, %c0_52] : memref<4x1x32xf32, #tpu.memory_space<vmem>>, vector<1x1x32xf32>
    %58 = vector.shape_cast %57 : vector<1x1x32xf32> to vector<1x32xf32>
    %59 = vector.broadcast %58 : vector<1x32xf32> to vector<512x32xf32>
    %60 = arith.addf %56, %59 : vector<512x32xf32>
    %c3 = arith.constant 3 : index
    %c0_53 = arith.constant 0 : index
    %c0_54 = arith.constant 0 : index
    %61 = vector.load %arg5[%c3, %c0_53, %c0_54] : memref<4x32x32xf32, #tpu.memory_space<vmem>>, vector<1x32x32xf32>
    %62 = vector.shape_cast %61 : vector<1x32x32xf32> to vector<32x32xf32>
    %cst_55 = arith.constant dense<0.000000e+00> : vector<512x32xf32>
    %63 = tpu.matmul %60, %62, %cst_55 {dimension_numbers = #tpu.dot_dimension_numbers<[1], [0], [0], [1], [0, 0, 1, 1], [], []>} : vector<512x32xf32>, vector<32x32xf32>, vector<512x32xf32> -> vector<512x32xf32>
    %c3_56 = arith.constant 3 : index
    %c0_57 = arith.constant 0 : index
    %c0_58 = arith.constant 0 : index
    %64 = vector.load %arg6[%c3_56, %c0_57, %c0_58] : memref<4x1x32xf32, #tpu.memory_space<vmem>>, vector<1x1x32xf32>
    %65 = vector.shape_cast %64 : vector<1x1x32xf32> to vector<1x32xf32>
    %66 = vector.broadcast %65 : vector<1x32xf32> to vector<512x32xf32>
    %67 = arith.addf %63, %66 : vector<512x32xf32>
    %cst_59 = arith.constant 0.000000e+00 : f32
    %68 = vector.broadcast %cst_59 : f32 to vector<512x32xf32>
    %69 = arith.maximumf %67, %68 : vector<512x32xf32>
    %c3_60 = arith.constant 3 : index
    %c0_61 = arith.constant 0 : index
    %c0_62 = arith.constant 0 : index
    %70 = vector.load %arg7[%c3_60, %c0_61, %c0_62] : memref<4x32x32xf32, #tpu.memory_space<vmem>>, vector<1x32x32xf32>
    %71 = vector.shape_cast %70 : vector<1x32x32xf32> to vector<32x32xf32>
    %cst_63 = arith.constant dense<0.000000e+00> : vector<512x32xf32>
    %72 = tpu.matmul %69, %71, %cst_63 {dimension_numbers = #tpu.dot_dimension_numbers<[1], [0], [0], [1], [0, 0, 1, 1], [], []>} : vector<512x32xf32>, vector<32x32xf32>, vector<512x32xf32> -> vector<512x32xf32>
    %73 = arith.addf %60, %72 : vector<512x32xf32>
    %c3_64 = arith.constant 3 : index
    %c0_65 = arith.constant 0 : index
    %c0_66 = arith.constant 0 : index
    %74 = vector.load %arg8[%c3_64, %c0_65, %c0_66] : memref<4x1x32xf32, #tpu.memory_space<vmem>>, vector<1x1x32xf32>
    %75 = vector.shape_cast %74 : vector<1x1x32xf32> to vector<1x32xf32>
    %76 = vector.broadcast %75 : vector<1x32xf32> to vector<512x32xf32>
    %77 = arith.addf %73, %76 : vector<512x32xf32>
    %cst_67 = arith.constant dense<0.000000e+00> : vector<512x128xf32>
    %78 = tpu.matmul %77, %3, %cst_67 {dimension_numbers = #tpu.dot_dimension_numbers<[1], [0], [0], [1], [0, 0, 1, 1], [], []>} : vector<512x32xf32>, vector<32x128xf32>, vector<512x128xf32> -> vector<512x128xf32>
    %79 = vector.broadcast %4 : vector<1x128xf32> to vector<512x128xf32>
    %80 = arith.addf %78, %79 : vector<512x128xf32>
    %81 = tpu.concatenate %26, %43, %60, %77 in 1 : vector<512x32xf32>, vector<512x32xf32>, vector<512x32xf32>, vector<512x32xf32> -> vector<512x128xf32>
    %c0_68 = arith.constant 0 : index
    %c0_69 = arith.constant 0 : index
    %82 = vector.load %arg12[%c0_68, %c0_69] : memref<512x128xf32, #tpu.memory_space<vmem>>, vector<512x128xf32>
    tpu.vector_store %arg12[%c0_68, %c0_69], %81 {strides = array<i32>} : memref<512x128xf32, #tpu.memory_space<vmem>>, vector<512x128xf32>,
    %c0_70 = arith.constant 0 : index
    %83 = memref.load %arg1[%c0_70] : memref<3xf32, #tpu.memory_space<smem>>
    %84 = vector.broadcast %83 : f32 to vector<512x128xf32>
    %85 = arith.mulf %84, %0 : vector<512x128xf32>
    %c1_71 = arith.constant 1 : index
    %86 = memref.load %arg1[%c1_71] : memref<3xf32, #tpu.memory_space<smem>>
    %87 = vector.broadcast %86 : f32 to vector<512x128xf32>
    %88 = arith.mulf %87, %80 : vector<512x128xf32>
    %89 = arith.addf %85, %88 : vector<512x128xf32>
    %c0_72 = arith.constant 0 : index
    %c0_73 = arith.constant 0 : index
    %90 = vector.load %arg11[%c0_72, %c0_73] : memref<512x128xf32, #tpu.memory_space<vmem>>, vector<512x128xf32>
    tpu.vector_store %arg11[%c0_72, %c0_73], %89 {strides = array<i32>} : memref<512x128xf32, #tpu.memory_space<vmem>>, vector<512x128xf32>,
    return
  }
  func.func @transform_0(%arg0: i32) -> i32 {
    %c0_i32 = arith.constant 0 : i32
    %c0_i32_0 = arith.constant 0 : i32
    return %c0_i32 : i32
  }
  func.func @transform_1(%arg0: i32) -> (i32, i32) {
    %c0_i32 = arith.constant 0 : i32
    %c0_i32_0 = arith.constant 0 : i32
    return %arg0, %c0_i32 : i32, i32
  }
  func.func @transform_2(%arg0: i32) -> (i32, i32) {
    %c0_i32 = arith.constant 0 : i32
    %c0_i32_0 = arith.constant 0 : i32
    %c0_i32_1 = arith.constant 0 : i32
    return %c0_i32, %c0_i32_0 : i32, i32
  }
  func.func @transform_3(%arg0: i32) -> (i32, i32) {
    %c0_i32 = arith.constant 0 : i32
    %c0_i32_0 = arith.constant 0 : i32
    %c0_i32_1 = arith.constant 0 : i32
    return %c0_i32, %c0_i32_0 : i32, i32
  }
  func.func @transform_4(%arg0: i32) -> (i32, i32, i32) {
    %c0_i32 = arith.constant 0 : i32
    %c0_i32_0 = arith.constant 0 : i32
    %c0_i32_1 = arith.constant 0 : i32
    %c0_i32_2 = arith.constant 0 : i32
    return %c0_i32, %c0_i32_0, %c0_i32_1 : i32, i32, i32
  }
  func.func @transform_5(%arg0: i32) -> (i32, i32, i32) {
    %c0_i32 = arith.constant 0 : i32
    %c0_i32_0 = arith.constant 0 : i32
    %c0_i32_1 = arith.constant 0 : i32
    %c0_i32_2 = arith.constant 0 : i32
    return %c0_i32, %c0_i32_0, %c0_i32_1 : i32, i32, i32
  }
  func.func @transform_6(%arg0: i32) -> (i32, i32, i32) {
    %c0_i32 = arith.constant 0 : i32
    %c0_i32_0 = arith.constant 0 : i32
    %c0_i32_1 = arith.constant 0 : i32
    %c0_i32_2 = arith.constant 0 : i32
    return %c0_i32, %c0_i32_0, %c0_i32_1 : i32, i32, i32
  }
  func.func @transform_7(%arg0: i32) -> (i32, i32, i32) {
    %c0_i32 = arith.constant 0 : i32
    %c0_i32_0 = arith.constant 0 : i32
    %c0_i32_1 = arith.constant 0 : i32
    %c0_i32_2 = arith.constant 0 : i32
    return %c0_i32, %c0_i32_0, %c0_i32_1 : i32, i32, i32
  }
  func.func @transform_8(%arg0: i32) -> (i32, i32) {
    %c0_i32 = arith.constant 0 : i32
    %c0_i32_0 = arith.constant 0 : i32
    %c0_i32_1 = arith.constant 0 : i32
    return %c0_i32, %c0_i32_0 : i32, i32
  }
  func.func @transform_9(%arg0: i32) -> (i32, i32) {
    %c0_i32 = arith.constant 0 : i32
    %c0_i32_0 = arith.constant 0 : i32
    %c0_i32_1 = arith.constant 0 : i32
    return %c0_i32, %c0_i32_0 : i32, i32
  }
  func.func @transform_10(%arg0: i32) -> (i32, i32) {
    %c0_i32 = arith.constant 0 : i32
    %c0_i32_0 = arith.constant 0 : i32
    return %arg0, %c0_i32 : i32, i32
  }
  func.func @transform_11(%arg0: i32) -> (i32, i32) {
    %c0_i32 = arith.constant 0 : i32
    %c0_i32_0 = arith.constant 0 : i32
    return %arg0, %c0_i32 : i32, i32
  }
}

</mosaic_0001>

<bundles_post_ra>
// kernel: custom-call.1
= control target key start
LH: loop header
LB: loop body
LE: loop exit
PB: predicated region body
PF: predicated region fallthrough
CT: control target
= control target key end

     0   :  { %s6_s0 = inlined_call_operand.hbm [shape: f32[4,512,128], index: 0, kind: output, shape index: {}]  }

// kernel: closed_call.10
= control target key start
LH: loop header
LB: loop body
LE: loop exit
PB: predicated region body
PF: predicated region fallthrough
CT: control target
= control target key end

     0   :  { %17 = vsyncpa [#allocation3], 0  ;;  %s6695_s20 = smov [#allocation2]   ;;  %s11686_s0 = inlined_call_operand.vmem [shape: f32[3], index: 0, kind: input, shape index: {}]   ;;  %s11687_s1 = inlined_call_operand.vmem [shape: f32[512,128], index: 1, kind: input, shape index: {}]   ;;  %s11688_s2 = inlined_call_operand.vmem [shape: f32[128,32], index: 2, kind: input, shape index: {}]   ;;  %s11689_s3 = inlined_call_operand.vmem [shape: f32[1,32], index: 3, kind: input, shape index: {}]   ;;  %s11690_s4 = inlined_call_operand.vmem [shape: f32[4,32,32], index: 4, kind: input, shape index: {}]   ;;  %s11691_s5 = inlined_call_operand.vmem [shape: f32[4,1,32], index: 5, kind: input, shape index: {}]   ;;  %s11692_s6 = inlined_call_operand.vmem [shape: f32[4,32,32], index: 6, kind: input, shape index: {}]   ;;  %s11693_s7 = inlined_call_operand.vmem [shape: f32[4,1,32], index: 7, kind: input, shape index: {}]   ;;  %s11694_s8 = inlined_call_operand.vmem [shape: f32[32,128], index: 8, kind: input, shape index: {}]   ;;  %s11695_s9 = inlined_call_operand.vmem [shape: f32[1,128], index: 9, kind: input, shape index: {}]   ;;  %s11696_s10 = inlined_call_operand.vmem [shape: f32[512,128], index: 10, kind: output, shape index: {0}]   ;;  %s11697_s11 = inlined_call_operand.vmem [shape: f32[512,128], index: 11, kind: output, shape index: {1}]  }
   0x1   :  { %s23_s19 = sshll.u32 %s11686_s0, 4  ;;  %s24_s19 = int_to_ptr.vmem [resolvable:$true] %s23_s19 }
   0x2   :  { %26 = dma.vmem_to_smem %s24_s19, 16, %s6695_s20, [#allocation3]  }
   0x3   :  { %6693 = dma.done.wait [#allocation3], 16  }
   0x4   :  { %6694 = vsyncadd [#allocation3], 4294967280 }
   0x5   :  { %49 = sfence }
   0x6   :  { %v129_v0 = vld [vmem:[%s11688_s2 + $0x78] sm:$0xff]  ;;  %v128_v1 = vld [vmem:[%s11688_s2 + $0x70] sm:$0xff]  ;;  %v127_v2 = vld [vmem:[%s11688_s2 + $0x68] sm:$0xff]  ;;  %vm420_vm0 = vcmask 261120   ;;  %s6696_s23 = smov 32   ;;  %s6697_s13 = smov 64  }
   0x7   :  { %139 = vmatpush.msra.mxu0 %v129_v0  ;;  %v126_v3 = vld [vmem:[%s11688_s2 + $0x60] sm:$0xff]  ;;  %v125_v4 = vld [vmem:[%s11688_s2 + $0x58] sm:$0xff]  ;;  %v124_v5 = vld [vmem:[%s11688_s2 + $0x50] sm:$0xff]  ;;  %s6698_s19 = smov 96   ;;  %vm5574_vm1 = vcmask 785408   ;;  %vm5509_vm2 = vcmask 523264  }
   0x8   :  { %v123_v6 = vld [vmem:[%s11688_s2 + $0x48] sm:$0xff]  ;;  %v122_v7 = vld [vmem:[%s11688_s2 + $0x40] sm:$0xff]  ;;  %v121_v8 = vld [vmem:[%s11688_s2 + $0x38] sm:$0xff]  ;;  %s5703_s0 = sld [smem:[#allocation2]] }
   0x9   :  { %140 = vmatpush.msra.mxu0 %v128_v1  ;;  %v120_v9 = vld [vmem:[%s11688_s2 + $0x30] sm:$0xff]  ;;  %v119_v10 = vld [vmem:[%s11688_s2 + $0x28] sm:$0xff]  ;;  %v118_v11 = vld [vmem:[%s11688_s2 + $0x20] sm:$0xff]  ;;  %s6578_s27 = sld [smem:[#allocation2 + $0x1]] }
   0xa   :  { %v117_v12 = vld [vmem:[%s11688_s2 + $0x18] sm:$0xff]  ;;  %v116_v13 = vld [vmem:[%s11688_s2 + $0x10] sm:$0xff]  ;;  %v115_v14 = vld [vmem:[%s11688_s2 + $0x8] sm:$0xff] }
   0xb   :  { %141 = vmatpush.msra.mxu0 %v127_v2  ;;  %v114_v15 = vld [vmem:[%s11688_s2] sm:$0xff]  ;;  %v51_v17 = vld [vmem:[%s11687_s1 + $0x8] sm:$0xff]  ;;  %v52_v18 = vld [vmem:[%s11687_s1 + $0x10] sm:$0xff] }
   0xc   :  { %v50_v16 = vld [vmem:[%s11687_s1] sm:$0xff]  ;;  %v53_v19 = vld [vmem:[%s11687_s1 + $0x18] sm:$0xff]  ;;  %v55_v21 = vld [vmem:[%s11687_s1 + $0x28] sm:$0xff] }
   0xd   :  { %142 = vmatpush.msra.mxu0 %v126_v3  ;;  %v54_v20 = vld [vmem:[%s11687_s1 + $0x20] sm:$0xff]  ;;  %v56_v22 = vld [vmem:[%s11687_s1 + $0x30] sm:$0xff]  ;;  %v57_v23 = vld [vmem:[%s11687_s1 + $0x38] sm:$0xff] }
   0xe   :  { %v58_v24 = vld [vmem:[%s11687_s1 + $0x40] sm:$0xff]  ;;  %v59_v25 = vld [vmem:[%s11687_s1 + $0x48] sm:$0xff]  ;;  %v60_v26 = vld [vmem:[%s11687_s1 + $0x50] sm:$0xff] }
   0xf   :  { %143 = vmatpush.msra.mxu0 %v125_v4  ;;  %v61_v27 = vld [vmem:[%s11687_s1 + $0x58] sm:$0xff]  ;;  %v414_v29 = vld [vmem:[%s11690_s4 + $0x10] sm:$0xff]  ;;  %v62_v30 = vld [vmem:[%s11687_s1 + $0x60] sm:$0xff] }
  0x10   :  { %v415_v28 = vld [vmem:[%s11690_s4 + $0x18] sm:$0xff]  ;;  %v413_v31 = vld [vmem:[%s11690_s4 + $0x8] sm:$0xff]  ;;  %v412_v32 = vld [vmem:[%s11690_s4] sm:$0xff] }
  0x11   :  { %144 = vmatpush.msra.mxu0 %v124_v5  ;;  %625 = vmatpush.msra.mxu1 %v415_v28  ;;  %v63_v33 = vld [vmem:[%s11687_s1 + $0x68] sm:$0xff]  ;;  %v889_v34 = vld [vmem:[%s11692_s6 + $0x18] sm:$0xff]  ;;  %v64_v35 = vld [vmem:[%s11687_s1 + $0x70] sm:$0xff] }
  0x12   :  { %6579 = vmatpush.msra.mxu3 %v415_v28  ;;  %6583 = vmatpush.msra.mxu2 %v889_v34  ;;  %v65_v36 = vld [vmem:[%s11687_s1 + $0x78] sm:$0xff]  ;;  %v6876_v37 = vld [vmem:[%s11689_s3] ss:$0 sm:$0xff]  ;;  %v67_v43 = vld [vmem:[%s11687_s1 + $0x88] sm:$0xff] }
  0x13   :  { %145 = vmatpush.msra.mxu0 %v123_v6  ;;  %626 = vmatpush.msra.mxu1 %v414_v29  ;;  %v66_v39 = vld [vmem:[%s11687_s1 + $0x80] sm:$0xff]  ;;  %v68_v47 = vld [vmem:[%s11687_s1 + $0x90] sm:$0xff]  ;;  %v69_v51 = vld [vmem:[%s11687_s1 + $0x98] sm:$0xff] }
  0x14   :  { %6580 = vmatpush.msra.mxu3 %v414_v29  ;;  %v70_v55 = vld [vmem:[%s11687_s1 + $0xa0] sm:$0xff]  ;;  %v71_v59 = vld [vmem:[%s11687_s1 + $0xa8] sm:$0xff]  ;;  %v72_v63 = vld [vmem:[%s11687_s1 + $0xb0] sm:$0xff] }
  0x15   :  { %146 = vmatpush.msra.mxu0 %v122_v7  ;;  %627 = vmatpush.msra.mxu1 %v413_v31  ;;  %v73_v3 = vld [vmem:[%s11687_s1 + $0xb8] sm:$0xff]  ;;  %v74_v7 = vld [vmem:[%s11687_s1 + $0xc0] sm:$0xff] }
  0x16   :  { %6581 = vmatpush.msra.mxu3 %v413_v31 }
  0x17   :  { %147 = vmatpush.msra.mxu0 %v121_v8  ;;  %628 = vmatpush.msra.mxu1 %v412_v32 }
  0x18   :  { %6582 = vmatpush.msra.mxu3 %v412_v32  ;;  %v80_v32 = vld [vmem:[%s11687_s1 + $0xf0] sm:$0xff] }
  0x19   :  { %148 = vmatpush.msra.mxu0 %v120_v9 }
  0x1a   :  { %6584 = vmatpush.msrb.mxu3 %v889_v34 }
  0x1b   :  { %149 = vmatpush.msra.mxu0 %v119_v10 }
  0x1d   :  { %150 = vmatpush.msra.mxu0 %v118_v11  ;;  %v75_v11 = vld [vmem:[%s11687_s1 + $0xc8] sm:$0xff] }
  0x1f   :  { %151 = vmatpush.msra.mxu0 %v117_v12 }
  0x21   :  { %152 = vmatpush.msra.mxu0 %v116_v13 }
  0x23   :  { %153 = vmatpush.msra.mxu0 %v115_v14 }
  0x25   :  { %154 = vmatpush.msra.mxu0 %v114_v15  ;;  %v76_v15 = vld [vmem:[%s11687_s1 + $0xd0] sm:$0xff] }
  0x26   :  { %155 = vmatmul.f32.vlgmr.msra.gmra.mxu0 %v50_v16 }
  0x27   :  { %1094 = vmatpush.msrb.mxu0 %v889_v34 }
  0x2e   :  { %158 = vmatmul.f32.gmra.mxu0 %v51_v17 }
  0x36   :  { %161 = vmatmul.f32.gmra.mxu0 %v52_v18 }
  0x3e   :  { %164 = vmatmul.f32.gmra.mxu0 %v53_v19  ;;  %v77_v19 = vld [vmem:[%s11687_s1 + $0xd8] sm:$0xff] }
  0x46   :  { %167 = vmatmul.f32.gmra.mxu0 %v54_v20 }
  0x4e   :  { %170 = vmatmul.f32.gmra.mxu0 %v55_v21 }
  0x56   :  { %173 = vmatmul.f32.gmra.mxu0 %v56_v22 }
  0x5e   :  { %176 = vmatmul.f32.gmra.mxu0 %v57_v23  ;;  %v78_v23 = vld [vmem:[%s11687_s1 + $0xe0] sm:$0xff] }
  0x66   :  { %179 = vmatmul.f32.gmra.mxu0 %v58_v24 }
  0x6e   :  { %182 = vmatmul.f32.gmra.mxu0 %v59_v25 }
  0x76   :  { %185 = vmatmul.f32.gmra.mxu0 %v60_v26 }
  0x7e   :  { %188 = vmatmul.f32.gmra.mxu0 %v61_v27  ;;  %v79_v27 = vld [vmem:[%s11687_s1 + $0xe8] sm:$0xff] }
  0x86   :  { %191 = vmatmul.f32.gmra.mxu0 %v62_v30  ;;  %v888_v30 = vld [vmem:[%s11692_s6 + $0x10] sm:$0xff] }
  0x87   :  { %1095 = vmatpush.msrb.mxu0 %v888_v30  ;;  %6585 = vmatpush.msra.mxu2 %v888_v30 }
  0x88   :  { %6586 = vmatpush.msrb.mxu3 %v888_v30  ;;  %v87_v30 = vld [vmem:[%s11687_s1 + $0x128] sm:$0xff] }
  0x8e   :  { %194 = vmatmul.f32.gmra.mxu0 %v63_v33 }
  0x96   :  { %197 = vmatmul.f32.gmra.mxu0 %v64_v35 }
  0x9e   :  { %200 = vmatmul.f32.gmra.mxu0 %v65_v36  ;;  %v81_v36 = vld [vmem:[%s11687_s1 + $0xf8] sm:$0xff] }
  0xa3   :  { %v156_v38 = vpop.f32.mrf.mxu0 }
  0xa4   :  { %v6882_v40 = vadd.f32 %v6876_v37, %v156_v38 }
  0xa6   :  { %v11732_v41 = vmax.f32 %v6882_v40, 0.0  ;;  %203 = vmatmul.f32.gmra.mxu0 %v66_v39 }
  0xa8   :  { %5972 = vmatmul.msk.f32.vlgmr.msra.gmra.mxu1 %vm420_vm0, %v11732_v41 }
  0xab   :  { %v159_v42 = vpop.f32.mrf.mxu0 }
  0xac   :  { %v6892_v44 = vadd.f32 %v6876_v37, %v159_v42 }
  0xae   :  { %v11731_v45 = vmax.f32 %v6892_v44, 0.0  ;;  %206 = vmatmul.f32.gmra.mxu0 %v67_v43  ;;  %v82_v43 = vld [vmem:[%s11687_s1 + $0x100] sm:$0xff] }
  0xb0   :  { %5973 = vmatmul.msk.f32.gmra.mxu1 %vm420_vm0, %v11731_v45 }
  0xb3   :  { %v162_v46 = vpop.f32.mrf.mxu0 }
  0xb4   :  { %v6902_v48 = vadd.f32 %v6876_v37, %v162_v46 }
  0xb6   :  { %v11729_v49 = vmax.f32 %v6902_v48, 0.0  ;;  %209 = vmatmul.f32.gmra.mxu0 %v68_v47 }
  0xb8   :  { %5974 = vmatmul.msk.f32.gmra.mxu1 %vm420_vm0, %v11729_v49 }
  0xbb   :  { %v165_v50 = vpop.f32.mrf.mxu0 }
  0xbc   :  { %v6912_v52 = vadd.f32 %v6876_v37, %v165_v50 }
  0xbe   :  { %v11728_v53 = vmax.f32 %v6912_v52, 0.0  ;;  %212 = vmatmul.f32.gmra.mxu0 %v69_v51 }
  0xc0   :  { %5975 = vmatmul.msk.f32.gmra.mxu1 %vm420_vm0, %v11728_v53 }
  0xc3   :  { %v168_v54 = vpop.f32.mrf.mxu0 }
  0xc4   :  { %v6922_v56 = vadd.f32 %v6876_v37, %v168_v54  ;;  %v83_v54 = vld [vmem:[%s11687_s1 + $0x108] sm:$0xff] }
  0xc6   :  { %v11726_v57 = vmax.f32 %v6922_v56, 0.0  ;;  %215 = vmatmul.f32.gmra.mxu0 %v70_v55 }
  0xc8   :  { %5976 = vmatmul.msk.f32.gmra.mxu1 %vm420_vm0, %v11726_v57 }
  0xcb   :  { %v171_v58 = vpop.f32.mrf.mxu0 }
  0xcc   :  { %v6932_v60 = vadd.f32 %v6876_v37, %v171_v58 }
  0xce   :  { %v11725_v61 = vmax.f32 %v6932_v60, 0.0  ;;  %218 = vmatmul.f32.gmra.mxu0 %v71_v59 }
  0xd0   :  { %5977 = vmatmul.msk.f32.gmra.mxu1 %vm420_vm0, %v11725_v61 }
  0xd3   :  { %v174_v62 = vpop.f32.mrf.mxu0 }
  0xd4   :  { %v6942_v0 = vadd.f32 %v6876_v37, %v174_v62 }
  0xd6   :  { %v11723_v1 = vmax.f32 %v6942_v0, 0.0  ;;  %221 = vmatmul.f32.gmra.mxu0 %v72_v63  ;;  %v84_v63 = vld [vmem:[%s11687_s1 + $0x110] sm:$0xff] }
  0xd8   :  { %5978 = vmatmul.msk.f32.gmra.mxu1 %vm420_vm0, %v11723_v1 }
  0xdb   :  { %v177_v2 = vpop.f32.mrf.mxu0 }
  0xdc   :  { %v6952_v4 = vadd.f32 %v6876_v37, %v177_v2 }
  0xde   :  { %v11722_v5 = vmax.f32 %v6952_v4, 0.0  ;;  %224 = vmatmul.f32.gmra.mxu0 %v73_v3 }
  0xe0   :  { %5979 = vmatmul.msk.f32.gmra.mxu1 %vm420_vm0, %v11722_v5 }
  0xe3   :  { %v180_v6 = vpop.f32.mrf.mxu0 }
  0xe4   :  { %v6962_v8 = vadd.f32 %v6876_v37, %v180_v6 }
  0xe6   :  { %v11720_v9 = vmax.f32 %v6962_v8, 0.0  ;;  %227 = vmatmul.f32.gmra.mxu0 %v74_v7 }
  0xe8   :  { %5980 = vmatmul.msk.f32.gmra.mxu1 %vm420_vm0, %v11720_v9 }
  0xeb   :  { %v183_v10 = vpop.f32.mrf.mxu0 }
  0xec   :  { %v6972_v12 = vadd.f32 %v6876_v37, %v183_v10  ;;  %v85_v10 = vld [vmem:[%s11687_s1 + $0x118] sm:$0xff] }
  0xee   :  { %v11719_v13 = vmax.f32 %v6972_v12, 0.0  ;;  %230 = vmatmul.f32.gmra.mxu0 %v75_v11 }
  0xf0   :  { %5981 = vmatmul.msk.f32.gmra.mxu1 %vm420_vm0, %v11719_v13 }
  0xf3   :  { %v186_v14 = vpop.f32.mrf.mxu0 }
  0xf4   :  { %v6982_v16 = vadd.f32 %v6876_v37, %v186_v14 }
  0xf6   :  { %v11717_v17 = vmax.f32 %v6982_v16, 0.0  ;;  %233 = vmatmul.f32.gmra.mxu0 %v76_v15 }
  0xf8   :  { %5982 = vmatmul.msk.f32.gmra.mxu1 %vm420_vm0, %v11717_v17 }
  0xfb   :  { %v189_v18 = vpop.f32.mrf.mxu0 }
  0xfc   :  { %v6992_v20 = vadd.f32 %v6876_v37, %v189_v18 }
  0xfe   :  { %v11716_v21 = vmax.f32 %v6992_v20, 0.0  ;;  %236 = vmatmul.f32.gmra.mxu0 %v77_v19  ;;  %v86_v19 = vld [vmem:[%s11687_s1 + $0x120] sm:$0xff] }
 0x100   :  { %5983 = vmatmul.msk.f32.gmra.mxu1 %vm420_vm0, %v11716_v21 }
 0x103   :  { %v192_v22 = vpop.f32.mrf.mxu0 }
 0x104   :  { %v7002_v24 = vadd.f32 %v6876_v37, %v192_v22 }
 0x106   :  { %v11714_v25 = vmax.f32 %v7002_v24, 0.0  ;;  %239 = vmatmul.f32.gmra.mxu0 %v78_v23 }
 0x108   :  { %5984 = vmatmul.msk.f32.gmra.mxu1 %vm420_vm0, %v11714_v25 }
 0x10b   :  { %v195_v26 = vpop.f32.mrf.mxu0 }
 0x10c   :  { %v7012_v28 = vadd.f32 %v6876_v37, %v195_v26 }
 0x10e   :  { %v11713_v29 = vmax.f32 %v7012_v28, 0.0  ;;  %242 = vmatmul.f32.gmra.mxu0 %v79_v27 }
 0x110   :  { %5985 = vmatmul.msk.f32.gmra.mxu1 %vm420_vm0, %v11713_v29 }
 0x113   :  { %v198_v31 = vpop.f32.mrf.mxu0 }
 0x114   :  { %v7025_v33 = vadd.f32 %v6876_v37, %v198_v31 }
 0x116   :  { %v11711_v34 = vmax.f32 %v7025_v33, 0.0  ;;  %245 = vmatmul.f32.gmra.mxu0 %v80_v32 }
 0x118   :  { %5986 = vmatmul.msk.f32.gmra.mxu1 %vm420_vm0, %v11711_v34 }
 0x11b   :  { %v201_v35 = vpop.f32.mrf.mxu0 }
 0x11c   :  { %v7035_v38 = vadd.f32 %v6876_v37, %v201_v35 }
 0x11e   :  { %v11710_v39 = vmax.f32 %v7035_v38, 0.0  ;;  %248 = vmatmul.f32.gmra.mxu0 %v81_v36 }
 0x120   :  { %5987 = vmatmul.msk.f32.gmra.mxu1 %vm420_vm0, %v11710_v39 }
 0x123   :  { %v204_v42 = vpop.f32.mrf.mxu0 }
 0x124   :  { %v7045_v46 = vadd.f32 %v6876_v37, %v204_v42  ;;  %v88_v42 = vld [vmem:[%s11687_s1 + $0x130] sm:$0xff] }
 0x125   :  { %v7047_v47 = vpop.f32.mrf.mxu1 }
 0x126   :  { %v11708_v50 = vmax.f32 %v7045_v46, 0.0  ;;  %251 = vmatmul.f32.gmra.mxu0 %v82_v43 }
 0x128   :  { %5988 = vmatmul.msk.f32.gmra.mxu1 %vm420_vm0, %v11708_v50 }
 0x12b   :  { %v207_v51 = vpop.f32.mrf.mxu0 }
 0x12c   :  { %v7057_v55 = vadd.f32 %v6876_v37, %v207_v51 }
 0x12d   :  { %v7059_v58 = vpop.f32.mrf.mxu1 }
 0x12e   :  { %v11707_v59 = vmax.f32 %v7057_v55, 0.0  ;;  %254 = vmatmul.f32.gmra.mxu0 %v83_v54 }
 0x130   :  { %5989 = vmatmul.msk.f32.gmra.mxu1 %vm420_vm0, %v11707_v59 }
 0x133   :  { %v210_v62 = vpop.f32.mrf.mxu0 }
 0x134   :  { %v7069_v2 = vadd.f32 %v6876_v37, %v210_v62 }
 0x135   :  { %v7071_v3 = vpop.f32.mrf.mxu1 }
 0x136   :  { %v11705_v6 = vmax.f32 %v7069_v2, 0.0  ;;  %257 = vmatmul.f32.gmra.mxu0 %v84_v63  ;;  %v89_v63 = vld [vmem:[%s11687_s1 + $0x138] sm:$0xff] }
 0x138   :  { %5990 = vmatmul.msk.f32.gmra.mxu1 %vm420_vm0, %v11705_v6 }
 0x13b   :  { %v213_v7 = vpop.f32.mrf.mxu0 }
 0x13c   :  { %v7081_v11 = vadd.f32 %v6876_v37, %v213_v7 }
 0x13d   :  { %v7083_v14 = vpop.f32.mrf.mxu1 }
 0x13e   :  { %v11704_v15 = vmax.f32 %v7081_v11, 0.0  ;;  %260 = vmatmul.f32.gmra.mxu0 %v85_v10 }
 0x140   :  { %5991 = vmatmul.msk.f32.gmra.mxu1 %vm420_vm0, %v11704_v15 }
 0x143   :  { %v216_v18 = vpop.f32.mrf.mxu0 }
 0x144   :  { %v7093_v22 = vadd.f32 %v6876_v37, %v216_v18 }
 0x145   :  { %v7095_v23 = vpop.f32.mrf.mxu1 }
 0x146   :  { %11935 = vst [vmem:[#allocation5_spill] sm:$0xff] %v7093_v22  ;;  %v11702_v26 = vmax.f32 %v7093_v22, 0.0  ;;  %263 = vmatmul.f32.gmra.mxu0 %v86_v19 }
 0x148   :  { %5992 = vmatmul.msk.f32.gmra.mxu1 %vm420_vm0, %v11702_v26 }
 0x14b   :  { %v219_v27 = vpop.f32.mrf.mxu0 }
 0x14c   :  { %v7105_v31 = vadd.f32 %v6876_v37, %v219_v27  ;;  %v90_v27 = vld [vmem:[%s11687_s1 + $0x140] sm:$0xff] }
 0x14d   :  { %v7107_v32 = vpop.f32.mrf.mxu1 }
 0x14e   :  { %11936 = vst [vmem:[#allocation6_spill] sm:$0xff] %v7105_v31  ;;  %v11701_v35 = vmax.f32 %v7105_v31, 0.0  ;;  %266 = vmatmul.f32.gmra.mxu0 %v87_v30 }
 0x150   :  { %5993 = vmatmul.msk.f32.gmra.mxu1 %vm420_vm0, %v11701_v35 }
 0x153   :  { %v222_v36 = vpop.f32.mrf.mxu0 }
 0x154   :  { %v7117_v43 = vadd.f32 %v6876_v37, %v222_v36 }
 0x155   :  { %v7119_v51 = vpop.f32.mrf.mxu1 }
 0x156   :  { %11937 = vst [vmem:[#allocation7_spill] sm:$0xff] %v7117_v43  ;;  %v11699_v54 = vmax.f32 %v7117_v43, 0.0  ;;  %269 = vmatmul.f32.gmra.mxu0 %v88_v42 }
 0x158   :  { %5994 = vmatmul.msk.f32.gmra.mxu1 %vm420_vm0, %v11699_v54 }
 0x15b   :  { %v225_v62 = vpop.f32.mrf.mxu0 }
 0x15c   :  { %v7129_v7 = vadd.f32 %v6876_v37, %v225_v62 }
 0x15d   :  { %v7131_v10 = vpop.f32.mrf.mxu1 }
 0x15e   :  { %11938 = vst [vmem:[#allocation8_spill] sm:$0xff] %v7129_v7  ;;  %v11698_v18 = vmax.f32 %v7129_v7, 0.0  ;;  %272 = vmatmul.f32.gmra.mxu0 %v89_v63  ;;  %v91_v63 = vld [vmem:[%s11687_s1 + $0x148] sm:$0xff]  ;;  %v113_v7 = vld [vmem:[%s11687_s1 + $0x1f8] sm:$0xff] }
 0x160   :  { %5995 = vmatmul.msk.f32.gmra.mxu1 %vm420_vm0, %v11698_v18 }
 0x163   :  { %v228_v19 = vpop.f32.mrf.mxu0 }
 0x164   :  { %v7141_v30 = vadd.f32 %v6876_v37, %v228_v19 }
 0x165   :  { %v7143_v36 = vpop.f32.mrf.mxu1 }
 0x166   :  { %11939 = vst [vmem:[#allocation9_spill] sm:$0xff] %v7141_v30  ;;  %v11700_v42 = vmax.f32 %v7141_v30, 0.0  ;;  %275 = vmatmul.f32.gmra.mxu0 %v90_v27 }
 0x168   :  { %5996 = vmatmul.msk.f32.gmra.mxu1 %vm420_vm0, %v11700_v42  ;;  %v92_v42 = vld [vmem:[%s11687_s1 + $0x150] sm:$0xff] }
 0x16b   :  { %v231_v62 = vpop.f32.mrf.mxu0 }
 0x16c   :  { %v7153_v18 = vadd.f32 %v6876_v37, %v231_v62 }
 0x16d   :  { %v7155_v54 = vpop.f32.mrf.mxu1 }
 0x16e   :  { %11940 = vst [vmem:[#allocation10_spill] sm:$0xff] %v7153_v18  ;;  %v11703_v19 = vmax.f32 %v7153_v18, 0.0  ;;  %278 = vmatmul.f32.gmra.mxu0 %v91_v63 }
 0x170   :  { %5997 = vmatmul.msk.f32.gmra.mxu1 %vm420_vm0, %v11703_v19  ;;  %v93_v19 = vld [vmem:[%s11687_s1 + $0x158] sm:$0xff] }
 0x173   :  { %v234_v27 = vpop.f32.mrf.mxu0 }
 0x174   :  { %v7165_v35 = vadd.f32 %v6876_v37, %v234_v27 }
 0x175   :  { %v7167_v26 = vpop.f32.mrf.mxu1 }
 0x176   :  { %11941 = vst [vmem:[#allocation11_spill] sm:$0xff] %v7165_v35  ;;  %v11706_v62 = vmax.f32 %v7165_v35, 0.0  ;;  %281 = vmatmul.f32.gmra.mxu0 %v92_v42 }
 0x178   :  { %5998 = vmatmul.msk.f32.gmra.mxu1 %vm420_vm0, %v11706_v62  ;;  %v94_v62 = vld [vmem:[%s11687_s1 + $0x160] sm:$0xff] }
 0x17b   :  { %v237_v63 = vpop.f32.mrf.mxu0 }
 0x17c   :  { %v7177_v15 = vadd.f32 %v6876_v37, %v237_v63 }
 0x17d   :  { %v7179_v6 = vpop.f32.mrf.mxu1 }
 0x17e   :  { %11942 = vst [vmem:[#allocation12_spill] sm:$0xff] %v7177_v15  ;;  %v11709_v27 = vmax.f32 %v7177_v15, 0.0  ;;  %284 = vmatmul.f32.gmra.mxu0 %v93_v19 }
 0x180   :  { %5999 = vmatmul.msk.f32.gmra.mxu1 %vm420_vm0, %v11709_v27  ;;  %v95_v27 = vld [vmem:[%s11687_s1 + $0x168] sm:$0xff] }
 0x183   :  { %v240_v42 = vpop.f32.mrf.mxu0 }
 0x184   :  { %v7189_v59 = vadd.f32 %v6876_v37, %v240_v42 }
 0x185   :  { %v7191_v50 = vpop.f32.mrf.mxu1 }
 0x186   :  { %11943 = vst [vmem:[#allocation13_spill] sm:$0xff] %v7189_v59  ;;  %v11712_v63 = vmax.f32 %v7189_v59, 0.0  ;;  %287 = vmatmul.f32.gmra.mxu0 %v94_v62  ;;  %v887_v62 = vld [vmem:[%s11692_s6 + $0x8] sm:$0xff] }
 0x187   :  { %1096 = vmatpush.msrb.mxu0 %v887_v62  ;;  %6587 = vmatpush.msra.mxu2 %v887_v62 }
 0x188   :  { %6000 = vmatmul.msk.f32.gmra.mxu1 %vm420_vm0, %v11712_v63  ;;  %6588 = vmatpush.msrb.mxu3 %v887_v62  ;;  %v97_v62 = vld [vmem:[%s11687_s1 + $0x178] sm:$0xff] }
 0x18b   :  { %v243_v19 = vpop.f32.mrf.mxu0 }
 0x18c   :  { %v7201_v39 = vadd.f32 %v6876_v37, %v243_v19  ;;  %v96_v19 = vld [vmem:[%s11687_s1 + $0x170] sm:$0xff] }
 0x18d   :  { %v7203_v34 = vpop.f32.mrf.mxu1 }
 0x18e   :  { %11944 = vst [vmem:[#allocation14_spill] sm:$0xff] %v7201_v39  ;;  %v11715_v42 = vmax.f32 %v7201_v39, 0.0  ;;  %290 = vmatmul.f32.gmra.mxu0 %v95_v27 }
 0x190   :  { %6001 = vmatmul.msk.f32.gmra.mxu1 %vm420_vm0, %v11715_v42 }
 0x193   :  { %v246_v63 = vpop.f32.mrf.mxu0 }
 0x194   :  { %v7216_v29 = vadd.f32 %v6876_v37, %v246_v63 }
 0x195   :  { %v7218_v27 = vpop.f32.mrf.mxu1 }
 0x196   :  { %11945 = vst [vmem:[#allocation15_spill] sm:$0xff] %v7216_v29  ;;  %v11718_v25 = vmax.f32 %v7216_v29, 0.0  ;;  %293 = vmatmul.f32.gmra.mxu0 %v96_v19 }
 0x198   :  { %6002 = vmatmul.msk.f32.gmra.mxu1 %vm420_vm0, %v11718_v25  ;;  %v98_v25 = vld [vmem:[%s11687_s1 + $0x180] sm:$0xff] }
 0x19b   :  { %v249_v42 = vpop.f32.mrf.mxu0 }
 0x19c   :  { %v7228_v21 = vadd.f32 %v6876_v37, %v249_v42 }
 0x19d   :  { %v7230_v17 = vpop.f32.mrf.mxu1 }
 0x19e   :  { %11946 = vst [vmem:[#allocation16_spill] sm:$0xff] %v7228_v21  ;;  %v11721_v63 = vmax.f32 %v7228_v21, 0.0  ;;  %296 = vmatmul.f32.gmra.mxu0 %v97_v62 }
 0x1a0   :  { %6003 = vmatmul.msk.f32.gmra.mxu1 %vm420_vm0, %v11721_v63  ;;  %v99_v63 = vld [vmem:[%s11687_s1 + $0x188] sm:$0xff] }
 0x1a3   :  { %v252_v19 = vpop.f32.mrf.mxu0 }
 0x1a4   :  { %v7240_v13 = vadd.f32 %v6876_v37, %v252_v19 }
 0x1a5   :  { %v7242_v9 = vpop.f32.mrf.mxu1 }
 0x1a6   :  { %11947 = vst [vmem:[#allocation17_spill] sm:$0xff] %v7240_v13  ;;  %v11724_v42 = vmax.f32 %v7240_v13, 0.0  ;;  %299 = vmatmul.f32.gmra.mxu0 %v98_v25 }
 0x1a8   :  { %6004 = vmatmul.msk.f32.gmra.mxu1 %vm420_vm0, %v11724_v42  ;;  %v100_v42 = vld [vmem:[%s11687_s1 + $0x190] sm:$0xff] }
 0x1ab   :  { %v255_v62 = vpop.f32.mrf.mxu0 }
 0x1ac   :  { %v7252_v5 = vadd.f32 %v6876_v37, %v255_v62 }
 0x1ad   :  { %v7254_v1 = vpop.f32.mrf.mxu1 }
 0x1ae   :  { %11948 = vst [vmem:[#allocation18_spill] sm:$0xff] %v7252_v5  ;;  %v11727_v19 = vmax.f32 %v7252_v5, 0.0  ;;  %302 = vmatmul.f32.gmra.mxu0 %v99_v63 }
 0x1b0   :  { %6005 = vmatmul.msk.f32.vlgmr.msra.gmra.mxu3 %vm420_vm0, %v11727_v19  ;;  %v101_v19 = vld [vmem:[%s11687_s1 + $0x198] sm:$0xff] }
 0x1b3   :  { %v258_v25 = vpop.f32.mrf.mxu0 }
 0x1b4   :  { %v7264_v61 = vadd.f32 %v6876_v37, %v258_v25 }
 0x1b5   :  { %v7266_v57 = vpop.f32.mrf.mxu1 }
 0x1b6   :  { %11949 = vst [vmem:[#allocation19_spill] sm:$0xff] %v7264_v61  ;;  %v11730_v62 = vmax.f32 %v7264_v61, 0.0  ;;  %305 = vmatmul.f32.gmra.mxu0 %v100_v42 }
 0x1b8   :  { %6006 = vmatmul.msk.f32.gmra.mxu3 %vm420_vm0, %v11730_v62  ;;  %v102_v62 = vld [vmem:[%s11687_s1 + $0x1a0] sm:$0xff] }
 0x1bb   :  { %v261_v63 = vpop.f32.mrf.mxu0 }
 0x1bc   :  { %v7276_v53 = vadd.f32 %v6876_v37, %v261_v63 }
 0x1bd   :  { %v7278_v49 = vpop.f32.mrf.mxu1 }
 0x1be   :  { %11950 = vst [vmem:[#allocation20_spill] sm:$0xff] %v7276_v53  ;;  %v11733_v25 = vmax.f32 %v7276_v53, 0.0  ;;  %308 = vmatmul.f32.gmra.mxu0 %v101_v19 }
 0x1c0   :  { %6007 = vmatmul.msk.f32.gmra.mxu3 %vm420_vm0, %v11733_v25  ;;  %v103_v25 = vld [vmem:[%s11687_s1 + $0x1a8] sm:$0xff] }
 0x1c3   :  { %v264_v42 = vpop.f32.mrf.mxu0 }
 0x1c4   :  { %v7288_v45 = vadd.f32 %v6876_v37, %v264_v42 }
 0x1c5   :  { %v7290_v41 = vpop.f32.mrf.mxu1 }
 0x1c6   :  { %11951 = vst [vmem:[#allocation21_spill] sm:$0xff] %v7288_v45  ;;  %v11736_v63 = vmax.f32 %v7288_v45, 0.0  ;;  %311 = vmatmul.f32.gmra.mxu0 %v102_v62 }
 0x1c8   :  { %6008 = vmatmul.msk.f32.gmra.mxu3 %vm420_vm0, %v11736_v63  ;;  %v104_v63 = vld [vmem:[%s11687_s1 + $0x1b0] sm:$0xff] }
 0x1cb   :  { %v267_v19 = vpop.f32.mrf.mxu0 }
 0x1cc   :  { %v7300_v53 = vadd.f32 %v6876_v37, %v267_v19 }
 0x1cd   :  { %v7302_v61 = vpop.f32.mrf.mxu1 }
 0x1ce   :  { %11952 = vst [vmem:[#allocation22_spill] sm:$0xff] %v7300_v53  ;;  %v11739_v42 = vmax.f32 %v7300_v53, 0.0  ;;  %314 = vmatmul.f32.gmra.mxu0 %v103_v25 }
 0x1d0   :  { %6009 = vmatmul.msk.f32.gmra.mxu3 %vm420_vm0, %v11739_v42  ;;  %v105_v42 = vld [vmem:[%s11687_s1 + $0x1b8] sm:$0xff] }
 0x1d3   :  { %v270_v62 = vpop.f32.mrf.mxu0 }
 0x1d4   :  { %v7312_v45 = vadd.f32 %v6876_v37, %v270_v62 }
 0x1d5   :  { %v7314_v5 = vpop.f32.mrf.mxu1 }
 0x1d6   :  { %11953 = vst [vmem:[#allocation23_spill] sm:$0xff] %v7312_v45  ;;  %v11742_v19 = vmax.f32 %v7312_v45, 0.0  ;;  %317 = vmatmul.f32.gmra.mxu0 %v104_v63 }
 0x1d8   :  { %6010 = vmatmul.msk.f32.gmra.mxu3 %vm420_vm0, %v11742_v19  ;;  %v106_v19 = vld [vmem:[%s11687_s1 + $0x1c0] sm:$0xff] }
 0x1db   :  { %v273_v25 = vpop.f32.mrf.mxu0 }
 0x1dc   :  { %v7324_v53 = vadd.f32 %v6876_v37, %v273_v25 }
 0x1dd   :  { %v7326_v13 = vpop.f32.mrf.mxu1 }
 0x1de   :  { %11954 = vst [vmem:[#allocation24_spill] sm:$0xff] %v7324_v53  ;;  %v11745_v62 = vmax.f32 %v7324_v53, 0.0  ;;  %320 = vmatmul.f32.gmra.mxu0 %v105_v42 }
 0x1e0   :  { %6011 = vmatmul.msk.f32.gmra.mxu3 %vm420_vm0, %v11745_v62  ;;  %v107_v62 = vld [vmem:[%s11687_s1 + $0x1c8] sm:$0xff] }
 0x1e3   :  { %v276_v63 = vpop.f32.mrf.mxu0 }
 0x1e4   :  { %v7336_v45 = vadd.f32 %v6876_v37, %v276_v63 }
 0x1e5   :  { %v7338_v21 = vpop.f32.mrf.mxu1 }
 0x1e6   :  { %11955 = vst [vmem:[#allocation25_spill] sm:$0xff] %v7336_v45  ;;  %v11748_v25 = vmax.f32 %v7336_v45, 0.0  ;;  %323 = vmatmul.f32.gmra.mxu0 %v106_v19 }
 0x1e8   :  { %6012 = vmatmul.msk.f32.gmra.mxu3 %vm420_vm0, %v11748_v25  ;;  %v108_v25 = vld [vmem:[%s11687_s1 + $0x1d0] sm:$0xff] }
 0x1eb   :  { %v279_v42 = vpop.f32.mrf.mxu0 }
 0x1ec   :  { %v7348_v53 = vadd.f32 %v6876_v37, %v279_v42 }
 0x1ed   :  { %v7350_v29 = vpop.f32.mrf.mxu1 }
 0x1ee   :  { %11956 = vst [vmem:[#allocation26_spill] sm:$0xff] %v7348_v53  ;;  %v11751_v63 = vmax.f32 %v7348_v53, 0.0  ;;  %326 = vmatmul.f32.gmra.mxu0 %v107_v62  ;;  %v886_v62 = vld [vmem:[%s11692_s6] sm:$0xff] }
 0x1ef   :  { %6589 = vmatpush.msra.mxu2 %v886_v62  ;;  %1097 = vmatpush.msrb.mxu0 %v886_v62 }
 0x1f0   :  { %6013 = vmatmul.msk.f32.gmra.mxu3 %vm420_vm0, %v11751_v63 }
 0x1f1   :  { %6590 = vmatpush.msrb.mxu3 %v886_v62  ;;  %v110_v62 = vld [vmem:[%s11687_s1 + $0x1e0] sm:$0xff] }
 0x1f3   :  { %v282_v19 = vpop.f32.mrf.mxu0 }
 0x1f4   :  { %v7360_v45 = vadd.f32 %v6876_v37, %v282_v19  ;;  %v109_v19 = vld [vmem:[%s11687_s1 + $0x1d8] sm:$0xff] }
 0x1f5   :  { %v7362_v39 = vpop.f32.mrf.mxu1 }
 0x1f6   :  { %11957 = vst [vmem:[#allocation27_spill] sm:$0xff] %v7360_v45  ;;  %v11754_v42 = vmax.f32 %v7360_v45, 0.0  ;;  %329 = vmatmul.f32.gmra.mxu0 %v108_v25 }
 0x1f8   :  { %6014 = vmatmul.msk.f32.gmra.mxu3 %vm420_vm0, %v11754_v42 }
 0x1fb   :  { %v285_v63 = vpop.f32.mrf.mxu0 }
 0x1fc   :  { %v7375_v53 = vadd.f32 %v6876_v37, %v285_v63 }
 0x1fd   :  { %v7377_v25 = vpop.f32.mrf.mxu1 }
 0x1fe   :  { %11958 = vst [vmem:[#allocation28_spill] sm:$0xff] %v7375_v53  ;;  %v11757_v45 = vmax.f32 %v7375_v53, 0.0  ;;  %332 = vmatmul.f32.gmra.mxu0 %v109_v19 }
 0x200   :  { %6015 = vmatmul.msk.f32.gmra.mxu3 %vm420_vm0, %v11757_v45  ;;  %v111_v45 = vld [vmem:[%s11687_s1 + $0x1e8] sm:$0xff] }
 0x203   :  { %v288_v42 = vpop.f32.mrf.mxu0 }
 0x204   :  { %v7387_v59 = vadd.f32 %v6876_v37, %v288_v42 }
 0x205   :  { %v7389_v15 = vpop.f32.mrf.mxu1 }
 0x206   :  { %11959 = vst [vmem:[#allocation29_spill] sm:$0xff] %v7387_v59  ;;  %v11760_v63 = vmax.f32 %v7387_v59, 0.0  ;;  %335 = vmatmul.f32.gmra.mxu0 %v110_v62  ;;  %v7413_v59 = vld [vmem:[%s11691_s5] ss:$0 sm:$0xff] }
 0x208   :  { %6016 = vmatmul.msk.f32.gmra.mxu3 %vm420_vm0, %v11760_v63  ;;  %v112_v63 = vld [vmem:[%s11687_s1 + $0x1f0] sm:$0xff] }
 0x20b   :  { %v291_v19 = vpop.f32.mrf.mxu0 }
 0x20c   :  { %v7399_v53 = vadd.f32 %v6876_v37, %v291_v19 }
 0x20d   :  { %v7401_v35 = vpop.f32.mrf.mxu1 }
 0x20e   :  { %11960 = vst [vmem:[#allocation30_spill] sm:$0xff] %v7399_v53  ;;  %v11764_v42 = vmax.f32 %v7399_v53, 0.0  ;;  %338 = vmatmul.f32.gmra.mxu0 %v111_v45 }
 0x210   :  { %6017 = vmatmul.msk.f32.gmra.mxu3 %vm420_vm0, %v11764_v42 }
 0x213   :  { %v294_v62 = vpop.f32.mrf.mxu0 }
 0x214   :  { %v7416_v19 = vadd.f32 %v6876_v37, %v294_v62 }
 0x215   :  { %v720_v18 = vpop.f32.mrf.mxu1 }
 0x216   :  { %11961 = vst [vmem:[#allocation31_spill] sm:$0xff] %v7416_v19  ;;  %v11769_v45 = vmax.f32 %v7416_v19, 0.0  ;;  %v721_v53 = vadd.f32 %v7413_v59, %v720_v18  ;;  %341 = vmatmul.f32.gmra.mxu0 %v112_v63 }
 0x218   :  { %v852_v42 = vmax.f32 %v721_v53, 0.0  ;;  %6018 = vmatmul.msk.f32.gmra.mxu3 %vm420_vm0, %v11769_v45  ;;  %v631_v53 = vadd.f32 %v7413_v59, %v7047_v47  ;;  %v634_v47 = vadd.f32 %v7413_v59, %v7059_v58 }
 0x21a   :  { %6066 = vmatmul.msk.f32.vlgmr.msra.gmra.mxu2 %vm420_vm0, %v852_v42  ;;  %v822_v45 = vmax.f32 %v631_v53, 0.0  ;;  %v823_v53 = vmax.f32 %v634_v47, 0.0 }
 0x21b   :  { %v297_v30 = vpop.f32.mrf.mxu0 }
 0x21c   :  { %v7428_v62 = vadd.f32 %v6876_v37, %v297_v30 }
 0x21d   :  { %v723_v43 = vpop.f32.mrf.mxu1 }
 0x21e   :  { %v11788_v31 = vmax.f32 %v7428_v62, 0.0  ;;  %v724_v18 = vadd.f32 %v7413_v59, %v723_v43  ;;  %344 = vmatmul.f32.gmra.mxu0 %v113_v7 }
 0x220   :  { %v853_v63 = vmax.f32 %v724_v18, 0.0  ;;  %6019 = vmatmul.msk.f32.gmra.mxu3 %vm420_vm0, %v11788_v31 }
 0x222   :  { %6067 = vmatmul.msk.f32.gmra.mxu2 %vm420_vm0, %v853_v63 }
 0x223   :  { %v300_v42 = vpop.f32.mrf.mxu0 }
 0x224   :  { %v7439_v30 = vadd.f32 %v6876_v37, %v300_v42 }
 0x225   :  { %v726_v19 = vpop.f32.mrf.mxu1 }
 0x226   :  { %v11772_v22 = vmax.f32 %v7439_v30, 0.0  ;;  %v727_v43 = vadd.f32 %v7413_v59, %v726_v19  ;;  %6036 = vmatmul.msk.f32.vlgmr.msrb.gmra.mxu0 %vm420_vm0, %v822_v45  ;;  %v637_v19 = vadd.f32 %v7413_v59, %v7071_v3  ;;  %v640_v3 = vadd.f32 %v7413_v59, %v7083_v14 }
 0x227   :  { %v643_v14 = vadd.f32 %v7413_v59, %v7095_v23  ;;  %v646_v23 = vadd.f32 %v7413_v59, %v7107_v32  ;;  %v649_v32 = vadd.f32 %v7413_v59, %v7119_v51  ;;  %v652_v51 = vadd.f32 %v7413_v59, %v7131_v10 }
 0x228   :  { %v854_v7 = vmax.f32 %v727_v43, 0.0  ;;  %6020 = vmatmul.msk.f32.gmra.mxu3 %vm420_vm0, %v11772_v22  ;;  %v824_v43 = vmax.f32 %v637_v19, 0.0  ;;  %v655_v10 = vadd.f32 %v7413_v59, %v7143_v36  ;;  %v658_v36 = vadd.f32 %v7413_v59, %v7155_v54 }
 0x229   :  { %v661_v54 = vadd.f32 %v7413_v59, %v7167_v26  ;;  %v664_v26 = vadd.f32 %v7413_v59, %v7179_v6  ;;  %v667_v6 = vadd.f32 %v7413_v59, %v7191_v50  ;;  %v670_v50 = vadd.f32 %v7413_v59, %v7203_v34 }
 0x22a   :  { %6068 = vmatmul.msk.f32.gmra.mxu2 %vm420_vm0, %v854_v7  ;;  %v673_v34 = vadd.f32 %v7413_v59, %v7218_v27  ;;  %v676_v27 = vadd.f32 %v7413_v59, %v7230_v17  ;;  %v679_v17 = vadd.f32 %v7413_v59, %v7242_v9 }
 0x22b   :  { %v303_v18 = vpop.f32.mrf.mxu0 }
 0x22c   :  { %v7451_v63 = vadd.f32 %v6876_v37, %v303_v18 }
 0x22e   :  { %v11773_v42 = vmax.f32 %v7451_v63, 0.0  ;;  %6037 = vmatmul.msk.f32.gmra.mxu0 %vm420_vm0, %v823_v53 }
 0x230   :  { %6021 = vmatmul.msk.f32.gmra.mxu3 %vm420_vm0, %v11773_v42 }
 0x233   :  { %v306_v58 = vpop.f32.mrf.mxu0  ;;  %v729_v45 = vpop.f32.mrf.mxu3 }
 0x234   :  { %v7461_v7 = vadd.f32 %v6876_v37, %v306_v58  ;;  %v730_v47 = vadd.f32 %v7413_v59, %v729_v45  ;;  %v825_v58 = vmax.f32 %v640_v3, 0.0 }
 0x236   :  { %v11774_v18 = vmax.f32 %v7461_v7, 0.0  ;;  %v855_v22 = vmax.f32 %v730_v47, 0.0  ;;  %6038 = vmatmul.msk.f32.gmra.mxu0 %vm420_vm0, %v824_v43 }
 0x238   :  { %6022 = vmatmul.msk.f32.gmra.mxu3 %vm420_vm0, %v11774_v18  ;;  %6069 = vmatmul.msk.f32.gmra.mxu2 %vm420_vm0, %v855_v22 }
 0x23b   :  { %v309_v53 = vpop.f32.mrf.mxu0  ;;  %v732_v19 = vpop.f32.mrf.mxu3 }
 0x23c   :  { %v7473_v42 = vadd.f32 %v6876_v37, %v309_v53  ;;  %v733_v45 = vadd.f32 %v7413_v59, %v732_v19  ;;  %v826_v53 = vmax.f32 %v643_v14, 0.0 }
 0x23e   :  { %v11775_v47 = vmax.f32 %v7473_v42, 0.0  ;;  %v856_v43 = vmax.f32 %v733_v45, 0.0  ;;  %6039 = vmatmul.msk.f32.gmra.mxu0 %vm420_vm0, %v825_v58 }
 0x240   :  { %6023 = vmatmul.msk.f32.gmra.mxu3 %vm420_vm0, %v11775_v47  ;;  %6070 = vmatmul.msk.f32.gmra.mxu2 %vm420_vm0, %v856_v43 }
 0x243   :  { %v312_v22 = vpop.f32.mrf.mxu0  ;;  %v735_v3 = vpop.f32.mrf.mxu3 }
 0x244   :  { %v7485_v18 = vadd.f32 %v6876_v37, %v312_v22  ;;  %v736_v19 = vadd.f32 %v7413_v59, %v735_v3  ;;  %v827_v22 = vmax.f32 %v646_v23, 0.0 }
 0x246   :  { %v11776_v45 = vmax.f32 %v7485_v18, 0.0  ;;  %v857_v58 = vmax.f32 %v736_v19, 0.0  ;;  %6040 = vmatmul.msk.f32.gmra.mxu0 %vm420_vm0, %v826_v53 }
 0x248   :  { %6024 = vmatmul.msk.f32.gmra.mxu3 %vm420_vm0, %v11776_v45  ;;  %6071 = vmatmul.msk.f32.gmra.mxu2 %vm420_vm0, %v857_v58 }
 0x24b   :  { %v315_v43 = vpop.f32.mrf.mxu0  ;;  %v738_v14 = vpop.f32.mrf.mxu3 }
 0x24c   :  { %v7497_v47 = vadd.f32 %v6876_v37, %v315_v43  ;;  %v739_v3 = vadd.f32 %v7413_v59, %v738_v14  ;;  %v828_v43 = vmax.f32 %v649_v32, 0.0 }
 0x24e   :  { %v11777_v19 = vmax.f32 %v7497_v47, 0.0  ;;  %v858_v53 = vmax.f32 %v739_v3, 0.0  ;;  %6041 = vmatmul.msk.f32.gmra.mxu0 %vm420_vm0, %v827_v22 }
 0x250   :  { %6025 = vmatmul.msk.f32.gmra.mxu3 %vm420_vm0, %v11777_v19  ;;  %6072 = vmatmul.msk.f32.gmra.mxu2 %vm420_vm0, %v858_v53 }
 0x253   :  { %v318_v58 = vpop.f32.mrf.mxu0  ;;  %v741_v23 = vpop.f32.mrf.mxu3 }
 0x254   :  { %v7509_v45 = vadd.f32 %v6876_v37, %v318_v58  ;;  %v742_v14 = vadd.f32 %v7413_v59, %v741_v23  ;;  %v829_v58 = vmax.f32 %v652_v51, 0.0 }
 0x256   :  { %v11778_v3 = vmax.f32 %v7509_v45, 0.0  ;;  %v859_v22 = vmax.f32 %v742_v14, 0.0  ;;  %6042 = vmatmul.msk.f32.gmra.mxu0 %vm420_vm0, %v828_v43 }
 0x258   :  { %6026 = vmatmul.msk.f32.gmra.mxu3 %vm420_vm0, %v11778_v3  ;;  %6073 = vmatmul.msk.f32.gmra.mxu2 %vm420_vm0, %v859_v22 }
 0x25b   :  { %v321_v53 = vpop.f32.mrf.mxu0  ;;  %v744_v32 = vpop.f32.mrf.mxu3 }
 0x25c   :  { %v7521_v19 = vadd.f32 %v6876_v37, %v321_v53  ;;  %v745_v23 = vadd.f32 %v7413_v59, %v744_v32  ;;  %v830_v53 = vmax.f32 %v655_v10, 0.0 }
 0x25e   :  { %v11779_v14 = vmax.f32 %v7521_v19, 0.0  ;;  %v860_v43 = vmax.f32 %v745_v23, 0.0  ;;  %6043 = vmatmul.msk.f32.gmra.mxu0 %vm420_vm0, %v829_v58 }
 0x260   :  { %6027 = vmatmul.msk.f32.gmra.mxu3 %vm420_vm0, %v11779_v14  ;;  %6074 = vmatmul.msk.f32.gmra.mxu2 %vm420_vm0, %v860_v43 }
 0x263   :  { %v324_v22 = vpop.f32.mrf.mxu0  ;;  %v747_v51 = vpop.f32.mrf.mxu3 }
 0x264   :  { %v7533_v3 = vadd.f32 %v6876_v37, %v324_v22  ;;  %v748_v32 = vadd.f32 %v7413_v59, %v747_v51  ;;  %v831_v22 = vmax.f32 %v658_v36, 0.0 }
 0x266   :  { %v11780_v23 = vmax.f32 %v7533_v3, 0.0  ;;  %v861_v58 = vmax.f32 %v748_v32, 0.0  ;;  %6044 = vmatmul.msk.f32.gmra.mxu0 %vm420_vm0, %v830_v53 }
 0x268   :  { %6028 = vmatmul.msk.f32.gmra.mxu3 %vm420_vm0, %v11780_v23  ;;  %6075 = vmatmul.msk.f32.gmra.mxu2 %vm420_vm0, %v861_v58 }
 0x26b   :  { %v327_v43 = vpop.f32.mrf.mxu0  ;;  %v750_v10 = vpop.f32.mrf.mxu3 }
 0x26c   :  { %v7545_v14 = vadd.f32 %v6876_v37, %v327_v43  ;;  %v751_v51 = vadd.f32 %v7413_v59, %v750_v10  ;;  %v832_v43 = vmax.f32 %v661_v54, 0.0 }
 0x26e   :  { %11962 = vst [vmem:[#allocation32_spill] sm:$0xff] %v7545_v14  ;;  %v11781_v32 = vmax.f32 %v7545_v14, 0.0  ;;  %v862_v53 = vmax.f32 %v751_v51, 0.0  ;;  %6045 = vmatmul.msk.f32.gmra.mxu0 %vm420_vm0, %v831_v22 }
 0x270   :  { %6029 = vmatmul.msk.f32.gmra.mxu3 %vm420_vm0, %v11781_v32  ;;  %6076 = vmatmul.msk.f32.gmra.mxu2 %vm420_vm0, %v862_v53 }
 0x273   :  { %v330_v58 = vpop.f32.mrf.mxu0  ;;  %v753_v36 = vpop.f32.mrf.mxu3 }
 0x274   :  { %v7557_v23 = vadd.f32 %v6876_v37, %v330_v58  ;;  %v754_v10 = vadd.f32 %v7413_v59, %v753_v36  ;;  %v833_v58 = vmax.f32 %v664_v26, 0.0 }
 0x276   :  { %11963 = vst [vmem:[#allocation33_spill] sm:$0xff] %v7557_v23  ;;  %v11782_v51 = vmax.f32 %v7557_v23, 0.0  ;;  %v863_v22 = vmax.f32 %v754_v10, 0.0  ;;  %6046 = vmatmul.msk.f32.gmra.mxu0 %vm420_vm0, %v832_v43 }
 0x278   :  { %6030 = vmatmul.msk.f32.gmra.mxu3 %vm420_vm0, %v11782_v51  ;;  %6077 = vmatmul.msk.f32.gmra.mxu2 %vm420_vm0, %v863_v22 }
 0x27b   :  { %v333_v53 = vpop.f32.mrf.mxu0  ;;  %v756_v54 = vpop.f32.mrf.mxu3 }
 0x27c   :  { %v7569_v32 = vadd.f32 %v6876_v37, %v333_v53  ;;  %v757_v36 = vadd.f32 %v7413_v59, %v756_v54  ;;  %v834_v53 = vmax.f32 %v667_v6, 0.0 }
 0x27e   :  { %11964 = vst [vmem:[#allocation34_spill] sm:$0xff] %v7569_v32  ;;  %v11783_v10 = vmax.f32 %v7569_v32, 0.0  ;;  %v864_v43 = vmax.f32 %v757_v36, 0.0  ;;  %6047 = vmatmul.msk.f32.gmra.mxu0 %vm420_vm0, %v833_v58 }
 0x280   :  { %6031 = vmatmul.msk.f32.gmra.mxu3 %vm420_vm0, %v11783_v10  ;;  %6078 = vmatmul.msk.f32.gmra.mxu2 %vm420_vm0, %v864_v43 }
 0x283   :  { %v336_v22 = vpop.f32.mrf.mxu0  ;;  %v759_v26 = vpop.f32.mrf.mxu3 }
 0x284   :  { %v7581_v51 = vadd.f32 %v6876_v37, %v336_v22  ;;  %v760_v54 = vadd.f32 %v7413_v59, %v759_v26  ;;  %v835_v22 = vmax.f32 %v670_v50, 0.0 }
 0x286   :  { %11965 = vst [vmem:[#allocation35_spill] sm:$0xff] %v7581_v51  ;;  %v11784_v36 = vmax.f32 %v7581_v51, 0.0  ;;  %v865_v58 = vmax.f32 %v760_v54, 0.0  ;;  %6048 = vmatmul.msk.f32.gmra.mxu0 %vm420_vm0, %v834_v53  ;;  %v12025_v51 = vld [vmem:[#allocation10_spill] sm:$0xff] }
 0x288   :  { %6032 = vmatmul.msk.f32.gmra.mxu3 %vm420_vm0, %v11784_v36  ;;  %6079 = vmatmul.msk.f32.gmra.mxu2 %vm420_vm0, %v865_v58 }
 0x28b   :  { %v339_v43 = vpop.f32.mrf.mxu0  ;;  %v762_v6 = vpop.f32.mrf.mxu3 }
 0x28c   :  { %v7593_v10 = vadd.f32 %v6876_v37, %v339_v43  ;;  %v763_v26 = vadd.f32 %v7413_v59, %v762_v6  ;;  %v836_v43 = vmax.f32 %v673_v34, 0.0 }
 0x28e   :  { %11966 = vst [vmem:[#allocation36_spill] sm:$0xff] %v7593_v10  ;;  %v11785_v54 = vmax.f32 %v7593_v10, 0.0  ;;  %v866_v53 = vmax.f32 %v763_v26, 0.0  ;;  %6049 = vmatmul.msk.f32.gmra.mxu0 %vm420_vm0, %v835_v22 }
 0x290   :  { %6033 = vmatmul.msk.f32.gmra.mxu3 %vm420_vm0, %v11785_v54  ;;  %6080 = vmatmul.msk.f32.gmra.mxu2 %vm420_vm0, %v866_v53 }
 0x293   :  { %v342_v58 = vpop.f32.mrf.mxu0  ;;  %v765_v50 = vpop.f32.mrf.mxu3 }
 0x294   :  { %v7605_v36 = vadd.f32 %v6876_v37, %v342_v58  ;;  %v766_v6 = vadd.f32 %v7413_v59, %v765_v50  ;;  %v837_v58 = vmax.f32 %v676_v27, 0.0  ;;  %v838_v27 = vmax.f32 %v679_v17, 0.0 }
 0x296   :  { %11967 = vst [vmem:[#allocation37_spill] sm:$0xff] %v7605_v36  ;;  %v11786_v26 = vmax.f32 %v7605_v36, 0.0  ;;  %v867_v22 = vmax.f32 %v766_v6, 0.0  ;;  %6050 = vmatmul.msk.f32.gmra.mxu0 %vm420_vm0, %v836_v43 }
 0x298   :  { %6034 = vmatmul.msk.f32.gmra.mxu3 %vm420_vm0, %v11786_v26  ;;  %6081 = vmatmul.msk.f32.gmra.mxu2 %vm420_vm0, %v867_v22 }
 0x29b   :  { %v345_v53 = vpop.f32.mrf.mxu0  ;;  %v768_v34 = vpop.f32.mrf.mxu3 }
 0x29c   :  { %v7617_v54 = vadd.f32 %v6876_v37, %v345_v53  ;;  %v769_v50 = vadd.f32 %v7413_v59, %v768_v34  ;;  %v682_v34 = vadd.f32 %v7413_v59, %v7254_v1  ;;  %v688_v1 = vadd.f32 %v7413_v59, %v7278_v49 }
 0x29d   :  { %v694_v49 = vadd.f32 %v7413_v59, %v7302_v61 }
 0x29e   :  { %11968 = vst [vmem:[#allocation38_spill] sm:$0xff] %v7617_v54  ;;  %v11787_v6 = vmax.f32 %v7617_v54, 0.0  ;;  %v868_v43 = vmax.f32 %v769_v50, 0.0  ;;  %6051 = vmatmul.msk.f32.gmra.mxu0 %vm420_vm0, %v837_v58  ;;  %v839_v9 = vmax.f32 %v682_v34, 0.0  ;;  %v841_v34 = vmax.f32 %v688_v1, 0.0 }
 0x2a0   :  { %6035 = vmatmul.msk.f32.gmra.mxu3 %vm420_vm0, %v11787_v6  ;;  %6082 = vmatmul.msk.f32.gmra.mxu2 %vm420_vm0, %v868_v43  ;;  %v685_v43 = vadd.f32 %v7413_v59, %v7266_v57  ;;  %v691_v57 = vadd.f32 %v7413_v59, %v7290_v41  ;;  %v697_v41 = vadd.f32 %v7413_v59, %v7314_v5 }
 0x2a3   :  { %v771_v22 = vpop.f32.mrf.mxu3 }
 0x2a4   :  { %v772_v37 = vadd.f32 %v7413_v59, %v771_v22  ;;  %v840_v22 = vmax.f32 %v685_v43, 0.0 }
 0x2a6   :  { %v869_v53 = vmax.f32 %v772_v37, 0.0  ;;  %6052 = vmatmul.msk.f32.gmra.mxu0 %vm420_vm0, %v838_v27 }
 0x2a8   :  { %6083 = vmatmul.msk.f32.gmra.mxu2 %vm420_vm0, %v869_v53 }
 0x2ab   :  { %v774_v58 = vpop.f32.mrf.mxu3 }
 0x2ac   :  { %v775_v50 = vadd.f32 %v7413_v59, %v774_v58 }
 0x2ae   :  { %v870_v26 = vmax.f32 %v775_v50, 0.0  ;;  %6053 = vmatmul.msk.f32.gmra.mxu0 %vm420_vm0, %v839_v9  ;;  %v842_v50 = vmax.f32 %v691_v57, 0.0  ;;  %v700_v57 = vadd.f32 %v7413_v59, %v7326_v13 }
 0x2b0   :  { %6084 = vmatmul.msk.f32.gmra.mxu2 %vm420_vm0, %v870_v26 }
 0x2b3   :  { %v777_v17 = vpop.f32.mrf.mxu3 }
 0x2b4   :  { %v778_v27 = vadd.f32 %v7413_v59, %v777_v17 }
 0x2b6   :  { %v871_v37 = vmax.f32 %v778_v27, 0.0  ;;  %6054 = vmatmul.msk.f32.gmra.mxu0 %vm420_vm0, %v840_v22  ;;  %v843_v27 = vmax.f32 %v694_v49, 0.0 }
 0x2b8   :  { %6085 = vmatmul.msk.f32.gmra.mxu2 %vm420_vm0, %v871_v37 }
 0x2bb   :  { %v780_v53 = vpop.f32.mrf.mxu3 }
 0x2bc   :  { %v781_v58 = vadd.f32 %v7413_v59, %v780_v53  ;;  %v7658_v53 = vpop.f32.mrf.mxu2 }
 0x2be   :  { %v872_v9 = vmax.f32 %v781_v58, 0.0  ;;  %6055 = vmatmul.msk.f32.gmra.mxu0 %vm420_vm0, %v841_v34  ;;  %v844_v58 = vmax.f32 %v697_v41, 0.0 }
 0x2c0   :  { %6086 = vmatmul.msk.f32.gmra.mxu2 %vm420_vm0, %v872_v9 }
 0x2c3   :  { %v783_v26 = vpop.f32.mrf.mxu3 }
 0x2c4   :  { %v784_v43 = vadd.f32 %v7413_v59, %v783_v26  ;;  %v7667_v5 = vpop.f32.mrf.mxu2 }
 0x2c6   :  { %v873_v17 = vmax.f32 %v784_v43, 0.0  ;;  %6056 = vmatmul.msk.f32.gmra.mxu0 %vm420_vm0, %v842_v50  ;;  %v845_v50 = vmax.f32 %v700_v57, 0.0  ;;  %v7665_v43 = vpop.f32.mrf.mxu0 }
 0x2c8   :  { %6087 = vmatmul.msk.f32.gmra.mxu2 %vm420_vm0, %v873_v17 }
 0x2cb   :  { %v786_v22 = vpop.f32.mrf.mxu3 }
 0x2cc   :  { %v787_v37 = vadd.f32 %v7413_v59, %v786_v22  ;;  %v703_v22 = vadd.f32 %v7413_v59, %v7338_v21  ;;  %v7677_v41 = vpop.f32.mrf.mxu2 }
 0x2ce   :  { %v874_v1 = vmax.f32 %v787_v37, 0.0  ;;  %6057 = vmatmul.msk.f32.gmra.mxu0 %vm420_vm0, %v843_v27  ;;  %v846_v13 = vmax.f32 %v703_v22, 0.0 }
 0x2d0   :  { %6088 = vmatmul.msk.f32.gmra.mxu2 %vm420_vm0, %v874_v1  ;;  %v7675_v1 = vpop.f32.mrf.mxu0 }
 0x2d3   :  { %v789_v34 = vpop.f32.mrf.mxu3 }
 0x2d4   :  { %v790_v61 = vadd.f32 %v7413_v59, %v789_v34  ;;  %v7684_v57 = vpop.f32.mrf.mxu2 }
 0x2d6   :  { %v875_v9 = vmax.f32 %v790_v61, 0.0  ;;  %6058 = vmatmul.msk.f32.gmra.mxu0 %vm420_vm0, %v844_v58  ;;  %v706_v58 = vadd.f32 %v7413_v59, %v7350_v29 }
 0x2d8   :  { %6089 = vmatmul.msk.f32.gmra.mxu2 %vm420_vm0, %v875_v9  ;;  %v847_v21 = vmax.f32 %v706_v58, 0.0 }
 0x2db   :  { %v792_v26 = vpop.f32.mrf.mxu3 }
 0x2dc   :  { %v793_v17 = vadd.f32 %v7413_v59, %v792_v26 }
 0x2de   :  { %v876_v49 = vmax.f32 %v793_v17, 0.0  ;;  %6059 = vmatmul.msk.f32.gmra.mxu0 %vm420_vm0, %v845_v50  ;;  %v709_v50 = vadd.f32 %v7413_v59, %v7362_v39  ;;  %v7689_v17 = vpop.f32.mrf.mxu0 }
 0x2e0   :  { %6090 = vmatmul.msk.f32.gmra.mxu2 %vm420_vm0, %v876_v49  ;;  %v848_v29 = vmax.f32 %v709_v50, 0.0 }
 0x2e3   :  { %v795_v27 = vpop.f32.mrf.mxu3 }
 0x2e4   :  { %v796_v37 = vadd.f32 %v7413_v59, %v795_v27 }
 0x2e6   :  { %v877_v34 = vmax.f32 %v796_v37, 0.0  ;;  %6060 = vmatmul.msk.f32.gmra.mxu0 %vm420_vm0, %v846_v13  ;;  %v712_v13 = vadd.f32 %v7413_v59, %v7377_v25  ;;  %v7696_v37 = vpop.f32.mrf.mxu2  ;;  %v715_v25 = vadd.f32 %v7413_v59, %v7389_v15  ;;  %v6103_v15 = vld [vmem:[%s11690_s4 + $0x38] sm:$0xff] }
 0x2e7   :  { %1637 = vmatpush.msra.mxu3 %v6103_v15 }
 0x2e8   :  { %6091 = vmatmul.msk.f32.gmra.mxu2 %vm420_vm0, %v877_v34  ;;  %v7699_v34 = vpop.f32.mrf.mxu0  ;;  %v849_v58 = vmax.f32 %v712_v13, 0.0  ;;  %v718_v13 = vadd.f32 %v7413_v59, %v7401_v35  ;;  %v6101_v35 = vld [vmem:[%s11690_s4 + $0x28] sm:$0xff] }
 0x2eb   :  { %v798_v61 = vpop.f32.mrf.mxu3 }
 0x2ec   :  { %v799_v9 = vadd.f32 %v7413_v59, %v798_v61 }
 0x2ee   :  { %v878_v26 = vmax.f32 %v799_v9, 0.0  ;;  %6061 = vmatmul.msk.f32.gmra.mxu0 %vm420_vm0, %v847_v21  ;;  %v6172_v9 = vld [vmem:[%s11692_s6 + $0x38] sm:$0xff] }
 0x2ef   :  { %2107 = vmatpush.msrb.mxu1 %v6172_v9 }
 0x2f0   :  { %6092 = vmatmul.msk.f32.gmra.mxu2 %vm420_vm0, %v878_v26  ;;  %v7709_v26 = vpop.f32.mrf.mxu2 }
 0x2f3   :  { %v801_v49 = vpop.f32.mrf.mxu3 }
 0x2f4   :  { %v802_v22 = vadd.f32 %v7413_v59, %v801_v49  ;;  %v850_v49 = vmax.f32 %v715_v25, 0.0 }
 0x2f6   :  { %v879_v27 = vmax.f32 %v802_v22, 0.0  ;;  %6062 = vmatmul.msk.f32.gmra.mxu0 %vm420_vm0, %v848_v29  ;;  %v1111_v29 = vpop.f32.mrf.mxu0 }
 0x2f8   :  { %6093 = vmatmul.msk.f32.gmra.mxu2 %vm420_vm0, %v879_v27 }
 0x2fb   :  { %v804_v39 = vpop.f32.mrf.mxu3 }
 0x2fc   :  { %v805_v61 = vadd.f32 %v7413_v59, %v804_v39  ;;  %v6102_v39 = vld [vmem:[%s11690_s4 + $0x30] sm:$0xff] }
 0x2fd   :  { %1638 = vmatpush.msra.mxu3 %v6102_v39 }
 0x2fe   :  { %v880_v21 = vmax.f32 %v805_v61, 0.0  ;;  %6063 = vmatmul.msk.f32.gmra.mxu0 %vm420_vm0, %v849_v58  ;;  %v851_v61 = vmax.f32 %v718_v13, 0.0  ;;  %v1114_v25 = vpop.f32.mrf.mxu0 }
 0x2ff   :  { %1639 = vmatpush.msra.mxu3 %v6101_v35 }
 0x300   :  { %6094 = vmatmul.msk.f32.gmra.mxu2 %vm420_vm0, %v880_v21  ;;  %v7722_v21 = vpop.f32.mrf.mxu2 }
 0x303   :  { %v807_v50 = vpop.f32.mrf.mxu3 }
 0x304   :  { %v808_v22 = vadd.f32 %v7413_v59, %v807_v50 }
 0x306   :  { %v881_v27 = vmax.f32 %v808_v22, 0.0  ;;  %6064 = vmatmul.msk.f32.gmra.mxu0 %vm420_vm0, %v850_v49  ;;  %v6100_v49 = vld [vmem:[%s11690_s4 + $0x20] sm:$0xff] }
 0x307   :  { %1640 = vmatpush.msra.mxu3 %v6100_v49 }
 0x308   :  { %6095 = vmatmul.msk.f32.gmra.mxu2 %vm420_vm0, %v881_v27  ;;  %v7734_v13 = vpop.f32.mrf.mxu2 }
 0x30b   :  { %v810_v58 = vpop.f32.mrf.mxu3 }
 0x30c   :  { %v811_v9 = vadd.f32 %v7413_v59, %v810_v58 }
 0x30e   :  { %v882_v50 = vmax.f32 %v811_v9, 0.0  ;;  %6065 = vmatmul.msk.f32.gmra.mxu0 %vm420_vm0, %v851_v61 }
 0x310   :  { %6096 = vmatmul.msk.f32.gmra.mxu2 %vm420_vm0, %v882_v50  ;;  %v7738_v9 = vpop.f32.mrf.mxu2 }
 0x313   :  { %v813_v22 = vpop.f32.mrf.mxu3 }
 0x314   :  { %v814_v27 = vadd.f32 %v7413_v59, %v813_v22  ;;  %v6310_v22 = vld [vmem:[%s11692_s6 + $0x58] sm:$0xff] }
 0x316   :  { %v883_v15 = vmax.f32 %v814_v27, 0.0  ;;  %v1117_v27 = vpop.f32.mrf.mxu0 }
 0x318   :  { %6097 = vmatmul.msk.f32.gmra.mxu2 %vm420_vm0, %v883_v15  ;;  %v11969_v15 = vmax.f32 %v6882_v40, 0.0 }
 0x31b   :  { %v816_v39 = vpop.f32.mrf.mxu3 }
 0x31c   :  { %v817_v58 = vadd.f32 %v7413_v59, %v816_v39  ;;  %v1291_v39 = vadd.f32 %v7665_v43, %v11969_v15  ;;  %v11973_v43 = vmax.f32 %v6902_v48, 0.0 }
 0x31e   :  { %v884_v61 = vmax.f32 %v817_v58, 0.0  ;;  %v7752_v58 = vld [vmem:[%s11693_s7] ss:$0 sm:$0xff] }
 0x320   :  { %6098 = vmatmul.msk.f32.gmra.mxu2 %vm420_vm0, %v884_v61  ;;  %v11971_v61 = vmax.f32 %v6892_v44, 0.0  ;;  %v6171_v44 = vld [vmem:[%s11692_s6 + $0x30] sm:$0xff] }
 0x321   :  { %2108 = vmatpush.msrb.mxu1 %v6171_v44 }
 0x323   :  { %v819_v35 = vpop.f32.mrf.mxu3 }
 0x324   :  { %v820_v50 = vadd.f32 %v7413_v59, %v819_v35  ;;  %v7755_v59 = vadd.f32 %v7752_v58, %v1291_v39  ;;  %v1292_v35 = vadd.f32 %v7675_v1, %v11971_v61  ;;  %v11975_v1 = vmax.f32 %v6912_v52, 0.0 }
 0x325   :  { %v11977_v61 = vmax.f32 %v6922_v56, 0.0  ;;  %v11979_v52 = vmax.f32 %v6932_v60, 0.0 }
 0x326   :  { %v885_v49 = vmax.f32 %v820_v50, 0.0  ;;  %11970 = vst [vmem:[#allocation39_spill] sm:$0xff] %v7755_v59  ;;  %v1120_v50 = vpop.f32.mrf.mxu0  ;;  %v7763_v40 = vadd.f32 %v7752_v58, %v1292_v35  ;;  %v1294_v39 = vadd.f32 %v7699_v34, %v11975_v1  ;;  %v11981_v1 = vmax.f32 %v6942_v0, 0.0 }
 0x327   :  { %v1295_v35 = vadd.f32 %v1111_v29, %v11977_v61  ;;  %v1296_v34 = vadd.f32 %v1114_v25, %v11979_v52  ;;  %v11983_v61 = vmax.f32 %v6952_v4, 0.0  ;;  %v11985_v0 = vmax.f32 %v6962_v8, 0.0 }
 0x328   :  { %6099 = vmatmul.msk.f32.vlgmr.msrb.gmra.mxu3 %vm420_vm0, %v885_v49  ;;  %11972 = vst [vmem:[#allocation40_spill] sm:$0xff] %v7763_v40  ;;  %v1293_v49 = vadd.f32 %v7689_v17, %v11973_v43  ;;  %v7782_v48 = vadd.f32 %v7752_v58, %v1294_v39  ;;  %v1297_v56 = vadd.f32 %v1117_v27, %v11981_v1  ;;  %v11987_v4 = vmax.f32 %v6972_v12, 0.0  ;;  %v6241_v12 = vld [vmem:[%s11690_s4 + $0x58] sm:$0xff] }
 0x329   :  { %3121 = vmatpush.msrb.mxu3 %v6310_v22  ;;  %v7789_v43 = vadd.f32 %v7752_v58, %v1295_v35  ;;  %v7796_v44 = vadd.f32 %v7752_v58, %v1296_v34  ;;  %v1298_v60 = vadd.f32 %v1120_v50, %v11983_v61  ;;  %v11989_v8 = vmax.f32 %v6982_v16, 0.0  ;;  %2651 = vmatpush.msrb.mxu2 %v6241_v12 }
 0x32a   :  { %v7771_v15 = vadd.f32 %v7752_v58, %v1293_v49  ;;  %11976 = vst [vmem:[#allocation42_spill] sm:$0xff] %v7782_v48  ;;  %v7803_v39 = vadd.f32 %v7752_v58, %v1297_v56 }
 0x32b   :  { %11978 = vst [vmem:[#allocation43_spill] sm:$0xff] %v7789_v43  ;;  %v7810_v35 = vadd.f32 %v7752_v58, %v1298_v60  ;;  %v11991_v60 = vmax.f32 %v6992_v20, 0.0  ;;  %v6309_v20 = vld [vmem:[%s11692_s6 + $0x50] sm:$0xff] }
 0x32c   :  { %11974 = vst [vmem:[#allocation41_spill] sm:$0xff] %v7771_v15  ;;  %3122 = vmatpush.msrb.mxu3 %v6309_v20  ;;  %v12001_v20 = vmax.f32 %v7045_v46, 0.0 }
 0x32d   :  { %11980 = vst [vmem:[#allocation44_spill] sm:$0xff] %v7796_v44 }
 0x32e   :  { %v1123_v22 = vpop.f32.mrf.mxu0  ;;  %11982 = vst [vmem:[#allocation45_spill] sm:$0xff] %v7803_v39 }
 0x32f   :  { %11984 = vst [vmem:[#allocation46_spill] sm:$0xff] %v7810_v35  ;;  %v1299_v27 = vadd.f32 %v1123_v22, %v11985_v0 }
 0x330   :  { %6105 = vmatmul.msk.f32.vlgmr.msra.gmra.mxu3 %vm420_vm0, %v7755_v59 }
 0x331   :  { %v7817_v52 = vadd.f32 %v7752_v58, %v1299_v27  ;;  %v11993_v27 = vmax.f32 %v7002_v24, 0.0  ;;  %v6169_v24 = vld [vmem:[%s11692_s6 + $0x20] sm:$0xff] }
 0x333   :  { %11986 = vst [vmem:[#allocation47_spill] sm:$0xff] %v7817_v52 }
 0x336   :  { %v1126_v17 = vpop.f32.mrf.mxu0 }
 0x337   :  { %v1300_v50 = vadd.f32 %v1126_v17, %v11987_v4  ;;  %v6170_v17 = vld [vmem:[%s11692_s6 + $0x28] sm:$0xff] }
 0x338   :  { %6106 = vmatmul.msk.f32.gmra.mxu3 %vm420_vm0, %v7763_v40  ;;  %2109 = vmatpush.msrb.mxu1 %v6170_v17  ;;  %v11997_v17 = vmax.f32 %v7025_v33, 0.0 }
 0x339   :  { %v7824_v1 = vadd.f32 %v7752_v58, %v1300_v50 }
 0x33a   :  { %2110 = vmatpush.msrb.mxu1 %v6169_v24 }
 0x33b   :  { %11988 = vst [vmem:[#allocation48_spill] sm:$0xff] %v7824_v1 }
 0x33e   :  { %v1129_v49 = vpop.f32.mrf.mxu0 }
 0x33f   :  { %v1301_v22 = vadd.f32 %v1129_v49, %v11989_v8 }
 0x340   :  { %6107 = vmatmul.msk.f32.gmra.mxu3 %vm420_vm0, %v7771_v15 }
 0x341   :  { %v7831_v61 = vadd.f32 %v7752_v58, %v1301_v22 }
 0x343   :  { %11990 = vst [vmem:[#allocation49_spill] sm:$0xff] %v7831_v61 }
 0x346   :  { %v1132_v29 = vpop.f32.mrf.mxu0 }
 0x347   :  { %v1302_v16 = vadd.f32 %v1132_v29, %v11991_v60  ;;  %v11995_v29 = vmax.f32 %v7012_v28, 0.0 }
 0x348   :  { %6108 = vmatmul.msk.f32.gmra.mxu3 %vm420_vm0, %v7782_v48 }
 0x349   :  { %v7844_v0 = vadd.f32 %v7752_v58, %v1302_v16 }
 0x34b   :  { %11992 = vst [vmem:[#allocation50_spill] sm:$0xff] %v7844_v0 }
 0x34e   :  { %v1135_v25 = vpop.f32.mrf.mxu0 }
 0x34f   :  { %v1303_v4 = vadd.f32 %v1135_v25, %v11993_v27 }
 0x350   :  { %6109 = vmatmul.msk.f32.gmra.mxu3 %vm420_vm0, %v7789_v43 }
 0x351   :  { %v7851_v8 = vadd.f32 %v7752_v58, %v1303_v4 }
 0x353   :  { %11994 = vst [vmem:[#allocation51_spill] sm:$0xff] %v7851_v8 }
 0x356   :  { %v1138_v34 = vpop.f32.mrf.mxu0 }
 0x357   :  { %v1304_v22 = vadd.f32 %v1138_v34, %v11995_v29  ;;  %v11999_v34 = vmax.f32 %v7035_v38, 0.0  ;;  %v7894_v38 = vld [vmem:[%s11691_s5 + $0x1] ss:$0 sm:$0xff] }
 0x358   :  { %6110 = vmatmul.msk.f32.gmra.mxu3 %vm420_vm0, %v7796_v44 }
 0x359   :  { %v7861_v12 = vadd.f32 %v7752_v58, %v1304_v22 }
 0x35b   :  { %11996 = vst [vmem:[#allocation52_spill] sm:$0xff] %v7861_v12 }
 0x35e   :  { %v1141_v56 = vpop.f32.mrf.mxu0 }
 0x35f   :  { %v1305_v60 = vadd.f32 %v1141_v56, %v11997_v17 }
 0x360   :  { %6111 = vmatmul.msk.f32.gmra.mxu3 %vm420_vm0, %v7803_v39 }
 0x361   :  { %v7871_v16 = vadd.f32 %v7752_v58, %v1305_v60 }
 0x363   :  { %11998 = vst [vmem:[#allocation53_spill] sm:$0xff] %v7871_v16 }
 0x366   :  { %v1144_v49 = vpop.f32.mrf.mxu0 }
 0x367   :  { %v1306_v27 = vadd.f32 %v1144_v49, %v11999_v34  ;;  %v12004_v49 = vmax.f32 %v7057_v55, 0.0 }
 0x368   :  { %6112 = vmatmul.msk.f32.gmra.mxu3 %vm420_vm0, %v7810_v35 }
 0x369   :  { %v7878_v4 = vadd.f32 %v7752_v58, %v1306_v27  ;;  %v12006_v27 = vmax.f32 %v7069_v2, 0.0  ;;  %v12008_v2 = vmax.f32 %v7081_v11, 0.0 }
 0x36b   :  { %12000 = vst [vmem:[#allocation54_spill] sm:$0xff] %v7878_v4 }
 0x36e   :  { %v1147_v50 = vpop.f32.mrf.mxu0 }
 0x36f   :  { %v1307_v33 = vadd.f32 %v1147_v50, %v12001_v20 }
 0x370   :  { %6113 = vmatmul.msk.f32.gmra.mxu3 %vm420_vm0, %v7817_v52 }
 0x371   :  { %v7887_v22 = vadd.f32 %v7752_v58, %v1307_v33 }
 0x373   :  { %12003 = vst [vmem:[#allocation56_spill] sm:$0xff] %v7887_v22 }
 0x376   :  { %v1150_v25 = vpop.f32.mrf.mxu0 }
 0x377   :  { %v1308_v24 = vadd.f32 %v1150_v25, %v12004_v49 }
 0x378   :  { %6114 = vmatmul.msk.f32.gmra.mxu3 %vm420_vm0, %v7824_v1 }
 0x379   :  { %v7900_v60 = vadd.f32 %v7752_v58, %v1308_v24  ;;  %v6240_v24 = vld [vmem:[%s11690_s4 + $0x50] sm:$0xff] }
 0x37a   :  { %2652 = vmatpush.msrb.mxu2 %v6240_v24 }
 0x37b   :  { %12005 = vst [vmem:[#allocation57_spill] sm:$0xff] %v7900_v60 }
 0x37e   :  { %v1153_v28 = vpop.f32.mrf.mxu0 }
 0x37f   :  { %v1309_v20 = vadd.f32 %v1153_v28, %v12006_v27 }
 0x380   :  { %6115 = vmatmul.msk.f32.gmra.mxu3 %vm420_vm0, %v7831_v61 }
 0x381   :  { %v7909_v25 = vadd.f32 %v7752_v58, %v1309_v20 }
 0x383   :  { %12007 = vst [vmem:[#allocation58_spill] sm:$0xff] %v7909_v25 }
 0x386   :  { %v1156_v56 = vpop.f32.mrf.mxu0 }
 0x387   :  { %v1310_v28 = vadd.f32 %v1156_v56, %v12008_v2 }
 0x388   :  { %6116 = vmatmul.msk.f32.gmra.mxu3 %vm420_vm0, %v7844_v0 }
 0x389   :  { %v7921_v27 = vadd.f32 %v7752_v58, %v1310_v28  ;;  %v12013_v28 = vld [vmem:[#allocation6_spill] sm:$0xff] }
 0x38b   :  { %12009 = vst [vmem:[#allocation59_spill] sm:$0xff] %v7921_v27 }
 0x38e   :  { %v1159_v50 = vpop.f32.mrf.mxu0 }
 0x390   :  { %6117 = vmatmul.msk.f32.gmra.mxu3 %vm420_vm0, %v7851_v8 }
 0x398   :  { %6118 = vmatmul.msk.f32.gmra.mxu3 %vm420_vm0, %v7861_v12 }
 0x3a0   :  { %6119 = vmatmul.msk.f32.gmra.mxu3 %vm420_vm0, %v7871_v16 }
 0x3a8   :  { %6120 = vmatmul.msk.f32.gmra.mxu3 %vm420_vm0, %v7878_v4 }
 0x3ab   :  { %v7884_v29 = vpop.f32.mrf.mxu3 }
 0x3ac   :  { %12002 = vst [vmem:[#allocation55_spill] sm:$0xff] %v7884_v29 }
 0x3b0   :  { %6121 = vmatmul.msk.f32.gmra.mxu3 %vm420_vm0, %v7887_v22 }
 0x3b3   :  { %v1642_v17 = vpop.f32.mrf.mxu3 }
 0x3b4   :  { %v1643_v46 = vadd.f32 %v7894_v38, %v1642_v17  ;;  %v1162_v17 = vpop.f32.mrf.mxu0 }
 0x3b6   :  { %v1834_v34 = vmax.f32 %v1643_v46, 0.0 }
 0x3b8   :  { %6122 = vmatmul.msk.f32.gmra.mxu3 %vm420_vm0, %v7900_v60  ;;  %6173 = vmatmul.msk.f32.vlgmr.msrb.gmra.mxu1 %vm420_vm0, %v1834_v34 }
 0x3bb   :  { %v1645_v33 = vpop.f32.mrf.mxu3 }
 0x3bc   :  { %v1646_v55 = vadd.f32 %v7894_v38, %v1645_v33  ;;  %v1165_v33 = vpop.f32.mrf.mxu0 }
 0x3be   :  { %v1835_v49 = vmax.f32 %v1646_v55, 0.0  ;;  %v12010_v55 = vld [vmem:[#allocation5_spill] sm:$0xff] }
 0x3c0   :  { %6123 = vmatmul.msk.f32.gmra.mxu3 %vm420_vm0, %v7909_v25  ;;  %6174 = vmatmul.msk.f32.gmra.mxu1 %vm420_vm0, %v1835_v49  ;;  %v12011_v49 = vmax.f32 %v12010_v55, 0.0 }
 0x3c2   :  { %v1311_v6 = vadd.f32 %v1159_v50, %v12011_v49 }
 0x3c3   :  { %v1648_v46 = vpop.f32.mrf.mxu3 }
 0x3c4   :  { %v1649_v34 = vadd.f32 %v7894_v38, %v1648_v46  ;;  %v7930_v56 = vadd.f32 %v7752_v58, %v1311_v6  ;;  %v7932_v46 = vpop.f32.mrf.mxu2  ;;  %v1168_v31 = vpop.f32.mrf.mxu0 }
 0x3c6   :  { %v1836_v20 = vmax.f32 %v1649_v34, 0.0  ;;  %12012 = vst [vmem:[#allocation5_spill] sm:$0xff] %v7930_v56  ;;  %v12014_v34 = vmax.f32 %v12013_v28, 0.0 }
 0x3c8   :  { %6124 = vmatmul.msk.f32.gmra.mxu3 %vm420_vm0, %v7921_v27  ;;  %6175 = vmatmul.msk.f32.gmra.mxu1 %vm420_vm0, %v1836_v20  ;;  %v1312_v20 = vadd.f32 %v1162_v17, %v12014_v34 }
 0x3ca   :  { %v7941_v49 = vadd.f32 %v7752_v58, %v1312_v20 }
 0x3cb   :  { %v1651_v24 = vpop.f32.mrf.mxu3 }
 0x3cc   :  { %v1652_v11 = vadd.f32 %v7894_v38, %v1651_v24  ;;  %12015 = vst [vmem:[#allocation6_spill] sm:$0xff] %v7941_v49  ;;  %v7946_v24 = vpop.f32.mrf.mxu2  ;;  %v1171_v34 = vpop.f32.mrf.mxu0 }
 0x3ce   :  { %v1837_v2 = vmax.f32 %v1652_v11, 0.0  ;;  %v12016_v11 = vld [vmem:[#allocation7_spill] sm:$0xff] }
 0x3d0   :  { %6125 = vmatmul.msk.f32.gmra.mxu3 %vm420_vm0, %v7930_v56  ;;  %6176 = vmatmul.msk.f32.gmra.mxu1 %vm420_vm0, %v1837_v2  ;;  %v12017_v2 = vmax.f32 %v12016_v11, 0.0 }
 0x3d2   :  { %v1313_v29 = vadd.f32 %v1165_v33, %v12017_v2 }
 0x3d3   :  { %v1654_v55 = vpop.f32.mrf.mxu3 }
 0x3d4   :  { %v1655_v50 = vadd.f32 %v7894_v38, %v1654_v55  ;;  %v7952_v55 = vadd.f32 %v7752_v58, %v1313_v29  ;;  %v7959_v36 = vpop.f32.mrf.mxu2  ;;  %v1174_v29 = vpop.f32.mrf.mxu0 }
 0x3d6   :  { %v1838_v6 = vmax.f32 %v1655_v50, 0.0  ;;  %12018 = vst [vmem:[#allocation7_spill] sm:$0xff] %v7952_v55  ;;  %v12019_v50 = vld [vmem:[#allocation8_spill] sm:$0xff] }
 0x3d8   :  { %6126 = vmatmul.msk.f32.gmra.mxu3 %vm420_vm0, %v7941_v49  ;;  %6177 = vmatmul.msk.f32.gmra.mxu1 %vm420_vm0, %v1838_v6  ;;  %v12020_v6 = vmax.f32 %v12019_v50, 0.0 }
 0x3da   :  { %v1314_v54 = vadd.f32 %v1168_v31, %v12020_v6 }
 0x3db   :  { %v1657_v28 = vpop.f32.mrf.mxu3 }
 0x3dc   :  { %v1658_v17 = vadd.f32 %v7894_v38, %v1657_v28  ;;  %v7963_v2 = vadd.f32 %v7752_v58, %v1314_v54  ;;  %v7971_v6 = vpop.f32.mrf.mxu2 }
 0x3de   :  { %v1839_v20 = vmax.f32 %v1658_v17, 0.0  ;;  %12021 = vst [vmem:[#allocation8_spill] sm:$0xff] %v7963_v2  ;;  %v12022_v17 = vld [vmem:[#allocation9_spill] sm:$0xff] }
 0x3e0   :  { %6127 = vmatmul.msk.f32.gmra.mxu3 %vm420_vm0, %v7952_v55  ;;  %6178 = vmatmul.msk.f32.gmra.mxu1 %vm420_vm0, %v1839_v20  ;;  %v12023_v20 = vmax.f32 %v12022_v17, 0.0 }
 0x3e2   :  { %v1315_v10 = vadd.f32 %v1171_v34, %v12023_v20 }
 0x3e3   :  { %v1660_v11 = vpop.f32.mrf.mxu3 }
 0x3e4   :  { %v1661_v33 = vadd.f32 %v7894_v38, %v1660_v11  ;;  %v7974_v11 = vadd.f32 %v7752_v58, %v1315_v10  ;;  %v7985_v23 = vpop.f32.mrf.mxu2  ;;  %v12028_v10 = vld [vmem:[#allocation11_spill] sm:$0xff] }
 0x3e6   :  { %v1840_v28 = vmax.f32 %v1661_v33, 0.0  ;;  %12024 = vst [vmem:[#allocation9_spill] sm:$0xff] %v7974_v11  ;;  %v1177_v33 = vpop.f32.mrf.mxu0 }
 0x3e8   :  { %6128 = vmatmul.msk.f32.gmra.mxu3 %vm420_vm0, %v7963_v2  ;;  %6179 = vmatmul.msk.f32.gmra.mxu1 %vm420_vm0, %v1840_v28  ;;  %v12026_v28 = vmax.f32 %v12025_v51, 0.0 }
 0x3ea   :  { %v1316_v32 = vadd.f32 %v1174_v29, %v12026_v28 }
 0x3eb   :  { %v1663_v50 = vpop.f32.mrf.mxu3 }
 0x3ec   :  { %v1664_v31 = vadd.f32 %v7894_v38, %v1663_v50  ;;  %v7983_v20 = vadd.f32 %v7752_v58, %v1316_v32 }
 0x3ee   :  { %v1841_v54 = vmax.f32 %v1664_v31, 0.0  ;;  %12027 = vst [vmem:[#allocation10_spill] sm:$0xff] %v7983_v20  ;;  %v12029_v31 = vmax.f32 %v12028_v10, 0.0 }
 0x3f0   :  { %6129 = vmatmul.msk.f32.gmra.mxu3 %vm420_vm0, %v7974_v11  ;;  %6180 = vmatmul.msk.f32.gmra.mxu1 %vm420_vm0, %v1841_v54  ;;  %v1317_v54 = vadd.f32 %v1177_v33, %v12029_v31  ;;  %v1180_v11 = vpop.f32.mrf.mxu0 }
 0x3f2   :  { %v7994_v28 = vadd.f32 %v7752_v58, %v1317_v54 }
 0x3f3   :  { %v1666_v17 = vpop.f32.mrf.mxu3 }
 0x3f4   :  { %v1667_v34 = vadd.f32 %v7894_v38, %v1666_v17  ;;  %12030 = vst [vmem:[#allocation11_spill] sm:$0xff] %v7994_v28  ;;  %v7999_v17 = vpop.f32.mrf.mxu2 }
 0x3f6   :  { %v1842_v50 = vmax.f32 %v1667_v34, 0.0  ;;  %v12031_v34 = vld [vmem:[#allocation12_spill] sm:$0xff] }
 0x3f8   :  { %6130 = vmatmul.msk.f32.gmra.mxu3 %vm420_vm0, %v7983_v20  ;;  %6181 = vmatmul.msk.f32.gmra.mxu1 %vm420_vm0, %v1842_v50  ;;  %v12032_v50 = vmax.f32 %v12031_v34, 0.0  ;;  %v1183_v31 = vpop.f32.mrf.mxu0 }
 0x3fa   :  { %v1318_v20 = vadd.f32 %v1180_v11, %v12032_v50 }
 0x3fb   :  { %v1669_v51 = vpop.f32.mrf.mxu3 }
 0x3fc   :  { %v1670_v29 = vadd.f32 %v7894_v38, %v1669_v51  ;;  %v8005_v51 = vadd.f32 %v7752_v58, %v1318_v20  ;;  %v8015_v50 = vpop.f32.mrf.mxu2 }
 0x3fe   :  { %v1843_v32 = vmax.f32 %v1670_v29, 0.0  ;;  %12033 = vst [vmem:[#allocation12_spill] sm:$0xff] %v8005_v51  ;;  %v6239_v29 = vld [vmem:[%s11690_s4 + $0x48] sm:$0xff] }
 0x3ff   :  { %2653 = vmatpush.msrb.mxu2 %v6239_v29 }
 0x400   :  { %6131 = vmatmul.msk.f32.gmra.mxu3 %vm420_vm0, %v7994_v28  ;;  %6182 = vmatmul.msk.f32.gmra.mxu1 %vm420_vm0, %v1843_v32  ;;  %v12034_v32 = vld [vmem:[#allocation13_spill] sm:$0xff]  ;;  %v1186_v14 = vpop.f32.mrf.mxu0 }
 0x401   :  { %v12035_v11 = vmax.f32 %v12034_v32, 0.0 }
 0x403   :  { %v1672_v10 = vpop.f32.mrf.mxu3  ;;  %v1319_v34 = vadd.f32 %v1183_v31, %v12035_v11  ;;  %v12037_v31 = vld [vmem:[#allocation14_spill] sm:$0xff] }
 0x404   :  { %v1673_v33 = vadd.f32 %v7894_v38, %v1672_v10  ;;  %v12038_v29 = vmax.f32 %v12037_v31, 0.0 }
 0x406   :  { %v1844_v54 = vmax.f32 %v1673_v33, 0.0  ;;  %v8019_v33 = vadd.f32 %v7752_v58, %v1319_v34  ;;  %v1320_v32 = vadd.f32 %v1186_v14, %v12038_v29  ;;  %v8030_v34 = vpop.f32.mrf.mxu2  ;;  %v6448_v14 = vld [vmem:[%s11692_s6 + $0x78] sm:$0xff] }
 0x407   :  { %4135 = vmatpush.msra.mxu1 %v6448_v14 }
 0x408   :  { %6132 = vmatmul.msk.f32.gmra.mxu3 %vm420_vm0, %v8005_v51  ;;  %6183 = vmatmul.msk.f32.gmra.mxu1 %vm420_vm0, %v1844_v54  ;;  %12036 = vst [vmem:[#allocation13_spill] sm:$0xff] %v8019_v33  ;;  %v6308_v54 = vld [vmem:[%s11692_s6 + $0x48] sm:$0xff] }
 0x409   :  { %3123 = vmatpush.msrb.mxu3 %v6308_v54  ;;  %v12040_v54 = vld [vmem:[#allocation15_spill] sm:$0xff] }
 0x40a   :  { %v12041_v31 = vmax.f32 %v12040_v54, 0.0 }
 0x40b   :  { %v1675_v10 = vpop.f32.mrf.mxu3 }
 0x40c   :  { %v1676_v20 = vadd.f32 %v7894_v38, %v1675_v10  ;;  %v1321_v29 = vadd.f32 %v7658_v53, %v12041_v31 }
 0x40e   :  { %v1845_v28 = vmax.f32 %v1676_v20, 0.0  ;;  %v8033_v20 = vadd.f32 %v7752_v58, %v1320_v32 }
 0x410   :  { %6133 = vmatmul.msk.f32.gmra.mxu3 %vm420_vm0, %v8019_v33  ;;  %6184 = vmatmul.msk.f32.gmra.mxu1 %vm420_vm0, %v1845_v28  ;;  %12039 = vst [vmem:[#allocation14_spill] sm:$0xff] %v8033_v20  ;;  %v6238_v28 = vld [vmem:[%s11690_s4 + $0x40] sm:$0xff] }
 0x411   :  { %2654 = vmatpush.msrb.mxu2 %v6238_v28  ;;  %v12043_v28 = vld [vmem:[#allocation16_spill] sm:$0xff] }
 0x412   :  { %v12044_v14 = vmax.f32 %v12043_v28, 0.0 }
 0x413   :  { %v1678_v11 = vpop.f32.mrf.mxu3 }
 0x414   :  { %v1679_v10 = vadd.f32 %v7894_v38, %v1678_v11  ;;  %v1322_v54 = vadd.f32 %v7667_v5, %v12044_v14 }
 0x416   :  { %v1846_v51 = vmax.f32 %v1679_v10, 0.0  ;;  %v8049_v10 = vadd.f32 %v7752_v58, %v1321_v29  ;;  %v8061_v31 = vadd.f32 %v7752_v58, %v1322_v54  ;;  %v12049_v54 = vld [vmem:[#allocation18_spill] sm:$0xff] }
 0x418   :  { %6134 = vmatmul.msk.f32.gmra.mxu3 %vm420_vm0, %v8033_v20  ;;  %6185 = vmatmul.msk.f32.gmra.mxu1 %vm420_vm0, %v1846_v51  ;;  %12042 = vst [vmem:[#allocation15_spill] sm:$0xff] %v8049_v10  ;;  %v8051_v20 = vpop.f32.mrf.mxu2 }
 0x419   :  { %12045 = vst [vmem:[#allocation16_spill] sm:$0xff] %v8061_v31 }
 0x41b   :  { %v1681_v32 = vpop.f32.mrf.mxu3 }
 0x41c   :  { %v1682_v11 = vadd.f32 %v7894_v38, %v1681_v32 }
 0x41e   :  { %v1847_v51 = vmax.f32 %v1682_v11, 0.0  ;;  %v12046_v11 = vld [vmem:[#allocation17_spill] sm:$0xff] }
 0x420   :  { %6135 = vmatmul.msk.f32.gmra.mxu3 %vm420_vm0, %v8049_v10  ;;  %6186 = vmatmul.msk.f32.gmra.mxu1 %vm420_vm0, %v1847_v51  ;;  %v8066_v32 = vpop.f32.mrf.mxu2  ;;  %v12047_v51 = vmax.f32 %v12046_v11, 0.0 }
 0x422   :  { %v1323_v28 = vadd.f32 %v7677_v41, %v12047_v51 }
 0x423   :  { %v1684_v33 = vpop.f32.mrf.mxu3 }
 0x424   :  { %v1685_v53 = vadd.f32 %v7894_v38, %v1684_v33  ;;  %v8073_v33 = vadd.f32 %v7752_v58, %v1323_v28 }
 0x426   :  { %v1848_v29 = vmax.f32 %v1685_v53, 0.0  ;;  %12048 = vst [vmem:[#allocation17_spill] sm:$0xff] %v8073_v33  ;;  %v12050_v53 = vmax.f32 %v12049_v54, 0.0 }
 0x428   :  { %6136 = vmatmul.msk.f32.gmra.mxu3 %vm420_vm0, %v8061_v31  ;;  %6187 = vmatmul.msk.f32.gmra.mxu1 %vm420_vm0, %v1848_v29  ;;  %v1324_v29 = vadd.f32 %v7684_v57, %v12050_v53  ;;  %v8081_v31 = vpop.f32.mrf.mxu2  ;;  %v12053_v57 = vld [vmem:[#allocation19_spill] sm:$0xff] }
 0x429   :  { %v12054_v53 = vmax.f32 %v12053_v57, 0.0 }
 0x42a   :  { %v8090_v28 = vadd.f32 %v7752_v58, %v1324_v29 }
 0x42b   :  { %v1687_v10 = vpop.f32.mrf.mxu3 }
 0x42c   :  { %v1688_v5 = vadd.f32 %v7894_v38, %v1687_v10  ;;  %v8087_v10 = vld [vmem:[%s11693_s7 + $0x1] ss:$0 sm:$0xff]  ;;  %12051 = vst [vmem:[#allocation18_spill] sm:$0xff] %v8090_v28 }
 0x42e   :  { %v1849_v14 = vmax.f32 %v1688_v5, 0.0 }
 0x430   :  { %6137 = vmatmul.msk.f32.gmra.mxu3 %vm420_vm0, %v8073_v33  ;;  %6188 = vmatmul.msk.f32.gmra.mxu1 %vm420_vm0, %v1849_v14 }
 0x433   :  { %v1690_v11 = vpop.f32.mrf.mxu3 }
 0x434   :  { %v1691_v41 = vadd.f32 %v7894_v38, %v1690_v11  ;;  %v1325_v11 = vadd.f32 %v7696_v37, %v12054_v53  ;;  %v12056_v53 = vld [vmem:[#allocation20_spill] sm:$0xff] }
 0x435   :  { %v2112_v51 = vpop.f32.mrf.mxu1 }
 0x436   :  { %v1850_v5 = vmax.f32 %v1691_v41, 0.0  ;;  %v2304_v14 = vadd.f32 %v2112_v51, %v7755_v59  ;;  %v8107_v51 = vpop.f32.mrf.mxu2  ;;  %v8110_v59 = vadd.f32 %v7752_v58, %v1325_v11 }
 0x438   :  { %v8094_v54 = vadd.f32 %v8087_v10, %v2304_v14  ;;  %6138 = vmatmul.msk.f32.gmra.mxu3 %vm420_vm0, %v8090_v28  ;;  %6189 = vmatmul.msk.f32.gmra.mxu1 %vm420_vm0, %v1850_v5  ;;  %12055 = vst [vmem:[#allocation19_spill] sm:$0xff] %v8110_v59 }
 0x43a   :  { %12052 = vst [vmem:[#allocation60_spill] sm:$0xff] %v8094_v54  ;;  %4869 = vrot.lane.b32.xlu0 %v8094_v54, %s6696_s23  ;;  %6243 = vmatmul.msk.f32.vlgmr.msrb.gmra.mxu2 %vm420_vm0, %v8094_v54  ;;  %v12057_v54 = vmax.f32 %v12056_v53, 0.0 }
 0x43b   :  { %v1693_v29 = vpop.f32.mrf.mxu3 }
 0x43c   :  { %v1694_v41 = vadd.f32 %v7894_v38, %v1693_v29  ;;  %v1326_v29 = vadd.f32 %v7709_v26, %v12057_v54  ;;  %v12060_v54 = vld [vmem:[#allocation21_spill] sm:$0xff] }
 0x43d   :  { %v2115_v14 = vpop.f32.mrf.mxu1  ;;  %v12061_v53 = vmax.f32 %v12060_v54, 0.0 }
 0x43e   :  { %v1851_v5 = vmax.f32 %v1694_v41, 0.0  ;;  %v2305_v57 = vadd.f32 %v2115_v14, %v7763_v40 }
 0x440   :  { %v8114_v37 = vadd.f32 %v8087_v10, %v2305_v57  ;;  %6139 = vmatmul.msk.f32.gmra.mxu3 %vm420_vm0, %v8110_v59  ;;  %6190 = vmatmul.msk.f32.gmra.mxu1 %vm420_vm0, %v1851_v5  ;;  %v8128_v57 = vadd.f32 %v7752_v58, %v1326_v29  ;;  %v8131_v59 = vpop.f32.mrf.mxu2 }
 0x442   :  { %4871 = vrot.lane.b32.xlu0 %v8114_v37, %s6696_s23  ;;  %6244 = vmatmul.msk.f32.gmra.mxu2 %vm420_vm0, %v8114_v37  ;;  %12058 = vst [vmem:[#allocation20_spill] sm:$0xff] %v8128_v57 }
 0x443   :  { %v1696_v11 = vpop.f32.mrf.mxu3 }
 0x444   :  { %v1697_v41 = vadd.f32 %v7894_v38, %v1696_v11  ;;  %v1327_v11 = vadd.f32 %v7722_v21, %v12061_v53  ;;  %v12064_v53 = vld [vmem:[#allocation22_spill] sm:$0xff] }
 0x445   :  { %v2118_v14 = vpop.f32.mrf.mxu1 }
 0x446   :  { %v1852_v40 = vmax.f32 %v1697_v41, 0.0  ;;  %v2306_v5 = vadd.f32 %v2118_v14, %v7771_v15 }
 0x448   :  { %v8134_v26 = vadd.f32 %v8087_v10, %v2306_v5  ;;  %6140 = vmatmul.msk.f32.gmra.mxu3 %vm420_vm0, %v8128_v57  ;;  %6191 = vmatmul.msk.f32.gmra.mxu1 %vm420_vm0, %v1852_v40  ;;  %v8148_v5 = vadd.f32 %v7752_v58, %v1327_v11  ;;  %v8157_v21 = vpop.f32.mrf.mxu2 }
 0x44a   :  { %12059 = vst [vmem:[#allocation61_spill] sm:$0xff] %v8134_v26  ;;  %4873 = vrot.lane.b32.xlu1 %v8134_v26, %s6696_s23  ;;  %6245 = vmatmul.msk.f32.gmra.mxu2 %vm420_vm0, %v8134_v26  ;;  %v12065_v26 = vmax.f32 %v12064_v53, 0.0 }
 0x44b   :  { %v1699_v29 = vpop.f32.mrf.mxu3  ;;  %12062 = vst [vmem:[#allocation21_spill] sm:$0xff] %v8148_v5 }
 0x44c   :  { %v1700_v41 = vadd.f32 %v7894_v38, %v1699_v29  ;;  %v1328_v29 = vadd.f32 %v7734_v13, %v12065_v26  ;;  %v12068_v13 = vld [vmem:[#allocation23_spill] sm:$0xff] }
 0x44d   :  { %v2121_v14 = vpop.f32.mrf.mxu1  ;;  %v12069_v26 = vmax.f32 %v12068_v13, 0.0 }
 0x44e   :  { %v1853_v15 = vmax.f32 %v1700_v41, 0.0  ;;  %v2307_v40 = vadd.f32 %v2121_v14, %v7782_v48 }
 0x450   :  { %v8152_v54 = vadd.f32 %v8087_v10, %v2307_v40  ;;  %6141 = vmatmul.msk.f32.gmra.mxu3 %vm420_vm0, %v8148_v5  ;;  %6192 = vmatmul.msk.f32.gmra.mxu1 %vm420_vm0, %v1853_v15  ;;  %v8168_v40 = vadd.f32 %v7752_v58, %v1328_v29  ;;  %v8184_v29 = vpop.f32.mrf.mxu2 }
 0x452   :  { %12063 = vst [vmem:[#allocation62_spill] sm:$0xff] %v8152_v54  ;;  %4875 = vrot.lane.b32.xlu1 %v8152_v54, %s6696_s23  ;;  %6246 = vmatmul.msk.f32.gmra.mxu2 %vm420_vm0, %v8152_v54  ;;  %v1329_v54 = vadd.f32 %v7738_v9, %v12069_v26  ;;  %v12072_v26 = vld [vmem:[#allocation24_spill] sm:$0xff] }
 0x453   :  { %v1702_v11 = vpop.f32.mrf.mxu3  ;;  %12066 = vst [vmem:[#allocation22_spill] sm:$0xff] %v8168_v40 }
 0x454   :  { %v1703_v41 = vadd.f32 %v7894_v38, %v1702_v11 }
 0x455   :  { %v2124_v14 = vpop.f32.mrf.mxu1 }
 0x456   :  { %v1854_v15 = vmax.f32 %v1703_v41, 0.0  ;;  %v2308_v48 = vadd.f32 %v2124_v14, %v7789_v43  ;;  %v8188_v14 = vadd.f32 %v7752_v58, %v1329_v54  ;;  %v12073_v43 = vmax.f32 %v12072_v26, 0.0 }
 0x458   :  { %v8172_v53 = vadd.f32 %v8087_v10, %v2308_v48  ;;  %6142 = vmatmul.msk.f32.gmra.mxu3 %vm420_vm0, %v8168_v40  ;;  %6193 = vmatmul.msk.f32.gmra.mxu1 %vm420_vm0, %v1854_v15  ;;  %12070 = vst [vmem:[#allocation23_spill] sm:$0xff] %v8188_v14 }
 0x45a   :  { %12067 = vst [vmem:[#allocation63_spill] sm:$0xff] %v8172_v53  ;;  %4877 = vrot.lane.b32.xlu2 %v8172_v53, %s6696_s23  ;;  %6247 = vmatmul.msk.f32.gmra.mxu2 %vm420_vm0, %v8172_v53  ;;  %v1330_v53 = vadd.f32 %v7932_v46, %v12073_v43  ;;  %v12075_v46 = vld [vmem:[#allocation25_spill] sm:$0xff] }
 0x45b   :  { %v1705_v11 = vpop.f32.mrf.mxu3 }
 0x45c   :  { %v1706_v48 = vadd.f32 %v7894_v38, %v1705_v11 }
 0x45d   :  { %v2127_v41 = vpop.f32.mrf.mxu1 }
 0x45e   :  { %v1855_v15 = vmax.f32 %v1706_v48, 0.0  ;;  %v2309_v13 = vadd.f32 %v2127_v41, %v7796_v44  ;;  %v8205_v48 = vpop.f32.mrf.mxu2  ;;  %v12076_v44 = vmax.f32 %v12075_v46, 0.0 }
 0x460   :  { %v8192_v9 = vadd.f32 %v8087_v10, %v2309_v13  ;;  %6143 = vmatmul.msk.f32.gmra.mxu3 %vm420_vm0, %v8188_v14  ;;  %6194 = vmatmul.msk.f32.gmra.mxu1 %vm420_vm0, %v1855_v15  ;;  %v8208_v13 = vadd.f32 %v7752_v58, %v1330_v53 }
 0x462   :  { %12071 = vst [vmem:[#allocation64_spill] sm:$0xff] %v8192_v9  ;;  %4879 = vrot.lane.b32.xlu2 %v8192_v9, %s6696_s23  ;;  %6248 = vmatmul.msk.f32.gmra.mxu2 %vm420_vm0, %v8192_v9 }
 0x463   :  { %v1708_v54 = vpop.f32.mrf.mxu3  ;;  %12074 = vst [vmem:[#allocation24_spill] sm:$0xff] %v8208_v13 }
 0x464   :  { %v1709_v11 = vadd.f32 %v7894_v38, %v1708_v54  ;;  %v1331_v54 = vadd.f32 %v7946_v24, %v12076_v44  ;;  %v12079_v24 = vld [vmem:[#allocation26_spill] sm:$0xff] }
 0x465   :  { %v2130_v41 = vpop.f32.mrf.mxu1  ;;  %v12080_v46 = vmax.f32 %v12079_v24, 0.0 }
 0x466   :  { %v1856_v15 = vmax.f32 %v1709_v11, 0.0  ;;  %v2310_v26 = vadd.f32 %v2130_v41, %v7803_v39  ;;  %v8229_v9 = vpop.f32.mrf.mxu2 }
 0x468   :  { %v8212_v43 = vadd.f32 %v8087_v10, %v2310_v26  ;;  %6144 = vmatmul.msk.f32.gmra.mxu3 %vm420_vm0, %v8208_v13  ;;  %6195 = vmatmul.msk.f32.gmra.mxu1 %vm420_vm0, %v1856_v15  ;;  %v8226_v26 = vadd.f32 %v7752_v58, %v1331_v54 }
 0x46a   :  { %4881 = vrot.lane.b32.xlu0 %v8212_v43, %s6696_s23  ;;  %6249 = vmatmul.msk.f32.gmra.mxu2 %vm420_vm0, %v8212_v43  ;;  %12077 = vst [vmem:[#allocation25_spill] sm:$0xff] %v8226_v26 }
 0x46b   :  { %v1711_v53 = vpop.f32.mrf.mxu3 }
 0x46c   :  { %v1712_v11 = vadd.f32 %v7894_v38, %v1711_v53  ;;  %v1332_v53 = vadd.f32 %v7959_v36, %v12080_v46  ;;  %v12083_v46 = vld [vmem:[#allocation27_spill] sm:$0xff] }
 0x46d   :  { %v2133_v41 = vpop.f32.mrf.mxu1 }
 0x46e   :  { %v1857_v39 = vmax.f32 %v1712_v11, 0.0  ;;  %v2311_v15 = vadd.f32 %v2133_v41, %v7810_v35  ;;  %v8255_v36 = vpop.f32.mrf.mxu2 }
 0x470   :  { %v8232_v44 = vadd.f32 %v8087_v10, %v2311_v15  ;;  %6145 = vmatmul.msk.f32.gmra.mxu3 %vm420_vm0, %v8226_v26  ;;  %6196 = vmatmul.msk.f32.gmra.mxu1 %vm420_vm0, %v1857_v39  ;;  %v8246_v15 = vadd.f32 %v7752_v58, %v1332_v53 }
 0x472   :  { %12078 = vst [vmem:[#allocation65_spill] sm:$0xff] %v8232_v44  ;;  %4883 = vrot.lane.b32.xlu1 %v8232_v44, %s6696_s23  ;;  %6250 = vmatmul.msk.f32.gmra.mxu2 %vm420_vm0, %v8232_v44  ;;  %v12084_v44 = vmax.f32 %v12083_v46, 0.0 }
 0x473   :  { %v1714_v54 = vpop.f32.mrf.mxu3  ;;  %12081 = vst [vmem:[#allocation26_spill] sm:$0xff] %v8246_v15 }
 0x474   :  { %v1715_v11 = vadd.f32 %v7894_v38, %v1714_v54  ;;  %v1333_v54 = vadd.f32 %v7971_v6, %v12084_v44  ;;  %v12087_v6 = vld [vmem:[#allocation28_spill] sm:$0xff] }
 0x475   :  { %v2136_v41 = vpop.f32.mrf.mxu1  ;;  %v12088_v44 = vmax.f32 %v12087_v6, 0.0 }
 0x476   :  { %v1858_v35 = vmax.f32 %v1715_v11, 0.0  ;;  %v2312_v39 = vadd.f32 %v2136_v41, %v7817_v52 }
 0x478   :  { %v8250_v24 = vadd.f32 %v8087_v10, %v2312_v39  ;;  %6146 = vmatmul.msk.f32.gmra.mxu3 %vm420_vm0, %v8246_v15  ;;  %6197 = vmatmul.msk.f32.gmra.mxu1 %vm420_vm0, %v1858_v35  ;;  %v8266_v39 = vadd.f32 %v7752_v58, %v1333_v54  ;;  %v8282_v54 = vpop.f32.mrf.mxu2 }
 0x47a   :  { %12082 = vst [vmem:[#allocation66_spill] sm:$0xff] %v8250_v24  ;;  %4885 = vrot.lane.b32.xlu2 %v8250_v24, %s6696_s23  ;;  %6251 = vmatmul.msk.f32.gmra.mxu2 %vm420_vm0, %v8250_v24  ;;  %v1334_v24 = vadd.f32 %v7985_v23, %v12088_v44  ;;  %v12091_v44 = vld [vmem:[#allocation29_spill] sm:$0xff] }
 0x47b   :  { %v1717_v53 = vpop.f32.mrf.mxu3  ;;  %12085 = vst [vmem:[#allocation27_spill] sm:$0xff] %v8266_v39 }
 0x47c   :  { %v1718_v11 = vadd.f32 %v7894_v38, %v1717_v53 }
 0x47d   :  { %v2139_v41 = vpop.f32.mrf.mxu1 }
 0x47e   :  { %v1859_v35 = vmax.f32 %v1718_v11, 0.0  ;;  %v2313_v52 = vadd.f32 %v2139_v41, %v7824_v1  ;;  %v8286_v41 = vadd.f32 %v7752_v58, %v1334_v24  ;;  %v12092_v1 = vmax.f32 %v12091_v44, 0.0 }
 0x480   :  { %v8270_v46 = vadd.f32 %v8087_v10, %v2313_v52  ;;  %6147 = vmatmul.msk.f32.gmra.mxu3 %vm420_vm0, %v8266_v39  ;;  %6198 = vmatmul.msk.f32.gmra.mxu1 %vm420_vm0, %v1859_v35  ;;  %12089 = vst [vmem:[#allocation28_spill] sm:$0xff] %v8286_v41 }
 0x482   :  { %12086 = vst [vmem:[#allocation67_spill] sm:$0xff] %v8270_v46  ;;  %4887 = vrot.lane.b32.xlu0 %v8270_v46, %s6696_s23  ;;  %6252 = vmatmul.msk.f32.gmra.mxu2 %vm420_vm0, %v8270_v46  ;;  %v1335_v46 = vadd.f32 %v7999_v17, %v12092_v1  ;;  %v6307_v17 = vld [vmem:[%s11692_s6 + $0x40] sm:$0xff] }
 0x483   :  { %v1720_v53 = vpop.f32.mrf.mxu3  ;;  %3124 = vmatpush.msrb.mxu3 %v6307_v17 }
 0x484   :  { %v1721_v52 = vadd.f32 %v7894_v38, %v1720_v53 }
 0x485   :  { %v2142_v11 = vpop.f32.mrf.mxu1 }
 0x486   :  { %v1860_v35 = vmax.f32 %v1721_v52, 0.0  ;;  %v2314_v6 = vadd.f32 %v2142_v11, %v7831_v61  ;;  %v8303_v52 = vpop.f32.mrf.mxu2 }
 0x488   :  { %v8290_v23 = vadd.f32 %v8087_v10, %v2314_v6  ;;  %6148 = vmatmul.msk.f32.gmra.mxu3 %vm420_vm0, %v8286_v41  ;;  %6199 = vmatmul.msk.f32.gmra.mxu1 %vm420_vm0, %v1860_v35  ;;  %v8306_v6 = vadd.f32 %v7752_v58, %v1335_v46 }
 0x48a   :  { %12090 = vst [vmem:[#allocation68_spill] sm:$0xff] %v8290_v23  ;;  %4889 = vrot.lane.b32.xlu1 %v8290_v23, %s6696_s23  ;;  %6253 = vmatmul.msk.f32.gmra.mxu2 %vm420_vm0, %v8290_v23 }
 0x48b   :  { %v1723_v24 = vpop.f32.mrf.mxu3  ;;  %12093 = vst [vmem:[#allocation29_spill] sm:$0xff] %v8306_v6 }
 0x48c   :  { %v1724_v53 = vadd.f32 %v7894_v38, %v1723_v24  ;;  %v12094_v24 = vld [vmem:[#allocation30_spill] sm:$0xff] }
 0x48d   :  { %v2145_v11 = vpop.f32.mrf.mxu1  ;;  %v12095_v61 = vmax.f32 %v12094_v24, 0.0  ;;  %v12097_v24 = vld [vmem:[#allocation31_spill] sm:$0xff] }
 0x48e   :  { %v1861_v35 = vmax.f32 %v1724_v53, 0.0  ;;  %v2315_v44 = vadd.f32 %v2145_v11, %v7844_v0  ;;  %v8330_v23 = vpop.f32.mrf.mxu2 }
 0x48f   :  { %v1336_v46 = vadd.f32 %v8015_v50, %v12095_v61  ;;  %v6447_v50 = vld [vmem:[%s11692_s6 + $0x70] sm:$0xff] }
 0x490   :  { %v8310_v1 = vadd.f32 %v8087_v10, %v2315_v44  ;;  %6149 = vmatmul.msk.f32.gmra.mxu3 %vm420_vm0, %v8306_v6  ;;  %6200 = vmatmul.msk.f32.gmra.mxu1 %vm420_vm0, %v1861_v35 }
 0x491   :  { %v8327_v35 = vadd.f32 %v7752_v58, %v1336_v46  ;;  %4136 = vmatpush.msra.mxu1 %v6447_v50  ;;  %v12098_v46 = vmax.f32 %v12097_v24, 0.0 }
 0x492   :  { %4891 = vrot.lane.b32.xlu2 %v8310_v1, %s6696_s23  ;;  %6254 = vmatmul.msk.f32.gmra.mxu2 %vm420_vm0, %v8310_v1 }
 0x493   :  { %v1726_v53 = vpop.f32.mrf.mxu3  ;;  %12096 = vst [vmem:[#allocation30_spill] sm:$0xff] %v8327_v35 }
 0x494   :  { %v1727_v11 = vadd.f32 %v7894_v38, %v1726_v53  ;;  %v1337_v53 = vadd.f32 %v8030_v34, %v12098_v46  ;;  %v134_v34 = vld [vmem:[%s11694_s8 + $0x18] sm:$0xff] }
 0x495   :  { %v2148_v44 = vpop.f32.mrf.mxu1  ;;  %4672 = vmatpush.msra.mxu2 %v134_v34 }
 0x496   :  { %v1862_v0 = vmax.f32 %v1727_v11, 0.0  ;;  %v2316_v17 = vadd.f32 %v2148_v44, %v7851_v8  ;;  %v8362_v46 = vpop.f32.mrf.mxu2 }
 0x498   :  { %v8333_v61 = vadd.f32 %v8087_v10, %v2316_v17  ;;  %6150 = vmatmul.msk.f32.gmra.mxu3 %vm420_vm0, %v8327_v35  ;;  %6201 = vmatmul.msk.f32.gmra.mxu1 %vm420_vm0, %v1862_v0  ;;  %v8350_v0 = vadd.f32 %v7752_v58, %v1337_v53  ;;  %v12100_v53 = vmax.f32 %v7428_v62, 0.0 }
 0x49a   :  { %4893 = vrot.lane.b32.xlu0 %v8333_v61, %s6696_s23  ;;  %6255 = vmatmul.msk.f32.gmra.mxu2 %vm420_vm0, %v8333_v61  ;;  %12099 = vst [vmem:[#allocation31_spill] sm:$0xff] %v8350_v0 }
 0x49b   :  { %v1729_v11 = vpop.f32.mrf.mxu3 }
 0x49c   :  { %v1730_v44 = vadd.f32 %v7894_v38, %v1729_v11  ;;  %v1338_v11 = vadd.f32 %v8051_v20, %v12100_v53  ;;  %v6379_v20 = vld [vmem:[%s11690_s4 + $0x78] sm:$0xff]  ;;  %v12102_v53 = vmax.f32 %v7439_v30, 0.0 }
 0x49d   :  { %v2151_v17 = vpop.f32.mrf.mxu1  ;;  %3665 = vmatpush.msra.mxu0 %v6379_v20 }
 0x49e   :  { %v1863_v8 = vmax.f32 %v1730_v44, 0.0  ;;  %v2317_v50 = vadd.f32 %v2151_v17, %v7861_v12  ;;  %v8373_v34 = vadd.f32 %v7752_v58, %v1338_v11  ;;  %v1339_v11 = vadd.f32 %v8066_v32, %v12102_v53 }
 0x49f   :  { %v12104_v53 = vmax.f32 %v7451_v63, 0.0 }
 0x4a0   :  { %v8357_v24 = vadd.f32 %v8087_v10, %v2317_v50  ;;  %6151 = vmatmul.msk.f32.gmra.mxu3 %vm420_vm0, %v8350_v0  ;;  %6202 = vmatmul.msk.f32.gmra.mxu1 %vm420_vm0, %v1863_v8  ;;  %12101 = vst [vmem:[#allocation69_spill] sm:$0xff] %v8373_v34 }
 0x4a2   :  { %4895 = vrot.lane.b32.xlu1 %v8357_v24, %s6696_s23  ;;  %6256 = vmatmul.msk.f32.gmra.mxu2 %vm420_vm0, %v8357_v24 }
 0x4a3   :  { %v1732_v44 = vpop.f32.mrf.mxu3 }
 0x4a4   :  { %v1733_v17 = vadd.f32 %v7894_v38, %v1732_v44 }
 0x4a5   :  { %v2154_v50 = vpop.f32.mrf.mxu1 }
 0x4a6   :  { %v1864_v8 = vmax.f32 %v1733_v17, 0.0  ;;  %v2318_v12 = vadd.f32 %v2154_v50, %v7871_v16  ;;  %v1340_v16 = vadd.f32 %v8081_v31, %v12104_v53  ;;  %v12107_v53 = vmax.f32 %v7461_v7, 0.0 }
 0x4a8   :  { %v8377_v62 = vadd.f32 %v8087_v10, %v2318_v12  ;;  %6152 = vmatmul.msk.f32.gmra.mxu3 %vm420_vm0, %v8373_v34  ;;  %6203 = vmatmul.msk.f32.gmra.mxu1 %vm420_vm0, %v1864_v8  ;;  %v8392_v12 = vpop.f32.mrf.mxu2  ;;  %v8396_v8 = vadd.f32 %v7752_v58, %v1339_v11 }
 0x4aa   :  { %4897 = vrot.lane.b32.xlu2 %v8377_v62, %s6696_s23  ;;  %6257 = vmatmul.msk.f32.gmra.mxu2 %vm420_vm0, %v8377_v62  ;;  %12103 = vst [vmem:[#allocation70_spill] sm:$0xff] %v8396_v8 }
 0x4ab   :  { %v1735_v44 = vpop.f32.mrf.mxu3 }
 0x4ac   :  { %v1736_v17 = vadd.f32 %v7894_v38, %v1735_v44 }
 0x4ad   :  { %v2157_v50 = vpop.f32.mrf.mxu1 }
 0x4ae   :  { %v1865_v20 = vmax.f32 %v1736_v17, 0.0  ;;  %v2319_v30 = vadd.f32 %v2157_v50, %v7878_v4 }
 0x4b0   :  { %v8400_v32 = vadd.f32 %v8087_v10, %v2319_v30  ;;  %6153 = vmatmul.msk.f32.gmra.mxu3 %vm420_vm0, %v8396_v8  ;;  %6204 = vmatmul.msk.f32.gmra.mxu1 %vm420_vm0, %v1865_v20  ;;  %v8413_v17 = vpop.f32.mrf.mxu2  ;;  %v8416_v30 = vadd.f32 %v7752_v58, %v1340_v16 }
 0x4b2   :  { %4899 = vrot.lane.b32.xlu0 %v8400_v32, %s6696_s23  ;;  %6258 = vmatmul.msk.f32.gmra.mxu2 %vm420_vm0, %v8400_v32  ;;  %12105 = vst [vmem:[#allocation71_spill] sm:$0xff] %v8416_v30 }
 0x4b3   :  { %v1738_v11 = vpop.f32.mrf.mxu3 }
 0x4b4   :  { %v1739_v44 = vadd.f32 %v7894_v38, %v1738_v11  ;;  %v1341_v11 = vadd.f32 %v8107_v51, %v12107_v53  ;;  %v12110_v53 = vmax.f32 %v7473_v42, 0.0 }
 0x4b5   :  { %v2160_v50 = vpop.f32.mrf.mxu1 }
 0x4b6   :  { %v1866_v20 = vmax.f32 %v1739_v44, 0.0  ;;  %v2320_v63 = vadd.f32 %v2160_v50, %v7887_v22  ;;  %v8436_v22 = vadd.f32 %v7752_v58, %v1341_v11 }
 0x4b8   :  { %v8420_v31 = vadd.f32 %v8087_v10, %v2320_v63  ;;  %6154 = vmatmul.msk.f32.gmra.mxu3 %vm420_vm0, %v8416_v30  ;;  %6205 = vmatmul.msk.f32.gmra.mxu1 %vm420_vm0, %v1866_v20  ;;  %12108 = vst [vmem:[#allocation73_spill] sm:$0xff] %v8436_v22 }
 0x4ba   :  { %12106 = vst [vmem:[#allocation72_spill] sm:$0xff] %v8420_v31  ;;  %4901 = vrot.lane.b32.xlu1 %v8420_v31, %s6696_s23  ;;  %6259 = vmatmul.msk.f32.gmra.mxu2 %vm420_vm0, %v8420_v31 }
 0x4bb   :  { %v1741_v16 = vpop.f32.mrf.mxu3 }
 0x4bc   :  { %v1742_v44 = vadd.f32 %v7894_v38, %v1741_v16  ;;  %v1342_v16 = vadd.f32 %v8131_v59, %v12110_v53  ;;  %v12113_v53 = vmax.f32 %v7485_v18, 0.0 }
 0x4bd   :  { %v2163_v50 = vpop.f32.mrf.mxu1  ;;  %v8433_v63 = vpop.f32.mrf.mxu2 }
 0x4be   :  { %v1867_v20 = vmax.f32 %v1742_v44, 0.0  ;;  %v2321_v7 = vadd.f32 %v2163_v50, %v7900_v60  ;;  %v8456_v60 = vadd.f32 %v7752_v58, %v1342_v16 }
 0x4c0   :  { %v8440_v51 = vadd.f32 %v8087_v10, %v2321_v7  ;;  %6155 = vmatmul.msk.f32.gmra.mxu3 %vm420_vm0, %v8436_v22  ;;  %6206 = vmatmul.msk.f32.gmra.mxu1 %vm420_vm0, %v1867_v20  ;;  %12111 = vst [vmem:[#allocation75_spill] sm:$0xff] %v8456_v60 }
 0x4c2   :  { %12109 = vst [vmem:[#allocation74_spill] sm:$0xff] %v8440_v51  ;;  %4903 = vrot.lane.b32.xlu2 %v8440_v51, %s6696_s23  ;;  %6260 = vmatmul.msk.f32.gmra.mxu2 %vm420_vm0, %v8440_v51  ;;  %v12156_v51 = vld [vmem:[#allocation14_spill] sm:$0xff] }
 0x4c3   :  { %v1744_v11 = vpop.f32.mrf.mxu3 }
 0x4c4   :  { %v1745_v44 = vadd.f32 %v7894_v38, %v1744_v11  ;;  %v1343_v11 = vadd.f32 %v8157_v21, %v12113_v53  ;;  %v12116_v53 = vmax.f32 %v7497_v47, 0.0 }
 0x4c5   :  { %v2166_v50 = vpop.f32.mrf.mxu1  ;;  %v8453_v7 = vpop.f32.mrf.mxu2 }
 0x4c6   :  { %v1868_v20 = vmax.f32 %v1745_v44, 0.0  ;;  %v2322_v42 = vadd.f32 %v2166_v50, %v7909_v25  ;;  %v8476_v25 = vadd.f32 %v7752_v58, %v1343_v11 }
 0x4c8   :  { %v8460_v59 = vadd.f32 %v8087_v10, %v2322_v42  ;;  %6156 = vmatmul.msk.f32.gmra.mxu3 %vm420_vm0, %v8456_v60  ;;  %6207 = vmatmul.msk.f32.gmra.mxu1 %vm420_vm0, %v1868_v20  ;;  %12114 = vst [vmem:[#allocation77_spill] sm:$0xff] %v8476_v25 }
 0x4ca   :  { %12112 = vst [vmem:[#allocation76_spill] sm:$0xff] %v8460_v59  ;;  %4905 = vrot.lane.b32.xlu0 %v8460_v59, %s6696_s23  ;;  %6261 = vmatmul.msk.f32.gmra.mxu2 %vm420_vm0, %v8460_v59 }
 0x4cb   :  { %v1747_v16 = vpop.f32.mrf.mxu3 }
 0x4cc   :  { %v1748_v44 = vadd.f32 %v7894_v38, %v1747_v16  ;;  %v1344_v16 = vadd.f32 %v8184_v29, %v12116_v53  ;;  %v12119_v53 = vmax.f32 %v7509_v45, 0.0 }
 0x4cd   :  { %v2169_v50 = vpop.f32.mrf.mxu1  ;;  %v8473_v42 = vpop.f32.mrf.mxu2 }
 0x4ce   :  { %v1869_v20 = vmax.f32 %v1748_v44, 0.0  ;;  %v2323_v18 = vadd.f32 %v2169_v50, %v7921_v27  ;;  %v8496_v27 = vadd.f32 %v7752_v58, %v1344_v16 }
 0x4d0   :  { %v8480_v21 = vadd.f32 %v8087_v10, %v2323_v18  ;;  %6157 = vmatmul.msk.f32.gmra.mxu3 %vm420_vm0, %v8476_v25  ;;  %6208 = vmatmul.msk.f32.gmra.mxu1 %vm420_vm0, %v1869_v20  ;;  %12117 = vst [vmem:[#allocation79_spill] sm:$0xff] %v8496_v27 }
 0x4d2   :  { %12115 = vst [vmem:[#allocation78_spill] sm:$0xff] %v8480_v21  ;;  %4907 = vrot.lane.b32.xlu1 %v8480_v21, %s6696_s23  ;;  %6262 = vmatmul.msk.f32.gmra.mxu2 %vm420_vm0, %v8480_v21  ;;  %v12146_v21 = vld [vmem:[#allocation12_spill] sm:$0xff] }
 0x4d3   :  { %v1750_v11 = vpop.f32.mrf.mxu3 }
 0x4d4   :  { %v1751_v44 = vadd.f32 %v7894_v38, %v1750_v11  ;;  %v1345_v11 = vadd.f32 %v8205_v48, %v12119_v53  ;;  %v12122_v53 = vmax.f32 %v7521_v19, 0.0 }
 0x4d5   :  { %v2172_v50 = vpop.f32.mrf.mxu1  ;;  %v8493_v18 = vpop.f32.mrf.mxu2 }
 0x4d6   :  { %v1870_v20 = vmax.f32 %v1751_v44, 0.0  ;;  %v2324_v47 = vadd.f32 %v2172_v50, %v7930_v56  ;;  %v8516_v56 = vadd.f32 %v7752_v58, %v1345_v11 }
 0x4d8   :  { %v8500_v29 = vadd.f32 %v8087_v10, %v2324_v47  ;;  %6158 = vmatmul.msk.f32.gmra.mxu3 %vm420_vm0, %v8496_v27  ;;  %6209 = vmatmul.msk.f32.gmra.mxu1 %vm420_vm0, %v1870_v20  ;;  %12120 = vst [vmem:[#allocation81_spill] sm:$0xff] %v8516_v56 }
 0x4da   :  { %12118 = vst [vmem:[#allocation80_spill] sm:$0xff] %v8500_v29  ;;  %4909 = vrot.lane.b32.xlu2 %v8500_v29, %s6696_s23  ;;  %6263 = vmatmul.msk.f32.gmra.mxu2 %vm420_vm0, %v8500_v29  ;;  %v12141_v29 = vld [vmem:[#allocation11_spill] sm:$0xff] }
 0x4db   :  { %v1753_v16 = vpop.f32.mrf.mxu3 }
 0x4dc   :  { %v1754_v44 = vadd.f32 %v7894_v38, %v1753_v16  ;;  %v1346_v16 = vadd.f32 %v8229_v9, %v12122_v53  ;;  %v6378_v53 = vld [vmem:[%s11690_s4 + $0x70] sm:$0xff] }
 0x4dd   :  { %v2175_v50 = vpop.f32.mrf.mxu1  ;;  %v8513_v47 = vpop.f32.mrf.mxu2  ;;  %3666 = vmatpush.msra.mxu0 %v6378_v53 }
 0x4de   :  { %v1871_v20 = vmax.f32 %v1754_v44, 0.0  ;;  %v2325_v45 = vadd.f32 %v2175_v50, %v7941_v49  ;;  %v12125_v49 = vmax.f32 %v7533_v3, 0.0 }
 0x4e0   :  { %v8520_v48 = vadd.f32 %v8087_v10, %v2325_v45  ;;  %6159 = vmatmul.msk.f32.gmra.mxu3 %vm420_vm0, %v8516_v56  ;;  %6210 = vmatmul.msk.f32.gmra.mxu1 %vm420_vm0, %v1871_v20  ;;  %v8538_v20 = vld [vmem:[%s11693_s7] ss:$0 sm:$0xff] }
 0x4e1   :  { %v8541_v19 = vadd.f32 %v8538_v20, %v1346_v16  ;;  %v1347_v16 = vadd.f32 %v8255_v36, %v12125_v49  ;;  %v12128_v36 = vld [vmem:[#allocation32_spill] sm:$0xff] }
 0x4e2   :  { %12121 = vst [vmem:[#allocation82_spill] sm:$0xff] %v8520_v48  ;;  %4911 = vrot.lane.b32.xlu0 %v8520_v48, %s6696_s23  ;;  %6264 = vmatmul.msk.f32.gmra.mxu2 %vm420_vm0, %v8520_v48  ;;  %v12129_v4 = vmax.f32 %v12128_v36, 0.0  ;;  %v12136_v48 = vld [vmem:[#allocation10_spill] sm:$0xff] }
 0x4e3   :  { %v1756_v58 = vpop.f32.mrf.mxu3  ;;  %12123 = vst [vmem:[#allocation83_spill] sm:$0xff] %v8541_v19 }
 0x4e4   :  { %v1757_v11 = vadd.f32 %v7894_v38, %v1756_v58 }
 0x4e5   :  { %v2178_v44 = vpop.f32.mrf.mxu1  ;;  %v8533_v50 = vpop.f32.mrf.mxu2 }
 0x4e6   :  { %v1872_v9 = vmax.f32 %v1757_v11, 0.0  ;;  %v2326_v45 = vadd.f32 %v2178_v44, %v7952_v55  ;;  %v8564_v55 = vadd.f32 %v8538_v20, %v1347_v16 }
 0x4e8   :  { %v8548_v58 = vadd.f32 %v8087_v10, %v2326_v45  ;;  %6160 = vmatmul.msk.f32.gmra.mxu3 %vm420_vm0, %v8541_v19  ;;  %6211 = vmatmul.msk.f32.gmra.mxu1 %vm420_vm0, %v1872_v9  ;;  %12126 = vst [vmem:[#allocation85_spill] sm:$0xff] %v8564_v55 }
 0x4ea   :  { %12124 = vst [vmem:[#allocation84_spill] sm:$0xff] %v8548_v58  ;;  %4913 = vrot.lane.b32.xlu1 %v8548_v58, %s6696_s23  ;;  %6265 = vmatmul.msk.f32.gmra.mxu2 %vm420_vm0, %v8548_v58  ;;  %v12131_v58 = vld [vmem:[#allocation9_spill] sm:$0xff] }
 0x4eb   :  { %v1759_v11 = vpop.f32.mrf.mxu3 }
 0x4ec   :  { %v1760_v44 = vadd.f32 %v7894_v38, %v1759_v11  ;;  %v1348_v11 = vadd.f32 %v8282_v54, %v12129_v4  ;;  %v12133_v54 = vld [vmem:[#allocation33_spill] sm:$0xff] }
 0x4ed   :  { %v2181_v45 = vpop.f32.mrf.mxu1  ;;  %v8561_v53 = vpop.f32.mrf.mxu2 }
 0x4ee   :  { %v1873_v9 = vmax.f32 %v1760_v44, 0.0  ;;  %v2327_v3 = vadd.f32 %v2181_v45, %v7963_v2  ;;  %v8584_v2 = vadd.f32 %v8538_v20, %v1348_v11 }
 0x4f0   :  { %v8568_v49 = vadd.f32 %v8087_v10, %v2327_v3  ;;  %6161 = vmatmul.msk.f32.gmra.mxu3 %vm420_vm0, %v8564_v55  ;;  %6212 = vmatmul.msk.f32.gmra.mxu1 %vm420_vm0, %v1873_v9  ;;  %12130 = vst [vmem:[#allocation32_spill] sm:$0xff] %v8584_v2 }
 0x4f2   :  { %12127 = vst [vmem:[#allocation86_spill] sm:$0xff] %v8568_v49  ;;  %4915 = vrot.lane.b32.xlu2 %v8568_v49, %s6696_s23  ;;  %6266 = vmatmul.msk.f32.gmra.mxu2 %vm420_vm0, %v8568_v49  ;;  %v12134_v49 = vmax.f32 %v12133_v54, 0.0 }
 0x4f3   :  { %v1762_v16 = vpop.f32.mrf.mxu3 }
 0x4f4   :  { %v1763_v44 = vadd.f32 %v7894_v38, %v1762_v16  ;;  %v1349_v16 = vadd.f32 %v8303_v52, %v12134_v49  ;;  %v12138_v49 = vld [vmem:[#allocation34_spill] sm:$0xff] }
 0x4f5   :  { %v2184_v45 = vpop.f32.mrf.mxu1  ;;  %v8581_v3 = vpop.f32.mrf.mxu2 }
 0x4f6   :  { %v1874_v9 = vmax.f32 %v1763_v44, 0.0  ;;  %v2328_v36 = vadd.f32 %v2184_v45, %v12131_v58  ;;  %v8604_v58 = vadd.f32 %v8538_v20, %v1349_v16 }
 0x4f8   :  { %v8588_v4 = vadd.f32 %v8087_v10, %v2328_v36  ;;  %6162 = vmatmul.msk.f32.gmra.mxu3 %vm420_vm0, %v8584_v2  ;;  %6213 = vmatmul.msk.f32.gmra.mxu1 %vm420_vm0, %v1874_v9  ;;  %12135 = vst [vmem:[#allocation33_spill] sm:$0xff] %v8604_v58 }
 0x4fa   :  { %12132 = vst [vmem:[#allocation87_spill] sm:$0xff] %v8588_v4  ;;  %4917 = vrot.lane.b32.xlu0 %v8588_v4, %s6696_s23  ;;  %6267 = vmatmul.msk.f32.gmra.mxu2 %vm420_vm0, %v8588_v4  ;;  %v12139_v4 = vmax.f32 %v12138_v49, 0.0 }
 0x4fb   :  { %v1765_v11 = vpop.f32.mrf.mxu3 }
 0x4fc   :  { %v1766_v44 = vadd.f32 %v7894_v38, %v1765_v11  ;;  %v1350_v11 = vadd.f32 %v8330_v23, %v12139_v4  ;;  %v12143_v4 = vld [vmem:[#allocation35_spill] sm:$0xff] }
 0x4fd   :  { %v2187_v45 = vpop.f32.mrf.mxu1  ;;  %v8601_v36 = vpop.f32.mrf.mxu2 }
 0x4fe   :  { %v1875_v9 = vmax.f32 %v1766_v44, 0.0  ;;  %v2329_v54 = vadd.f32 %v2187_v45, %v12136_v48  ;;  %v8624_v48 = vadd.f32 %v8538_v20, %v1350_v11 }
 0x500   :  { %v8608_v52 = vadd.f32 %v8087_v10, %v2329_v54  ;;  %6163 = vmatmul.msk.f32.gmra.mxu3 %vm420_vm0, %v8604_v58  ;;  %6214 = vmatmul.msk.f32.gmra.mxu1 %vm420_vm0, %v1875_v9  ;;  %12140 = vst [vmem:[#allocation34_spill] sm:$0xff] %v8624_v48 }
 0x502   :  { %12137 = vst [vmem:[#allocation88_spill] sm:$0xff] %v8608_v52  ;;  %4919 = vrot.lane.b32.xlu1 %v8608_v52, %s6696_s23  ;;  %6268 = vmatmul.msk.f32.gmra.mxu2 %vm420_vm0, %v8608_v52  ;;  %v12144_v52 = vmax.f32 %v12143_v4, 0.0 }
 0x503   :  { %v1768_v16 = vpop.f32.mrf.mxu3 }
 0x504   :  { %v1769_v44 = vadd.f32 %v7894_v38, %v1768_v16  ;;  %v1351_v16 = vadd.f32 %v8362_v46, %v12144_v52  ;;  %v12148_v52 = vld [vmem:[#allocation36_spill] sm:$0xff] }
 0x505   :  { %v2190_v45 = vpop.f32.mrf.mxu1  ;;  %v8621_v54 = vpop.f32.mrf.mxu2 }
 0x506   :  { %v1876_v9 = vmax.f32 %v1769_v44, 0.0  ;;  %v2330_v49 = vadd.f32 %v2190_v45, %v12141_v29  ;;  %v8644_v29 = vadd.f32 %v8538_v20, %v1351_v16 }
 0x508   :  { %v8628_v23 = vadd.f32 %v8087_v10, %v2330_v49  ;;  %6164 = vmatmul.msk.f32.gmra.mxu3 %vm420_vm0, %v8624_v48  ;;  %6215 = vmatmul.msk.f32.gmra.mxu1 %vm420_vm0, %v1876_v9  ;;  %12145 = vst [vmem:[#allocation35_spill] sm:$0xff] %v8644_v29 }
 0x50a   :  { %12142 = vst [vmem:[#allocation89_spill] sm:$0xff] %v8628_v23  ;;  %4921 = vrot.lane.b32.xlu2 %v8628_v23, %s6696_s23  ;;  %6269 = vmatmul.msk.f32.gmra.mxu2 %vm420_vm0, %v8628_v23  ;;  %v12149_v23 = vmax.f32 %v12148_v52, 0.0 }
 0x50b   :  { %v1771_v11 = vpop.f32.mrf.mxu3 }
 0x50c   :  { %v1772_v44 = vadd.f32 %v7894_v38, %v1771_v11  ;;  %v1352_v38 = vadd.f32 %v8392_v12, %v12149_v23  ;;  %v8663_v11 = vld [vmem:[%s11691_s5 + $0x1] ss:$0 sm:$0xff] }
 0x50d   :  { %v2193_v45 = vpop.f32.mrf.mxu1  ;;  %v8641_v49 = vpop.f32.mrf.mxu2  ;;  %v12151_v23 = vld [vmem:[#allocation13_spill] sm:$0xff] }
 0x50e   :  { %v1877_v9 = vmax.f32 %v1772_v44, 0.0  ;;  %v2331_v4 = vadd.f32 %v2193_v45, %v12146_v21 }
 0x510   :  { %v8648_v46 = vadd.f32 %v8087_v10, %v2331_v4  ;;  %6165 = vmatmul.msk.f32.gmra.mxu3 %vm420_vm0, %v8644_v29  ;;  %6216 = vmatmul.msk.f32.gmra.mxu1 %vm420_vm0, %v1877_v9  ;;  %v8669_v4 = vadd.f32 %v8538_v20, %v1352_v38 }
 0x512   :  { %12147 = vst [vmem:[#allocation90_spill] sm:$0xff] %v8648_v46  ;;  %4923 = vrot.lane.b32.xlu0 %v8648_v46, %s6696_s23  ;;  %6270 = vmatmul.msk.f32.gmra.mxu2 %vm420_vm0, %v8648_v46  ;;  %v12153_v46 = vld [vmem:[#allocation37_spill] sm:$0xff] }
 0x513   :  { %v1774_v16 = vpop.f32.mrf.mxu3  ;;  %12150 = vst [vmem:[#allocation36_spill] sm:$0xff] %v8669_v4  ;;  %v12154_v59 = vmax.f32 %v12153_v46, 0.0 }
 0x514   :  { %v1775_v44 = vadd.f32 %v8663_v11, %v1774_v16  ;;  %v6446_v16 = vld [vmem:[%s11692_s6 + $0x68] sm:$0xff] }
 0x515   :  { %v2196_v45 = vpop.f32.mrf.mxu1  ;;  %v8666_v9 = vpop.f32.mrf.mxu2  ;;  %4137 = vmatpush.msra.mxu1 %v6446_v16  ;;  %v1353_v38 = vadd.f32 %v8413_v17, %v12154_v59  ;;  %v133_v17 = vld [vmem:[%s11694_s8 + $0x10] sm:$0xff] }
 0x516   :  { %v1878_v12 = vmax.f32 %v1775_v44, 0.0  ;;  %v2332_v52 = vadd.f32 %v2196_v45, %v12151_v23  ;;  %4673 = vmatpush.msra.mxu2 %v133_v17 }
 0x518   :  { %v8673_v21 = vadd.f32 %v8087_v10, %v2332_v52  ;;  %6166 = vmatmul.msk.f32.gmra.mxu3 %vm420_vm0, %v8669_v4  ;;  %6217 = vmatmul.msk.f32.gmra.mxu1 %vm420_vm0, %v1878_v12  ;;  %v8690_v12 = vadd.f32 %v8538_v20, %v1353_v38  ;;  %v6377_v38 = vld [vmem:[%s11690_s4 + $0x68] sm:$0xff] }
 0x519   :  { %3667 = vmatpush.msra.mxu0 %v6377_v38  ;;  %v8721_v38 = vld [vmem:[%s11691_s5 + $0x2] ss:$0 sm:$0xff] }
 0x51a   :  { %12152 = vst [vmem:[#allocation91_spill] sm:$0xff] %v8673_v21  ;;  %4925 = vrot.lane.b32.xlu1 %v8673_v21, %s6696_s23  ;;  %6271 = vmatmul.msk.f32.gmra.mxu2 %vm420_vm0, %v8673_v21 }
 0x51b   :  { %v1777_v44 = vpop.f32.mrf.mxu3  ;;  %12155 = vst [vmem:[#allocation37_spill] sm:$0xff] %v8690_v12 }
 0x51c   :  { %v1778_v45 = vadd.f32 %v8663_v11, %v1777_v44  ;;  %v12158_v44 = vld [vmem:[#allocation38_spill] sm:$0xff] }
 0x51d   :  { %v2199_v52 = vpop.f32.mrf.mxu1  ;;  %v8696_v59 = vpop.f32.mrf.mxu2 }
 0x51e   :  { %v1879_v23 = vmax.f32 %v1778_v45, 0.0  ;;  %v2333_v16 = vadd.f32 %v2199_v52, %v12156_v51  ;;  %v12159_v45 = vmax.f32 %v12158_v44, 0.0  ;;  %v12160_v52 = vld [vmem:[#allocation55_spill] sm:$0xff] }
 0x520   :  { %v8699_v46 = vadd.f32 %v8087_v10, %v2333_v16  ;;  %6167 = vmatmul.msk.f32.gmra.mxu3 %vm420_vm0, %v8690_v12  ;;  %6218 = vmatmul.msk.f32.gmra.mxu1 %vm420_vm0, %v1879_v23  ;;  %v1354_v51 = vadd.f32 %v12160_v52, %v12159_v45  ;;  %v12162_v45 = vld [vmem:[#allocation15_spill] sm:$0xff] }
 0x522   :  { %12157 = vst [vmem:[#allocation92_spill] sm:$0xff] %v8699_v46  ;;  %4927 = vrot.lane.b32.xlu2 %v8699_v46, %s6696_s23  ;;  %6272 = vmatmul.msk.f32.gmra.mxu2 %vm420_vm0, %v8699_v46  ;;  %v8716_v23 = vadd.f32 %v8538_v20, %v1354_v51  ;;  %v2657_v51 = vadd.f32 %v8721_v38, %v8433_v63  ;;  %v12163_v46 = vld [vmem:[#allocation16_spill] sm:$0xff] }
 0x523   :  { %v1780_v16 = vpop.f32.mrf.mxu3  ;;  %v2660_v63 = vadd.f32 %v8721_v38, %v8453_v7  ;;  %v2663_v7 = vadd.f32 %v8721_v38, %v8473_v42  ;;  %v2666_v42 = vadd.f32 %v8721_v38, %v8493_v18  ;;  %v2669_v18 = vadd.f32 %v8721_v38, %v8513_v47 }
 0x524   :  { %v1781_v17 = vadd.f32 %v8663_v11, %v1780_v16  ;;  %12161 = vst [vmem:[#allocation38_spill] sm:$0xff] %v8716_v23 }
 0x525   :  { %v2202_v21 = vpop.f32.mrf.mxu1  ;;  %v8730_v16 = vpop.f32.mrf.mxu2 }
 0x526   :  { %v1880_v44 = vmax.f32 %v1781_v17, 0.0  ;;  %v2334_v52 = vadd.f32 %v2202_v21, %v12162_v45 }
 0x528   :  { %v8725_v31 = vadd.f32 %v8087_v10, %v2334_v52  ;;  %6168 = vmatmul.msk.f32.gmra.mxu3 %vm420_vm0, %v8716_v23  ;;  %6219 = vmatmul.msk.f32.gmra.mxu1 %vm420_vm0, %v1880_v44  ;;  %v2848_v52 = vmax.f32 %v2657_v51, 0.0 }
 0x52a   :  { %4929 = vrot.lane.b32.xlu0 %v8725_v31, %s6696_s23  ;;  %6273 = vmatmul.msk.f32.gmra.mxu2 %vm420_vm0, %v8725_v31 }
 0x52b   :  { %v1783_v21 = vpop.f32.mrf.mxu3 }
 0x52c   :  { %v1784_v20 = vadd.f32 %v8663_v11, %v1783_v21 }
 0x52d   :  { %v2205_v17 = vpop.f32.mrf.mxu1  ;;  %v8751_v51 = vpop.f32.mrf.mxu2 }
 0x52e   :  { %v1881_v45 = vmax.f32 %v1784_v20, 0.0  ;;  %v2335_v23 = vadd.f32 %v2205_v17, %v12163_v46  ;;  %v2849_v17 = vmax.f32 %v2660_v63, 0.0 }
 0x530   :  { %v8741_v44 = vadd.f32 %v8087_v10, %v2335_v23  ;;  %6220 = vmatmul.msk.f32.gmra.mxu1 %vm420_vm0, %v1881_v45  ;;  %6311 = vmatmul.msk.f32.vlgmr.msrb.gmra.mxu3 %vm420_vm0, %v2848_v52 }
 0x532   :  { %4931 = vrot.lane.b32.xlu1 %v8741_v44, %s6696_s23  ;;  %6274 = vmatmul.msk.f32.gmra.mxu2 %vm420_vm0, %v8741_v44 }
 0x533   :  { %v1786_v21 = vpop.f32.mrf.mxu3 }
 0x534   :  { %v1787_v20 = vadd.f32 %v8663_v11, %v1786_v21 }
 0x535   :  { %v2208_v23 = vpop.f32.mrf.mxu1 }
 0x536   :  { %v1882_v46 = vmax.f32 %v1787_v20, 0.0  ;;  %v2336_v45 = vadd.f32 %v2208_v23, %v8073_v33  ;;  %v8767_v20 = vpop.f32.mrf.mxu2 }
 0x538   :  { %v8756_v52 = vadd.f32 %v8087_v10, %v2336_v45  ;;  %6221 = vmatmul.msk.f32.gmra.mxu1 %vm420_vm0, %v1882_v46  ;;  %6312 = vmatmul.msk.f32.gmra.mxu3 %vm420_vm0, %v2849_v17  ;;  %v2850_v45 = vmax.f32 %v2663_v7, 0.0 }
 0x53a   :  { %12164 = vst [vmem:[#allocation55_spill] sm:$0xff] %v8756_v52  ;;  %4933 = vrot.lane.b32.xlu2 %v8756_v52, %s6696_s23  ;;  %6275 = vmatmul.msk.f32.gmra.mxu2 %vm420_vm0, %v8756_v52 }
 0x53b   :  { %v1789_v63 = vpop.f32.mrf.mxu3 }
 0x53c   :  { %v1790_v21 = vadd.f32 %v8663_v11, %v1789_v63 }
 0x53d   :  { %v2211_v23 = vpop.f32.mrf.mxu1 }
 0x53e   :  { %v1883_v33 = vmax.f32 %v1790_v21, 0.0  ;;  %v2337_v46 = vadd.f32 %v2211_v23, %v8090_v28  ;;  %v2851_v23 = vmax.f32 %v2666_v42, 0.0  ;;  %v12165_v28 = vld [vmem:[#allocation19_spill] sm:$0xff] }
 0x540   :  { %v8771_v17 = vadd.f32 %v8087_v10, %v2337_v46  ;;  %6222 = vmatmul.msk.f32.gmra.mxu1 %vm420_vm0, %v1883_v33  ;;  %6313 = vmatmul.msk.f32.gmra.mxu3 %vm420_vm0, %v2850_v45  ;;  %v8783_v33 = vpop.f32.mrf.mxu2 }
 0x542   :  { %4935 = vrot.lane.b32.xlu0 %v8771_v17, %s6696_s23  ;;  %6276 = vmatmul.msk.f32.gmra.mxu2 %vm420_vm0, %v8771_v17 }
 0x543   :  { %v1792_v7 = vpop.f32.mrf.mxu3 }
 0x544   :  { %v1793_v63 = vadd.f32 %v8663_v11, %v1792_v7 }
 0x545   :  { %v2214_v21 = vpop.f32.mrf.mxu1 }
 0x546   :  { %v1884_v46 = vmax.f32 %v1793_v63, 0.0  ;;  %v2338_v52 = vadd.f32 %v2214_v21, %v12165_v28  ;;  %v2852_v21 = vmax.f32 %v2669_v18, 0.0 }
 0x548   :  { %v8786_v45 = vadd.f32 %v8087_v10, %v2338_v52  ;;  %6223 = vmatmul.msk.f32.gmra.mxu1 %vm420_vm0, %v1884_v46  ;;  %6314 = vmatmul.msk.f32.gmra.mxu3 %vm420_vm0, %v2851_v23  ;;  %v8803_v47 = vpop.f32.mrf.mxu2  ;;  %v2672_v23 = vadd.f32 %v8721_v38, %v8533_v50  ;;  %v2675_v50 = vadd.f32 %v8721_v38, %v8561_v53  ;;  %v6376_v53 = vld [vmem:[%s11690_s4 + $0x60] sm:$0xff] }
 0x549   :  { %3668 = vmatpush.msra.mxu0 %v6376_v53 }
 0x54a   :  { %4937 = vrot.lane.b32.xlu1 %v8786_v45, %s6696_s23  ;;  %6277 = vmatmul.msk.f32.gmra.mxu2 %vm420_vm0, %v8786_v45 }
 0x54b   :  { %v1795_v42 = vpop.f32.mrf.mxu3 }
 0x54c   :  { %v1796_v7 = vadd.f32 %v8663_v11, %v1795_v42 }
 0x54d   :  { %v2217_v63 = vpop.f32.mrf.mxu1 }
 0x54e   :  { %v1885_v52 = vmax.f32 %v1796_v7, 0.0  ;;  %v2339_v28 = vadd.f32 %v2217_v63, %v8128_v57  ;;  %v2853_v7 = vmax.f32 %v2672_v23, 0.0 }
 0x550   :  { %v8799_v46 = vadd.f32 %v8087_v10, %v2339_v28  ;;  %6224 = vmatmul.msk.f32.gmra.mxu1 %vm420_vm0, %v1885_v52  ;;  %6315 = vmatmul.msk.f32.gmra.mxu3 %vm420_vm0, %v2852_v21  ;;  %v8824_v23 = vpop.f32.mrf.mxu2 }
 0x552   :  { %4939 = vrot.lane.b32.xlu2 %v8799_v46, %s6696_s23  ;;  %6278 = vmatmul.msk.f32.gmra.mxu2 %vm420_vm0, %v8799_v46 }
 0x553   :  { %v1798_v18 = vpop.f32.mrf.mxu3 }
 0x554   :  { %v1799_v42 = vadd.f32 %v8663_v11, %v1798_v18 }
 0x555   :  { %v2220_v28 = vpop.f32.mrf.mxu1 }
 0x556   :  { %v1886_v63 = vmax.f32 %v1799_v42, 0.0  ;;  %v2340_v52 = vadd.f32 %v2220_v28, %v8148_v5 }
 0x558   :  { %v8814_v21 = vadd.f32 %v8087_v10, %v2340_v52  ;;  %6225 = vmatmul.msk.f32.gmra.mxu1 %vm420_vm0, %v1886_v63  ;;  %6316 = vmatmul.msk.f32.gmra.mxu3 %vm420_vm0, %v2853_v7  ;;  %v2854_v52 = vmax.f32 %v2675_v50, 0.0 }
 0x55a   :  { %4941 = vrot.lane.b32.xlu0 %v8814_v21, %s6696_s23  ;;  %6279 = vmatmul.msk.f32.gmra.mxu2 %vm420_vm0, %v8814_v21 }
 0x55b   :  { %v1801_v18 = vpop.f32.mrf.mxu3 }
 0x55c   :  { %v1802_v42 = vadd.f32 %v8663_v11, %v1801_v18  ;;  %v2678_v18 = vadd.f32 %v8721_v38, %v8581_v3  ;;  %v8849_v3 = vld [vmem:[%s11693_s7 + $0x1] ss:$0 sm:$0xff] }
 0x55d   :  { %v2223_v28 = vpop.f32.mrf.mxu1 }
 0x55e   :  { %v1887_v57 = vmax.f32 %v1802_v42, 0.0  ;;  %v2341_v63 = vadd.f32 %v2223_v28, %v8168_v40  ;;  %v8843_v28 = vpop.f32.mrf.mxu2 }
 0x560   :  { %v8832_v7 = vadd.f32 %v8087_v10, %v2341_v63  ;;  %6226 = vmatmul.msk.f32.gmra.mxu1 %vm420_vm0, %v1887_v57  ;;  %6317 = vmatmul.msk.f32.gmra.mxu3 %vm420_vm0, %v2854_v52  ;;  %v2855_v63 = vmax.f32 %v2678_v18, 0.0 }
 0x562   :  { %4943 = vrot.lane.b32.xlu1 %v8832_v7, %s6696_s23  ;;  %6280 = vmatmul.msk.f32.gmra.mxu2 %vm420_vm0, %v8832_v7 }
 0x563   :  { %v1804_v50 = vpop.f32.mrf.mxu3 }
 0x564   :  { %v1805_v42 = vadd.f32 %v8663_v11, %v1804_v50  ;;  %v2681_v50 = vadd.f32 %v8721_v38, %v8601_v36  ;;  %v2684_v36 = vadd.f32 %v8721_v38, %v8621_v54  ;;  %v2687_v54 = vadd.f32 %v8721_v38, %v8641_v49 }
 0x565   :  { %v2226_v10 = vpop.f32.mrf.mxu1  ;;  %v2690_v49 = vadd.f32 %v8721_v38, %v8666_v9  ;;  %v2693_v9 = vadd.f32 %v8721_v38, %v8696_v59  ;;  %v2696_v59 = vadd.f32 %v8721_v38, %v8730_v16  ;;  %v6445_v16 = vld [vmem:[%s11692_s6 + $0x60] sm:$0xff] }
 0x566   :  { %v1888_v53 = vmax.f32 %v1805_v42, 0.0  ;;  %v2342_v57 = vadd.f32 %v2226_v10, %v8188_v14  ;;  %v2856_v14 = vmax.f32 %v2681_v50, 0.0  ;;  %4138 = vmatpush.msra.mxu1 %v6445_v16 }
 0x568   :  { %v8852_v52 = vadd.f32 %v8849_v3, %v2342_v57  ;;  %6227 = vmatmul.msk.f32.gmra.mxu1 %vm420_vm0, %v1888_v53  ;;  %6318 = vmatmul.msk.f32.gmra.mxu3 %vm420_vm0, %v2855_v63  ;;  %v8864_v53 = vpop.f32.mrf.mxu2 }
 0x56a   :  { %4945 = vrot.lane.b32.xlu2 %v8852_v52, %s6696_s23  ;;  %6281 = vmatmul.msk.f32.gmra.mxu2 %vm420_vm0, %v8852_v52 }
 0x56b   :  { %v1807_v18 = vpop.f32.mrf.mxu3 }
 0x56c   :  { %v1808_v42 = vadd.f32 %v8663_v11, %v1807_v18 }
 0x56d   :  { %v2229_v10 = vpop.f32.mrf.mxu1 }
 0x56e   :  { %v1889_v57 = vmax.f32 %v1808_v42, 0.0  ;;  %v2343_v40 = vadd.f32 %v2229_v10, %v8208_v13  ;;  %v2857_v10 = vmax.f32 %v2684_v36, 0.0 }
 0x570   :  { %v8867_v63 = vadd.f32 %v8849_v3, %v2343_v40  ;;  %6228 = vmatmul.msk.f32.gmra.mxu1 %vm420_vm0, %v1889_v57  ;;  %6319 = vmatmul.msk.f32.gmra.mxu3 %vm420_vm0, %v2856_v14  ;;  %v8884_v14 = vpop.f32.mrf.mxu2 }
 0x572   :  { %4947 = vrot.lane.b32.xlu0 %v8867_v63, %s6696_s23  ;;  %6282 = vmatmul.msk.f32.gmra.mxu2 %vm420_vm0, %v8867_v63 }
 0x573   :  { %v1810_v50 = vpop.f32.mrf.mxu3 }
 0x574   :  { %v1811_v18 = vadd.f32 %v8663_v11, %v1810_v50 }
 0x575   :  { %v2232_v42 = vpop.f32.mrf.mxu1 }
 0x576   :  { %v1890_v40 = vmax.f32 %v1811_v18, 0.0  ;;  %v2344_v13 = vadd.f32 %v2232_v42, %v8226_v26  ;;  %v2858_v18 = vmax.f32 %v2687_v54, 0.0 }
 0x578   :  { %v8880_v57 = vadd.f32 %v8849_v3, %v2344_v13  ;;  %6229 = vmatmul.msk.f32.gmra.mxu1 %vm420_vm0, %v1890_v40  ;;  %6320 = vmatmul.msk.f32.gmra.mxu3 %vm420_vm0, %v2857_v10  ;;  %v8905_v54 = vpop.f32.mrf.mxu2 }
 0x57a   :  { %4949 = vrot.lane.b32.xlu1 %v8880_v57, %s6696_s23  ;;  %6283 = vmatmul.msk.f32.gmra.mxu2 %vm420_vm0, %v8880_v57 }
 0x57b   :  { %v1813_v36 = vpop.f32.mrf.mxu3 }
 0x57c   :  { %v1814_v50 = vadd.f32 %v8663_v11, %v1813_v36 }
 0x57d   :  { %v2235_v13 = vpop.f32.mrf.mxu1 }
 0x57e   :  { %v1891_v42 = vmax.f32 %v1814_v50, 0.0  ;;  %v2345_v40 = vadd.f32 %v2235_v13, %v8246_v15 }
 0x580   :  { %v8895_v10 = vadd.f32 %v8849_v3, %v2345_v40  ;;  %6230 = vmatmul.msk.f32.gmra.mxu1 %vm420_vm0, %v1891_v42  ;;  %6321 = vmatmul.msk.f32.gmra.mxu3 %vm420_vm0, %v2858_v18  ;;  %v2859_v40 = vmax.f32 %v2690_v49, 0.0 }
 0x582   :  { %4951 = vrot.lane.b32.xlu2 %v8895_v10, %s6696_s23  ;;  %6284 = vmatmul.msk.f32.gmra.mxu2 %vm420_vm0, %v8895_v10 }
 0x583   :  { %v1816_v36 = vpop.f32.mrf.mxu3 }
 0x584   :  { %v1817_v50 = vadd.f32 %v8663_v11, %v1816_v36 }
 0x585   :  { %v2238_v13 = vpop.f32.mrf.mxu1 }
 0x586   :  { %v1892_v15 = vmax.f32 %v1817_v50, 0.0  ;;  %v2346_v42 = vadd.f32 %v2238_v13, %v8266_v39  ;;  %v8921_v50 = vpop.f32.mrf.mxu2 }
 0x588   :  { %v8910_v18 = vadd.f32 %v8849_v3, %v2346_v42  ;;  %6231 = vmatmul.msk.f32.gmra.mxu1 %vm420_vm0, %v1892_v15  ;;  %6322 = vmatmul.msk.f32.gmra.mxu3 %vm420_vm0, %v2859_v40  ;;  %v2860_v42 = vmax.f32 %v2693_v9, 0.0 }
 0x58a   :  { %4953 = vrot.lane.b32.xlu0 %v8910_v18, %s6696_s23  ;;  %6285 = vmatmul.msk.f32.gmra.mxu2 %vm420_vm0, %v8910_v18 }
 0x58b   :  { %v1819_v49 = vpop.f32.mrf.mxu3 }
 0x58c   :  { %v1820_v36 = vadd.f32 %v8663_v11, %v1819_v49 }
 0x58d   :  { %v2241_v13 = vpop.f32.mrf.mxu1 }
 0x58e   :  { %v1893_v26 = vmax.f32 %v1820_v36, 0.0  ;;  %v2347_v15 = vadd.f32 %v2241_v13, %v8286_v41  ;;  %v2861_v13 = vmax.f32 %v2696_v59, 0.0 }
 0x590   :  { %v8925_v40 = vadd.f32 %v8849_v3, %v2347_v15  ;;  %6232 = vmatmul.msk.f32.gmra.mxu1 %vm420_vm0, %v1893_v26  ;;  %6323 = vmatmul.msk.f32.gmra.mxu3 %vm420_vm0, %v2860_v42  ;;  %v8937_v26 = vpop.f32.mrf.mxu2 }
 0x592   :  { %4955 = vrot.lane.b32.xlu1 %v8925_v40, %s6696_s23  ;;  %6286 = vmatmul.msk.f32.gmra.mxu2 %vm420_vm0, %v8925_v40 }
 0x593   :  { %v1822_v9 = vpop.f32.mrf.mxu3 }
 0x594   :  { %v1823_v49 = vadd.f32 %v8663_v11, %v1822_v9  ;;  %v2699_v9 = vadd.f32 %v8721_v38, %v8751_v51 }
 0x595   :  { %v2244_v36 = vpop.f32.mrf.mxu1 }
 0x596   :  { %v1894_v15 = vmax.f32 %v1823_v49, 0.0  ;;  %v2348_v41 = vadd.f32 %v2244_v36, %v8306_v6  ;;  %v2862_v36 = vmax.f32 %v2699_v9, 0.0  ;;  %v132_v6 = vld [vmem:[%s11694_s8 + $0x8] sm:$0xff]  ;;  %v2702_v9 = vadd.f32 %v8721_v38, %v8767_v20 }
 0x597   :  { %4674 = vmatpush.msra.mxu2 %v132_v6  ;;  %v2705_v20 = vadd.f32 %v8721_v38, %v8783_v33  ;;  %v2708_v33 = vadd.f32 %v8721_v38, %v8803_v47 }
 0x598   :  { %v8940_v42 = vadd.f32 %v8849_v3, %v2348_v41  ;;  %6233 = vmatmul.msk.f32.gmra.mxu1 %vm420_vm0, %v1894_v15  ;;  %6324 = vmatmul.msk.f32.gmra.mxu3 %vm420_vm0, %v2861_v13  ;;  %v8963_v16 = vpop.f32.mrf.mxu2 }
 0x59a   :  { %4957 = vrot.lane.b32.xlu2 %v8940_v42, %s6696_s23  ;;  %6287 = vmatmul.msk.f32.gmra.mxu2 %vm420_vm0, %v8940_v42 }
 0x59b   :  { %v1825_v59 = vpop.f32.mrf.mxu3 }
 0x59c   :  { %v1826_v41 = vadd.f32 %v8663_v11, %v1825_v59 }
 0x59d   :  { %v2247_v49 = vpop.f32.mrf.mxu1 }
 0x59e   :  { %v1895_v13 = vmax.f32 %v1826_v41, 0.0  ;;  %v2349_v15 = vadd.f32 %v2247_v49, %v8327_v35  ;;  %v2863_v49 = vmax.f32 %v2702_v9, 0.0 }
 0x5a0   :  { %v8959_v51 = vadd.f32 %v8849_v3, %v2349_v15  ;;  %6234 = vmatmul.msk.f32.gmra.mxu1 %vm420_vm0, %v1895_v13  ;;  %6325 = vmatmul.msk.f32.gmra.mxu3 %vm420_vm0, %v2862_v36  ;;  %v8984_v9 = vpop.f32.mrf.mxu2 }
 0x5a2   :  { %4959 = vrot.lane.b32.xlu0 %v8959_v51, %s6696_s23  ;;  %6288 = vmatmul.msk.f32.gmra.mxu2 %vm420_vm0, %v8959_v51 }
 0x5a3   :  { %v1828_v59 = vpop.f32.mrf.mxu3 }
 0x5a4   :  { %v1829_v6 = vadd.f32 %v8663_v11, %v1828_v59 }
 0x5a5   :  { %v2250_v41 = vpop.f32.mrf.mxu1 }
 0x5a6   :  { %v1896_v15 = vmax.f32 %v1829_v6, 0.0  ;;  %v2350_v13 = vadd.f32 %v2250_v41, %v8350_v0 }
 0x5a8   :  { %v8974_v36 = vadd.f32 %v8849_v3, %v2350_v13  ;;  %6235 = vmatmul.msk.f32.gmra.mxu1 %vm420_vm0, %v1896_v15  ;;  %6326 = vmatmul.msk.f32.gmra.mxu3 %vm420_vm0, %v2863_v49  ;;  %v2864_v13 = vmax.f32 %v2705_v20, 0.0 }
 0x5aa   :  { %4961 = vrot.lane.b32.xlu1 %v8974_v36, %s6696_s23  ;;  %6289 = vmatmul.msk.f32.gmra.mxu2 %vm420_vm0, %v8974_v36 }
 0x5ab   :  { %v1831_v59 = vpop.f32.mrf.mxu3 }
 0x5ac   :  { %v1832_v6 = vadd.f32 %v8663_v11, %v1831_v59  ;;  %v9002_v11 = vld [vmem:[%s11693_s7 + $0x2] ss:$0 sm:$0xff]  ;;  %v12166_v59 = vld [vmem:[#allocation60_spill] sm:$0xff] }
 0x5ad   :  { %v2253_v41 = vpop.f32.mrf.mxu1 }
 0x5ae   :  { %v1897_v39 = vmax.f32 %v1832_v6, 0.0  ;;  %v2351_v15 = vadd.f32 %v2253_v41, %v8373_v34 }
 0x5b0   :  { %v8989_v49 = vadd.f32 %v8849_v3, %v2351_v15  ;;  %6236 = vmatmul.msk.f32.gmra.mxu1 %vm420_vm0, %v1897_v39  ;;  %6327 = vmatmul.msk.f32.gmra.mxu3 %vm420_vm0, %v2864_v13  ;;  %v9005_v39 = vpop.f32.mrf.mxu2  ;;  %v2865_v13 = vmax.f32 %v2708_v33, 0.0  ;;  %v2711_v33 = vadd.f32 %v8721_v38, %v8824_v23 }
 0x5b2   :  { %4963 = vrot.lane.b32.xlu2 %v8989_v49, %s6696_s23  ;;  %6290 = vmatmul.msk.f32.gmra.mxu2 %vm420_vm0, %v8989_v49 }
 0x5b3   :  { %v3126_v20 = vpop.f32.mrf.mxu3 }
 0x5b4   :  { %v3318_v6 = vadd.f32 %v3126_v20, %v12166_v59 }
 0x5b5   :  { %v2256_v41 = vpop.f32.mrf.mxu1 }
 0x5b6   :  { %v9008_v47 = vadd.f32 %v9002_v11, %v3318_v6  ;;  %v2352_v15 = vadd.f32 %v2256_v41, %v8396_v8  ;;  %v2866_v41 = vmax.f32 %v2711_v33, 0.0 }
 0x5b8   :  { %v9012_v5 = vadd.f32 %v8849_v3, %v2352_v15  ;;  %6328 = vmatmul.msk.f32.gmra.mxu3 %vm420_vm0, %v2865_v13  ;;  %6381 = vmatmul.msk.f32.vlgmr.msra.gmra.mxu0 %vm420_vm0, %v9008_v47  ;;  %v9030_v8 = vpop.f32.mrf.mxu2 }
 0x5b9   :  { %5061 = vrot.lane.b32.xlu1 %v9008_v47, %s6697_s13 }
 0x5ba   :  { %4965 = vrot.lane.b32.xlu0 %v9012_v5, %s6696_s23  ;;  %6291 = vmatmul.msk.f32.gmra.mxu2 %vm420_vm0, %v9012_v5 }
 0x5bb   :  { %v3129_v20 = vpop.f32.mrf.mxu3 }
 0x5bc   :  { %v3319_v59 = vadd.f32 %v3129_v20, %v8114_v37  ;;  %v2714_v37 = vadd.f32 %v8721_v38, %v8843_v28  ;;  %v12167_v20 = vld [vmem:[#allocation61_spill] sm:$0xff] }
 0x5bd   :  { %v2259_v6 = vpop.f32.mrf.mxu1 }
 0x5be   :  { %v9027_v13 = vadd.f32 %v9002_v11, %v3319_v59  ;;  %v2353_v15 = vadd.f32 %v2259_v6, %v8416_v30 }
 0x5c0   :  { %v9033_v23 = vadd.f32 %v8849_v3, %v2353_v15  ;;  %6329 = vmatmul.msk.f32.gmra.mxu3 %vm420_vm0, %v2866_v41  ;;  %6382 = vmatmul.msk.f32.gmra.mxu0 %vm420_vm0, %v9027_v13  ;;  %v2867_v41 = vmax.f32 %v2714_v37, 0.0  ;;  %v9057_v28 = vpop.f32.mrf.mxu2  ;;  %v2717_v37 = vadd.f32 %v8721_v38, %v8864_v53  ;;  %v2720_v53 = vadd.f32 %v8721_v38, %v8884_v14 }
 0x5c1   :  { %5063 = vrot.lane.b32.xlu2 %v9027_v13, %s6697_s13 }
 0x5c2   :  { %4967 = vrot.lane.b32.xlu1 %v9033_v23, %s6696_s23  ;;  %6292 = vmatmul.msk.f32.gmra.mxu2 %vm420_vm0, %v9033_v23 }
 0x5c3   :  { %v3132_v33 = vpop.f32.mrf.mxu3 }
 0x5c4   :  { %v3320_v59 = vadd.f32 %v3132_v33, %v12167_v20  ;;  %v12169_v33 = vld [vmem:[#allocation62_spill] sm:$0xff] }
 0x5c5   :  { %v2262_v6 = vpop.f32.mrf.mxu1 }
 0x5c6   :  { %v9048_v15 = vadd.f32 %v9002_v11, %v3320_v59  ;;  %v2354_v34 = vadd.f32 %v2262_v6, %v8436_v22  ;;  %v2868_v6 = vmax.f32 %v2717_v37, 0.0 }
 0x5c8   :  { %v9052_v30 = vadd.f32 %v8849_v3, %v2354_v34  ;;  %6330 = vmatmul.msk.f32.gmra.mxu3 %vm420_vm0, %v2867_v41  ;;  %6383 = vmatmul.msk.f32.gmra.mxu0 %vm420_vm0, %v9048_v15  ;;  %v9086_v37 = vpop.f32.mrf.mxu2 }
 0x5c9   :  { %5065 = vrot.lane.b32.xlu0 %v9048_v15, %s6697_s13 }
 0x5ca   :  { %12168 = vst [vmem:[#allocation60_spill] sm:$0xff] %v9052_v30  ;;  %4969 = vrot.lane.b32.xlu2 %v9052_v30, %s6696_s23  ;;  %6293 = vmatmul.msk.f32.gmra.mxu2 %vm420_vm0, %v9052_v30 }
 0x5cb   :  { %v3135_v34 = vpop.f32.mrf.mxu3 }
 0x5cc   :  { %v3321_v20 = vadd.f32 %v3135_v34, %v12169_v33  ;;  %v12171_v34 = vld [vmem:[#allocation63_spill] sm:$0xff] }
 0x5cd   :  { %v2265_v59 = vpop.f32.mrf.mxu1 }
 0x5ce   :  { %v9069_v41 = vadd.f32 %v9002_v11, %v3321_v20  ;;  %v2355_v22 = vadd.f32 %v2265_v59, %v8456_v60  ;;  %v2869_v59 = vmax.f32 %v2720_v53, 0.0 }
 0x5d0   :  { %v9073_v35 = vadd.f32 %v8849_v3, %v2355_v22  ;;  %6331 = vmatmul.msk.f32.gmra.mxu3 %vm420_vm0, %v2868_v6  ;;  %6384 = vmatmul.msk.f32.gmra.mxu0 %vm420_vm0, %v9069_v41 }
 0x5d1   :  { %5067 = vrot.lane.b32.xlu1 %v9069_v41, %s6697_s13 }
 0x5d2   :  { %12170 = vst [vmem:[#allocation61_spill] sm:$0xff] %v9073_v35  ;;  %4971 = vrot.lane.b32.xlu0 %v9073_v35, %s6696_s23  ;;  %6294 = vmatmul.msk.f32.gmra.mxu2 %vm420_vm0, %v9073_v35 }
 0x5d3   :  { %v3138_v22 = vpop.f32.mrf.mxu3 }
 0x5d4   :  { %v3322_v33 = vadd.f32 %v3138_v22, %v12171_v34  ;;  %v2723_v22 = vadd.f32 %v8721_v38, %v8905_v54 }
 0x5d5   :  { %v2268_v20 = vpop.f32.mrf.mxu1 }
 0x5d6   :  { %v9090_v6 = vadd.f32 %v9002_v11, %v3322_v33  ;;  %v2356_v60 = vadd.f32 %v2268_v20, %v8476_v25  ;;  %v9108_v33 = vpop.f32.mrf.mxu2 }
 0x5d8   :  { %v9094_v14 = vadd.f32 %v8849_v3, %v2356_v60  ;;  %6332 = vmatmul.msk.f32.gmra.mxu3 %vm420_vm0, %v2869_v59  ;;  %6385 = vmatmul.msk.f32.gmra.mxu0 %vm420_vm0, %v9090_v6  ;;  %v12173_v60 = vld [vmem:[#allocation64_spill] sm:$0xff]  ;;  %v2870_v59 = vmax.f32 %v2723_v22, 0.0 }
 0x5d9   :  { %5069 = vrot.lane.b32.xlu2 %v9090_v6, %s6697_s13 }
 0x5da   :  { %12172 = vst [vmem:[#allocation62_spill] sm:$0xff] %v9094_v14  ;;  %4973 = vrot.lane.b32.xlu1 %v9094_v14, %s6696_s23  ;;  %6295 = vmatmul.msk.f32.gmra.mxu2 %vm420_vm0, %v9094_v14 }
 0x5db   :  { %v3141_v53 = vpop.f32.mrf.mxu3 }
 0x5dc   :  { %v3323_v34 = vadd.f32 %v3141_v53, %v12173_v60  ;;  %v2726_v53 = vadd.f32 %v8721_v38, %v8921_v50 }
 0x5dd   :  { %v2271_v20 = vpop.f32.mrf.mxu1 }
 0x5de   :  { %v9111_v25 = vadd.f32 %v9002_v11, %v3323_v34  ;;  %v2357_v0 = vadd.f32 %v2271_v20, %v8496_v27  ;;  %v2871_v34 = vmax.f32 %v2726_v53, 0.0  ;;  %v9133_v27 = vpop.f32.mrf.mxu2 }
 0x5e0   :  { %v9115_v54 = vadd.f32 %v8849_v3, %v2357_v0  ;;  %6333 = vmatmul.msk.f32.gmra.mxu3 %vm420_vm0, %v2870_v59  ;;  %6386 = vmatmul.msk.f32.gmra.mxu0 %vm420_vm0, %v9111_v25 }
 0x5e1   :  { %5071 = vrot.lane.b32.xlu0 %v9111_v25, %s6697_s13 }
 0x5e2   :  { %12174 = vst [vmem:[#allocation63_spill] sm:$0xff] %v9115_v54  ;;  %4975 = vrot.lane.b32.xlu2 %v9115_v54, %s6696_s23  ;;  %6296 = vmatmul.msk.f32.gmra.mxu2 %vm420_vm0, %v9115_v54 }
 0x5e3   :  { %v3144_v22 = vpop.f32.mrf.mxu3 }
 0x5e4   :  { %v3324_v0 = vadd.f32 %v3144_v22, %v8212_v43  ;;  %v2729_v43 = vadd.f32 %v8721_v38, %v8937_v26  ;;  %v12176_v22 = vld [vmem:[#allocation65_spill] sm:$0xff] }
 0x5e5   :  { %v2274_v60 = vpop.f32.mrf.mxu1 }
 0x5e6   :  { %v9130_v20 = vadd.f32 %v9002_v11, %v3324_v0  ;;  %v2358_v59 = vadd.f32 %v2274_v60, %v8516_v56  ;;  %v9160_v26 = vpop.f32.mrf.mxu2 }
 0x5e8   :  { %v9136_v50 = vadd.f32 %v8849_v3, %v2358_v59  ;;  %6334 = vmatmul.msk.f32.gmra.mxu3 %vm420_vm0, %v2871_v34  ;;  %6387 = vmatmul.msk.f32.gmra.mxu0 %vm420_vm0, %v9130_v20  ;;  %v2872_v34 = vmax.f32 %v2729_v43, 0.0  ;;  %v2732_v43 = vadd.f32 %v8721_v38, %v8963_v16  ;;  %v2735_v16 = vadd.f32 %v8721_v38, %v8984_v9 }
 0x5e9   :  { %5073 = vrot.lane.b32.xlu1 %v9130_v20, %s6697_s13 }
 0x5ea   :  { %12175 = vst [vmem:[#allocation64_spill] sm:$0xff] %v9136_v50  ;;  %4977 = vrot.lane.b32.xlu0 %v9136_v50, %s6696_s23  ;;  %6297 = vmatmul.msk.f32.gmra.mxu2 %vm420_vm0, %v9136_v50 }
 0x5eb   :  { %v3147_v53 = vpop.f32.mrf.mxu3 }
 0x5ec   :  { %v3325_v0 = vadd.f32 %v3147_v53, %v12176_v22  ;;  %v12178_v53 = vld [vmem:[#allocation66_spill] sm:$0xff] }
 0x5ed   :  { %v2277_v60 = vpop.f32.mrf.mxu1 }
 0x5ee   :  { %v9151_v59 = vadd.f32 %v9002_v11, %v3325_v0  ;;  %v2359_v56 = vadd.f32 %v2277_v60, %v8541_v19  ;;  %v2873_v60 = vmax.f32 %v2732_v43, 0.0  ;;  %v9189_v43 = vpop.f32.mrf.mxu2 }
 0x5f0   :  { %v9155_v54 = vadd.f32 %v8849_v3, %v2359_v56  ;;  %6335 = vmatmul.msk.f32.gmra.mxu3 %vm420_vm0, %v2872_v34  ;;  %6388 = vmatmul.msk.f32.gmra.mxu0 %vm420_vm0, %v9151_v59 }
 0x5f1   :  { %5075 = vrot.lane.b32.xlu2 %v9151_v59, %s6697_s13 }
 0x5f2   :  { %12177 = vst [vmem:[#allocation65_spill] sm:$0xff] %v9155_v54  ;;  %4979 = vrot.lane.b32.xlu1 %v9155_v54, %s6696_s23  ;;  %6298 = vmatmul.msk.f32.gmra.mxu2 %vm420_vm0, %v9155_v54 }
 0x5f3   :  { %v3150_v56 = vpop.f32.mrf.mxu3 }
 0x5f4   :  { %v3326_v22 = vadd.f32 %v3150_v56, %v12178_v53  ;;  %v12180_v56 = vld [vmem:[#allocation67_spill] sm:$0xff] }
 0x5f5   :  { %v2280_v0 = vpop.f32.mrf.mxu1 }
 0x5f6   :  { %v9172_v34 = vadd.f32 %v9002_v11, %v3326_v22  ;;  %v2360_v19 = vadd.f32 %v2280_v0, %v8564_v55  ;;  %v2874_v0 = vmax.f32 %v2735_v16, 0.0 }
 0x5f8   :  { %v9176_v50 = vadd.f32 %v8849_v3, %v2360_v19  ;;  %6336 = vmatmul.msk.f32.gmra.mxu3 %vm420_vm0, %v2873_v60  ;;  %6389 = vmatmul.msk.f32.gmra.mxu0 %vm420_vm0, %v9172_v34 }
 0x5f9   :  { %5077 = vrot.lane.b32.xlu0 %v9172_v34, %s6697_s13 }
 0x5fa   :  { %12179 = vst [vmem:[#allocation66_spill] sm:$0xff] %v9176_v50  ;;  %4981 = vrot.lane.b32.xlu2 %v9176_v50, %s6696_s23  ;;  %6299 = vmatmul.msk.f32.gmra.mxu2 %vm420_vm0, %v9176_v50 }
 0x5fb   :  { %v3153_v19 = vpop.f32.mrf.mxu3 }
 0x5fc   :  { %v3327_v53 = vadd.f32 %v3153_v19, %v12180_v56  ;;  %v2738_v19 = vadd.f32 %v8721_v38, %v9005_v39 }
 0x5fd   :  { %v2283_v22 = vpop.f32.mrf.mxu1 }
 0x5fe   :  { %v9193_v60 = vadd.f32 %v9002_v11, %v3327_v53  ;;  %v2361_v55 = vadd.f32 %v2283_v22, %v8584_v2  ;;  %v9211_v53 = vpop.f32.mrf.mxu2 }
 0x600   :  { %v9197_v9 = vadd.f32 %v8849_v3, %v2361_v55  ;;  %6337 = vmatmul.msk.f32.gmra.mxu3 %vm420_vm0, %v2874_v0  ;;  %6390 = vmatmul.msk.f32.gmra.mxu0 %vm420_vm0, %v9193_v60  ;;  %v12182_v55 = vld [vmem:[#allocation68_spill] sm:$0xff]  ;;  %v2875_v0 = vmax.f32 %v2738_v19, 0.0 }
 0x601   :  { %5079 = vrot.lane.b32.xlu1 %v9193_v60, %s6697_s13 }
 0x602   :  { %12181 = vst [vmem:[#allocation67_spill] sm:$0xff] %v9197_v9  ;;  %4983 = vrot.lane.b32.xlu0 %v9197_v9, %s6696_s23  ;;  %6300 = vmatmul.msk.f32.gmra.mxu2 %vm420_vm0, %v9197_v9 }
 0x603   :  { %v3156_v16 = vpop.f32.mrf.mxu3 }
 0x604   :  { %v3328_v56 = vadd.f32 %v3156_v16, %v12182_v55  ;;  %v2741_v16 = vadd.f32 %v8721_v38, %v9030_v8 }
 0x605   :  { %v2286_v22 = vpop.f32.mrf.mxu1 }
 0x606   :  { %v9214_v2 = vadd.f32 %v9002_v11, %v3328_v56  ;;  %v2362_v50 = vadd.f32 %v2286_v22, %v8604_v58  ;;  %v2876_v56 = vmax.f32 %v2741_v16, 0.0  ;;  %v9236_v58 = vpop.f32.mrf.mxu2 }
 0x608   :  { %v9218_v39 = vadd.f32 %v8849_v3, %v2362_v50  ;;  %6338 = vmatmul.msk.f32.gmra.mxu3 %vm420_vm0, %v2875_v0  ;;  %6391 = vmatmul.msk.f32.gmra.mxu0 %vm420_vm0, %v9214_v2 }
 0x609   :  { %5081 = vrot.lane.b32.xlu2 %v9214_v2, %s6697_s13 }
 0x60a   :  { %12183 = vst [vmem:[#allocation68_spill] sm:$0xff] %v9218_v39  ;;  %4985 = vrot.lane.b32.xlu1 %v9218_v39, %s6696_s23  ;;  %6301 = vmatmul.msk.f32.gmra.mxu2 %vm420_vm0, %v9218_v39 }
 0x60b   :  { %v3159_v19 = vpop.f32.mrf.mxu3 }
 0x60c   :  { %v3329_v50 = vadd.f32 %v3159_v19, %v8310_v1  ;;  %v2744_v1 = vadd.f32 %v8721_v38, %v9057_v28  ;;  %v9252_v19 = vpop.permute.xlu2 %4877 }
 0x60d   :  { %v2289_v55 = vpop.f32.mrf.mxu1  ;;  %12185 = vst [vmem:[#allocation94_spill] sm:$0xff] %v9252_v19 }
 0x60e   :  { %v9233_v22 = vadd.f32 %v9002_v11, %v3329_v50  ;;  %v2363_v0 = vadd.f32 %v2289_v55, %v8624_v48 }
 0x610   :  { %v9239_v8 = vadd.f32 %v8849_v3, %v2363_v0  ;;  %6339 = vmatmul.msk.f32.gmra.mxu3 %vm420_vm0, %v2876_v56  ;;  %6392 = vmatmul.msk.f32.gmra.mxu0 %vm420_vm0, %v9233_v22  ;;  %v2877_v56 = vmax.f32 %v2744_v1, 0.0 }
 0x611   :  { %5083 = vrot.lane.b32.xlu0 %v9233_v22, %s6697_s13 }
 0x612   :  { %12184 = vst [vmem:[#allocation93_spill] sm:$0xff] %v9239_v8  ;;  %4987 = vrot.lane.b32.xlu2 %v9239_v8, %s6696_s23  ;;  %6302 = vmatmul.msk.f32.gmra.mxu2 %vm420_vm0, %v9239_v8  ;;  %v9265_v8 = vpop.f32.mrf.mxu2 }
 0x613   :  { %v3162_v16 = vpop.f32.mrf.mxu3 }
 0x614   :  { %v3330_v50 = vadd.f32 %v3162_v16, %v8333_v61  ;;  %v2747_v61 = vadd.f32 %v8721_v38, %v9086_v37  ;;  %v131_v37 = vld [vmem:[%s11694_s8] sm:$0xff] }
 0x615   :  { %v2292_v55 = vpop.f32.mrf.mxu1  ;;  %4675 = vmatpush.msra.mxu2 %v131_v37 }
 0x616   :  { %v9256_v0 = vadd.f32 %v9002_v11, %v3330_v50  ;;  %v2364_v48 = vadd.f32 %v2292_v55, %v8644_v29  ;;  %v9276_v50 = vpop.permute.xlu2 %4879  ;;  %v2878_v55 = vmax.f32 %v2747_v61, 0.0 }
 0x617   :  { %12187 = vst [vmem:[#allocation96_spill] sm:$0xff] %v9276_v50 }
 0x618   :  { %v9260_v28 = vadd.f32 %v8849_v3, %v2364_v48  ;;  %6340 = vmatmul.msk.f32.gmra.mxu3 %vm420_vm0, %v2877_v56  ;;  %6393 = vmatmul.msk.f32.gmra.mxu0 %vm420_vm0, %v9256_v0 }
 0x619   :  { %5085 = vrot.lane.b32.xlu1 %v9256_v0, %s6697_s13 }
 0x61a   :  { %12186 = vst [vmem:[#allocation95_spill] sm:$0xff] %v9260_v28  ;;  %4989 = vrot.lane.b32.xlu0 %v9260_v28, %s6696_s23  ;;  %6303 = vmatmul.msk.f32.gmra.mxu2 %vm420_vm0, %v9260_v28  ;;  %v9299_v61 = vpop.f32.mrf.mxu2 }
 0x61b   :  { %v3165_v48 = vpop.f32.mrf.mxu3 }
 0x61c   :  { %v3331_v1 = vadd.f32 %v3165_v48, %v8357_v24  ;;  %v2750_v24 = vadd.f32 %v8721_v38, %v9108_v33 }
 0x61d   :  { %v2295_v16 = vpop.f32.mrf.mxu1 }
 0x61e   :  { %v9279_v56 = vadd.f32 %v9002_v11, %v3331_v1  ;;  %v2365_v29 = vadd.f32 %v2295_v16, %v8669_v4  ;;  %v9302_v16 = vpop.permute.xlu2 %4885 }
 0x61f   :  { %12189 = vst [vmem:[#allocation98_spill] sm:$0xff] %v9302_v16 }
 0x620   :  { %v9286_v39 = vadd.f32 %v8849_v3, %v2365_v29  ;;  %6341 = vmatmul.msk.f32.gmra.mxu3 %vm420_vm0, %v2878_v55  ;;  %6394 = vmatmul.msk.f32.gmra.mxu0 %vm420_vm0, %v9279_v56  ;;  %v2879_v55 = vmax.f32 %v2750_v24, 0.0 }
 0x621   :  { %5087 = vrot.lane.b32.xlu2 %v9279_v56, %s6697_s13 }
 0x622   :  { %12188 = vst [vmem:[#allocation97_spill] sm:$0xff] %v9286_v39  ;;  %4991 = vrot.lane.b32.xlu1 %v9286_v39, %s6696_s23  ;;  %6304 = vmatmul.msk.f32.gmra.mxu2 %vm420_vm0, %v9286_v39 }
 0x623   :  { %v3168_v29 = vpop.f32.mrf.mxu3 }
 0x624   :  { %v3332_v48 = vadd.f32 %v3168_v29, %v8377_v62  ;;  %v2753_v62 = vadd.f32 %v8721_v38, %v9133_v27  ;;  %v9322_v29 = vpop.permute.xlu0 %4869  ;;  %v12192_v27 = vld [vmem:[#allocation38_spill] sm:$0xff] }
 0x625   :  { %v2298_v1 = vpop.f32.mrf.mxu1 }
 0x626   :  { %v9305_v37 = vadd.f32 %v9002_v11, %v3332_v48  ;;  %v2366_v33 = vadd.f32 %v2298_v1, %v8690_v12  ;;  %v9325_v1 = vpop.f32.mrf.mxu2  ;;  %v2880_v12 = vmax.f32 %v2753_v62, 0.0  ;;  %v2756_v62 = vadd.f32 %v8721_v38, %v9160_v26 }
 0x628   :  { %v9309_v4 = vadd.f32 %v8849_v3, %v2366_v33  ;;  %6342 = vmatmul.msk.f32.gmra.mxu3 %vm420_vm0, %v2879_v55  ;;  %6395 = vmatmul.msk.f32.gmra.mxu0 %vm420_vm0, %v9305_v37  ;;  %v9327_v33 = vpop.permute.xlu2 %4891  ;;  %v2881_v26 = vmax.f32 %v2756_v62, 0.0 }
 0x629   :  { %5089 = vrot.lane.b32.xlu0 %v9305_v37, %s6697_s13  ;;  %12191 = vst [vmem:[#allocation100_spill] sm:$0xff] %v9327_v33 }
 0x62a   :  { %12190 = vst [vmem:[#allocation99_spill] sm:$0xff] %v9309_v4  ;;  %4993 = vrot.lane.b32.xlu2 %v9309_v4, %s6696_s23  ;;  %6305 = vmatmul.msk.f32.gmra.mxu2 %vm420_vm0, %v9309_v4 }
 0x62b   :  { %v3171_v24 = vpop.f32.mrf.mxu3 }
 0x62c   :  { %v3333_v48 = vadd.f32 %v3171_v24, %v8400_v32  ;;  %v9341_v32 = vpop.permute.xlu1 %4873 }
 0x62d   :  { %v2301_v55 = vpop.f32.mrf.mxu1 }
 0x62e   :  { %v9330_v39 = vadd.f32 %v9002_v11, %v3333_v48  ;;  %v2367_v28 = vadd.f32 %v2301_v55, %v12192_v27  ;;  %v9355_v55 = vpop.permute.xlu0 %4871 }
 0x630   :  { %v9334_v9 = vadd.f32 %v8849_v3, %v2367_v28  ;;  %6343 = vmatmul.msk.f32.gmra.mxu3 %vm420_vm0, %v2880_v12  ;;  %6396 = vmatmul.msk.f32.gmra.mxu0 %vm420_vm0, %v9330_v39  ;;  %v9352_v12 = vld [vmem:[%s11691_s5 + $0x3] ss:$0 sm:$0xff]  ;;  %v12194_v28 = vld [vmem:[#allocation72_spill] sm:$0xff]  ;;  %v9357_v27 = vpop.permute.xlu2 %4897 }
 0x631   :  { %5091 = vrot.lane.b32.xlu1 %v9330_v39, %s6697_s13  ;;  %12195 = vst [vmem:[#allocation72_spill] sm:$0xff] %v9357_v27 }
 0x632   :  { %12193 = vst [vmem:[#allocation101_spill] sm:$0xff] %v9334_v9  ;;  %4995 = vrot.lane.b32.xlu0 %v9334_v9, %s6696_s23  ;;  %6306 = vmatmul.msk.f32.gmra.mxu2 %vm420_vm0, %v9334_v9  ;;  %v9363_v9 = vpop.f32.mrf.mxu2 }
 0x633   :  { %v3174_v3 = vpop.f32.mrf.mxu3 }
 0x634   :  { %v3334_v24 = vadd.f32 %v3174_v3, %v12194_v28  ;;  %v2759_v3 = vadd.f32 %v8721_v38, %v9189_v43  ;;  %v9373_v28 = vpop.permute.xlu1 %4875 }
 0x635   :  { %v3670_v48 = vpop.f32.mrf.mxu0 }
 0x636   :  { %v9360_v4 = vadd.f32 %v9002_v11, %v3334_v24  ;;  %v3671_v33 = vadd.f32 %v9352_v12, %v3670_v48  ;;  %v12196_v24 = vld [vmem:[#allocation74_spill] sm:$0xff]  ;;  %v2882_v54 = vmax.f32 %v2759_v3, 0.0 }
 0x638   :  { %v3862_v16 = vmax.f32 %v3671_v33, 0.0  ;;  %6344 = vmatmul.msk.f32.gmra.mxu3 %vm420_vm0, %v2881_v26  ;;  %6397 = vmatmul.msk.f32.gmra.mxu0 %vm420_vm0, %v9360_v4  ;;  %v9376_v33 = vpop.permute.xlu0 %4881  ;;  %v9378_v26 = vpop.permute.xlu2 %4903 }
 0x639   :  { %5093 = vrot.lane.b32.xlu2 %v9360_v4, %s6697_s13  ;;  %12197 = vst [vmem:[#allocation74_spill] sm:$0xff] %v9376_v33 }
 0x63a   :  { %6449 = vmatmul.msk.f32.vlgmr.msra.gmra.mxu1 %vm420_vm0, %v3862_v16  ;;  %12198 = vst [vmem:[#allocation102_spill] sm:$0xff] %v9378_v26  ;;  %v9387_v43 = vpop.f32.mrf.mxu2  ;;  %v2762_v16 = vadd.f32 %v8721_v38, %v9211_v53  ;;  %v2765_v53 = vadd.f32 %v8721_v38, %v9236_v58 }
 0x63b   :  { %v3177_v62 = vpop.f32.mrf.mxu3 }
 0x63c   :  { %v3335_v48 = vadd.f32 %v3177_v62, %v12196_v24  ;;  %v9394_v62 = vpop.permute.xlu1 %4883  ;;  %v2883_v26 = vmax.f32 %v2762_v16, 0.0 }
 0x63d   :  { %v3673_v27 = vpop.f32.mrf.mxu0  ;;  %12199 = vst [vmem:[#allocation103_spill] sm:$0xff] %v9394_v62 }
 0x63e   :  { %v9381_v50 = vadd.f32 %v9002_v11, %v3335_v48  ;;  %v3674_v14 = vadd.f32 %v9352_v12, %v3673_v27  ;;  %v12200_v27 = vld [vmem:[#allocation76_spill] sm:$0xff] }
 0x640   :  { %v3863_v19 = vmax.f32 %v3674_v14, 0.0  ;;  %6345 = vmatmul.msk.f32.gmra.mxu3 %vm420_vm0, %v2882_v54  ;;  %6398 = vmatmul.msk.f32.gmra.mxu0 %vm420_vm0, %v9381_v50  ;;  %v9397_v54 = vpop.permute.xlu0 %4887  ;;  %v9399_v48 = vpop.permute.xlu2 %4909 }
 0x641   :  { %5095 = vrot.lane.b32.xlu0 %v9381_v50, %s6697_s13  ;;  %12201 = vst [vmem:[#allocation76_spill] sm:$0xff] %v9397_v54 }
 0x642   :  { %6450 = vmatmul.msk.f32.gmra.mxu1 %vm420_vm0, %v3863_v19  ;;  %12202 = vst [vmem:[#allocation104_spill] sm:$0xff] %v9399_v48  ;;  %v9413_v19 = vpop.f32.mrf.mxu2  ;;  %v2884_v48 = vmax.f32 %v2765_v53, 0.0 }
 0x643   :  { %v3180_v3 = vpop.f32.mrf.mxu3 }
 0x644   :  { %v3336_v14 = vadd.f32 %v3180_v3, %v12200_v27  ;;  %v9415_v3 = vpop.permute.xlu1 %4889  ;;  %v12204_v27 = vld [vmem:[#allocation78_spill] sm:$0xff] }
 0x645   :  { %v3676_v24 = vpop.f32.mrf.mxu0  ;;  %12203 = vst [vmem:[#allocation105_spill] sm:$0xff] %v9415_v3 }
 0x646   :  { %v9402_v35 = vadd.f32 %v9002_v11, %v3336_v14  ;;  %v3677_v33 = vadd.f32 %v9352_v12, %v3676_v24 }
 0x648   :  { %v3864_v30 = vmax.f32 %v3677_v33, 0.0  ;;  %6346 = vmatmul.msk.f32.gmra.mxu3 %vm420_vm0, %v2883_v26  ;;  %6399 = vmatmul.msk.f32.gmra.mxu0 %vm420_vm0, %v9402_v35  ;;  %v9418_v26 = vpop.permute.xlu0 %4893  ;;  %v9420_v24 = vpop.permute.xlu2 %4915 }
 0x649   :  { %5097 = vrot.lane.b32.xlu1 %v9402_v35, %s6697_s13  ;;  %12205 = vst [vmem:[#allocation78_spill] sm:$0xff] %v9418_v26 }
 0x64a   :  { %6451 = vmatmul.msk.f32.gmra.mxu1 %vm420_vm0, %v3864_v30  ;;  %12206 = vst [vmem:[#allocation106_spill] sm:$0xff] %v9420_v24  ;;  %v9434_v30 = vld [vmem:[%s11691_s5 + $0x2] ss:$0 sm:$0xff] }
 0x64b   :  { %v3183_v16 = vpop.f32.mrf.mxu3  ;;  %v2768_v53 = vadd.f32 %v9434_v30, %v9265_v8 }
 0x64c   :  { %v3337_v33 = vadd.f32 %v3183_v16, %v12204_v27  ;;  %v9439_v27 = vpop.permute.xlu1 %4895 }
 0x64d   :  { %v3679_v14 = vpop.f32.mrf.mxu0  ;;  %12208 = vst [vmem:[#allocation108_spill] sm:$0xff] %v9439_v27  ;;  %v2885_v26 = vmax.f32 %v2768_v53, 0.0 }
 0x64e   :  { %v9423_v62 = vadd.f32 %v9002_v11, %v3337_v33  ;;  %v3680_v58 = vadd.f32 %v9352_v12, %v3679_v14  ;;  %v9442_v14 = vpop.f32.mrf.mxu2 }
 0x650   :  { %12207 = vst [vmem:[#allocation107_spill] sm:$0xff] %v9423_v62  ;;  %v3865_v38 = vmax.f32 %v3680_v58, 0.0  ;;  %6347 = vmatmul.msk.f32.gmra.mxu3 %vm420_vm0, %v2884_v48  ;;  %6400 = vmatmul.msk.f32.gmra.mxu0 %vm420_vm0, %v9423_v62  ;;  %v12209_v48 = vld [vmem:[#allocation80_spill] sm:$0xff]  ;;  %v9444_v24 = vpop.permute.xlu0 %4899  ;;  %v9446_v3 = vpop.permute.xlu2 %4921 }
 0x651   :  { %5099 = vrot.lane.b32.xlu2 %v9423_v62, %s6697_s13  ;;  %12210 = vst [vmem:[#allocation80_spill] sm:$0xff] %v9444_v24 }
 0x652   :  { %6452 = vmatmul.msk.f32.gmra.mxu1 %vm420_vm0, %v3865_v38  ;;  %12211 = vst [vmem:[#allocation109_spill] sm:$0xff] %v9446_v3  ;;  %v2771_v38 = vadd.f32 %v9434_v30, %v9299_v61 }
 0x653   :  { %v3186_v16 = vpop.f32.mrf.mxu3 }
 0x654   :  { %v3338_v33 = vadd.f32 %v3186_v16, %v12209_v48  ;;  %v9460_v16 = vpop.permute.xlu1 %4901  ;;  %v12214_v48 = vld [vmem:[#allocation82_spill] sm:$0xff]  ;;  %v2886_v3 = vmax.f32 %v2771_v38, 0.0 }
 0x655   :  { %v3682_v58 = vpop.f32.mrf.mxu0  ;;  %12213 = vst [vmem:[#allocation111_spill] sm:$0xff] %v9460_v16 }
 0x656   :  { %v9449_v54 = vadd.f32 %v9002_v11, %v3338_v33  ;;  %v3683_v8 = vadd.f32 %v9352_v12, %v3682_v58 }
 0x658   :  { %12212 = vst [vmem:[#allocation110_spill] sm:$0xff] %v9449_v54  ;;  %v3866_v62 = vmax.f32 %v3683_v8, 0.0  ;;  %6348 = vmatmul.msk.f32.gmra.mxu3 %vm420_vm0, %v2885_v26  ;;  %6401 = vmatmul.msk.f32.gmra.mxu0 %vm420_vm0, %v9449_v54  ;;  %v9463_v8 = vpop.permute.xlu0 %4905  ;;  %v9465_v26 = vpop.permute.xlu2 %4927 }
 0x659   :  { %5101 = vrot.lane.b32.xlu0 %v9449_v54, %s6697_s13  ;;  %12215 = vst [vmem:[#allocation82_spill] sm:$0xff] %v9463_v8  ;;  %v9471_v54 = vpop.f32.mrf.mxu2 }
 0x65a   :  { %6453 = vmatmul.msk.f32.gmra.mxu1 %vm420_vm0, %v3866_v62  ;;  %12216 = vst [vmem:[#allocation112_spill] sm:$0xff] %v9465_v26  ;;  %v2774_v62 = vadd.f32 %v9434_v30, %v9325_v1 }
 0x65b   :  { %v3189_v53 = vpop.f32.mrf.mxu3 }
 0x65c   :  { %v3339_v33 = vadd.f32 %v3189_v53, %v12214_v48  ;;  %v9481_v53 = vpop.permute.xlu1 %4907  ;;  %v12219_v48 = vld [vmem:[#allocation84_spill] sm:$0xff]  ;;  %v2887_v26 = vmax.f32 %v2774_v62, 0.0 }
 0x65d   :  { %v3685_v58 = vpop.f32.mrf.mxu0  ;;  %12218 = vst [vmem:[#allocation114_spill] sm:$0xff] %v9481_v53 }
 0x65e   :  { %v9468_v27 = vadd.f32 %v9002_v11, %v3339_v33  ;;  %v3686_v24 = vadd.f32 %v9352_v12, %v3685_v58 }
 0x660   :  { %12217 = vst [vmem:[#allocation113_spill] sm:$0xff] %v9468_v27  ;;  %v3867_v61 = vmax.f32 %v3686_v24, 0.0  ;;  %6349 = vmatmul.msk.f32.gmra.mxu3 %vm420_vm0, %v2886_v3  ;;  %6402 = vmatmul.msk.f32.gmra.mxu0 %vm420_vm0, %v9468_v27  ;;  %v9484_v24 = vpop.permute.xlu0 %4911  ;;  %v9486_v3 = vpop.permute.xlu2 %4933 }
 0x661   :  { %5103 = vrot.lane.b32.xlu1 %v9468_v27, %s6697_s13  ;;  %12220 = vst [vmem:[#allocation84_spill] sm:$0xff] %v9484_v24  ;;  %v9495_v1 = vpop.f32.mrf.mxu2 }
 0x662   :  { %6454 = vmatmul.msk.f32.gmra.mxu1 %vm420_vm0, %v3867_v61  ;;  %12221 = vst [vmem:[#allocation115_spill] sm:$0xff] %v9486_v3  ;;  %v2777_v61 = vadd.f32 %v9434_v30, %v9363_v9  ;;  %v2780_v9 = vadd.f32 %v9434_v30, %v9387_v43 }
 0x663   :  { %v3192_v38 = vpop.f32.mrf.mxu3 }
 0x664   :  { %v3340_v33 = vadd.f32 %v3192_v38, %v12219_v48  ;;  %v9502_v38 = vpop.permute.xlu1 %4913  ;;  %v12224_v48 = vld [vmem:[#allocation86_spill] sm:$0xff]  ;;  %v2888_v3 = vmax.f32 %v2777_v61, 0.0 }
 0x665   :  { %v3688_v58 = vpop.f32.mrf.mxu0  ;;  %12223 = vst [vmem:[#allocation117_spill] sm:$0xff] %v9502_v38 }
 0x666   :  { %v9489_v16 = vadd.f32 %v9002_v11, %v3340_v33  ;;  %v3689_v8 = vadd.f32 %v9352_v12, %v3688_v58 }
 0x668   :  { %12222 = vst [vmem:[#allocation116_spill] sm:$0xff] %v9489_v16  ;;  %v3868_v27 = vmax.f32 %v3689_v8, 0.0  ;;  %6350 = vmatmul.msk.f32.gmra.mxu3 %vm420_vm0, %v2887_v26  ;;  %6403 = vmatmul.msk.f32.gmra.mxu0 %vm420_vm0, %v9489_v16  ;;  %v9505_v26 = vpop.permute.xlu0 %4917  ;;  %v9507_v58 = vpop.permute.xlu2 %4939 }
 0x669   :  { %5105 = vrot.lane.b32.xlu2 %v9489_v16, %s6697_s13  ;;  %12225 = vst [vmem:[#allocation86_spill] sm:$0xff] %v9505_v26 }
 0x66a   :  { %6455 = vmatmul.msk.f32.gmra.mxu1 %vm420_vm0, %v3868_v27  ;;  %12226 = vst [vmem:[#allocation118_spill] sm:$0xff] %v9507_v58  ;;  %v9521_v27 = vpop.f32.mrf.mxu2  ;;  %v2889_v58 = vmax.f32 %v2780_v9, 0.0 }
 0x66b   :  { %v3195_v62 = vpop.f32.mrf.mxu3 }
 0x66c   :  { %v3341_v8 = vadd.f32 %v3195_v62, %v12224_v48  ;;  %v9523_v62 = vpop.permute.xlu1 %4919  ;;  %v12228_v48 = vld [vmem:[#allocation87_spill] sm:$0xff] }
 0x66d   :  { %v3691_v33 = vpop.f32.mrf.mxu0  ;;  %12227 = vst [vmem:[#allocation119_spill] sm:$0xff] %v9523_v62 }
 0x66e   :  { %v9510_v53 = vadd.f32 %v9002_v11, %v3341_v8  ;;  %v3692_v24 = vadd.f32 %v9352_v12, %v3691_v33 }
 0x670   :  { %v3869_v16 = vmax.f32 %v3692_v24, 0.0  ;;  %6351 = vmatmul.msk.f32.gmra.mxu3 %vm420_vm0, %v2888_v3  ;;  %6404 = vmatmul.msk.f32.gmra.mxu0 %vm420_vm0, %v9510_v53  ;;  %v9526_v3 = vpop.permute.xlu0 %4923  ;;  %v9528_v33 = vpop.permute.xlu2 %4945 }
 0x671   :  { %5107 = vrot.lane.b32.xlu0 %v9510_v53, %s6697_s13  ;;  %12229 = vst [vmem:[#allocation87_spill] sm:$0xff] %v9526_v3 }
 0x672   :  { %6456 = vmatmul.msk.f32.gmra.mxu1 %vm420_vm0, %v3869_v16  ;;  %12230 = vst [vmem:[#allocation120_spill] sm:$0xff] %v9528_v33  ;;  %v2783_v16 = vadd.f32 %v9434_v30, %v9413_v19 }
 0x673   :  { %v3198_v61 = vpop.f32.mrf.mxu3 }
 0x674   :  { %v3342_v24 = vadd.f32 %v3198_v61, %v12228_v48  ;;  %v9542_v61 = vpop.permute.xlu1 %4925  ;;  %v12233_v48 = vld [vmem:[#allocation88_spill] sm:$0xff]  ;;  %v2890_v62 = vmax.f32 %v2783_v16, 0.0 }
 0x675   :  { %v3694_v8 = vpop.f32.mrf.mxu0  ;;  %12232 = vst [vmem:[#allocation122_spill] sm:$0xff] %v9542_v61 }
 0x676   :  { %v9531_v38 = vadd.f32 %v9002_v11, %v3342_v24  ;;  %v3695_v43 = vadd.f32 %v9352_v12, %v3694_v8  ;;  %v9545_v8 = vpop.f32.mrf.mxu2 }
 0x678   :  { %12231 = vst [vmem:[#allocation121_spill] sm:$0xff] %v9531_v38  ;;  %v3870_v26 = vmax.f32 %v3695_v43, 0.0  ;;  %6352 = vmatmul.msk.f32.gmra.mxu3 %vm420_vm0, %v2889_v58  ;;  %6405 = vmatmul.msk.f32.gmra.mxu0 %vm420_vm0, %v9531_v38  ;;  %v9547_v58 = vpop.permute.xlu0 %4929  ;;  %v9549_v33 = vpop.permute.xlu2 %4951 }
 0x679   :  { %5109 = vrot.lane.b32.xlu1 %v9531_v38, %s6697_s13  ;;  %12234 = vst [vmem:[#allocation88_spill] sm:$0xff] %v9547_v58 }
 0x67a   :  { %6457 = vmatmul.msk.f32.gmra.mxu1 %vm420_vm0, %v3870_v26  ;;  %12235 = vst [vmem:[#allocation123_spill] sm:$0xff] %v9549_v33  ;;  %v2786_v26 = vadd.f32 %v9434_v30, %v9442_v14 }
 0x67b   :  { %v3201_v9 = vpop.f32.mrf.mxu3 }
 0x67c   :  { %v3343_v24 = vadd.f32 %v3201_v9, %v12233_v48  ;;  %v9563_v9 = vpop.permute.xlu1 %4931  ;;  %v12238_v48 = vld [vmem:[#allocation89_spill] sm:$0xff]  ;;  %v2891_v33 = vmax.f32 %v2786_v26, 0.0 }
 0x67d   :  { %v3697_v43 = vpop.f32.mrf.mxu0  ;;  %12237 = vst [vmem:[#allocation125_spill] sm:$0xff] %v9563_v9 }
 0x67e   :  { %v9552_v3 = vadd.f32 %v9002_v11, %v3343_v24  ;;  %v3698_v19 = vadd.f32 %v9352_v12, %v3697_v43 }
 0x680   :  { %12236 = vst [vmem:[#allocation124_spill] sm:$0xff] %v9552_v3  ;;  %v3871_v38 = vmax.f32 %v3698_v19, 0.0  ;;  %6353 = vmatmul.msk.f32.gmra.mxu3 %vm420_vm0, %v2890_v62  ;;  %6406 = vmatmul.msk.f32.gmra.mxu0 %vm420_vm0, %v9552_v3  ;;  %v9566_v19 = vpop.permute.xlu0 %4935  ;;  %v9568_v62 = vpop.permute.xlu2 %4957 }
 0x681   :  { %5111 = vrot.lane.b32.xlu2 %v9552_v3, %s6697_s13  ;;  %12239 = vst [vmem:[#allocation89_spill] sm:$0xff] %v9566_v19  ;;  %v9574_v3 = vpop.f32.mrf.mxu2 }
 0x682   :  { %6458 = vmatmul.msk.f32.gmra.mxu1 %vm420_vm0, %v3871_v38  ;;  %12240 = vst [vmem:[#allocation126_spill] sm:$0xff] %v9568_v62  ;;  %v2789_v38 = vadd.f32 %v9434_v30, %v9471_v54 }
 0x683   :  { %v3204_v16 = vpop.f32.mrf.mxu3 }
 0x684   :  { %v3344_v24 = vadd.f32 %v3204_v16, %v12238_v48  ;;  %v9584_v16 = vpop.permute.xlu1 %4937  ;;  %v12243_v48 = vld [vmem:[#allocation90_spill] sm:$0xff]  ;;  %v2892_v62 = vmax.f32 %v2789_v38, 0.0 }
 0x685   :  { %v3700_v43 = vpop.f32.mrf.mxu0  ;;  %12242 = vst [vmem:[#allocation128_spill] sm:$0xff] %v9584_v16 }
 0x686   :  { %v9571_v61 = vadd.f32 %v9002_v11, %v3344_v24  ;;  %v3701_v58 = vadd.f32 %v9352_v12, %v3700_v43 }
 0x688   :  { %12241 = vst [vmem:[#allocation127_spill] sm:$0xff] %v9571_v61  ;;  %v3872_v14 = vmax.f32 %v3701_v58, 0.0  ;;  %6354 = vmatmul.msk.f32.gmra.mxu3 %vm420_vm0, %v2891_v33  ;;  %6407 = vmatmul.msk.f32.gmra.mxu0 %vm420_vm0, %v9571_v61  ;;  %v9587_v58 = vpop.permute.xlu0 %4941  ;;  %v9589_v33 = vpop.permute.xlu2 %4963 }
 0x689   :  { %5113 = vrot.lane.b32.xlu0 %v9571_v61, %s6697_s13  ;;  %12244 = vst [vmem:[#allocation90_spill] sm:$0xff] %v9587_v58  ;;  %v9598_v54 = vpop.f32.mrf.mxu2 }
 0x68a   :  { %6459 = vmatmul.msk.f32.gmra.mxu1 %vm420_vm0, %v3872_v14  ;;  %12245 = vst [vmem:[#allocation129_spill] sm:$0xff] %v9589_v33  ;;  %v2792_v14 = vadd.f32 %v9434_v30, %v9495_v1  ;;  %v2795_v1 = vadd.f32 %v9434_v30, %v9521_v27 }
 0x68b   :  { %v3207_v26 = vpop.f32.mrf.mxu3 }
 0x68c   :  { %v3345_v24 = vadd.f32 %v3207_v26, %v12243_v48  ;;  %v9605_v26 = vpop.permute.xlu1 %4943  ;;  %v12248_v48 = vld [vmem:[#allocation91_spill] sm:$0xff]  ;;  %v2893_v16 = vmax.f32 %v2792_v14, 0.0 }
 0x68d   :  { %v3703_v43 = vpop.f32.mrf.mxu0  ;;  %12247 = vst [vmem:[#allocation131_spill] sm:$0xff] %v9605_v26  ;;  %v2894_v26 = vmax.f32 %v2795_v1, 0.0 }
 0x68e   :  { %v9592_v9 = vadd.f32 %v9002_v11, %v3345_v24  ;;  %v3704_v19 = vadd.f32 %v9352_v12, %v3703_v43 }
 0x690   :  { %12246 = vst [vmem:[#allocation130_spill] sm:$0xff] %v9592_v9  ;;  %v3873_v61 = vmax.f32 %v3704_v19, 0.0  ;;  %6355 = vmatmul.msk.f32.gmra.mxu3 %vm420_vm0, %v2892_v62  ;;  %6408 = vmatmul.msk.f32.gmra.mxu0 %vm420_vm0, %v9592_v9  ;;  %v9608_v62 = vpop.permute.xlu0 %4947  ;;  %v9610_v43 = vpop.permute.xlu2 %5063 }
 0x691   :  { %5115 = vrot.lane.b32.xlu1 %v9592_v9, %s6697_s13  ;;  %12249 = vst [vmem:[#allocation91_spill] sm:$0xff] %v9608_v62 }
 0x692   :  { %6460 = vmatmul.msk.f32.gmra.mxu1 %vm420_vm0, %v3873_v61  ;;  %v9624_v61 = vpop.f32.mrf.mxu2 }
 0x693   :  { %v3210_v38 = vpop.f32.mrf.mxu3 }
 0x694   :  { %v3346_v19 = vadd.f32 %v3210_v38, %v12248_v48  ;;  %v9626_v38 = vpop.permute.xlu1 %4949  ;;  %v12252_v48 = vld [vmem:[#allocation92_spill] sm:$0xff] }
 0x695   :  { %v3706_v24 = vpop.f32.mrf.mxu0  ;;  %12251 = vst [vmem:[#allocation133_spill] sm:$0xff] %v9626_v38 }
 0x696   :  { %v9613_v58 = vadd.f32 %v9002_v11, %v3346_v19  ;;  %v3707_v33 = vadd.f32 %v9352_v12, %v3706_v24 }
 0x698   :  { %12250 = vst [vmem:[#allocation132_spill] sm:$0xff] %v9613_v58  ;;  %v3874_v9 = vmax.f32 %v3707_v33, 0.0  ;;  %6356 = vmatmul.msk.f32.gmra.mxu3 %vm420_vm0, %v2893_v16  ;;  %6409 = vmatmul.msk.f32.gmra.mxu0 %vm420_vm0, %v9613_v58  ;;  %v9629_v16 = vpop.permute.xlu0 %4953  ;;  %v9631_v24 = vpop.permute.xlu2 %4969 }
 0x699   :  { %5117 = vrot.lane.b32.xlu2 %v9613_v58, %s6697_s13  ;;  %12253 = vst [vmem:[#allocation92_spill] sm:$0xff] %v9629_v16 }
 0x69a   :  { %6461 = vmatmul.msk.f32.gmra.mxu1 %vm420_vm0, %v3874_v9  ;;  %12254 = vst [vmem:[#allocation134_spill] sm:$0xff] %v9631_v24  ;;  %v2798_v9 = vadd.f32 %v9434_v30, %v9545_v8 }
 0x69b   :  { %v3213_v14 = vpop.f32.mrf.mxu3 }
 0x69c   :  { %v3347_v33 = vadd.f32 %v3213_v14, %v12252_v48  ;;  %v9645_v14 = vpop.permute.xlu1 %4955  ;;  %v2895_v38 = vmax.f32 %v2798_v9, 0.0 }
 0x69d   :  { %v3709_v19 = vpop.f32.mrf.mxu0  ;;  %12256 = vst [vmem:[#allocation136_spill] sm:$0xff] %v9645_v14 }
 0x69e   :  { %v9634_v62 = vadd.f32 %v9002_v11, %v3347_v33  ;;  %v3710_v27 = vadd.f32 %v9352_v12, %v3709_v19  ;;  %v9648_v33 = vpop.f32.mrf.mxu2 }
 0x6a0   :  { %12255 = vst [vmem:[#allocation135_spill] sm:$0xff] %v9634_v62  ;;  %v3875_v58 = vmax.f32 %v3710_v27, 0.0  ;;  %6357 = vmatmul.msk.f32.gmra.mxu3 %vm420_vm0, %v2894_v26  ;;  %6410 = vmatmul.msk.f32.gmra.mxu0 %vm420_vm0, %v9634_v62  ;;  %v9650_v26 = vpop.permute.xlu0 %4959  ;;  %v9652_v27 = vpop.permute.xlu2 %5069 }
 0x6a1   :  { %5119 = vrot.lane.b32.xlu0 %v9634_v62, %s6697_s13  ;;  %12257 = vst [vmem:[#allocation137_spill] sm:$0xff] %v9650_v26 }
 0x6a2   :  { %6462 = vmatmul.msk.f32.gmra.mxu1 %vm420_vm0, %v3875_v58 }
 0x6a3   :  { %v3216_v1 = vpop.f32.mrf.mxu3 }
 0x6a4   :  { %v3348_v48 = vadd.f32 %v3216_v1, %v8725_v31  ;;  %v2801_v31 = vadd.f32 %v9434_v30, %v9574_v3  ;;  %v9666_v9 = vpop.permute.xlu1 %4961 }
 0x6a5   :  { %v3712_v19 = vpop.f32.mrf.mxu0  ;;  %12259 = vst [vmem:[#allocation139_spill] sm:$0xff] %v9666_v9 }
 0x6a6   :  { %v9655_v16 = vadd.f32 %v9002_v11, %v3348_v48  ;;  %v3713_v8 = vadd.f32 %v9352_v12, %v3712_v19  ;;  %v9677_v62 = vpop.f32.mrf.mxu2 }
 0x6a8   :  { %12258 = vst [vmem:[#allocation138_spill] sm:$0xff] %v9655_v16  ;;  %v3876_v24 = vmax.f32 %v3713_v8, 0.0  ;;  %6358 = vmatmul.msk.f32.gmra.mxu3 %vm420_vm0, %v2895_v38  ;;  %6411 = vmatmul.msk.f32.gmra.mxu0 %vm420_vm0, %v9655_v16  ;;  %v9669_v19 = vpop.permute.xlu0 %4965  ;;  %v9671_v38 = vpop.permute.xlu2 %4975  ;;  %v2896_v8 = vmax.f32 %v2801_v31, 0.0 }
 0x6a9   :  { %5121 = vrot.lane.b32.xlu1 %v9655_v16, %s6697_s13  ;;  %12260 = vst [vmem:[#allocation140_spill] sm:$0xff] %v9669_v19 }
 0x6aa   :  { %6463 = vmatmul.msk.f32.gmra.mxu1 %vm420_vm0, %v3876_v24  ;;  %12261 = vst [vmem:[#allocation141_spill] sm:$0xff] %v9671_v38 }
 0x6ab   :  { %v3219_v58 = vpop.f32.mrf.mxu3 }
 0x6ac   :  { %v3349_v1 = vadd.f32 %v3219_v58, %v8741_v44  ;;  %v2804_v44 = vadd.f32 %v9434_v30, %v9598_v54  ;;  %v9687_v31 = vpop.permute.xlu1 %5061  ;;  %v12263_v58 = vld [vmem:[#allocation55_spill] sm:$0xff]  ;;  %v9701_v54 = vld [vmem:[%s11693_s7 + $0x3] ss:$0 sm:$0xff] }
 0x6ad   :  { %v3715_v48 = vpop.f32.mrf.mxu0 }
 0x6ae   :  { %v9674_v14 = vadd.f32 %v9002_v11, %v3349_v1  ;;  %v3716_v16 = vadd.f32 %v9352_v12, %v3715_v48 }
 0x6b0   :  { %12262 = vst [vmem:[#allocation142_spill] sm:$0xff] %v9674_v14  ;;  %v3877_v3 = vmax.f32 %v3716_v16, 0.0  ;;  %6359 = vmatmul.msk.f32.gmra.mxu3 %vm420_vm0, %v2896_v8  ;;  %6412 = vmatmul.msk.f32.gmra.mxu0 %vm420_vm0, %v9674_v14  ;;  %v9690_v16 = vpop.permute.xlu0 %5065  ;;  %v2897_v8 = vmax.f32 %v2804_v44, 0.0  ;;  %v9692_v38 = vpop.permute.xlu2 %5075 }
 0x6b1   :  { %5123 = vrot.lane.b32.xlu2 %v9674_v14, %s6697_s13  ;;  %v9707_v44 = vpop.f32.mrf.mxu2 }
 0x6b2   :  { %6464 = vmatmul.msk.f32.gmra.mxu1 %vm420_vm0, %v3877_v3 }
 0x6b3   :  { %v3222_v24 = vpop.f32.mrf.mxu3 }
 0x6b4   :  { %v3350_v1 = vadd.f32 %v3222_v24, %v12263_v58 }
 0x6b5   :  { %v3718_v48 = vpop.f32.mrf.mxu0 }
 0x6b6   :  { %v9695_v19 = vadd.f32 %v9002_v11, %v3350_v1  ;;  %v3719_v14 = vadd.f32 %v9352_v12, %v3718_v48  ;;  %v2807_v11 = vadd.f32 %v9434_v30, %v9624_v61  ;;  %v9715_v1 = vpop.permute.xlu1 %4967  ;;  %v9727_v61 = vld [vmem:[%s11693_s7 + $0x2] ss:$0 sm:$0xff] }
 0x6b7   :  { %v4140_v3 = vpop.f32.mrf.mxu1  ;;  %12265 = vst [vmem:[#allocation143_spill] sm:$0xff] %v9715_v1 }
 0x6b8   :  { %12264 = vst [vmem:[#allocation55_spill] sm:$0xff] %v9695_v19  ;;  %v3878_v26 = vmax.f32 %v3719_v14, 0.0  ;;  %v4332_v24 = vadd.f32 %v4140_v3, %v9008_v47  ;;  %6360 = vmatmul.msk.f32.gmra.mxu3 %vm420_vm0, %v2897_v8  ;;  %6413 = vmatmul.msk.f32.gmra.mxu0 %vm420_vm0, %v9695_v19  ;;  %v9720_v8 = vpop.permute.xlu0 %4971  ;;  %v2898_v3 = vmax.f32 %v2807_v11, 0.0  ;;  %v2810_v11 = vadd.f32 %v9434_v30, %v9648_v33 }
 0x6b9   :  { %5125 = vrot.lane.b32.xlu0 %v9695_v19, %s6697_s13  ;;  %12266 = vst [vmem:[#allocation144_spill] sm:$0xff] %v9720_v8  ;;  %v9722_v19 = vpop.permute.xlu2 %4981 }
 0x6ba   :  { %v4401_v58 = vadd.f32 %v9701_v54, %v4332_v24  ;;  %6465 = vmatmul.msk.f32.gmra.mxu1 %vm420_vm0, %v3878_v26  ;;  %12267 = vst [vmem:[#allocation145_spill] sm:$0xff] %v9722_v19  ;;  %v2899_v8 = vmax.f32 %v2810_v11, 0.0 }
 0x6bb   :  { %v3225_v14 = vpop.f32.mrf.mxu3 }
 0x6bc   :  { %v3351_v47 = vadd.f32 %v3225_v14, %v8771_v17  ;;  %5253 = vrot.lane.b32.xlu2 %v4401_v58, %s6698_s19  ;;  %6514 = vmatmul.msk.f32.vlgmr.msra.gmra.mxu2 %vm420_vm0, %v4401_v58 }
 0x6bd   :  { %v3721_v48 = vpop.f32.mrf.mxu0 }
 0x6be   :  { %v9730_v26 = vadd.f32 %v9727_v61, %v3351_v47  ;;  %v3722_v17 = vadd.f32 %v9352_v12, %v3721_v48  ;;  %v2818_v48 = vpop.f32.mrf.mxu2 }
 0x6bf   :  { %v4143_v24 = vpop.f32.mrf.mxu1 }
 0x6c0   :  { %12268 = vst [vmem:[#allocation146_spill] sm:$0xff] %v9730_v26  ;;  %v3879_v14 = vmax.f32 %v3722_v17, 0.0  ;;  %v4333_v58 = vadd.f32 %v4143_v24, %v9027_v13  ;;  %6361 = vmatmul.msk.f32.gmra.mxu3 %vm420_vm0, %v2898_v3  ;;  %6414 = vmatmul.msk.f32.gmra.mxu0 %vm420_vm0, %v9730_v26  ;;  %v9743_v17 = vpop.permute.xlu1 %5067  ;;  %v9748_v24 = vpop.permute.xlu0 %5071 }
 0x6c1   :  { %5127 = vrot.lane.b32.xlu1 %v9730_v26, %s6697_s13  ;;  %v9750_v26 = vpop.permute.xlu2 %5081 }
 0x6c2   :  { %v4402_v47 = vadd.f32 %v9701_v54, %v4333_v58  ;;  %6466 = vmatmul.msk.f32.gmra.mxu1 %vm420_vm0, %v3879_v14 }
 0x6c3   :  { %v3228_v19 = vpop.f32.mrf.mxu3 }
 0x6c4   :  { %v3352_v13 = vadd.f32 %v3228_v19, %v8786_v45  ;;  %5255 = vrot.lane.b32.xlu0 %v4402_v47, %s6698_s19  ;;  %6515 = vmatmul.msk.f32.gmra.mxu2 %vm420_vm0, %v4402_v47  ;;  %v2813_v45 = vadd.f32 %v9434_v30, %v9677_v62 }
 0x6c5   :  { %v3724_v3 = vpop.f32.mrf.mxu0 }
 0x6c6   :  { %v9753_v33 = vadd.f32 %v9727_v61, %v3352_v13  ;;  %v3725_v14 = vadd.f32 %v9352_v12, %v3724_v3 }
 0x6c7   :  { %v4146_v58 = vpop.f32.mrf.mxu1 }
 0x6c8   :  { %12269 = vst [vmem:[#allocation147_spill] sm:$0xff] %v9753_v33  ;;  %v3880_v1 = vmax.f32 %v3725_v14, 0.0  ;;  %v4334_v9 = vadd.f32 %v4146_v58, %v9048_v15  ;;  %6362 = vmatmul.msk.f32.gmra.mxu3 %vm420_vm0, %v2899_v8  ;;  %6415 = vmatmul.msk.f32.gmra.mxu0 %vm420_vm0, %v9753_v33  ;;  %v9766_v47 = vpop.permute.xlu1 %4973  ;;  %v2821_v8 = vpop.f32.mrf.mxu2  ;;  %v2900_v14 = vmax.f32 %v2813_v45, 0.0  ;;  %v2816_v45 = vadd.f32 %v9434_v30, %v9707_v44 }
 0x6c9   :  { %5129 = vrot.lane.b32.xlu2 %v9753_v33, %s6697_s13  ;;  %v9771_v3 = vpop.permute.xlu0 %4977  ;;  %v9773_v58 = vpop.permute.xlu2 %4987 }
 0x6ca   :  { %v4403_v19 = vadd.f32 %v9701_v54, %v4334_v9  ;;  %6467 = vmatmul.msk.f32.gmra.mxu1 %vm420_vm0, %v3880_v1  ;;  %12270 = vst [vmem:[#allocation148_spill] sm:$0xff] %v9771_v3 }
 0x6cb   :  { %v3231_v11 = vpop.f32.mrf.mxu3  ;;  %12271 = vst [vmem:[#allocation149_spill] sm:$0xff] %v9773_v58 }
 0x6cc   :  { %v3353_v15 = vadd.f32 %v3231_v11, %v8799_v46  ;;  %5257 = vrot.lane.b32.xlu1 %v4403_v19, %s6698_s19  ;;  %6516 = vmatmul.msk.f32.gmra.mxu2 %vm420_vm0, %v4403_v19 }
 0x6cd   :  { %v3727_v13 = vpop.f32.mrf.mxu0 }
 0x6ce   :  { %v9776_v62 = vadd.f32 %v9727_v61, %v3353_v15  ;;  %v3728_v9 = vadd.f32 %v9352_v12, %v3727_v13 }
 0x6cf   :  { %v4149_v1 = vpop.f32.mrf.mxu1 }
 0x6d0   :  { %12272 = vst [vmem:[#allocation150_spill] sm:$0xff] %v9776_v62  ;;  %v3881_v33 = vmax.f32 %v3728_v9, 0.0  ;;  %v4335_v46 = vadd.f32 %v4149_v1, %v9069_v41  ;;  %6363 = vmatmul.msk.f32.gmra.mxu3 %vm420_vm0, %v2900_v14  ;;  %6416 = vmatmul.msk.f32.gmra.mxu0 %vm420_vm0, %v9776_v62  ;;  %v9789_v15 = vpop.permute.xlu1 %5073  ;;  %v2901_v14 = vmax.f32 %v2816_v45, 0.0  ;;  %v2819_v45 = vadd.f32 %v9434_v30, %v2818_v48 }
 0x6d1   :  { %5131 = vrot.lane.b32.xlu0 %v9776_v62, %s6697_s13  ;;  %v9794_v9 = vpop.permute.xlu0 %5077  ;;  %v9796_v1 = vpop.permute.xlu2 %5087 }
 0x6d2   :  { %v4404_v19 = vadd.f32 %v9701_v54, %v4335_v46  ;;  %6468 = vmatmul.msk.f32.gmra.mxu1 %vm420_vm0, %v3881_v33  ;;  %v2824_v46 = vpop.f32.mrf.mxu2 }
 0x6d3   :  { %v3234_v11 = vpop.f32.mrf.mxu3 }
 0x6d4   :  { %v3354_v41 = vadd.f32 %v3234_v11, %v8814_v21  ;;  %5259 = vrot.lane.b32.xlu2 %v4404_v19, %s6698_s19  ;;  %6517 = vmatmul.msk.f32.gmra.mxu2 %vm420_vm0, %v4404_v19 }
 0x6d5   :  { %v3730_v13 = vpop.f32.mrf.mxu0 }
 0x6d6   :  { %v9799_v44 = vadd.f32 %v9727_v61, %v3354_v41  ;;  %v3731_v33 = vadd.f32 %v9352_v12, %v3730_v13 }
 0x6d7   :  { %v4152_v58 = vpop.f32.mrf.mxu1 }
 0x6d8   :  { %12273 = vst [vmem:[#allocation151_spill] sm:$0xff] %v9799_v44  ;;  %v3882_v3 = vmax.f32 %v3731_v33, 0.0  ;;  %v4336_v21 = vadd.f32 %v4152_v58, %v9090_v6  ;;  %6364 = vmatmul.msk.f32.gmra.mxu3 %vm420_vm0, %v2901_v14  ;;  %6417 = vmatmul.msk.f32.gmra.mxu0 %vm420_vm0, %v9799_v44  ;;  %v9811_v41 = vpop.permute.xlu1 %4979  ;;  %v2902_v58 = vmax.f32 %v2819_v45, 0.0  ;;  %v2822_v45 = vadd.f32 %v9434_v30, %v2821_v8 }
 0x6d9   :  { %5133 = vrot.lane.b32.xlu1 %v9799_v44, %s6697_s13  ;;  %v9816_v14 = vpop.permute.xlu0 %4983  ;;  %v9818_v33 = vpop.permute.xlu2 %4993 }
 0x6da   :  { %v4405_v19 = vadd.f32 %v9701_v54, %v4336_v21  ;;  %6469 = vmatmul.msk.f32.gmra.mxu1 %vm420_vm0, %v3882_v3  ;;  %12274 = vst [vmem:[#allocation152_spill] sm:$0xff] %v9816_v14 }
 0x6db   :  { %v3237_v11 = vpop.f32.mrf.mxu3  ;;  %12275 = vst [vmem:[#allocation153_spill] sm:$0xff] %v9818_v33 }
 0x6dc   :  { %v3355_v13 = vadd.f32 %v3237_v11, %v8832_v7  ;;  %5261 = vrot.lane.b32.xlu0 %v4405_v19, %s6698_s19  ;;  %6518 = vmatmul.msk.f32.gmra.mxu2 %vm420_vm0, %v4405_v19  ;;  %v2827_v7 = vpop.f32.mrf.mxu2 }
 0x6dd   :  { %v3733_v6 = vpop.f32.mrf.mxu0 }
 0x6de   :  { %v9821_v48 = vadd.f32 %v9727_v61, %v3355_v13  ;;  %v3734_v3 = vadd.f32 %v9352_v12, %v3733_v6 }
 0x6df   :  { %v4155_v21 = vpop.f32.mrf.mxu1 }
 0x6e0   :  { %v3883_v44 = vmax.f32 %v3734_v3, 0.0  ;;  %v4337_v62 = vadd.f32 %v4155_v21, %v9111_v25  ;;  %6365 = vmatmul.msk.f32.gmra.mxu3 %vm420_vm0, %v2902_v58  ;;  %6418 = vmatmul.msk.f32.gmra.mxu0 %vm420_vm0, %v9821_v48  ;;  %v9833_v13 = vpop.permute.xlu1 %5079  ;;  %v2903_v58 = vmax.f32 %v2822_v45, 0.0 }
 0x6e1   :  { %5135 = vrot.lane.b32.xlu2 %v9821_v48, %s6697_s13  ;;  %v9838_v3 = vpop.permute.xlu0 %5083  ;;  %v9840_v21 = vpop.permute.xlu2 %5093 }
 0x6e2   :  { %v4406_v19 = vadd.f32 %v9701_v54, %v4337_v62  ;;  %6470 = vmatmul.msk.f32.gmra.mxu1 %vm420_vm0, %v3883_v44 }
 0x6e3   :  { %v3240_v11 = vpop.f32.mrf.mxu3 }
 0x6e4   :  { %v3356_v25 = vadd.f32 %v3240_v11, %v8852_v52  ;;  %5263 = vrot.lane.b32.xlu1 %v4406_v19, %s6698_s19  ;;  %6519 = vmatmul.msk.f32.gmra.mxu2 %vm420_vm0, %v4406_v19  ;;  %v2825_v52 = vadd.f32 %v9434_v30, %v2824_v46  ;;  %v2830_v19 = vpop.f32.mrf.mxu2 }
 0x6e5   :  { %v3736_v6 = vpop.f32.mrf.mxu0 }
 0x6e6   :  { %v9843_v8 = vadd.f32 %v9727_v61, %v3356_v25  ;;  %v3737_v62 = vadd.f32 %v9352_v12, %v3736_v6 }
 0x6e7   :  { %v4158_v44 = vpop.f32.mrf.mxu1 }
 0x6e8   :  { %12276 = vst [vmem:[#allocation154_spill] sm:$0xff] %v9843_v8  ;;  %v3884_v33 = vmax.f32 %v3737_v62, 0.0  ;;  %v4338_v14 = vadd.f32 %v4158_v44, %v9130_v20  ;;  %6366 = vmatmul.msk.f32.gmra.mxu3 %vm420_vm0, %v2903_v58  ;;  %6419 = vmatmul.msk.f32.gmra.mxu0 %vm420_vm0, %v9843_v8  ;;  %v9855_v25 = vpop.permute.xlu1 %4985  ;;  %v2904_v58 = vmax.f32 %v2825_v52, 0.0 }
 0x6e9   :  { %5137 = vrot.lane.b32.xlu0 %v9843_v8, %s6697_s13  ;;  %12277 = vst [vmem:[#allocation155_spill] sm:$0xff] %v9855_v25  ;;  %v9860_v62 = vpop.permute.xlu0 %4989  ;;  %v9862_v44 = vpop.permute.xlu2 %5099 }
 0x6ea   :  { %v4407_v45 = vadd.f32 %v9701_v54, %v4338_v14  ;;  %6471 = vmatmul.msk.f32.gmra.mxu1 %vm420_vm0, %v3884_v33  ;;  %12278 = vst [vmem:[#allocation156_spill] sm:$0xff] %v9860_v62 }
 0x6eb   :  { %v3243_v11 = vpop.f32.mrf.mxu3 }
 0x6ec   :  { %v3357_v20 = vadd.f32 %v3243_v11, %v8867_v63  ;;  %5265 = vrot.lane.b32.xlu2 %v4407_v45, %s6698_s19  ;;  %6520 = vmatmul.msk.f32.gmra.mxu2 %vm420_vm0, %v4407_v45  ;;  %v2828_v63 = vadd.f32 %v9434_v30, %v2827_v7 }
 0x6ed   :  { %v3739_v6 = vpop.f32.mrf.mxu0 }
 0x6ee   :  { %v9865_v46 = vadd.f32 %v9727_v61, %v3357_v20  ;;  %v3740_v14 = vadd.f32 %v9352_v12, %v3739_v6 }
 0x6ef   :  { %v4161_v33 = vpop.f32.mrf.mxu1 }
 0x6f0   :  { %v3885_v8 = vmax.f32 %v3740_v14, 0.0  ;;  %v4339_v25 = vadd.f32 %v4161_v33, %v9151_v59  ;;  %6367 = vmatmul.msk.f32.gmra.mxu3 %vm420_vm0, %v2904_v58  ;;  %6420 = vmatmul.msk.f32.gmra.mxu0 %vm420_vm0, %v9865_v46  ;;  %v9877_v11 = vpop.permute.xlu1 %5085  ;;  %v2833_v59 = vpop.f32.mrf.mxu2  ;;  %v2905_v58 = vmax.f32 %v2828_v63, 0.0  ;;  %v2831_v63 = vadd.f32 %v9434_v30, %v2830_v19 }
 0x6f1   :  { %5139 = vrot.lane.b32.xlu1 %v9865_v46, %s6697_s13  ;;  %v9882_v14 = vpop.permute.xlu0 %5089  ;;  %v9884_v33 = vpop.permute.xlu2 %5105 }
 0x6f2   :  { %v4408_v52 = vadd.f32 %v9701_v54, %v4339_v25  ;;  %6472 = vmatmul.msk.f32.gmra.mxu1 %vm420_vm0, %v3885_v8 }
 0x6f3   :  { %v3246_v45 = vpop.f32.mrf.mxu3 }
 0x6f4   :  { %v3358_v20 = vadd.f32 %v3246_v45, %v8880_v57  ;;  %5267 = vrot.lane.b32.xlu0 %v4408_v52, %s6698_s19  ;;  %6521 = vmatmul.msk.f32.gmra.mxu2 %vm420_vm0, %v4408_v52 }
 0x6f5   :  { %v3742_v6 = vpop.f32.mrf.mxu0 }
 0x6f6   :  { %v9887_v7 = vadd.f32 %v9727_v61, %v3358_v20  ;;  %v3743_v8 = vadd.f32 %v9352_v12, %v3742_v6 }
 0x6f7   :  { %v4164_v25 = vpop.f32.mrf.mxu1 }
 0x6f8   :  { %12279 = vst [vmem:[#allocation157_spill] sm:$0xff] %v9887_v7  ;;  %v3886_v62 = vmax.f32 %v3743_v8, 0.0  ;;  %v4340_v57 = vadd.f32 %v4164_v25, %v9172_v34  ;;  %6368 = vmatmul.msk.f32.gmra.mxu3 %vm420_vm0, %v2905_v58  ;;  %6421 = vmatmul.msk.f32.gmra.mxu0 %vm420_vm0, %v9887_v7  ;;  %v9902_v34 = vpop.permute.xlu1 %4991  ;;  %v2906_v58 = vmax.f32 %v2831_v63, 0.0  ;;  %v2834_v63 = vadd.f32 %v9434_v30, %v2833_v59 }
 0x6f9   :  { %5141 = vrot.lane.b32.xlu2 %v9887_v7, %s6697_s13  ;;  %v9904_v8 = vpop.permute.xlu0 %4995  ;;  %v9906_v25 = vpop.permute.xlu2 %5111 }
 0x6fa   :  { %v4409_v52 = vadd.f32 %v9701_v54, %v4340_v57  ;;  %6473 = vmatmul.msk.f32.gmra.mxu1 %vm420_vm0, %v3886_v62  ;;  %12280 = vst [vmem:[#allocation158_spill] sm:$0xff] %v9904_v8  ;;  %v2836_v7 = vpop.f32.mrf.mxu2 }
 0x6fb   :  { %v3249_v45 = vpop.f32.mrf.mxu3 }
 0x6fc   :  { %v3359_v20 = vadd.f32 %v3249_v45, %v8895_v10  ;;  %5269 = vrot.lane.b32.xlu1 %v4409_v52, %s6698_s19  ;;  %6522 = vmatmul.msk.f32.gmra.mxu2 %vm420_vm0, %v4409_v52 }
 0x6fd   :  { %v3745_v6 = vpop.f32.mrf.mxu0 }
 0x6fe   :  { %v9909_v19 = vadd.f32 %v9727_v61, %v3359_v20  ;;  %v3746_v62 = vadd.f32 %v9352_v12, %v3745_v6 }
 0x6ff   :  { %v4167_v57 = vpop.f32.mrf.mxu1 }
 0x700   :  { %12281 = vst [vmem:[#allocation159_spill] sm:$0xff] %v9909_v19  ;;  %v3887_v10 = vmax.f32 %v3746_v62, 0.0  ;;  %v4341_v45 = vadd.f32 %v4167_v57, %v9193_v60  ;;  %6369 = vmatmul.msk.f32.gmra.mxu3 %vm420_vm0, %v2906_v58  ;;  %6422 = vmatmul.msk.f32.gmra.mxu0 %vm420_vm0, %v9909_v19  ;;  %v9924_v60 = vpop.permute.xlu1 %5091  ;;  %v2907_v62 = vmax.f32 %v2834_v63, 0.0  ;;  %v2837_v63 = vadd.f32 %v9434_v30, %v2836_v7 }
 0x701   :  { %5143 = vrot.lane.b32.xlu0 %v9909_v19, %s6697_s13  ;;  %v9926_v57 = vpop.permute.xlu0 %5095  ;;  %v9928_v8 = vpop.permute.xlu2 %5117 }
 0x702   :  { %v4410_v52 = vadd.f32 %v9701_v54, %v4341_v45  ;;  %6474 = vmatmul.msk.f32.gmra.mxu1 %vm420_vm0, %v3887_v10  ;;  %12282 = vst [vmem:[#allocation160_spill] sm:$0xff] %v9928_v8 }
 0x703   :  { %v3252_v20 = vpop.f32.mrf.mxu3 }
 0x704   :  { %v3360_v6 = vadd.f32 %v3252_v20, %v8910_v18  ;;  %5271 = vrot.lane.b32.xlu2 %v4410_v52, %s6698_s19  ;;  %6523 = vmatmul.msk.f32.gmra.mxu2 %vm420_vm0, %v4410_v52  ;;  %v2839_v52 = vpop.f32.mrf.mxu2 }
 0x705   :  { %v3748_v58 = vpop.f32.mrf.mxu0 }
 0x706   :  { %v9931_v59 = vadd.f32 %v9727_v61, %v3360_v6  ;;  %v3749_v10 = vadd.f32 %v9352_v12, %v3748_v58 }
 0x707   :  { %v4170_v45 = vpop.f32.mrf.mxu1 }
 0x708   :  { %12283 = vst [vmem:[#allocation161_spill] sm:$0xff] %v9931_v59  ;;  %v3888_v19 = vmax.f32 %v3749_v10, 0.0  ;;  %v4342_v18 = vadd.f32 %v4170_v45, %v9214_v2  ;;  %6370 = vmatmul.msk.f32.gmra.mxu3 %vm420_vm0, %v2907_v62  ;;  %6423 = vmatmul.msk.f32.gmra.mxu0 %vm420_vm0, %v9931_v59  ;;  %v9946_v2 = vpop.permute.xlu1 %5097  ;;  %v2908_v10 = vmax.f32 %v2837_v63, 0.0  ;;  %v2840_v63 = vadd.f32 %v9434_v30, %v2839_v52 }
 0x709   :  { %5145 = vrot.lane.b32.xlu1 %v9931_v59, %s6697_s13  ;;  %v9948_v45 = vpop.permute.xlu0 %5101 }
 0x70a   :  { %v4411_v20 = vadd.f32 %v9701_v54, %v4342_v18  ;;  %6475 = vmatmul.msk.f32.gmra.mxu1 %vm420_vm0, %v3888_v19 }
 0x70b   :  { %v3255_v6 = vpop.f32.mrf.mxu3  ;;  %v9950_v8 = vpop.permute.xlu2 %5123 }
 0x70c   :  { %v3361_v58 = vadd.f32 %v3255_v6, %v8925_v40  ;;  %5273 = vrot.lane.b32.xlu0 %v4411_v20, %s6698_s19  ;;  %6524 = vmatmul.msk.f32.gmra.mxu2 %vm420_vm0, %v4411_v20  ;;  %12284 = vst [vmem:[#allocation162_spill] sm:$0xff] %v9950_v8 }
 0x70d   :  { %v3751_v62 = vpop.f32.mrf.mxu0 }
 0x70e   :  { %v9953_v7 = vadd.f32 %v9727_v61, %v3361_v58  ;;  %v3752_v19 = vadd.f32 %v9352_v12, %v3751_v62  ;;  %v2842_v12 = vpop.f32.mrf.mxu2 }
 0x70f   :  { %v4173_v18 = vpop.f32.mrf.mxu1 }
 0x710   :  { %v3889_v59 = vmax.f32 %v3752_v19, 0.0  ;;  %v4343_v40 = vadd.f32 %v4173_v18, %v9233_v22  ;;  %6371 = vmatmul.msk.f32.gmra.mxu3 %vm420_vm0, %v2908_v10  ;;  %6424 = vmatmul.msk.f32.gmra.mxu0 %vm420_vm0, %v9953_v7  ;;  %v12285_v22 = vld [vmem:[#allocation39_spill] sm:$0xff]  ;;  %v9971_v10 = vpop.permute.xlu1 %5103  ;;  %v2909_v19 = vmax.f32 %v2840_v63, 0.0  ;;  %v2843_v63 = vadd.f32 %v9434_v30, %v2842_v12 }
 0x711   :  { %5147 = vrot.lane.b32.xlu2 %v9953_v7, %s6697_s13  ;;  %v5445_v62 = vsel %vm420_vm0, %v12285_v22, %v9322_v29  ;;  %v9975_v18 = vpop.permute.xlu0 %5107 }
 0x712   :  { %v4412_v20 = vadd.f32 %v9701_v54, %v4343_v40  ;;  %6476 = vmatmul.msk.f32.gmra.mxu1 %vm420_vm0, %v3889_v59  ;;  %v5510_v59 = vsel %vm5509_vm2, %v5445_v62, %v9687_v31  ;;  %v9983_v40 = vld [vmem:[%s11691_s5 + $0x3] ss:$0 sm:$0xff] }
 0x713   :  { %v3258_v6 = vpop.f32.mrf.mxu3 }
 0x714   :  { %v3362_v58 = vadd.f32 %v3258_v6, %v8940_v42  ;;  %5275 = vrot.lane.b32.xlu1 %v4412_v20, %s6698_s19  ;;  %6525 = vmatmul.msk.f32.gmra.mxu2 %vm420_vm0, %v4412_v20 }
 0x715   :  { %v3754_v52 = vpop.f32.mrf.mxu0 }
 0x716   :  { %v9978_v42 = vadd.f32 %v9727_v61, %v3362_v58  ;;  %v3755_v29 = vadd.f32 %v9983_v40, %v3754_v52  ;;  %v5254_v20 = vpop.permute.xlu2 %5253 }
 0x717   :  { %v5575_v6 = vsel %vm5574_vm1, %v5510_v59, %v5254_v20  ;;  %v4176_v22 = vpop.f32.mrf.mxu1 }
 0x718   :  { %v3890_v8 = vmax.f32 %v3755_v29, 0.0  ;;  %5639 = vst [vmem:[%s11697_s11] sm:$0xff] %v5575_v6  ;;  %v4344_v31 = vadd.f32 %v4176_v22, %v9256_v0  ;;  %6372 = vmatmul.msk.f32.gmra.mxu3 %vm420_vm0, %v2909_v19  ;;  %6425 = vmatmul.msk.f32.gmra.mxu0 %vm420_vm0, %v9978_v42  ;;  %v10002_v0 = vpop.permute.xlu1 %5109  ;;  %v2910_v19 = vmax.f32 %v2843_v63, 0.0 }
 0x719   :  { %5149 = vrot.lane.b32.xlu0 %v9978_v42, %s6697_s13  ;;  %v10004_v29 = vpop.permute.xlu0 %5113 }
 0x71a   :  { %v4413_v58 = vadd.f32 %v9701_v54, %v4344_v31  ;;  %6477 = vmatmul.msk.f32.gmra.mxu1 %vm420_vm0, %v3890_v8  ;;  %v2845_v8 = vpop.f32.mrf.mxu2 }
 0x71b   :  { %v3261_v62 = vpop.f32.mrf.mxu3  ;;  %v2846_v63 = vadd.f32 %v9434_v30, %v2845_v8 }
 0x71c   :  { %v3363_v52 = vadd.f32 %v3261_v62, %v8959_v51  ;;  %5277 = vrot.lane.b32.xlu2 %v4413_v58, %s6698_s19  ;;  %6526 = vmatmul.msk.f32.gmra.mxu2 %vm420_vm0, %v4413_v58 }
 0x71d   :  { %v3757_v59 = vpop.f32.mrf.mxu0  ;;  %v2911_v30 = vmax.f32 %v2846_v63, 0.0 }
 0x71e   :  { %v10007_v20 = vadd.f32 %v9727_v61, %v3363_v52  ;;  %v3758_v12 = vadd.f32 %v9983_v40, %v3757_v59 }
 0x71f   :  { %v4179_v6 = vpop.f32.mrf.mxu1 }
 0x720   :  { %v3891_v22 = vmax.f32 %v3758_v12, 0.0  ;;  %v4345_v51 = vadd.f32 %v4179_v6, %v9279_v56  ;;  %6373 = vmatmul.msk.f32.gmra.mxu3 %vm420_vm0, %v2910_v19  ;;  %6426 = vmatmul.msk.f32.gmra.mxu0 %vm420_vm0, %v10007_v20  ;;  %v10022_v56 = vpop.permute.xlu1 %5115 }
 0x721   :  { %5151 = vrot.lane.b32.xlu1 %v10007_v20, %s6697_s13  ;;  %v10024_v59 = vpop.permute.xlu0 %5119 }
 0x722   :  { %v4414_v31 = vadd.f32 %v9701_v54, %v4345_v51  ;;  %6478 = vmatmul.msk.f32.gmra.mxu1 %vm420_vm0, %v3891_v22 }
 0x723   :  { %v3264_v58 = vpop.f32.mrf.mxu3  ;;  %v10026_v19 = vpop.permute.xlu2 %5129 }
 0x724   :  { %v3364_v62 = vadd.f32 %v3264_v58, %v8974_v36  ;;  %5279 = vrot.lane.b32.xlu0 %v4414_v31, %s6698_s19  ;;  %6527 = vmatmul.msk.f32.gmra.mxu2 %vm420_vm0, %v4414_v31 }
 0x725   :  { %v3760_v52 = vpop.f32.mrf.mxu0 }
 0x726   :  { %v10029_v12 = vadd.f32 %v9727_v61, %v3364_v62  ;;  %v3761_v6 = vadd.f32 %v9983_v40, %v3760_v52 }
 0x727   :  { %v4182_v8 = vpop.f32.mrf.mxu1 }
 0x728   :  { %v3892_v22 = vmax.f32 %v3761_v6, 0.0  ;;  %v4346_v36 = vadd.f32 %v4182_v8, %v9305_v37  ;;  %6427 = vmatmul.msk.f32.gmra.mxu0 %vm420_vm0, %v10029_v12  ;;  %5153 = vrot.lane.b32.xlu2 %v10029_v12, %s6697_s13  ;;  %v12286_v37 = vld [vmem:[#allocation42_spill] sm:$0xff]  ;;  %v10046_v62 = vpop.permute.xlu1 %5121 }
 0x729   :  { %6374 = vmatmul.msk.f32.gmra.mxu3 %vm420_vm0, %v2911_v30  ;;  %v5448_v63 = vsel %vm420_vm0, %v12286_v37, %v9373_v28 }
 0x72a   :  { %v4415_v51 = vadd.f32 %v9701_v54, %v4346_v36  ;;  %6479 = vmatmul.msk.f32.gmra.mxu1 %vm420_vm0, %v3892_v22  ;;  %v5513_v6 = vsel %vm5509_vm2, %v5448_v63, %v9743_v17 }
 0x72b   :  { %v3267_v31 = vpop.f32.mrf.mxu3  ;;  %v10050_v30 = vpop.permute.xlu0 %5125 }
 0x72c   :  { %v3365_v58 = vadd.f32 %v3267_v31, %v8989_v49  ;;  %5281 = vrot.lane.b32.xlu1 %v4415_v51, %s6698_s19  ;;  %6528 = vmatmul.msk.f32.gmra.mxu2 %vm420_vm0, %v4415_v51 }
 0x72d   :  { %v3763_v52 = vpop.f32.mrf.mxu0 }
 0x72e   :  { %v10053_v8 = vadd.f32 %v9727_v61, %v3365_v58  ;;  %v3764_v49 = vadd.f32 %v9983_v40, %v3763_v52  ;;  %v5260_v22 = vpop.permute.xlu2 %5259 }
 0x72f   :  { %v5578_v36 = vsel %vm5574_vm1, %v5513_v6, %v5260_v22  ;;  %v4185_v51 = vpop.f32.mrf.mxu1 }
 0x730   :  { %v3893_v31 = vmax.f32 %v3764_v49, 0.0  ;;  %5642 = vst [vmem:[%s11697_s11 + $0x18] sm:$0xff] %v5578_v36  ;;  %v4347_v28 = vadd.f32 %v4185_v51, %v9330_v39  ;;  %6428 = vmatmul.msk.f32.gmra.mxu0 %vm420_vm0, %v10053_v8  ;;  %5155 = vrot.lane.b32.xlu0 %v10053_v8, %s6697_s13  ;;  %v12287_v39 = vld [vmem:[#allocation40_spill] sm:$0xff] }
 0x731   :  { %v5446_v63 = vsel %vm420_vm0, %v12287_v39, %v9355_v55  ;;  %v12288_v39 = vld [vmem:[#allocation41_spill] sm:$0xff] }
 0x732   :  { %v4416_v17 = vadd.f32 %v9701_v54, %v4347_v28  ;;  %6480 = vmatmul.msk.f32.gmra.mxu1 %vm420_vm0, %v3893_v31  ;;  %v5511_v6 = vsel %vm5509_vm2, %v5446_v63, %v9610_v43  ;;  %v5447_v63 = vsel %vm420_vm0, %v12288_v39, %v9341_v32 }
 0x733   :  { %v3270_v58 = vpop.f32.mrf.mxu3  ;;  %v10075_v49 = vpop.permute.xlu1 %5127 }
 0x734   :  { %v3366_v37 = vadd.f32 %v3270_v58, %v9012_v5  ;;  %5283 = vrot.lane.b32.xlu2 %v4416_v17, %s6698_s19  ;;  %6529 = vmatmul.msk.f32.gmra.mxu2 %vm420_vm0, %v4416_v17  ;;  %v10092_v58 = vstv %s5703_s0 }
 0x735   :  { %v3766_v52 = vpop.f32.mrf.mxu0 }
 0x736   :  { %v10078_v22 = vadd.f32 %v9727_v61, %v3366_v37  ;;  %v3767_v36 = vadd.f32 %v9983_v40, %v3766_v52  ;;  %v5256_v5 = vpop.permute.xlu0 %5255 }
 0x737   :  { %v5576_v51 = vsel %vm5574_vm1, %v5511_v6, %v5256_v5  ;;  %v4188_v31 = vpop.f32.mrf.mxu1  ;;  %v5512_v6 = vsel %vm5509_vm2, %v5447_v63, %v9690_v16 }
 0x738   :  { %v3894_v28 = vmax.f32 %v3767_v36, 0.0  ;;  %5640 = vst [vmem:[%s11697_s11 + $0x8] sm:$0xff] %v5576_v51  ;;  %v4348_v55 = vadd.f32 %v4188_v31, %v9360_v4  ;;  %6429 = vmatmul.msk.f32.gmra.mxu0 %vm420_vm0, %v10078_v22  ;;  %5157 = vrot.lane.b32.xlu1 %v10078_v22, %s6697_s13  ;;  %v10100_v4 = vld [vmem:[%s11695_s9] ss:$0 sm:$0xff] }
 0x739   :  { %v6611_v31 = vld [vmem:[%s11687_s1] sm:$0xff] }
 0x73a   :  { %v4417_v43 = vadd.f32 %v9701_v54, %v4348_v55  ;;  %6481 = vmatmul.msk.f32.gmra.mxu1 %vm420_vm0, %v3894_v28  ;;  %v5705_v28 = vmul.f32 %v6611_v31, %v10092_v58 }
 0x73b   :  { %v3273_v17 = vpop.f32.mrf.mxu3  ;;  %v10107_v36 = vpop.permute.xlu2 %5135 }
 0x73c   :  { %v3367_v37 = vadd.f32 %v3273_v17, %v9033_v23  ;;  %5285 = vrot.lane.b32.xlu0 %v4417_v43, %s6698_s19  ;;  %6530 = vmatmul.msk.f32.gmra.mxu2 %vm420_vm0, %v4417_v43  ;;  %12289 = vst [vmem:[#allocation39_spill] sm:$0xff] %v10107_v36  ;;  %v10118_v17 = vstv %s6578_s27 }
 0x73d   :  { %v3769_v52 = vpop.f32.mrf.mxu0 }
 0x73e   :  { %v10110_v23 = vadd.f32 %v9727_v61, %v3367_v37  ;;  %v3770_v5 = vadd.f32 %v9983_v40, %v3769_v52  ;;  %v5258_v51 = vpop.permute.xlu1 %5257 }
 0x73f   :  { %v5577_v32 = vsel %vm5574_vm1, %v5512_v6, %v5258_v51  ;;  %v4191_v55 = vpop.f32.mrf.mxu1  ;;  %v4677_v43 = vpop.f32.mrf.mxu2  ;;  %v12290_v51 = vld [vmem:[#allocation60_spill] sm:$0xff] }
 0x740   :  { %v3895_v16 = vmax.f32 %v3770_v5, 0.0  ;;  %5641 = vst [vmem:[%s11697_s11 + $0x10] sm:$0xff] %v5577_v32  ;;  %v4349_v37 = vadd.f32 %v4191_v55, %v9381_v50  ;;  %v4678_v39 = vadd.f32 %v10100_v4, %v4677_v43  ;;  %6430 = vmatmul.msk.f32.gmra.mxu0 %vm420_vm0, %v10110_v23  ;;  %5159 = vrot.lane.b32.xlu2 %v10110_v23, %s6697_s13  ;;  %v12291_v50 = vld [vmem:[#allocation74_spill] sm:$0xff]  ;;  %v12292_v32 = vld [vmem:[#allocation45_spill] sm:$0xff] }
 0x741   :  { %v5451_v55 = vsel %vm420_vm0, %v12292_v32, %v12291_v50 }
 0x742   :  { %v4418_v63 = vadd.f32 %v9701_v54, %v4349_v37  ;;  %v5771_v52 = vmul.f32 %v10118_v17, %v4678_v39  ;;  %6482 = vmatmul.msk.f32.gmra.mxu1 %vm420_vm0, %v3895_v16  ;;  %v5516_v37 = vsel %vm5509_vm2, %v5451_v55, %v9789_v15 }
 0x743   :  { %v3276_v6 = vpop.f32.mrf.mxu3  ;;  %v10143_v16 = vpop.permute.xlu0 %5131 }
 0x744   :  { %v5835_v5 = vadd.f32 %v5771_v52, %v5705_v28  ;;  %v3368_v31 = vadd.f32 %v3276_v6, %v12290_v51  ;;  %5287 = vrot.lane.b32.xlu1 %v4418_v63, %s6698_s19  ;;  %6531 = vmatmul.msk.f32.gmra.mxu2 %vm420_vm0, %v4418_v63  ;;  %v6612_v52 = vld [vmem:[%s11687_s1 + $0x8] sm:$0xff] }
 0x745   :  { %v3772_v43 = vpop.f32.mrf.mxu0  ;;  %v5706_v6 = vmul.f32 %v6612_v52, %v10092_v58 }
 0x746   :  { %5899 = vst [vmem:[%s11696_s10] sm:$0xff] %v5835_v5  ;;  %v10146_v28 = vadd.f32 %v9727_v61, %v3368_v31  ;;  %v3773_v39 = vadd.f32 %v9983_v40, %v3772_v43  ;;  %v5266_v63 = vpop.permute.xlu2 %5265 }
 0x747   :  { %v5581_v15 = vsel %vm5574_vm1, %v5516_v37, %v5266_v63  ;;  %v4194_v51 = vpop.f32.mrf.mxu1  ;;  %v4680_v50 = vpop.f32.mrf.mxu2  ;;  %v12293_v63 = vld [vmem:[#allocation61_spill] sm:$0xff] }
 0x748   :  { %v3896_v32 = vmax.f32 %v3773_v39, 0.0  ;;  %5645 = vst [vmem:[%s11697_s11 + $0x30] sm:$0xff] %v5581_v15  ;;  %v4350_v5 = vadd.f32 %v4194_v51, %v9402_v35  ;;  %v4681_v31 = vadd.f32 %v10100_v4, %v4680_v50  ;;  %6431 = vmatmul.msk.f32.gmra.mxu0 %vm420_vm0, %v10146_v28  ;;  %5161 = vrot.lane.b32.xlu0 %v10146_v28, %s6697_s13  ;;  %v12294_v35 = vld [vmem:[#allocation94_spill] sm:$0xff]  ;;  %v12295_v15 = vld [vmem:[#allocation43_spill] sm:$0xff] }
 0x749   :  { %v5449_v51 = vsel %vm420_vm0, %v12295_v15, %v12294_v35 }
 0x74a   :  { %v4419_v55 = vadd.f32 %v9701_v54, %v4350_v5  ;;  %v5772_v43 = vmul.f32 %v10118_v17, %v4681_v31  ;;  %6483 = vmatmul.msk.f32.gmra.mxu1 %vm420_vm0, %v3896_v32  ;;  %v5514_v5 = vsel %vm5509_vm2, %v5449_v51, %v9652_v27 }
 0x74b   :  { %v3279_v37 = vpop.f32.mrf.mxu3  ;;  %v10177_v32 = vpop.permute.xlu1 %5133 }
 0x74c   :  { %v5836_v39 = vadd.f32 %v5772_v43, %v5706_v6  ;;  %v3369_v52 = vadd.f32 %v3279_v37, %v12293_v63  ;;  %5289 = vrot.lane.b32.xlu2 %v4419_v55, %s6698_s19  ;;  %6532 = vmatmul.msk.f32.gmra.mxu2 %vm420_vm0, %v4419_v55  ;;  %v6613_v43 = vld [vmem:[%s11687_s1 + $0x10] sm:$0xff] }
 0x74d   :  { %v3775_v50 = vpop.f32.mrf.mxu0  ;;  %v5707_v37 = vmul.f32 %v6613_v43, %v10092_v58  ;;  %v12297_v43 = vld [vmem:[#allocation62_spill] sm:$0xff] }
 0x74e   :  { %5900 = vst [vmem:[%s11696_s10 + $0x8] sm:$0xff] %v5836_v39  ;;  %v10180_v6 = vadd.f32 %v9727_v61, %v3369_v52  ;;  %v3776_v31 = vadd.f32 %v9983_v40, %v3775_v50  ;;  %v5262_v55 = vpop.permute.xlu0 %5261  ;;  %v12296_v39 = vld [vmem:[#allocation107_spill] sm:$0xff] }
 0x74f   :  { %v5579_v27 = vsel %vm5574_vm1, %v5514_v5, %v5262_v55  ;;  %v4197_v63 = vpop.f32.mrf.mxu1  ;;  %v4683_v35 = vpop.f32.mrf.mxu2 }
 0x750   :  { %v3897_v15 = vmax.f32 %v3776_v31, 0.0  ;;  %5643 = vst [vmem:[%s11697_s11 + $0x20] sm:$0xff] %v5579_v27  ;;  %v4351_v52 = vadd.f32 %v4197_v63, %v12296_v39  ;;  %v4684_v51 = vadd.f32 %v10100_v4, %v4683_v35  ;;  %6432 = vmatmul.msk.f32.gmra.mxu0 %vm420_vm0, %v10180_v6  ;;  %5163 = vrot.lane.b32.xlu1 %v10180_v6, %s6697_s13  ;;  %v12298_v63 = vld [vmem:[#allocation96_spill] sm:$0xff] }
 0x751   :  { %v12299_v35 = vld [vmem:[#allocation44_spill] sm:$0xff] }
 0x752   :  { %v4420_v50 = vadd.f32 %v9701_v54, %v4351_v52  ;;  %v5773_v5 = vmul.f32 %v10118_v17, %v4684_v51  ;;  %6484 = vmatmul.msk.f32.gmra.mxu1 %vm420_vm0, %v3897_v15  ;;  %v5450_v39 = vsel %vm420_vm0, %v12299_v35, %v12298_v63 }
 0x753   :  { %v3282_v31 = vpop.f32.mrf.mxu3  ;;  %v5515_v52 = vsel %vm5509_vm2, %v5450_v39, %v9748_v24  ;;  %v10211_v15 = vpop.permute.xlu2 %5141 }
 0x754   :  { %v5837_v55 = vadd.f32 %v5773_v5, %v5707_v37  ;;  %v3370_v27 = vadd.f32 %v3282_v31, %v12297_v43  ;;  %5291 = vrot.lane.b32.xlu0 %v4420_v50, %s6698_s19  ;;  %6533 = vmatmul.msk.f32.gmra.mxu2 %vm420_vm0, %v4420_v50  ;;  %12300 = vst [vmem:[#allocation42_spill] sm:$0xff] %v10211_v15  ;;  %v6614_v5 = vld [vmem:[%s11687_s1 + $0x18] sm:$0xff] }
 0x755   :  { %v3778_v36 = vpop.f32.mrf.mxu0  ;;  %v5708_v31 = vmul.f32 %v6614_v5, %v10092_v58  ;;  %v12302_v5 = vld [vmem:[#allocation63_spill] sm:$0xff] }
 0x756   :  { %5901 = vst [vmem:[%s11696_s10 + $0x10] sm:$0xff] %v5837_v55  ;;  %v10214_v37 = vadd.f32 %v9727_v61, %v3370_v27  ;;  %v3779_v51 = vadd.f32 %v9983_v40, %v3778_v36  ;;  %v5264_v50 = vpop.permute.xlu1 %5263  ;;  %v12301_v55 = vld [vmem:[#allocation110_spill] sm:$0xff] }
 0x757   :  { %v5580_v24 = vsel %vm5574_vm1, %v5515_v52, %v5264_v50  ;;  %v4200_v43 = vpop.f32.mrf.mxu1  ;;  %v4686_v63 = vpop.f32.mrf.mxu2 }
 0x758   :  { %v3898_v35 = vmax.f32 %v3779_v51, 0.0  ;;  %5644 = vst [vmem:[%s11697_s11 + $0x28] sm:$0xff] %v5580_v24  ;;  %v4352_v27 = vadd.f32 %v4200_v43, %v12301_v55  ;;  %v4687_v36 = vadd.f32 %v10100_v4, %v4686_v63  ;;  %6433 = vmatmul.msk.f32.gmra.mxu0 %vm420_vm0, %v10214_v37  ;;  %5165 = vrot.lane.b32.xlu2 %v10214_v37, %s6697_s13  ;;  %v12303_v43 = vld [vmem:[#allocation76_spill] sm:$0xff] }
 0x759   :  { %v12304_v63 = vld [vmem:[#allocation48_spill] sm:$0xff] }
 0x75a   :  { %v4421_v39 = vadd.f32 %v9701_v54, %v4352_v27  ;;  %v5774_v52 = vmul.f32 %v10118_v17, %v4687_v36  ;;  %6485 = vmatmul.msk.f32.gmra.mxu1 %vm420_vm0, %v3898_v35  ;;  %v5454_v55 = vsel %vm420_vm0, %v12304_v63, %v12303_v43 }
 0x75b   :  { %v3285_v51 = vpop.f32.mrf.mxu3  ;;  %v5519_v27 = vsel %vm5509_vm2, %v5454_v55, %v9833_v13  ;;  %v10245_v35 = vpop.permute.xlu0 %5137 }
 0x75c   :  { %v5838_v50 = vadd.f32 %v5774_v52, %v5708_v31  ;;  %v3371_v24 = vadd.f32 %v3285_v51, %v12302_v5  ;;  %5293 = vrot.lane.b32.xlu1 %v4421_v39, %s6698_s19  ;;  %6534 = vmatmul.msk.f32.gmra.mxu2 %vm420_vm0, %v4421_v39  ;;  %12305 = vst [vmem:[#allocation40_spill] sm:$0xff] %v10245_v35  ;;  %v6615_v52 = vld [vmem:[%s11687_s1 + $0x20] sm:$0xff] }
 0x75d   :  { %v3781_v15 = vpop.f32.mrf.mxu0  ;;  %v5709_v51 = vmul.f32 %v6615_v52, %v10092_v58  ;;  %v12308_v52 = vld [vmem:[#allocation64_spill] sm:$0xff] }
 0x75e   :  { %5902 = vst [vmem:[%s11696_s10 + $0x18] sm:$0xff] %v5838_v50  ;;  %v10248_v31 = vadd.f32 %v9727_v61, %v3371_v24  ;;  %v3782_v36 = vadd.f32 %v9983_v40, %v3781_v15  ;;  %v5272_v39 = vpop.permute.xlu2 %5271  ;;  %v12307_v50 = vld [vmem:[#allocation113_spill] sm:$0xff] }
 0x75f   :  { %v5584_v13 = vsel %vm5574_vm1, %v5519_v27, %v5272_v39  ;;  %v4203_v5 = vpop.f32.mrf.mxu1  ;;  %v4689_v43 = vpop.f32.mrf.mxu2 }
 0x760   :  { %12306 = vst [vmem:[#allocation41_spill] sm:$0xff] %v10248_v31  ;;  %v3899_v63 = vmax.f32 %v3782_v36, 0.0  ;;  %v4353_v24 = vadd.f32 %v4203_v5, %v12307_v50  ;;  %v4690_v15 = vadd.f32 %v10100_v4, %v4689_v43  ;;  %6434 = vmatmul.msk.f32.gmra.mxu0 %vm420_vm0, %v10248_v31  ;;  %5167 = vrot.lane.b32.xlu0 %v10248_v31, %s6697_s13  ;;  %v12309_v5 = vld [vmem:[#allocation103_spill] sm:$0xff]  ;;  %v12310_v43 = vld [vmem:[#allocation46_spill] sm:$0xff] }
 0x761   :  { %5648 = vst [vmem:[%s11697_s11 + $0x48] sm:$0xff] %v5584_v13  ;;  %v5452_v50 = vsel %vm420_vm0, %v12310_v43, %v12309_v5 }
 0x762   :  { %v4422_v55 = vadd.f32 %v9701_v54, %v4353_v24  ;;  %v5775_v27 = vmul.f32 %v10118_v17, %v4690_v15  ;;  %6486 = vmatmul.msk.f32.gmra.mxu1 %vm420_vm0, %v3899_v63  ;;  %v5517_v24 = vsel %vm5509_vm2, %v5452_v50, %v9692_v38 }
 0x763   :  { %v3288_v36 = vpop.f32.mrf.mxu3  ;;  %v10279_v63 = vpop.permute.xlu1 %5139 }
 0x764   :  { %v5839_v39 = vadd.f32 %v5775_v27, %v5709_v51  ;;  %v3372_v13 = vadd.f32 %v3288_v36, %v12308_v52  ;;  %5295 = vrot.lane.b32.xlu2 %v4422_v55, %s6698_s19  ;;  %6535 = vmatmul.msk.f32.gmra.mxu2 %vm420_vm0, %v4422_v55  ;;  %v6616_v27 = vld [vmem:[%s11687_s1 + $0x28] sm:$0xff] }
 0x765   :  { %v3784_v35 = vpop.f32.mrf.mxu0  ;;  %v5710_v36 = vmul.f32 %v6616_v27, %v10092_v58  ;;  %v12312_v27 = vld [vmem:[#allocation65_spill] sm:$0xff] }
 0x766   :  { %5903 = vst [vmem:[%s11696_s10 + $0x20] sm:$0xff] %v5839_v39  ;;  %v10282_v51 = vadd.f32 %v9727_v61, %v3372_v13  ;;  %v3785_v15 = vadd.f32 %v9983_v40, %v3784_v35  ;;  %v5268_v55 = vpop.permute.xlu0 %5267  ;;  %v12311_v39 = vld [vmem:[#allocation116_spill] sm:$0xff] }
 0x767   :  { %v5582_v38 = vsel %vm5574_vm1, %v5517_v24, %v5268_v55  ;;  %v4206_v52 = vpop.f32.mrf.mxu1  ;;  %v4692_v5 = vpop.f32.mrf.mxu2 }
 0x768   :  { %v3900_v43 = vmax.f32 %v3785_v15, 0.0  ;;  %5646 = vst [vmem:[%s11697_s11 + $0x38] sm:$0xff] %v5582_v38  ;;  %v4354_v13 = vadd.f32 %v4206_v52, %v12311_v39  ;;  %v4693_v35 = vadd.f32 %v10100_v4, %v4692_v5  ;;  %6435 = vmatmul.msk.f32.gmra.mxu0 %vm420_vm0, %v10282_v51  ;;  %5169 = vrot.lane.b32.xlu1 %v10282_v51, %s6697_s13  ;;  %v12313_v52 = vld [vmem:[#allocation98_spill] sm:$0xff]  ;;  %v12314_v5 = vld [vmem:[#allocation47_spill] sm:$0xff] }
 0x769   :  { %v5453_v39 = vsel %vm420_vm0, %v12314_v5, %v12313_v52 }
 0x76a   :  { %v4423_v50 = vadd.f32 %v9701_v54, %v4354_v13  ;;  %v5776_v24 = vmul.f32 %v10118_v17, %v4693_v35  ;;  %6487 = vmatmul.msk.f32.gmra.mxu1 %vm420_vm0, %v3900_v43  ;;  %v5518_v54 = vsel %vm5509_vm2, %v5453_v39, %v9794_v9 }
 0x76b   :  { %v3291_v15 = vpop.f32.mrf.mxu3  ;;  %v10313_v43 = vpop.permute.xlu2 %5147 }
 0x76c   :  { %v5840_v55 = vadd.f32 %v5776_v24, %v5710_v36  ;;  %v3373_v38 = vadd.f32 %v3291_v15, %v12312_v27  ;;  %5297 = vrot.lane.b32.xlu0 %v4423_v50, %s6698_s19  ;;  %6536 = vmatmul.msk.f32.gmra.mxu2 %vm420_vm0, %v4423_v50  ;;  %12315 = vst [vmem:[#allocation60_spill] sm:$0xff] %v10313_v43  ;;  %v6617_v50 = vld [vmem:[%s11687_s1 + $0x30] sm:$0xff] }
 0x76d   :  { %v3787_v31 = vpop.f32.mrf.mxu0  ;;  %v5711_v24 = vmul.f32 %v6617_v50, %v10092_v58  ;;  %v12318_v50 = vld [vmem:[#allocation51_spill] sm:$0xff] }
 0x76e   :  { %5904 = vst [vmem:[%s11696_s10 + $0x28] sm:$0xff] %v5840_v55  ;;  %v10316_v36 = vadd.f32 %v9727_v61, %v3373_v38  ;;  %v3788_v13 = vadd.f32 %v9983_v40, %v3787_v31  ;;  %v5270_v35 = vpop.permute.xlu1 %5269  ;;  %v10336_v55 = vld [vmem:[%s11693_s7 + $0x3] ss:$0 sm:$0xff] }
 0x76f   :  { %v5583_v9 = vsel %vm5574_vm1, %v5518_v54, %v5270_v35  ;;  %v4209_v15 = vpop.f32.mrf.mxu1  ;;  %v4695_v27 = vpop.f32.mrf.mxu2  ;;  %v12316_v54 = vld [vmem:[#allocation66_spill] sm:$0xff] }
 0x770   :  { %v3901_v52 = vmax.f32 %v3788_v13, 0.0  ;;  %5647 = vst [vmem:[%s11697_s11 + $0x40] sm:$0xff] %v5583_v9  ;;  %v4355_v61 = vadd.f32 %v4209_v15, %v9510_v53  ;;  %v4696_v31 = vadd.f32 %v10100_v4, %v4695_v27  ;;  %6436 = vmatmul.msk.f32.gmra.mxu0 %vm420_vm0, %v10316_v36  ;;  %5171 = vrot.lane.b32.xlu2 %v10316_v36, %s6697_s13  ;;  %v12317_v35 = vld [vmem:[#allocation78_spill] sm:$0xff] }
 0x771   :  { %v5457_v9 = vsel %vm420_vm0, %v12318_v50, %v12317_v35 }
 0x772   :  { %v4424_v38 = vadd.f32 %v10336_v55, %v4355_v61  ;;  %v5777_v5 = vmul.f32 %v10118_v17, %v4696_v31  ;;  %6488 = vmatmul.msk.f32.gmra.mxu1 %vm420_vm0, %v3901_v52  ;;  %v5522_v27 = vsel %vm5509_vm2, %v5457_v9, %v9877_v11  ;;  %v6620_v11 = vld [vmem:[%s11687_s1 + $0x38] sm:$0xff] }
 0x773   :  { %v3294_v53 = vpop.f32.mrf.mxu3  ;;  %v10352_v52 = vpop.permute.xlu0 %5143 }
 0x774   :  { %v5841_v39 = vadd.f32 %v5777_v5, %v5711_v24  ;;  %v3374_v13 = vadd.f32 %v3294_v53, %v12316_v54  ;;  %5299 = vrot.lane.b32.xlu1 %v4424_v38, %s6698_s19  ;;  %6537 = vmatmul.msk.f32.gmra.mxu2 %vm420_vm0, %v4424_v38  ;;  %12319 = vst [vmem:[#allocation74_spill] sm:$0xff] %v10352_v52  ;;  %v10357_v24 = vld [vmem:[%s11693_s7 + $0x2] ss:$0 sm:$0xff] }
 0x775   :  { %v3790_v15 = vpop.f32.mrf.mxu0  ;;  %v5712_v5 = vmul.f32 %v6620_v11, %v10092_v58  ;;  %v12322_v11 = vld [vmem:[#allocation67_spill] sm:$0xff] }
 0x776   :  { %5905 = vst [vmem:[%s11696_s10 + $0x30] sm:$0xff] %v5841_v39  ;;  %v10360_v61 = vadd.f32 %v10357_v24, %v3374_v13  ;;  %v3791_v31 = vadd.f32 %v9983_v40, %v3790_v15  ;;  %v5278_v38 = vpop.permute.xlu2 %5277  ;;  %v12321_v13 = vld [vmem:[#allocation121_spill] sm:$0xff] }
 0x777   :  { %v5587_v53 = vsel %vm5574_vm1, %v5522_v27, %v5278_v38  ;;  %v4212_v39 = vpop.f32.mrf.mxu1  ;;  %v4698_v54 = vpop.f32.mrf.mxu2 }
 0x778   :  { %12320 = vst [vmem:[#allocation45_spill] sm:$0xff] %v10360_v61  ;;  %v3902_v35 = vmax.f32 %v3791_v31, 0.0  ;;  %v4356_v50 = vadd.f32 %v4212_v39, %v12321_v13  ;;  %v4699_v9 = vadd.f32 %v10100_v4, %v4698_v54  ;;  %6437 = vmatmul.msk.f32.gmra.mxu0 %vm420_vm0, %v10360_v61  ;;  %5173 = vrot.lane.b32.xlu0 %v10360_v61, %s6697_s13  ;;  %v12323_v39 = vld [vmem:[#allocation105_spill] sm:$0xff] }
 0x779   :  { %5651 = vst [vmem:[%s11697_s11 + $0x60] sm:$0xff] %v5587_v53  ;;  %v12324_v54 = vld [vmem:[#allocation49_spill] sm:$0xff] }
 0x77a   :  { %v4425_v15 = vadd.f32 %v10336_v55, %v4356_v50  ;;  %v5778_v27 = vmul.f32 %v10118_v17, %v4699_v9  ;;  %6489 = vmatmul.msk.f32.gmra.mxu1 %vm420_vm0, %v3902_v35  ;;  %v5455_v13 = vsel %vm420_vm0, %v12324_v54, %v12323_v39 }
 0x77b   :  { %v3297_v31 = vpop.f32.mrf.mxu3  ;;  %v5520_v50 = vsel %vm5509_vm2, %v5455_v13, %v9750_v26  ;;  %v10391_v35 = vpop.permute.xlu1 %5145  ;;  %v12327_v13 = vld [vmem:[#allocation139_spill] sm:$0xff] }
 0x77c   :  { %v5842_v38 = vadd.f32 %v5778_v27, %v5712_v5  ;;  %v3375_v53 = vadd.f32 %v3297_v31, %v12322_v11  ;;  %5301 = vrot.lane.b32.xlu2 %v4425_v15, %s6698_s19  ;;  %6538 = vmatmul.msk.f32.gmra.mxu2 %vm420_vm0, %v4425_v15  ;;  %v6621_v27 = vld [vmem:[%s11687_s1 + $0x40] sm:$0xff] }
 0x77d   :  { %v3793_v43 = vpop.f32.mrf.mxu0  ;;  %v5713_v31 = vmul.f32 %v6621_v27, %v10092_v58  ;;  %v12328_v27 = vld [vmem:[#allocation31_spill] sm:$0xff] }
 0x77e   :  { %5906 = vst [vmem:[%s11696_s10 + $0x38] sm:$0xff] %v5842_v38  ;;  %v10394_v5 = vadd.f32 %v10357_v24, %v3375_v53  ;;  %v3794_v9 = vadd.f32 %v9983_v40, %v3793_v43  ;;  %v5274_v15 = vpop.permute.xlu0 %5273  ;;  %v12326_v38 = vld [vmem:[#allocation124_spill] sm:$0xff] }
 0x77f   :  { %v5585_v26 = vsel %vm5574_vm1, %v5520_v50, %v5274_v15  ;;  %v4215_v11 = vpop.f32.mrf.mxu1  ;;  %v4701_v39 = vpop.f32.mrf.mxu2  ;;  %v5491_v50 = vsel %vm420_vm0, %v12328_v27, %v12327_v13  ;;  %v12332_v13 = vld [vmem:[#allocation50_spill] sm:$0xff] }
 0x780   :  { %12325 = vst [vmem:[#allocation61_spill] sm:$0xff] %v10394_v5  ;;  %v3903_v54 = vmax.f32 %v3794_v9, 0.0  ;;  %v4357_v53 = vadd.f32 %v4215_v11, %v12326_v38  ;;  %v4702_v43 = vadd.f32 %v10100_v4, %v4701_v39  ;;  %6438 = vmatmul.msk.f32.gmra.mxu0 %vm420_vm0, %v10394_v5  ;;  %5175 = vrot.lane.b32.xlu1 %v10394_v5, %s6697_s13  ;;  %v12330_v38 = vld [vmem:[#allocation68_spill] sm:$0xff] }
 0x781   :  { %5649 = vst [vmem:[%s11697_s11 + $0x50] sm:$0xff] %v5585_v26  ;;  %v12331_v5 = vld [vmem:[#allocation100_spill] sm:$0xff] }
 0x782   :  { %v4426_v9 = vadd.f32 %v10336_v55, %v4357_v53  ;;  %v5779_v15 = vmul.f32 %v10118_v17, %v4702_v43  ;;  %v5154_v61 = vpop.permute.xlu2 %5153  ;;  %6490 = vmatmul.msk.f32.gmra.mxu1 %vm420_vm0, %v3903_v54  ;;  %v5456_v53 = vsel %vm420_vm0, %v12332_v13, %v12331_v5 }
 0x783   :  { %v10418_v26 = vsel %vm5509_vm2, %v5491_v50, %v5154_v61  ;;  %v3300_v11 = vpop.f32.mrf.mxu3  ;;  %v5521_v43 = vsel %vm5509_vm2, %v5456_v53, %v9838_v3  ;;  %v6622_v50 = vld [vmem:[%s11687_s1 + $0x48] sm:$0xff] }
 0x784   :  { %12329 = vst [vmem:[#allocation94_spill] sm:$0xff] %v10418_v26  ;;  %v5843_v39 = vadd.f32 %v5779_v15, %v5713_v31  ;;  %v3376_v52 = vadd.f32 %v3300_v11, %v12330_v38  ;;  %5303 = vrot.lane.b32.xlu0 %v4426_v9, %s6698_s19  ;;  %6539 = vmatmul.msk.f32.gmra.mxu2 %vm420_vm0, %v4426_v9 }
 0x785   :  { %v3796_v27 = vpop.f32.mrf.mxu0  ;;  %v5714_v5 = vmul.f32 %v6622_v50, %v10092_v58  ;;  %v12335_v50 = vld [vmem:[#allocation80_spill] sm:$0xff] }
 0x786   :  { %5907 = vst [vmem:[%s11696_s10 + $0x40] sm:$0xff] %v5843_v39  ;;  %v10432_v61 = vadd.f32 %v10357_v24, %v3376_v52  ;;  %v3797_v31 = vadd.f32 %v9983_v40, %v3796_v27  ;;  %v5276_v54 = vpop.permute.xlu1 %5275  ;;  %v12333_v52 = vld [vmem:[#allocation127_spill] sm:$0xff] }
 0x787   :  { %v5586_v9 = vsel %vm5574_vm1, %v5521_v43, %v5276_v54  ;;  %v4218_v15 = vpop.f32.mrf.mxu1  ;;  %v4704_v3 = vpop.f32.mrf.mxu2 }
 0x788   :  { %v3904_v11 = vmax.f32 %v3797_v31, 0.0  ;;  %5650 = vst [vmem:[%s11697_s11 + $0x58] sm:$0xff] %v5586_v9  ;;  %v4358_v39 = vadd.f32 %v4218_v15, %v12333_v52  ;;  %v4705_v38 = vadd.f32 %v10100_v4, %v4704_v3  ;;  %6439 = vmatmul.msk.f32.gmra.mxu0 %vm420_vm0, %v10432_v61  ;;  %5177 = vrot.lane.b32.xlu2 %v10432_v61, %s6697_s13  ;;  %v12334_v31 = vld [vmem:[#allocation93_spill] sm:$0xff]  ;;  %v12336_v9 = vld [vmem:[#allocation54_spill] sm:$0xff] }
 0x789   :  { %v5460_v15 = vsel %vm420_vm0, %v12336_v9, %v12335_v50 }
 0x78a   :  { %v4427_v13 = vadd.f32 %v10336_v55, %v4358_v39  ;;  %v5780_v53 = vmul.f32 %v10118_v17, %v4705_v38  ;;  %6491 = vmatmul.msk.f32.gmra.mxu1 %vm420_vm0, %v3904_v11  ;;  %v5525_v52 = vsel %vm5509_vm2, %v5460_v15, %v9924_v60 }
 0x78b   :  { %v3303_v27 = vpop.f32.mrf.mxu3  ;;  %v10463_v11 = vpop.permute.xlu0 %5149 }
 0x78c   :  { %v5844_v43 = vadd.f32 %v5780_v53, %v5714_v5  ;;  %v3377_v54 = vadd.f32 %v3303_v27, %v12334_v31  ;;  %5305 = vrot.lane.b32.xlu1 %v4427_v13, %s6698_s19  ;;  %6540 = vmatmul.msk.f32.gmra.mxu2 %vm420_vm0, %v4427_v13  ;;  %v6623_v13 = vld [vmem:[%s11687_s1 + $0x50] sm:$0xff] }
 0x78d   :  { %v3799_v3 = vpop.f32.mrf.mxu0  ;;  %v5715_v53 = vmul.f32 %v6623_v13, %v10092_v58 }
 0x78e   :  { %5908 = vst [vmem:[%s11696_s10 + $0x48] sm:$0xff] %v5844_v43  ;;  %v10466_v5 = vadd.f32 %v10357_v24, %v3377_v54  ;;  %v3800_v39 = vadd.f32 %v9983_v40, %v3799_v3  ;;  %v5284_v38 = vpop.permute.xlu2 %5283  ;;  %v12338_v43 = vld [vmem:[#allocation130_spill] sm:$0xff] }
 0x78f   :  { %v5590_v60 = vsel %vm5574_vm1, %v5525_v52, %v5284_v38  ;;  %v4221_v27 = vpop.f32.mrf.mxu1  ;;  %v4707_v31 = vpop.f32.mrf.mxu2  ;;  %v12339_v52 = vld [vmem:[#allocation137_spill] sm:$0xff] }
 0x790   :  { %12337 = vst [vmem:[#allocation43_spill] sm:$0xff] %v10466_v5  ;;  %v3905_v50 = vmax.f32 %v3800_v39, 0.0  ;;  %v4359_v54 = vadd.f32 %v4221_v27, %v12338_v43  ;;  %v4708_v9 = vadd.f32 %v10100_v4, %v4707_v31  ;;  %6440 = vmatmul.msk.f32.gmra.mxu0 %vm420_vm0, %v10466_v5  ;;  %5179 = vrot.lane.b32.xlu0 %v10466_v5, %s6697_s13  ;;  %v12340_v39 = vld [vmem:[#allocation30_spill] sm:$0xff]  ;;  %v12341_v43 = vld [vmem:[#allocation95_spill] sm:$0xff] }
 0x791   :  { %5654 = vst [vmem:[%s11697_s11 + $0x78] sm:$0xff] %v5590_v60  ;;  %v5490_v38 = vsel %vm420_vm0, %v12340_v39, %v12339_v52 }
 0x792   :  { %v4428_v15 = vadd.f32 %v10336_v55, %v4359_v54  ;;  %v5781_v3 = vmul.f32 %v10118_v17, %v4708_v9  ;;  %6492 = vmatmul.msk.f32.gmra.mxu1 %vm420_vm0, %v3905_v50  ;;  %v12342_v54 = vld [vmem:[#allocation108_spill] sm:$0xff] }
 0x793   :  { %v5152_v13 = vpop.permute.xlu1 %5151  ;;  %v3306_v60 = vpop.f32.mrf.mxu3  ;;  %v12343_v9 = vld [vmem:[#allocation52_spill] sm:$0xff] }
 0x794   :  { %v5845_v27 = vadd.f32 %v5781_v3, %v5715_v53  ;;  %v10490_v31 = vsel %vm5509_vm2, %v5490_v38, %v5152_v13  ;;  %v3378_v26 = vadd.f32 %v3306_v60, %v12341_v43  ;;  %5307 = vrot.lane.b32.xlu2 %v4428_v15, %s6698_s19  ;;  %6541 = vmatmul.msk.f32.gmra.mxu2 %vm420_vm0, %v4428_v15  ;;  %v6624_v15 = vld [vmem:[%s11687_s1 + $0x58] sm:$0xff] }
 0x795   :  { %v5458_v50 = vsel %vm420_vm0, %v12343_v9, %v12342_v54  ;;  %v3802_v5 = vpop.f32.mrf.mxu0  ;;  %v5716_v38 = vmul.f32 %v6624_v15, %v10092_v58  ;;  %v12346_v54 = vld [vmem:[#allocation143_spill] sm:$0xff] }
 0x796   :  { %v5523_v52 = vsel %vm5509_vm2, %v5458_v50, %v9796_v1  ;;  %5909 = vst [vmem:[%s11696_s10 + $0x50] sm:$0xff] %v5845_v27  ;;  %v10504_v53 = vadd.f32 %v10357_v24, %v3378_v26  ;;  %v3803_v3 = vadd.f32 %v9983_v40, %v3802_v5  ;;  %v5280_v39 = vpop.permute.xlu0 %5279  ;;  %v12345_v26 = vld [vmem:[#allocation132_spill] sm:$0xff]  ;;  %v12347_v9 = vld [vmem:[#allocation71_spill] sm:$0xff] }
 0x797   :  { %v5588_v13 = vsel %vm5574_vm1, %v5523_v52, %v5280_v39  ;;  %v4224_v60 = vpop.f32.mrf.mxu1  ;;  %v4710_v1 = vpop.f32.mrf.mxu2  ;;  %v5494_v50 = vsel %vm420_vm0, %v12347_v9, %v12346_v54  ;;  %v12351_v54 = vld [vmem:[#allocation53_spill] sm:$0xff] }
 0x798   :  { %12344 = vst [vmem:[#allocation107_spill] sm:$0xff] %v10504_v53  ;;  %v3906_v43 = vmax.f32 %v3803_v3, 0.0  ;;  %v4360_v27 = vadd.f32 %v4224_v60, %v12345_v26  ;;  %v4711_v5 = vadd.f32 %v10100_v4, %v4710_v1  ;;  %6441 = vmatmul.msk.f32.gmra.mxu0 %vm420_vm0, %v10504_v53  ;;  %5181 = vrot.lane.b32.xlu1 %v10504_v53, %s6697_s13  ;;  %v12349_v1 = vld [vmem:[#allocation97_spill] sm:$0xff]  ;;  %v12350_v53 = vld [vmem:[#allocation72_spill] sm:$0xff] }
 0x799   :  { %5652 = vst [vmem:[%s11697_s11 + $0x68] sm:$0xff] %v5588_v13 }
 0x79a   :  { %v4429_v52 = vadd.f32 %v10336_v55, %v4360_v27  ;;  %v5782_v3 = vmul.f32 %v10118_v17, %v4711_v5  ;;  %v5160_v39 = vpop.permute.xlu2 %5159  ;;  %6493 = vmatmul.msk.f32.gmra.mxu1 %vm420_vm0, %v3906_v43  ;;  %v5459_v27 = vsel %vm420_vm0, %v12351_v54, %v12350_v53  ;;  %v12353_v54 = vld [vmem:[#allocation129_spill] sm:$0xff] }
 0x79b   :  { %v10528_v15 = vsel %vm5509_vm2, %v5494_v50, %v5160_v39  ;;  %v3309_v13 = vpop.f32.mrf.mxu3  ;;  %v5524_v5 = vsel %vm5509_vm2, %v5459_v27, %v9882_v14  ;;  %v12354_v27 = vld [vmem:[#allocation69_spill] sm:$0xff] }
 0x79c   :  { %12348 = vst [vmem:[#allocation62_spill] sm:$0xff] %v10528_v15  ;;  %v5846_v60 = vadd.f32 %v5782_v3, %v5716_v38  ;;  %v3379_v26 = vadd.f32 %v3309_v13, %v12349_v1  ;;  %5309 = vrot.lane.b32.xlu0 %v4429_v52, %s6698_s19  ;;  %6542 = vmatmul.msk.f32.gmra.mxu2 %vm420_vm0, %v4429_v52  ;;  %v6625_v52 = vld [vmem:[%s11687_s1 + $0x60] sm:$0xff]  ;;  %v12356_v15 = vld [vmem:[#allocation82_spill] sm:$0xff] }
 0x79d   :  { %v3805_v9 = vpop.f32.mrf.mxu0  ;;  %v5717_v53 = vmul.f32 %v6625_v52, %v10092_v58 }
 0x79e   :  { %5910 = vst [vmem:[%s11696_s10 + $0x58] sm:$0xff] %v5846_v60  ;;  %v10542_v38 = vadd.f32 %v10357_v24, %v3379_v26  ;;  %v3806_v43 = vadd.f32 %v9983_v40, %v3805_v9  ;;  %v5282_v50 = vpop.permute.xlu1 %5281  ;;  %v12352_v60 = vld [vmem:[#allocation135_spill] sm:$0xff]  ;;  %v5492_v9 = vsel %vm420_vm0, %v12354_v27, %v12353_v54  ;;  %v12357_v54 = vld [vmem:[#allocation58_spill] sm:$0xff] }
 0x79f   :  { %v5589_v3 = vsel %vm5574_vm1, %v5524_v5, %v5282_v50  ;;  %v4227_v39 = vpop.f32.mrf.mxu1  ;;  %v4713_v14 = vpop.f32.mrf.mxu2 }
 0x7a0   :  { %v3907_v13 = vmax.f32 %v3806_v43, 0.0  ;;  %5653 = vst [vmem:[%s11697_s11 + $0x70] sm:$0xff] %v5589_v3  ;;  %v4361_v1 = vadd.f32 %v4227_v39, %v12352_v60  ;;  %v4714_v26 = vadd.f32 %v10100_v4, %v4713_v14  ;;  %6442 = vmatmul.msk.f32.gmra.mxu0 %vm420_vm0, %v10542_v38  ;;  %5183 = vrot.lane.b32.xlu2 %v10542_v38, %s6697_s13  ;;  %v12355_v14 = vld [vmem:[#allocation99_spill] sm:$0xff] }
 0x7a2   :  { %v4430_v5 = vadd.f32 %v10336_v55, %v4361_v1  ;;  %v5783_v43 = vmul.f32 %v10118_v17, %v4714_v26  ;;  %6494 = vmatmul.msk.f32.gmra.mxu1 %vm420_vm0, %v3907_v13  ;;  %v5156_v50 = vpop.permute.xlu0 %5155  ;;  %v5463_v1 = vsel %vm420_vm0, %v12357_v54, %v12356_v15  ;;  %v12360_v54 = vld [vmem:[#allocation140_spill] sm:$0xff] }
 0x7a3   :  { %v10566_v52 = vsel %vm5509_vm2, %v5492_v9, %v5156_v50  ;;  %v3312_v3 = vpop.f32.mrf.mxu3  ;;  %v5528_v13 = vsel %vm5509_vm2, %v5463_v1, %v9946_v2  ;;  %v12361_v1 = vld [vmem:[#allocation70_spill] sm:$0xff] }
 0x7a4   :  { %v5847_v39 = vadd.f32 %v5783_v43, %v5717_v53  ;;  %v3380_v60 = vadd.f32 %v3312_v3, %v12355_v14  ;;  %5311 = vrot.lane.b32.xlu1 %v4430_v5, %s6698_s19  ;;  %6543 = vmatmul.msk.f32.gmra.mxu2 %vm420_vm0, %v4430_v5  ;;  %v6626_v5 = vld [vmem:[%s11687_s1 + $0x68] sm:$0xff] }
 0x7a5   :  { %v3808_v27 = vpop.f32.mrf.mxu0  ;;  %v5718_v15 = vmul.f32 %v6626_v5, %v10092_v58 }
 0x7a6   :  { %5911 = vst [vmem:[%s11696_s10 + $0x60] sm:$0xff] %v5847_v39  ;;  %v10580_v53 = vadd.f32 %v10357_v24, %v3380_v60  ;;  %v3809_v26 = vadd.f32 %v9983_v40, %v3808_v27  ;;  %v5290_v9 = vpop.permute.xlu2 %5289  ;;  %v12359_v39 = vld [vmem:[#allocation138_spill] sm:$0xff]  ;;  %v5493_v27 = vsel %vm420_vm0, %v12361_v1, %v12360_v54  ;;  %v12364_v1 = vld [vmem:[#allocation101_spill] sm:$0xff] }
 0x7a7   :  { %v5593_v43 = vsel %vm5574_vm1, %v5528_v13, %v5290_v9  ;;  %v4230_v50 = vpop.f32.mrf.mxu1  ;;  %v4716_v2 = vpop.f32.mrf.mxu2 }
 0x7a8   :  { %12358 = vst [vmem:[#allocation96_spill] sm:$0xff] %v10580_v53  ;;  %v3908_v3 = vmax.f32 %v3809_v26, 0.0  ;;  %v4362_v14 = vadd.f32 %v4230_v50, %v12359_v39  ;;  %v4717_v60 = vadd.f32 %v10100_v4, %v4716_v2  ;;  %6443 = vmatmul.msk.f32.gmra.mxu0 %vm420_vm0, %v10580_v53  ;;  %5185 = vrot.lane.b32.xlu0 %v10580_v53, %s6697_s13  ;;  %v12362_v2 = vld [vmem:[#allocation111_spill] sm:$0xff]  ;;  %v12363_v39 = vld [vmem:[#allocation56_spill] sm:$0xff] }
 0x7a9   :  { %5657 = vst [vmem:[%s11697_s11 + $0x90] sm:$0xff] %v5593_v43  ;;  %v5461_v54 = vsel %vm420_vm0, %v12363_v39, %v12362_v2  ;;  %v12366_v39 = vld [vmem:[#allocation77_spill] sm:$0xff] }
 0x7aa   :  { %v4431_v13 = vadd.f32 %v10336_v55, %v4362_v14  ;;  %v5784_v26 = vmul.f32 %v10118_v17, %v4717_v60  ;;  %v5158_v9 = vpop.permute.xlu1 %5157  ;;  %6495 = vmatmul.msk.f32.gmra.mxu1 %vm420_vm0, %v3908_v3  ;;  %v5526_v60 = vsel %vm5509_vm2, %v5461_v54, %v9840_v21  ;;  %v5497_v54 = vsel %vm420_vm0, %v12366_v39, %v9766_v47  ;;  %v6628_v39 = vld [vmem:[%s11687_s1 + $0x78] sm:$0xff] }
 0x7ab   :  { %v10604_v5 = vsel %vm5509_vm2, %v5493_v27, %v5158_v9 }
 0x7ac   :  { %v5848_v43 = vadd.f32 %v5784_v26, %v5718_v15  ;;  %v3315_v50 = vpop.f32.mrf.mxu3  ;;  %5313 = vrot.lane.b32.xlu2 %v4431_v13, %s6698_s19  ;;  %6544 = vmatmul.msk.f32.gmra.mxu2 %vm420_vm0, %v4431_v13 }
 0x7ad   :  { %v3381_v14 = vadd.f32 %v3315_v50, %v12364_v1  ;;  %v3811_v53 = vpop.f32.mrf.mxu0  ;;  %v6627_v50 = vld [vmem:[%s11687_s1 + $0x70] sm:$0xff] }
 0x7ae   :  { %5912 = vst [vmem:[%s11696_s10 + $0x68] sm:$0xff] %v5848_v43  ;;  %v3812_v15 = vadd.f32 %v9983_v40, %v3811_v53  ;;  %v5286_v3 = vpop.permute.xlu0 %5285  ;;  %v5719_v21 = vmul.f32 %v6627_v50, %v10092_v58  ;;  %v12365_v53 = vld [vmem:[#allocation142_spill] sm:$0xff] }
 0x7af   :  { %v10619_v27 = vadd.f32 %v10357_v24, %v3381_v14  ;;  %v5591_v13 = vsel %vm5574_vm1, %v5526_v60, %v5286_v3  ;;  %v4233_v26 = vpop.f32.mrf.mxu1  ;;  %v4719_v9 = vpop.f32.mrf.mxu2 }
 0x7b0   :  { %v3909_v2 = vmax.f32 %v3812_v15, 0.0  ;;  %5655 = vst [vmem:[%s11697_s11 + $0x80] sm:$0xff] %v5591_v13  ;;  %v4363_v43 = vadd.f32 %v4233_v26, %v12365_v53  ;;  %v4720_v24 = vadd.f32 %v10100_v4, %v4719_v9  ;;  %v12367_v13 = vld [vmem:[#allocation102_spill] sm:$0xff]  ;;  %v12368_v26 = vld [vmem:[#allocation57_spill] sm:$0xff] }
 0x7b1   :  { %5187 = vrot.lane.b32.xlu1 %v10619_v27, %s6697_s13  ;;  %6444 = vmatmul.msk.f32.gmra.mxu0 %vm420_vm0, %v10619_v27  ;;  %v5462_v9 = vsel %vm420_vm0, %v12368_v26, %v12367_v13 }
 0x7b2   :  { %v4432_v1 = vadd.f32 %v10336_v55, %v4363_v43  ;;  %v5785_v14 = vmul.f32 %v10118_v17, %v4720_v24  ;;  %v5166_v60 = vpop.permute.xlu2 %5165  ;;  %6496 = vmatmul.msk.f32.gmra.mxu1 %vm420_vm0, %v3909_v2  ;;  %v5527_v50 = vsel %vm5509_vm2, %v5462_v9, %v9926_v57  ;;  %v12369_v57 = vld [vmem:[#allocation55_spill] sm:$0xff] }
 0x7b3   :  { %v10642_v15 = vsel %vm5509_vm2, %v5497_v54, %v5166_v60  ;;  %v5720_v54 = vmul.f32 %v6628_v39, %v10092_v58  ;;  %v12370_v60 = vld [vmem:[#allocation134_spill] sm:$0xff] }
 0x7b4   :  { %v5849_v3 = vadd.f32 %v5785_v14, %v5719_v21  ;;  %5315 = vrot.lane.b32.xlu0 %v4432_v1, %s6698_s19  ;;  %6545 = vmatmul.msk.f32.gmra.mxu2 %vm420_vm0, %v4432_v1 }
 0x7b5   :  { %v3814_v47 = vpop.f32.mrf.mxu0 }
 0x7b6   :  { %5913 = vst [vmem:[%s11696_s10 + $0x70] sm:$0xff] %v5849_v3  ;;  %v3815_v2 = vadd.f32 %v9983_v40, %v3814_v47  ;;  %v5288_v53 = vpop.permute.xlu1 %5287  ;;  %v12371_v3 = vld [vmem:[#allocation73_spill] sm:$0xff] }
 0x7b7   :  { %v5592_v21 = vsel %vm5574_vm1, %v5527_v50, %v5288_v53  ;;  %v4236_v43 = vpop.f32.mrf.mxu1  ;;  %v4722_v24 = vpop.f32.mrf.mxu2  ;;  %v5495_v13 = vsel %vm420_vm0, %v12371_v3, %v12370_v60  ;;  %v12372_v53 = vld [vmem:[#allocation84_spill] sm:$0xff] }
 0x7b8   :  { %v3910_v1 = vmax.f32 %v3815_v2, 0.0  ;;  %5656 = vst [vmem:[%s11697_s11 + $0x88] sm:$0xff] %v5592_v21  ;;  %v4364_v14 = vadd.f32 %v4236_v43, %v12369_v57  ;;  %v4723_v40 = vadd.f32 %v10100_v4, %v4722_v24  ;;  %v12373_v21 = vld [vmem:[#allocation6_spill] sm:$0xff] }
 0x7b9   :  { %v5466_v43 = vsel %vm420_vm0, %v12373_v21, %v12372_v53  ;;  %v12376_v53 = vld [vmem:[#allocation75_spill] sm:$0xff] }
 0x7ba   :  { %v4433_v26 = vadd.f32 %v10336_v55, %v4364_v14  ;;  %v5786_v9 = vmul.f32 %v10118_v17, %v4723_v40  ;;  %6497 = vmatmul.msk.f32.gmra.mxu1 %vm420_vm0, %v3910_v1  ;;  %v5162_v47 = vpop.permute.xlu0 %5161  ;;  %v5531_v39 = vsel %vm5509_vm2, %v5466_v43, %v9971_v10  ;;  %v6630_v10 = vld [vmem:[%s11687_s1 + $0x80] sm:$0xff] }
 0x7bb   :  { %v10672_v50 = vsel %vm5509_vm2, %v5495_v13, %v5162_v47  ;;  %v5721_v3 = vmul.f32 %v6630_v10, %v10092_v58 }
 0x7bc   :  { %v5850_v2 = vadd.f32 %v5786_v9, %v5720_v54  ;;  %6546 = vmatmul.msk.f32.gmra.mxu2 %vm420_vm0, %v4433_v26  ;;  %5317 = vrot.lane.b32.xlu1 %v4433_v26, %s6698_s19  ;;  %v10687_v54 = vld [vmem:[%s11691_s5 + $0x3] ss:$0 sm:$0xff]  ;;  %v12374_v26 = vld [vmem:[#allocation146_spill] sm:$0xff] }
 0x7bd   :  { %v3817_v24 = vpop.f32.mrf.mxu0 }
 0x7be   :  { %5914 = vst [vmem:[%s11696_s10 + $0x78] sm:$0xff] %v5850_v2  ;;  %v3818_v1 = vadd.f32 %v10687_v54, %v3817_v24  ;;  %v5296_v57 = vpop.permute.xlu2 %5295  ;;  %v12375_v2 = vld [vmem:[#allocation144_spill] sm:$0xff] }
 0x7bf   :  { %v5596_v14 = vsel %vm5574_vm1, %v5531_v39, %v5296_v57  ;;  %v4239_v40 = vpop.f32.mrf.mxu1  ;;  %v4725_v60 = vpop.f32.mrf.mxu2  ;;  %v5496_v21 = vsel %vm420_vm0, %v12376_v53, %v12375_v2  ;;  %v6631_v53 = vld [vmem:[%s11687_s1 + $0x88] sm:$0xff] }
 0x7c0   :  { %v3911_v13 = vmax.f32 %v3818_v1, 0.0  ;;  %5660 = vst [vmem:[%s11697_s11 + $0xa8] sm:$0xff] %v5596_v14  ;;  %v4365_v9 = vadd.f32 %v4239_v40, %v12374_v26  ;;  %v4726_v47 = vadd.f32 %v10100_v4, %v4725_v60  ;;  %v12377_v14 = vld [vmem:[#allocation114_spill] sm:$0xff]  ;;  %v12378_v40 = vld [vmem:[#allocation59_spill] sm:$0xff] }
 0x7c1   :  { %v5464_v60 = vsel %vm420_vm0, %v12378_v40, %v12377_v14 }
 0x7c2   :  { %v4434_v43 = vadd.f32 %v10336_v55, %v4365_v9  ;;  %v5787_v24 = vmul.f32 %v10118_v17, %v4726_v47  ;;  %v5164_v39 = vpop.permute.xlu1 %5163  ;;  %6498 = vmatmul.msk.f32.gmra.mxu1 %vm420_vm0, %v3911_v13  ;;  %v5529_v26 = vsel %vm5509_vm2, %v5464_v60, %v9862_v44  ;;  %v12379_v44 = vld [vmem:[#allocation147_spill] sm:$0xff] }
 0x7c3   :  { %v10707_v1 = vsel %vm5509_vm2, %v5496_v21, %v5164_v39  ;;  %v5722_v21 = vmul.f32 %v6631_v53, %v10092_v58 }
 0x7c4   :  { %v5851_v57 = vadd.f32 %v5787_v24, %v5721_v3  ;;  %5319 = vrot.lane.b32.xlu2 %v4434_v43, %s6698_s19  ;;  %6547 = vmatmul.msk.f32.gmra.mxu2 %vm420_vm0, %v4434_v43 }
 0x7c5   :  { %v3820_v10 = vpop.f32.mrf.mxu0 }
 0x7c6   :  { %5915 = vst [vmem:[%s11696_s10 + $0x80] sm:$0xff] %v5851_v57  ;;  %v3821_v13 = vadd.f32 %v10687_v54, %v3820_v10  ;;  %v5292_v9 = vpop.permute.xlu0 %5291  ;;  %v12380_v57 = vld [vmem:[#allocation83_spill] sm:$0xff] }
 0x7c7   :  { %v5594_v3 = vsel %vm5574_vm1, %v5529_v26, %v5292_v9  ;;  %v4242_v47 = vpop.f32.mrf.mxu1  ;;  %v4728_v2 = vpop.f32.mrf.mxu2  ;;  %v5500_v14 = vsel %vm420_vm0, %v12380_v57, %v9811_v41  ;;  %v12381_v9 = vld [vmem:[#allocation104_spill] sm:$0xff] }
 0x7c8   :  { %v3912_v43 = vmax.f32 %v3821_v13, 0.0  ;;  %5658 = vst [vmem:[%s11697_s11 + $0x98] sm:$0xff] %v5594_v3  ;;  %v4366_v24 = vadd.f32 %v4242_v47, %v12379_v44  ;;  %v4729_v39 = vadd.f32 %v10100_v4, %v4728_v2  ;;  %v12382_v3 = vld [vmem:[#allocation5_spill] sm:$0xff] }
 0x7c9   :  { %v5465_v47 = vsel %vm420_vm0, %v12382_v3, %v12381_v9 }
 0x7ca   :  { %v4435_v40 = vadd.f32 %v10336_v55, %v4366_v24  ;;  %v5788_v60 = vmul.f32 %v10118_v17, %v4729_v39  ;;  %v5172_v10 = vpop.permute.xlu2 %5171  ;;  %6499 = vmatmul.msk.f32.gmra.mxu1 %vm420_vm0, %v3912_v43  ;;  %v5530_v2 = vsel %vm5509_vm2, %v5465_v47, %v9948_v45  ;;  %v6632_v39 = vld [vmem:[%s11687_s1 + $0x90] sm:$0xff]  ;;  %v12383_v45 = vld [vmem:[#allocation150_spill] sm:$0xff] }
 0x7cb   :  { %v10737_v26 = vsel %vm5509_vm2, %v5500_v14, %v5172_v10  ;;  %v5723_v57 = vmul.f32 %v6632_v39, %v10092_v58  ;;  %v12384_v10 = vld [vmem:[#allocation141_spill] sm:$0xff] }
 0x7cc   :  { %v5852_v13 = vadd.f32 %v5788_v60, %v5722_v21  ;;  %5321 = vrot.lane.b32.xlu0 %v4435_v40, %s6698_s19  ;;  %6548 = vmatmul.msk.f32.gmra.mxu2 %vm420_vm0, %v4435_v40 }
 0x7cd   :  { %v3823_v41 = vpop.f32.mrf.mxu0 }
 0x7ce   :  { %5916 = vst [vmem:[%s11696_s10 + $0x88] sm:$0xff] %v5852_v13  ;;  %v3824_v53 = vadd.f32 %v10687_v54, %v3823_v41  ;;  %v5294_v43 = vpop.permute.xlu1 %5293  ;;  %v12385_v13 = vld [vmem:[#allocation79_spill] sm:$0xff] }
 0x7cf   :  { %v5595_v21 = vsel %vm5574_vm1, %v5530_v2, %v5294_v43  ;;  %v4245_v44 = vpop.f32.mrf.mxu1  ;;  %v4731_v24 = vpop.f32.mrf.mxu2  ;;  %v5498_v9 = vsel %vm420_vm0, %v12385_v13, %v12384_v10  ;;  %v12386_v43 = vld [vmem:[#allocation86_spill] sm:$0xff]  ;;  %v6633_v10 = vld [vmem:[%s11687_s1 + $0x98] sm:$0xff] }
 0x7d0   :  { %v3913_v14 = vmax.f32 %v3824_v53, 0.0  ;;  %5659 = vst [vmem:[%s11697_s11 + $0xa0] sm:$0xff] %v5595_v21  ;;  %v4367_v40 = vadd.f32 %v4245_v44, %v12383_v45  ;;  %v4732_v60 = vadd.f32 %v10100_v4, %v4731_v24  ;;  %v12387_v21 = vld [vmem:[#allocation9_spill] sm:$0xff]  ;;  %v5724_v13 = vmul.f32 %v6633_v10, %v10092_v58 }
 0x7d1   :  { %v5469_v44 = vsel %vm420_vm0, %v12387_v21, %v12386_v43 }
 0x7d2   :  { %v4436_v3 = vadd.f32 %v10336_v55, %v4367_v40  ;;  %v5789_v47 = vmul.f32 %v10118_v17, %v4732_v60  ;;  %6500 = vmatmul.msk.f32.gmra.mxu1 %vm420_vm0, %v3913_v14  ;;  %v5168_v41 = vpop.permute.xlu0 %5167  ;;  %v5534_v39 = vsel %vm5509_vm2, %v5469_v44, %v10002_v0  ;;  %v12388_v0 = vld [vmem:[#allocation151_spill] sm:$0xff] }
 0x7d3   :  { %v10767_v2 = vsel %vm5509_vm2, %v5498_v9, %v5168_v41  ;;  %v12389_v41 = vld [vmem:[#allocation148_spill] sm:$0xff] }
 0x7d4   :  { %v5853_v53 = vadd.f32 %v5789_v47, %v5723_v57  ;;  %6549 = vmatmul.msk.f32.gmra.mxu2 %vm420_vm0, %v4436_v3  ;;  %5323 = vrot.lane.b32.xlu1 %v4436_v3, %s6698_s19 }
 0x7d5   :  { %v3826_v24 = vpop.f32.mrf.mxu0 }
 0x7d6   :  { %5917 = vst [vmem:[%s11696_s10 + $0x90] sm:$0xff] %v5853_v53  ;;  %v3827_v14 = vadd.f32 %v10687_v54, %v3826_v24  ;;  %v5302_v45 = vpop.permute.xlu2 %5301  ;;  %v12390_v53 = vld [vmem:[#allocation81_spill] sm:$0xff] }
 0x7d7   :  { %v5599_v57 = vsel %vm5574_vm1, %v5534_v39, %v5302_v45  ;;  %v4248_v40 = vpop.f32.mrf.mxu1  ;;  %v4734_v60 = vpop.f32.mrf.mxu2  ;;  %v5499_v43 = vsel %vm420_vm0, %v12390_v53, %v12389_v41  ;;  %v12392_v45 = vld [vmem:[#allocation7_spill] sm:$0xff] }
 0x7d8   :  { %v3914_v9 = vmax.f32 %v3827_v14, 0.0  ;;  %5663 = vst [vmem:[%s11697_s11 + $0xc0] sm:$0xff] %v5599_v57  ;;  %v4368_v3 = vadd.f32 %v4248_v40, %v12388_v0  ;;  %v4735_v47 = vadd.f32 %v10100_v4, %v4734_v60  ;;  %v12391_v4 = vld [vmem:[#allocation117_spill] sm:$0xff] }
 0x7d9   :  { %v5467_v57 = vsel %vm420_vm0, %v12392_v45, %v12391_v4 }
 0x7da   :  { %v4437_v21 = vadd.f32 %v10336_v55, %v4368_v3  ;;  %v5790_v44 = vmul.f32 %v10118_v17, %v4735_v47  ;;  %v5170_v24 = vpop.permute.xlu1 %5169  ;;  %6501 = vmatmul.msk.f32.gmra.mxu1 %vm420_vm0, %v3914_v9  ;;  %v5532_v60 = vsel %vm5509_vm2, %v5467_v57, %v9884_v33  ;;  %v6634_v47 = vld [vmem:[%s11687_s1 + $0xa0] sm:$0xff] }
 0x7db   :  { %v10797_v39 = vsel %vm5509_vm2, %v5499_v43, %v5170_v24  ;;  %v5725_v41 = vmul.f32 %v6634_v47, %v10092_v58  ;;  %v10822_v43 = vld [vmem:[%s11695_s9] ss:$0 sm:$0xff] }
 0x7dc   :  { %v5854_v14 = vadd.f32 %v5790_v44, %v5724_v13  ;;  %5325 = vrot.lane.b32.xlu2 %v4437_v21, %s6698_s19  ;;  %6550 = vmatmul.msk.f32.gmra.mxu2 %vm420_vm0, %v4437_v21  ;;  %v12393_v44 = vld [vmem:[#allocation155_spill] sm:$0xff]  ;;  %v12394_v24 = vld [vmem:[#allocation33_spill] sm:$0xff] }
 0x7dd   :  { %v3829_v40 = vpop.f32.mrf.mxu0 }
 0x7de   :  { %5918 = vst [vmem:[%s11696_s10 + $0x98] sm:$0xff] %v5854_v14  ;;  %v3830_v10 = vadd.f32 %v10687_v54, %v3829_v40  ;;  %v5298_v9 = vpop.permute.xlu0 %5297  ;;  %v5503_v14 = vsel %vm420_vm0, %v12394_v24, %v12393_v44 }
 0x7df   :  { %v5597_v13 = vsel %vm5574_vm1, %v5532_v60, %v5298_v9  ;;  %v4251_v0 = vpop.f32.mrf.mxu1  ;;  %v4737_v3 = vpop.f32.mrf.mxu2  ;;  %v12395_v60 = vld [vmem:[#allocation106_spill] sm:$0xff] }
 0x7e0   :  { %v3915_v53 = vmax.f32 %v3830_v10, 0.0  ;;  %5661 = vst [vmem:[%s11697_s11 + $0xb0] sm:$0xff] %v5597_v13  ;;  %v4369_v33 = vadd.f32 %v4251_v0, %v9821_v48  ;;  %v4738_v21 = vadd.f32 %v10822_v43, %v4737_v3  ;;  %v12396_v10 = vld [vmem:[#allocation8_spill] sm:$0xff] }
 0x7e1   :  { %v5468_v9 = vsel %vm420_vm0, %v12396_v10, %v12395_v60 }
 0x7e2   :  { %v4438_v4 = vadd.f32 %v10336_v55, %v4369_v33  ;;  %v5791_v45 = vmul.f32 %v10118_v17, %v4738_v21  ;;  %v5178_v57 = vpop.permute.xlu2 %5177  ;;  %6502 = vmatmul.msk.f32.gmra.mxu1 %vm420_vm0, %v3915_v53  ;;  %v5533_v0 = vsel %vm5509_vm2, %v5468_v9, %v9975_v18  ;;  %v6636_v21 = vld [vmem:[%s11687_s1 + $0xa8] sm:$0xff] }
 0x7e3   :  { %v10832_v48 = vsel %vm5509_vm2, %v5503_v14, %v5178_v57  ;;  %v5726_v44 = vmul.f32 %v6636_v21, %v10092_v58  ;;  %v12397_v18 = vld [vmem:[#allocation154_spill] sm:$0xff]  ;;  %v12399_v57 = vld [vmem:[#allocation85_spill] sm:$0xff] }
 0x7e4   :  { %v5855_v40 = vadd.f32 %v5791_v45, %v5725_v41  ;;  %5327 = vrot.lane.b32.xlu0 %v4438_v4, %s6698_s19  ;;  %6551 = vmatmul.msk.f32.gmra.mxu2 %vm420_vm0, %v4438_v4  ;;  %v12398_v45 = vld [vmem:[#allocation145_spill] sm:$0xff] }
 0x7e5   :  { %v3832_v13 = vpop.f32.mrf.mxu0 }
 0x7e6   :  { %5919 = vst [vmem:[%s11696_s10 + $0xa0] sm:$0xff] %v5855_v40  ;;  %v3833_v3 = vadd.f32 %v10687_v54, %v3832_v13  ;;  %v5300_v47 = vpop.permute.xlu1 %5299  ;;  %v5501_v40 = vsel %vm420_vm0, %v12399_v57, %v12398_v45 }
 0x7e7   :  { %v5598_v41 = vsel %vm5574_vm1, %v5533_v0, %v5300_v47  ;;  %v4254_v53 = vpop.f32.mrf.mxu1  ;;  %v4740_v33 = vpop.f32.mrf.mxu2  ;;  %v12401_v47 = vld [vmem:[#allocation12_spill] sm:$0xff] }
 0x7e8   :  { %v3916_v24 = vmax.f32 %v3833_v3, 0.0  ;;  %5662 = vst [vmem:[%s11697_s11 + $0xb8] sm:$0xff] %v5598_v41  ;;  %v4370_v14 = vadd.f32 %v4254_v53, %v12397_v18  ;;  %v4741_v4 = vadd.f32 %v10822_v43, %v4740_v33  ;;  %v12400_v3 = vld [vmem:[#allocation87_spill] sm:$0xff] }
 0x7e9   :  { %v5472_v41 = vsel %vm420_vm0, %v12401_v47, %v12400_v3 }
 0x7ea   :  { %v4439_v60 = vadd.f32 %v10336_v55, %v4370_v14  ;;  %v5792_v10 = vmul.f32 %v10118_v17, %v4741_v4  ;;  %6503 = vmatmul.msk.f32.gmra.mxu1 %vm420_vm0, %v3916_v24  ;;  %v5174_v9 = vpop.permute.xlu0 %5173  ;;  %v5537_v33 = vsel %vm5509_vm2, %v5472_v41, %v10022_v56  ;;  %v6637_v4 = vld [vmem:[%s11687_s1 + $0xb0] sm:$0xff] }
 0x7eb   :  { %v10862_v13 = vsel %vm5509_vm2, %v5501_v40, %v5174_v9  ;;  %v5727_v45 = vmul.f32 %v6637_v4, %v10092_v58 }
 0x7ec   :  { %v5856_v0 = vadd.f32 %v5792_v10, %v5726_v44  ;;  %6552 = vmatmul.msk.f32.gmra.mxu2 %vm420_vm0, %v4439_v60  ;;  %5329 = vrot.lane.b32.xlu1 %v4439_v60, %s6698_s19  ;;  %v12402_v60 = vld [vmem:[#allocation152_spill] sm:$0xff] }
 0x7ed   :  { %v3835_v53 = vpop.f32.mrf.mxu0  ;;  %v12403_v10 = vld [vmem:[#allocation32_spill] sm:$0xff] }
 0x7ee   :  { %5920 = vst [vmem:[%s11696_s10 + $0xa8] sm:$0xff] %v5856_v0  ;;  %v3836_v21 = vadd.f32 %v10687_v54, %v3835_v53  ;;  %v5308_v24 = vpop.permute.xlu2 %5307  ;;  %v5502_v9 = vsel %vm420_vm0, %v12403_v10, %v12402_v60 }
 0x7ef   :  { %v5602_v44 = vsel %vm5574_vm1, %v5537_v33, %v5308_v24  ;;  %v4257_v18 = vpop.f32.mrf.mxu1  ;;  %v4743_v14 = vpop.f32.mrf.mxu2  ;;  %v12405_v33 = vld [vmem:[#allocation10_spill] sm:$0xff] }
 0x7f0   :  { %v3917_v57 = vmax.f32 %v3836_v21, 0.0  ;;  %5666 = vst [vmem:[%s11697_s11 + $0xd8] sm:$0xff] %v5602_v44  ;;  %v4371_v56 = vadd.f32 %v4257_v18, %v9865_v46  ;;  %v4744_v40 = vadd.f32 %v10822_v43, %v4743_v14  ;;  %v12404_v46 = vld [vmem:[#allocation119_spill] sm:$0xff] }
 0x7f1   :  { %v5470_v21 = vsel %vm420_vm0, %v12405_v33, %v12404_v46 }
 0x7f2   :  { %v4440_v0 = vadd.f32 %v10336_v55, %v4371_v56  ;;  %v5793_v3 = vmul.f32 %v10118_v17, %v4744_v40  ;;  %v5176_v47 = vpop.permute.xlu1 %5175  ;;  %6504 = vmatmul.msk.f32.gmra.mxu1 %vm420_vm0, %v3917_v57  ;;  %v5535_v44 = vsel %vm5509_vm2, %v5470_v21, %v9906_v25  ;;  %v6638_v56 = vld [vmem:[%s11687_s1 + $0xb8] sm:$0xff]  ;;  %v12406_v25 = vld [vmem:[#allocation157_spill] sm:$0xff] }
 0x7f3   :  { %v10892_v41 = vsel %vm5509_vm2, %v5502_v9, %v5176_v47  ;;  %v5728_v40 = vmul.f32 %v6638_v56, %v10092_v58 }
 0x7f4   :  { %v5857_v53 = vadd.f32 %v5793_v3, %v5727_v45  ;;  %5331 = vrot.lane.b32.xlu2 %v4440_v0, %s6698_s19  ;;  %6553 = vmatmul.msk.f32.gmra.mxu2 %vm420_vm0, %v4440_v0  ;;  %v12407_v0 = vld [vmem:[#allocation36_spill] sm:$0xff] }
 0x7f5   :  { %v3838_v24 = vpop.f32.mrf.mxu0  ;;  %v5506_v3 = vsel %vm420_vm0, %v12407_v0, %v9902_v34 }
 0x7f6   :  { %5921 = vst [vmem:[%s11696_s10 + $0xb0] sm:$0xff] %v5857_v53  ;;  %v3839_v18 = vadd.f32 %v10687_v54, %v3838_v24  ;;  %v5304_v14 = vpop.permute.xlu0 %5303  ;;  %v12408_v24 = vld [vmem:[#allocation109_spill] sm:$0xff] }
 0x7f7   :  { %v5600_v4 = vsel %vm5574_vm1, %v5535_v44, %v5304_v14  ;;  %v4260_v45 = vpop.f32.mrf.mxu1  ;;  %v4746_v57 = vpop.f32.mrf.mxu2  ;;  %v12409_v44 = vld [vmem:[#allocation11_spill] sm:$0xff] }
 0x7f8   :  { %v3918_v60 = vmax.f32 %v3839_v18, 0.0  ;;  %5664 = vst [vmem:[%s11697_s11 + $0xc8] sm:$0xff] %v5600_v4  ;;  %v4372_v10 = vadd.f32 %v4260_v45, %v12406_v25  ;;  %v4747_v9 = vadd.f32 %v10822_v43, %v4746_v57  ;;  %v5471_v18 = vsel %vm420_vm0, %v12409_v44, %v12408_v24 }
 0x7f9   :  { %v5536_v14 = vsel %vm5509_vm2, %v5471_v18, %v10004_v29  ;;  %v12410_v29 = vld [vmem:[#allocation159_spill] sm:$0xff] }
 0x7fa   :  { %v4441_v47 = vadd.f32 %v10336_v55, %v4372_v10  ;;  %v5794_v53 = vmul.f32 %v10118_v17, %v4747_v9  ;;  %v5184_v46 = vpop.permute.xlu2 %5183  ;;  %6505 = vmatmul.msk.f32.gmra.mxu1 %vm420_vm0, %v3918_v60  ;;  %v6639_v60 = vld [vmem:[%s11687_s1 + $0xc0] sm:$0xff] }
 0x7fb   :  { %v10922_v33 = vsel %vm5509_vm2, %v5506_v3, %v5184_v46  ;;  %v5729_v25 = vmul.f32 %v6639_v60, %v10092_v58  ;;  %v12411_v3 = vld [vmem:[#allocation149_spill] sm:$0xff] }
 0x7fc   :  { %v5858_v21 = vadd.f32 %v5794_v53, %v5728_v40  ;;  %5333 = vrot.lane.b32.xlu0 %v4441_v47, %s6698_s19  ;;  %6554 = vmatmul.msk.f32.gmra.mxu2 %vm420_vm0, %v4441_v47  ;;  %v12412_v47 = vld [vmem:[#allocation34_spill] sm:$0xff] }
 0x7fd   :  { %v3841_v34 = vpop.f32.mrf.mxu0  ;;  %v5504_v53 = vsel %vm420_vm0, %v12412_v47, %v12411_v3 }
 0x7fe   :  { %5922 = vst [vmem:[%s11696_s10 + $0xb8] sm:$0xff] %v5858_v21  ;;  %v3842_v4 = vadd.f32 %v10687_v54, %v3841_v34  ;;  %v5306_v45 = vpop.permute.xlu1 %5305  ;;  %v12413_v34 = vld [vmem:[#allocation88_spill] sm:$0xff] }
 0x7ff   :  { %v5601_v57 = vsel %vm5574_vm1, %v5536_v14, %v5306_v45  ;;  %v4263_v56 = vpop.f32.mrf.mxu1  ;;  %v4749_v40 = vpop.f32.mrf.mxu2  ;;  %v12414_v14 = vld [vmem:[#allocation15_spill] sm:$0xff] }
 0x800   :  { %v3919_v10 = vmax.f32 %v3842_v4, 0.0  ;;  %5665 = vst [vmem:[%s11697_s11 + $0xd0] sm:$0xff] %v5601_v57  ;;  %v4373_v9 = vadd.f32 %v4263_v56, %v12410_v29  ;;  %v4750_v0 = vadd.f32 %v10822_v43, %v4749_v40  ;;  %v5475_v4 = vsel %vm420_vm0, %v12414_v14, %v12413_v34  ;;  %v6640_v29 = vld [vmem:[%s11687_s1 + $0xc8] sm:$0xff] }
 0x801   :  { %v5540_v57 = vsel %vm5509_vm2, %v5475_v4, %v10046_v62  ;;  %v12415_v62 = vld [vmem:[#allocation161_spill] sm:$0xff] }
 0x802   :  { %v4442_v46 = vadd.f32 %v10336_v55, %v4373_v9  ;;  %v5795_v21 = vmul.f32 %v10118_v17, %v4750_v0  ;;  %6506 = vmatmul.msk.f32.gmra.mxu1 %vm420_vm0, %v3919_v10  ;;  %v5180_v24 = vpop.permute.xlu0 %5179  ;;  %v5730_v9 = vmul.f32 %v6640_v29, %v10092_v58 }
 0x803   :  { %v10952_v44 = vsel %vm5509_vm2, %v5504_v53, %v5180_v24  ;;  %v12416_v53 = vld [vmem:[#allocation156_spill] sm:$0xff] }
 0x804   :  { %v5859_v18 = vadd.f32 %v5795_v21, %v5729_v25  ;;  %6555 = vmatmul.msk.f32.gmra.mxu2 %vm420_vm0, %v4442_v46  ;;  %5335 = vrot.lane.b32.xlu1 %v4442_v46, %s6698_s19  ;;  %v12417_v46 = vld [vmem:[#allocation35_spill] sm:$0xff] }
 0x805   :  { %v3844_v45 = vpop.f32.mrf.mxu0  ;;  %v5505_v21 = vsel %vm420_vm0, %v12417_v46, %v12416_v53 }
 0x806   :  { %5923 = vst [vmem:[%s11696_s10 + $0xc0] sm:$0xff] %v5859_v18  ;;  %v3845_v56 = vadd.f32 %v10687_v54, %v3844_v45  ;;  %v5314_v40 = vpop.permute.xlu2 %5313  ;;  %v12418_v45 = vld [vmem:[#allocation122_spill] sm:$0xff] }
 0x807   :  { %v5605_v60 = vsel %vm5574_vm1, %v5540_v57, %v5314_v40  ;;  %v4266_v25 = vpop.f32.mrf.mxu1  ;;  %v4752_v10 = vpop.f32.mrf.mxu2  ;;  %v12419_v57 = vld [vmem:[#allocation13_spill] sm:$0xff] }
 0x808   :  { %v3920_v0 = vmax.f32 %v3845_v56, 0.0  ;;  %5669 = vst [vmem:[%s11697_s11 + $0xf0] sm:$0xff] %v5605_v60  ;;  %v4374_v3 = vadd.f32 %v4266_v25, %v12415_v62  ;;  %v4753_v47 = vadd.f32 %v10822_v43, %v4752_v10  ;;  %v5473_v56 = vsel %vm420_vm0, %v12419_v57, %v12418_v45  ;;  %v12420_v60 = vld [vmem:[#allocation160_spill] sm:$0xff]  ;;  %v12422_v45 = vld [vmem:[#allocation14_spill] sm:$0xff] }
 0x809   :  { %v5538_v25 = vsel %vm5509_vm2, %v5473_v56, %v12420_v60 }
 0x80a   :  { %v4443_v24 = vadd.f32 %v10336_v55, %v4374_v3  ;;  %v5796_v18 = vmul.f32 %v10118_v17, %v4753_v47  ;;  %v5182_v34 = vpop.permute.xlu1 %5181  ;;  %6507 = vmatmul.msk.f32.gmra.mxu1 %vm420_vm0, %v3920_v0  ;;  %v6641_v3 = vld [vmem:[%s11687_s1 + $0xd0] sm:$0xff] }
 0x80b   :  { %v10982_v14 = vsel %vm5509_vm2, %v5505_v21, %v5182_v34  ;;  %v5731_v47 = vmul.f32 %v6641_v3, %v10092_v58  ;;  %v12423_v3 = vld [vmem:[#allocation153_spill] sm:$0xff] }
 0x80c   :  { %v5860_v4 = vadd.f32 %v5796_v18, %v5730_v9  ;;  %5337 = vrot.lane.b32.xlu2 %v4443_v24, %s6698_s19  ;;  %6556 = vmatmul.msk.f32.gmra.mxu2 %vm420_vm0, %v4443_v24 }
 0x80d   :  { %v3847_v40 = vpop.f32.mrf.mxu0 }
 0x80e   :  { %5924 = vst [vmem:[%s11696_s10 + $0xc8] sm:$0xff] %v5860_v4  ;;  %v3848_v10 = vadd.f32 %v10687_v54, %v3847_v40  ;;  %v5310_v29 = vpop.permute.xlu0 %5309  ;;  %v12421_v4 = vld [vmem:[#allocation112_spill] sm:$0xff] }
 0x80f   :  { %v5603_v9 = vsel %vm5574_vm1, %v5538_v25, %v5310_v29  ;;  %v4269_v0 = vpop.f32.mrf.mxu1  ;;  %v4755_v62 = vpop.f32.mrf.mxu2  ;;  %v5474_v57 = vsel %vm420_vm0, %v12422_v45, %v12421_v4  ;;  %v6642_v29 = vld [vmem:[%s11687_s1 + $0xd8] sm:$0xff]  ;;  %v12425_v4 = vld [vmem:[#allocation89_spill] sm:$0xff]  ;;  %v12426_v45 = vld [vmem:[#allocation18_spill] sm:$0xff] }
 0x810   :  { %v3921_v53 = vmax.f32 %v3848_v10, 0.0  ;;  %5667 = vst [vmem:[%s11697_s11 + $0xe0] sm:$0xff] %v5603_v9  ;;  %v4375_v46 = vadd.f32 %v4269_v0, %v9953_v7  ;;  %v4756_v21 = vadd.f32 %v10822_v43, %v4755_v62  ;;  %v5539_v7 = vsel %vm5509_vm2, %v5474_v57, %v10024_v59 }
 0x811   :  { %v5732_v9 = vmul.f32 %v6642_v29, %v10092_v58  ;;  %v5478_v57 = vsel %vm420_vm0, %v12426_v45, %v12425_v4  ;;  %v6644_v29 = vld [vmem:[%s11687_s1 + $0xe0] sm:$0xff]  ;;  %v12430_v4 = vld [vmem:[#allocation16_spill] sm:$0xff] }
 0x812   :  { %v4444_v24 = vadd.f32 %v10336_v55, %v4375_v46  ;;  %v5797_v18 = vmul.f32 %v10118_v17, %v4756_v21  ;;  %6508 = vmatmul.msk.f32.gmra.mxu1 %vm420_vm0, %v3921_v53  ;;  %v11035_v46 = vld [vmem:[%s11693_s7 + $0x3] ss:$0 sm:$0xff] }
 0x814   :  { %v5861_v34 = vadd.f32 %v5797_v18, %v5731_v47  ;;  %5339 = vrot.lane.b32.xlu0 %v4444_v24, %s6698_s19  ;;  %6557 = vmatmul.msk.f32.gmra.mxu2 %vm420_vm0, %v4444_v24  ;;  %v12424_v47 = vld [vmem:[#allocation37_spill] sm:$0xff] }
 0x815   :  { %v3850_v56 = vpop.f32.mrf.mxu0  ;;  %v5507_v53 = vsel %vm420_vm0, %v12424_v47, %v12423_v3  ;;  %v12427_v47 = vld [vmem:[#allocation158_spill] sm:$0xff] }
 0x816   :  { %5925 = vst [vmem:[%s11696_s10 + $0xd0] sm:$0xff] %v5861_v34  ;;  %v3851_v55 = vadd.f32 %v10687_v54, %v3850_v56  ;;  %v5312_v40 = vpop.permute.xlu1 %5311 }
 0x817   :  { %v5604_v60 = vsel %vm5574_vm1, %v5539_v7, %v5312_v40  ;;  %v4272_v25 = vpop.f32.mrf.mxu1  ;;  %v4758_v10 = vpop.f32.mrf.mxu2  ;;  %v5543_v7 = vsel %vm5509_vm2, %v5478_v57, %v10075_v49 }
 0x818   :  { %v3922_v0 = vmax.f32 %v3851_v55, 0.0  ;;  %5668 = vst [vmem:[%s11697_s11 + $0xe8] sm:$0xff] %v5604_v60  ;;  %v4376_v59 = vadd.f32 %v4272_v25, %v9978_v42  ;;  %v4759_v62 = vadd.f32 %v10822_v43, %v4758_v10 }
 0x81a   :  { %v4445_v21 = vadd.f32 %v11035_v46, %v4376_v59  ;;  %v5798_v24 = vmul.f32 %v10118_v17, %v4759_v62  ;;  %6509 = vmatmul.msk.f32.gmra.mxu1 %vm420_vm0, %v3922_v0  ;;  %v5186_v18 = vpop.permute.xlu0 %5185 }
 0x81b   :  { %v11041_v42 = vsel %vm5509_vm2, %v5507_v53, %v5186_v18  ;;  %v12428_v53 = vld [vmem:[#allocation38_spill] sm:$0xff] }
 0x81c   :  { %v5862_v34 = vadd.f32 %v5798_v24, %v5732_v9  ;;  %6558 = vmatmul.msk.f32.gmra.mxu2 %vm420_vm0, %v4445_v21  ;;  %5341 = vrot.lane.b32.xlu1 %v4445_v21, %s6698_s19  ;;  %v5733_v9 = vmul.f32 %v6644_v29, %v10092_v58  ;;  %v5508_v21 = vsel %vm420_vm0, %v12428_v53, %v12427_v47  ;;  %v6645_v29 = vld [vmem:[%s11687_s1 + $0xe8] sm:$0xff]  ;;  %v12432_v53 = vld [vmem:[#allocation115_spill] sm:$0xff] }
 0x81d   :  { %v3853_v56 = vpop.f32.mrf.mxu0 }
 0x81e   :  { %5926 = vst [vmem:[%s11696_s10 + $0xd8] sm:$0xff] %v5862_v34  ;;  %v3854_v55 = vadd.f32 %v10687_v54, %v3853_v56  ;;  %v5320_v40 = vpop.permute.xlu2 %5319  ;;  %v12431_v56 = vld [vmem:[#allocation162_spill] sm:$0xff] }
 0x81f   :  { %v5608_v60 = vsel %vm5574_vm1, %v5543_v7, %v5320_v40  ;;  %v4275_v25 = vpop.f32.mrf.mxu1  ;;  %v4761_v10 = vpop.f32.mrf.mxu2 }
 0x820   :  { %v3923_v0 = vmax.f32 %v3854_v55, 0.0  ;;  %5672 = vst [vmem:[%s11697_s11 + $0x108] sm:$0xff] %v5608_v60  ;;  %v4377_v49 = vadd.f32 %v4275_v25, %v10007_v20  ;;  %v4762_v59 = vadd.f32 %v10822_v43, %v4761_v10  ;;  %v12429_v20 = vld [vmem:[#allocation125_spill] sm:$0xff] }
 0x821   :  { %v5476_v45 = vsel %vm420_vm0, %v12430_v4, %v12429_v20 }
 0x822   :  { %v4446_v62 = vadd.f32 %v11035_v46, %v4377_v49  ;;  %v5799_v3 = vmul.f32 %v10118_v17, %v4762_v59  ;;  %6510 = vmatmul.msk.f32.gmra.mxu1 %vm420_vm0, %v3923_v0  ;;  %v5541_v7 = vsel %vm5509_vm2, %v5476_v45, %v12431_v56 }
 0x823   :  { %v5188_v24 = vpop.permute.xlu1 %5187 }
 0x824   :  { %v5863_v18 = vadd.f32 %v5799_v3, %v5733_v9  ;;  %v11071_v34 = vsel %vm5509_vm2, %v5508_v21, %v5188_v24  ;;  %5343 = vrot.lane.b32.xlu2 %v4446_v62, %s6698_s19  ;;  %6559 = vmatmul.msk.f32.gmra.mxu2 %vm420_vm0, %v4446_v62  ;;  %v5734_v9 = vmul.f32 %v6645_v29, %v10092_v58  ;;  %v12433_v21 = vld [vmem:[#allocation17_spill] sm:$0xff]  ;;  %v12434_v29 = vld [vmem:[#allocation90_spill] sm:$0xff] }
 0x825   :  { %v3856_v57 = vpop.f32.mrf.mxu0  ;;  %v5477_v24 = vsel %vm420_vm0, %v12433_v21, %v12432_v53 }
 0x826   :  { %5927 = vst [vmem:[%s11696_s10 + $0xe0] sm:$0xff] %v5863_v18  ;;  %v3857_v55 = vadd.f32 %v10687_v54, %v3856_v57  ;;  %v5316_v40 = vpop.permute.xlu0 %5315 }
 0x827   :  { %v5606_v60 = vsel %vm5574_vm1, %v5541_v7, %v5316_v40  ;;  %v4278_v25 = vpop.f32.mrf.mxu1  ;;  %v4764_v10 = vpop.f32.mrf.mxu2  ;;  %v6646_v7 = vld [vmem:[%s11687_s1 + $0xf0] sm:$0xff] }
 0x828   :  { %v3924_v0 = vmax.f32 %v3857_v55, 0.0  ;;  %5670 = vst [vmem:[%s11697_s11 + $0xf8] sm:$0xff] %v5606_v60  ;;  %v4378_v49 = vadd.f32 %v4278_v25, %v10029_v12  ;;  %v4765_v59 = vadd.f32 %v10822_v43, %v4764_v10  ;;  %v5542_v12 = vsel %vm5509_vm2, %v5477_v24, %v10050_v30 }
 0x829   :  { %v5735_v55 = vmul.f32 %v6646_v7, %v10092_v58 }
 0x82a   :  { %v4447_v62 = vadd.f32 %v11035_v46, %v4378_v49  ;;  %v5800_v3 = vmul.f32 %v10118_v17, %v4765_v59  ;;  %6511 = vmatmul.msk.f32.gmra.mxu1 %vm420_vm0, %v3924_v0 }
 0x82c   :  { %v5864_v47 = vadd.f32 %v5800_v3, %v5734_v9  ;;  %5345 = vrot.lane.b32.xlu0 %v4447_v62, %s6698_s19  ;;  %6560 = vmatmul.msk.f32.gmra.mxu2 %vm420_vm0, %v4447_v62  ;;  %v12435_v9 = vld [vmem:[#allocation21_spill] sm:$0xff] }
 0x82d   :  { %v5481_v0 = vsel %vm420_vm0, %v12435_v9, %v12434_v29  ;;  %v12438_v29 = vld [vmem:[#allocation118_spill] sm:$0xff]  ;;  %v12439_v9 = vld [vmem:[#allocation20_spill] sm:$0xff] }
 0x82e   :  { %5928 = vst [vmem:[%s11696_s10 + $0xe8] sm:$0xff] %v5864_v47  ;;  %v3859_v18 = vpop.f32.mrf.mxu0  ;;  %v5318_v20 = vpop.permute.xlu1 %5317  ;;  %v6647_v47 = vld [vmem:[%s11687_s1 + $0xf8] sm:$0xff] }
 0x82f   :  { %v3860_v4 = vadd.f32 %v10687_v54, %v3859_v18  ;;  %v5607_v45 = vsel %vm5574_vm1, %v5542_v12, %v5318_v20  ;;  %v4281_v57 = vpop.f32.mrf.mxu1  ;;  %v4767_v56 = vpop.f32.mrf.mxu2  ;;  %v5736_v53 = vmul.f32 %v6647_v47, %v10092_v58  ;;  %v12436_v20 = vld [vmem:[#allocation128_spill] sm:$0xff] }
 0x830   :  { %5671 = vst [vmem:[%s11697_s11 + $0x100] sm:$0xff] %v5607_v45  ;;  %v4379_v30 = vadd.f32 %v4281_v57, %v10053_v8  ;;  %v4768_v40 = vadd.f32 %v10822_v43, %v4767_v56  ;;  %v5546_v8 = vsel %vm5509_vm2, %v5481_v0, %v10177_v32  ;;  %v5480_v0 = vsel %vm420_vm0, %v12439_v9, %v12438_v29 }
 0x831   :  { %v3925_v60 = vmax.f32 %v3860_v4, 0.0  ;;  %v12437_v4 = vld [vmem:[#allocation19_spill] sm:$0xff] }
 0x832   :  { %v4448_v54 = vadd.f32 %v11035_v46, %v4379_v30  ;;  %v5801_v25 = vmul.f32 %v10118_v17, %v4768_v40  ;;  %v5479_v45 = vsel %vm420_vm0, %v12437_v4, %v12436_v20  ;;  %v6648_v30 = vld [vmem:[%s11687_s1 + $0x100] sm:$0xff] }
 0x833   :  { %6512 = vmatmul.msk.f32.gmra.mxu1 %vm420_vm0, %v3925_v60  ;;  %v5544_v57 = vsel %vm5509_vm2, %v5479_v45, %v10026_v19  ;;  %v5737_v40 = vmul.f32 %v6648_v30, %v10092_v58 }
 0x834   :  { %v5865_v10 = vadd.f32 %v5801_v25, %v5735_v55  ;;  %6561 = vmatmul.msk.f32.gmra.mxu2 %vm420_vm0, %v4448_v54  ;;  %5347 = vrot.lane.b32.xlu1 %v4448_v54, %s6698_s19 }
 0x836   :  { %5929 = vst [vmem:[%s11696_s10 + $0xf0] sm:$0xff] %v5865_v10  ;;  %v5326_v49 = vpop.permute.xlu2 %5325 }
 0x837   :  { %v5611_v59 = vsel %vm5574_vm1, %v5546_v8, %v5326_v49  ;;  %v4284_v62 = vpop.f32.mrf.mxu1  ;;  %v4770_v3 = vpop.f32.mrf.mxu2  ;;  %v5545_v8 = vsel %vm5509_vm2, %v5480_v0, %v10143_v16 }
 0x838   :  { %5675 = vst [vmem:[%s11697_s11 + $0x120] sm:$0xff] %v5611_v59  ;;  %v4380_v32 = vadd.f32 %v4284_v62, %v10078_v22  ;;  %v4771_v21 = vadd.f32 %v10822_v43, %v4770_v3  ;;  %v6649_v3 = vld [vmem:[%s11687_s1 + $0x108] sm:$0xff] }
 0x839   :  { %v5738_v47 = vmul.f32 %v6649_v3, %v10092_v58 }
 0x83a   :  { %v4449_v24 = vadd.f32 %v11035_v46, %v4380_v32  ;;  %v5802_v12 = vmul.f32 %v10118_v17, %v4771_v21 }
 0x83c   :  { %v5866_v18 = vadd.f32 %v5802_v12, %v5736_v53  ;;  %5349 = vrot.lane.b32.xlu2 %v4449_v24, %s6698_s19  ;;  %6562 = vmatmul.msk.f32.gmra.mxu2 %vm420_vm0, %v4449_v24  ;;  %v12440_v12 = vld [vmem:[#allocation91_spill] sm:$0xff] }
 0x83e   :  { %5930 = vst [vmem:[%s11696_s10 + $0xf8] sm:$0xff] %v5866_v18  ;;  %v5322_v22 = vpop.permute.xlu0 %5321  ;;  %v12441_v18 = vld [vmem:[#allocation24_spill] sm:$0xff] }
 0x83f   :  { %v5609_v56 = vsel %vm5574_vm1, %v5544_v57, %v5322_v22  ;;  %v4287_v7 = vpop.f32.mrf.mxu1  ;;  %v4773_v55 = vpop.f32.mrf.mxu2  ;;  %v5484_v20 = vsel %vm420_vm0, %v12441_v18, %v12440_v12 }
 0x840   :  { %5673 = vst [vmem:[%s11697_s11 + $0x110] sm:$0xff] %v5609_v56  ;;  %v4381_v19 = vadd.f32 %v4287_v7, %v10110_v23  ;;  %v4774_v60 = vadd.f32 %v10822_v43, %v4773_v55  ;;  %v5549_v4 = vsel %vm5509_vm2, %v5484_v20, %v10279_v63  ;;  %v6650_v56 = vld [vmem:[%s11687_s1 + $0x110] sm:$0xff] }
 0x841   :  { %v5739_v7 = vmul.f32 %v6650_v56, %v10092_v58 }
 0x842   :  { %v4450_v54 = vadd.f32 %v11035_v46, %v4381_v19  ;;  %v5803_v25 = vmul.f32 %v10118_v17, %v4774_v60  ;;  %v12442_v60 = vld [vmem:[#allocation131_spill] sm:$0xff] }
 0x844   :  { %v5867_v10 = vadd.f32 %v5803_v25, %v5737_v40  ;;  %5351 = vrot.lane.b32.xlu0 %v4450_v54, %s6698_s19  ;;  %6563 = vmatmul.msk.f32.gmra.mxu2 %vm420_vm0, %v4450_v54  ;;  %v12443_v54 = vld [vmem:[#allocation22_spill] sm:$0xff] }
 0x845   :  { %v5482_v25 = vsel %vm420_vm0, %v12443_v54, %v12442_v60 }
 0x846   :  { %5931 = vst [vmem:[%s11696_s10 + $0x100] sm:$0xff] %v5867_v10  ;;  %v5324_v23 = vpop.permute.xlu1 %5323  ;;  %v12444_v10 = vld [vmem:[#allocation39_spill] sm:$0xff] }
 0x847   :  { %v5610_v49 = vsel %vm5574_vm1, %v5545_v8, %v5324_v23  ;;  %v4290_v59 = vpop.f32.mrf.mxu1  ;;  %v4776_v62 = vpop.f32.mrf.mxu2  ;;  %v5547_v29 = vsel %vm5509_vm2, %v5482_v25, %v12444_v10  ;;  %v6651_v23 = vld [vmem:[%s11687_s1 + $0x118] sm:$0xff] }
 0x848   :  { %5674 = vst [vmem:[%s11697_s11 + $0x118] sm:$0xff] %v5610_v49  ;;  %v4382_v16 = vadd.f32 %v4290_v59, %v10146_v28  ;;  %v4777_v53 = vadd.f32 %v10822_v43, %v4776_v62  ;;  %v5740_v49 = vmul.f32 %v6651_v23, %v10092_v58 }
 0x84a   :  { %v4451_v32 = vadd.f32 %v11035_v46, %v4382_v16  ;;  %v5804_v21 = vmul.f32 %v10118_v17, %v4777_v53  ;;  %v12445_v53 = vld [vmem:[#allocation120_spill] sm:$0xff] }
 0x84c   :  { %v5868_v24 = vadd.f32 %v5804_v21, %v5738_v47  ;;  %6564 = vmatmul.msk.f32.gmra.mxu2 %vm420_vm0, %v4451_v32  ;;  %5353 = vrot.lane.b32.xlu1 %v4451_v32, %s6698_s19  ;;  %v12446_v32 = vld [vmem:[#allocation23_spill] sm:$0xff] }
 0x84d   :  { %v5483_v21 = vsel %vm420_vm0, %v12446_v32, %v12445_v53 }
 0x84e   :  { %5932 = vst [vmem:[%s11696_s10 + $0x108] sm:$0xff] %v5868_v24  ;;  %v5332_v28 = vpop.permute.xlu2 %5331  ;;  %v12447_v24 = vld [vmem:[#allocation40_spill] sm:$0xff] }
 0x84f   :  { %v5614_v45 = vsel %vm5574_vm1, %v5549_v4, %v5332_v28  ;;  %v4293_v57 = vpop.f32.mrf.mxu1  ;;  %v4779_v22 = vpop.f32.mrf.mxu2  ;;  %v5548_v12 = vsel %vm5509_vm2, %v5483_v21, %v12447_v24  ;;  %v6652_v28 = vld [vmem:[%s11687_s1 + $0x120] sm:$0xff]  ;;  %v6654_v24 = vld [vmem:[%s11687_s1 + $0x130] sm:$0xff] }
 0x850   :  { %5678 = vst [vmem:[%s11697_s11 + $0x138] sm:$0xff] %v5614_v45  ;;  %v4383_v63 = vadd.f32 %v4293_v57, %v10180_v6  ;;  %v4780_v55 = vadd.f32 %v10822_v43, %v4779_v22  ;;  %v5741_v45 = vmul.f32 %v6652_v28, %v10092_v58  ;;  %v12448_v57 = vld [vmem:[#allocation41_spill] sm:$0xff] }
 0x852   :  { %v4452_v30 = vadd.f32 %v11035_v46, %v4383_v63  ;;  %v5805_v40 = vmul.f32 %v10118_v17, %v4780_v55 }
 0x854   :  { %v5869_v19 = vadd.f32 %v5805_v40, %v5739_v7  ;;  %5355 = vrot.lane.b32.xlu2 %v4452_v30, %s6698_s19  ;;  %6565 = vmatmul.msk.f32.gmra.mxu2 %vm420_vm0, %v4452_v30  ;;  %v12449_v30 = vld [vmem:[#allocation92_spill] sm:$0xff]  ;;  %v12450_v40 = vld [vmem:[#allocation27_spill] sm:$0xff] }
 0x856   :  { %5933 = vst [vmem:[%s11696_s10 + $0x110] sm:$0xff] %v5869_v19  ;;  %v5328_v6 = vpop.permute.xlu0 %5327  ;;  %v5487_v19 = vsel %vm420_vm0, %v12450_v40, %v12449_v30  ;;  %v6655_v40 = vld [vmem:[%s11687_s1 + $0x138] sm:$0xff] }
 0x857   :  { %v5612_v9 = vsel %vm5574_vm1, %v5547_v29, %v5328_v6  ;;  %v4296_v0 = vpop.f32.mrf.mxu1  ;;  %v4782_v8 = vpop.f32.mrf.mxu2  ;;  %v5552_v60 = vsel %vm5509_vm2, %v5487_v19, %v10391_v35  ;;  %v6653_v6 = vld [vmem:[%s11687_s1 + $0x128] sm:$0xff]  ;;  %v5744_v19 = vmul.f32 %v6655_v40, %v10092_v58 }
 0x858   :  { %5676 = vst [vmem:[%s11697_s11 + $0x128] sm:$0xff] %v5612_v9  ;;  %v4384_v59 = vadd.f32 %v4296_v0, %v10214_v37  ;;  %v4783_v62 = vadd.f32 %v10822_v43, %v4782_v8  ;;  %v5742_v9 = vmul.f32 %v6653_v6, %v10092_v58 }
 0x85a   :  { %v4453_v3 = vadd.f32 %v11035_v46, %v4384_v59  ;;  %v5806_v47 = vmul.f32 %v10118_v17, %v4783_v62  ;;  %v12451_v59 = vld [vmem:[#allocation133_spill] sm:$0xff] }
 0x85b   :  { %v12452_v62 = vld [vmem:[#allocation25_spill] sm:$0xff] }
 0x85c   :  { %v5870_v16 = vadd.f32 %v5806_v47, %v5740_v49  ;;  %5357 = vrot.lane.b32.xlu0 %v4453_v3, %s6698_s19  ;;  %6566 = vmatmul.msk.f32.gmra.mxu2 %vm420_vm0, %v4453_v3  ;;  %v5485_v3 = vsel %vm420_vm0, %v12452_v62, %v12451_v59  ;;  %v12453_v47 = vld [vmem:[#allocation42_spill] sm:$0xff]  ;;  %v12458_v59 = vld [vmem:[#allocation61_spill] sm:$0xff] }
 0x85e   :  { %5934 = vst [vmem:[%s11696_s10 + $0x118] sm:$0xff] %v5870_v16  ;;  %v5330_v37 = vpop.permute.xlu1 %5329  ;;  %v5550_v16 = vsel %vm5509_vm2, %v5485_v3, %v12453_v47 }
 0x85f   :  { %v5613_v18 = vsel %vm5574_vm1, %v5548_v12, %v5330_v37  ;;  %v4299_v20 = vpop.f32.mrf.mxu1  ;;  %v4785_v4 = vpop.f32.mrf.mxu2  ;;  %v5743_v12 = vmul.f32 %v6654_v24, %v10092_v58 }
 0x860   :  { %5677 = vst [vmem:[%s11697_s11 + $0x130] sm:$0xff] %v5613_v18  ;;  %v4385_v22 = vadd.f32 %v4299_v20, %v12448_v57  ;;  %v4786_v56 = vadd.f32 %v10822_v43, %v4785_v4  ;;  %v12455_v57 = vld [vmem:[#allocation26_spill] sm:$0xff] }
 0x862   :  { %v4454_v7 = vadd.f32 %v11035_v46, %v4385_v22  ;;  %v5807_v63 = vmul.f32 %v10118_v17, %v4786_v56  ;;  %v12456_v56 = vld [vmem:[#allocation74_spill] sm:$0xff] }
 0x864   :  { %v5871_v55 = vadd.f32 %v5807_v63, %v5741_v45  ;;  %6567 = vmatmul.msk.f32.gmra.mxu2 %vm420_vm0, %v4454_v7  ;;  %5359 = vrot.lane.b32.xlu1 %v4454_v7, %s6698_s19  ;;  %v12454_v45 = vld [vmem:[#allocation123_spill] sm:$0xff] }
 0x865   :  { %v5486_v22 = vsel %vm420_vm0, %v12455_v57, %v12454_v45 }
 0x866   :  { %5935 = vst [vmem:[%s11696_s10 + $0x120] sm:$0xff] %v5871_v55  ;;  %v5338_v54 = vpop.permute.xlu2 %5337  ;;  %v5551_v7 = vsel %vm5509_vm2, %v5486_v22, %v12456_v56 }
 0x867   :  { %v5617_v25 = vsel %vm5574_vm1, %v5552_v60, %v5338_v54  ;;  %v4302_v10 = vpop.f32.mrf.mxu1  ;;  %v4788_v29 = vpop.f32.mrf.mxu2  ;;  %v12457_v60 = vld [vmem:[#allocation45_spill] sm:$0xff] }
 0x868   :  { %5681 = vst [vmem:[%s11697_s11 + $0x150] sm:$0xff] %v5617_v25  ;;  %v4386_v35 = vadd.f32 %v4302_v10, %v10282_v51  ;;  %v4789_v0 = vadd.f32 %v10822_v43, %v4788_v29 }
 0x86a   :  { %v4455_v8 = vadd.f32 %v11035_v46, %v4386_v35  ;;  %v5808_v23 = vmul.f32 %v10118_v17, %v4789_v0 }
 0x86c   :  { %v5872_v49 = vadd.f32 %v5808_v23, %v5742_v9  ;;  %5361 = vrot.lane.b32.xlu2 %v4455_v8, %s6698_s19  ;;  %6568 = vmatmul.msk.f32.gmra.mxu2 %vm420_vm0, %v4455_v8  ;;  %v6656_v23 = vld [vmem:[%s11687_s1 + $0x140] sm:$0xff] }
 0x86e   :  { %5936 = vst [vmem:[%s11696_s10 + $0x128] sm:$0xff] %v5872_v49  ;;  %v5334_v51 = vpop.permute.xlu0 %5333  ;;  %v5745_v49 = vmul.f32 %v6656_v23, %v10092_v58 }
 0x86f   :  { %v5615_v53 = vsel %vm5574_vm1, %v5550_v16, %v5334_v51  ;;  %v4305_v32 = vpop.f32.mrf.mxu1  ;;  %v4791_v21 = vpop.f32.mrf.mxu2  ;;  %v12459_v51 = vld [vmem:[#allocation136_spill] sm:$0xff] }
 0x870   :  { %5679 = vst [vmem:[%s11697_s11 + $0x140] sm:$0xff] %v5615_v53  ;;  %v4387_v37 = vadd.f32 %v4305_v32, %v10316_v36  ;;  %v4792_v18 = vadd.f32 %v10822_v43, %v4791_v21  ;;  %v12460_v53 = vld [vmem:[#allocation28_spill] sm:$0xff] }
 0x871   :  { %v5488_v32 = vsel %vm420_vm0, %v12460_v53, %v12459_v51  ;;  %v12461_v21 = vld [vmem:[#allocation60_spill] sm:$0xff] }
 0x872   :  { %v4456_v20 = vadd.f32 %v11035_v46, %v4387_v37  ;;  %v5809_v4 = vmul.f32 %v10118_v17, %v4792_v18  ;;  %v5553_v24 = vsel %vm5509_vm2, %v5488_v32, %v12461_v21  ;;  %v12466_v32 = vld [vmem:[#allocation94_spill] sm:$0xff] }
 0x874   :  { %v5873_v28 = vadd.f32 %v5809_v4, %v5743_v12  ;;  %5363 = vrot.lane.b32.xlu0 %v4456_v20, %s6698_s19  ;;  %6569 = vmatmul.msk.f32.gmra.mxu2 %vm420_vm0, %v4456_v20  ;;  %v6657_v4 = vld [vmem:[%s11687_s1 + $0x148] sm:$0xff] }
 0x876   :  { %5937 = vst [vmem:[%s11696_s10 + $0x130] sm:$0xff] %v5873_v28  ;;  %v5336_v36 = vpop.permute.xlu1 %5335  ;;  %v5746_v28 = vmul.f32 %v6657_v4, %v10092_v58 }
 0x877   :  { %v5616_v63 = vsel %vm5574_vm1, %v5551_v7, %v5336_v36  ;;  %v4308_v55 = vpop.f32.mrf.mxu1  ;;  %v4794_v30 = vpop.f32.mrf.mxu2  ;;  %v12462_v36 = vld [vmem:[#allocation126_spill] sm:$0xff] }
 0x878   :  { %5680 = vst [vmem:[%s11697_s11 + $0x148] sm:$0xff] %v5616_v63  ;;  %v4388_v54 = vadd.f32 %v4308_v55, %v12457_v60  ;;  %v4795_v25 = vadd.f32 %v10822_v43, %v4794_v30  ;;  %v12463_v63 = vld [vmem:[#allocation29_spill] sm:$0xff] }
 0x879   :  { %v5489_v55 = vsel %vm420_vm0, %v12463_v63, %v12462_v36  ;;  %v6661_v36 = vld [vmem:[%s11687_s1 + $0x168] sm:$0xff] }
 0x87a   :  { %v4457_v10 = vadd.f32 %v11035_v46, %v4388_v54  ;;  %v5810_v29 = vmul.f32 %v10118_v17, %v4795_v25  ;;  %v5554_v30 = vsel %vm5509_vm2, %v5489_v55, %v10463_v11  ;;  %v6658_v54 = vld [vmem:[%s11687_s1 + $0x150] sm:$0xff]  ;;  %v5750_v63 = vmul.f32 %v6661_v36, %v10092_v58  ;;  %v12467_v55 = vld [vmem:[#allocation96_spill] sm:$0xff] }
 0x87b   :  { %v5747_v25 = vmul.f32 %v6658_v54, %v10092_v58  ;;  %v12464_v11 = vld [vmem:[#allocation43_spill] sm:$0xff] }
 0x87c   :  { %v5874_v6 = vadd.f32 %v5810_v29, %v5744_v19  ;;  %6570 = vmatmul.msk.f32.gmra.mxu2 %vm420_vm0, %v4457_v10  ;;  %5365 = vrot.lane.b32.xlu1 %v4457_v10, %s6698_s19 }
 0x87e   :  { %5938 = vst [vmem:[%s11696_s10 + $0x138] sm:$0xff] %v5874_v6  ;;  %v5344_v9 = vpop.permute.xlu2 %5343 }
 0x87f   :  { %v5620_v35 = vsel %vm5574_vm1, %v10490_v31, %v5344_v9  ;;  %v4311_v0 = vpop.f32.mrf.mxu1  ;;  %v4797_v8 = vpop.f32.mrf.mxu2 }
 0x880   :  { %5684 = vst [vmem:[%s11697_s11 + $0x168] sm:$0xff] %v5620_v35  ;;  %v4389_v62 = vadd.f32 %v4311_v0, %v12458_v59  ;;  %v4798_v3 = vadd.f32 %v10822_v43, %v4797_v8  ;;  %v6659_v59 = vld [vmem:[%s11687_s1 + $0x158] sm:$0xff] }
 0x882   :  { %v4458_v47 = vadd.f32 %v11035_v46, %v4389_v62  ;;  %v5811_v31 = vmul.f32 %v10118_v17, %v4798_v3  ;;  %v5748_v62 = vmul.f32 %v6659_v59, %v10092_v58  ;;  %v12465_v3 = vld [vmem:[#allocation107_spill] sm:$0xff] }
 0x884   :  { %v5875_v16 = vadd.f32 %v5811_v31, %v5745_v49  ;;  %5367 = vrot.lane.b32.xlu2 %v4458_v47, %s6698_s19  ;;  %6571 = vmatmul.msk.f32.gmra.mxu2 %vm420_vm0, %v4458_v47 }
 0x886   :  { %5939 = vst [vmem:[%s11696_s10 + $0x140] sm:$0xff] %v5875_v16  ;;  %v5340_v12 = vpop.permute.xlu0 %5339 }
 0x887   :  { %v5618_v37 = vsel %vm5574_vm1, %v5553_v24, %v5340_v12  ;;  %v4314_v18 = vpop.f32.mrf.mxu1  ;;  %v4800_v20 = vpop.f32.mrf.mxu2 }
 0x888   :  { %5682 = vst [vmem:[%s11697_s11 + $0x158] sm:$0xff] %v5618_v37  ;;  %v4390_v45 = vadd.f32 %v4314_v18, %v10432_v61  ;;  %v4801_v57 = vadd.f32 %v10822_v43, %v4800_v20  ;;  %v6660_v37 = vld [vmem:[%s11687_s1 + $0x160] sm:$0xff] }
 0x889   :  { %v5749_v18 = vmul.f32 %v6660_v37, %v10092_v58 }
 0x88a   :  { %v4459_v22 = vadd.f32 %v11035_v46, %v4390_v45  ;;  %v5812_v56 = vmul.f32 %v10118_v17, %v4801_v57 }
 0x88c   :  { %v5876_v7 = vadd.f32 %v5812_v56, %v5746_v28  ;;  %5369 = vrot.lane.b32.xlu0 %v4459_v22, %s6698_s19  ;;  %6572 = vmatmul.msk.f32.gmra.mxu2 %vm420_vm0, %v4459_v22 }
 0x88e   :  { %5940 = vst [vmem:[%s11696_s10 + $0x148] sm:$0xff] %v5876_v7  ;;  %v5342_v61 = vpop.permute.xlu1 %5341 }
 0x88f   :  { %v5619_v40 = vsel %vm5574_vm1, %v5554_v30, %v5342_v61  ;;  %v4317_v19 = vpop.f32.mrf.mxu1  ;;  %v4803_v60 = vpop.f32.mrf.mxu2 }
 0x890   :  { %5683 = vst [vmem:[%s11697_s11 + $0x160] sm:$0xff] %v5619_v40  ;;  %v4391_v10 = vadd.f32 %v4317_v19, %v12464_v11  ;;  %v4804_v29 = vadd.f32 %v10822_v43, %v4803_v60  ;;  %v6662_v11 = vld [vmem:[%s11687_s1 + $0x170] sm:$0xff] }
 0x892   :  { %v4460_v6 = vadd.f32 %v11035_v46, %v4391_v10  ;;  %v5813_v9 = vmul.f32 %v10118_v17, %v4804_v29  ;;  %v5751_v10 = vmul.f32 %v6662_v11, %v10092_v58  ;;  %v6669_v11 = vld [vmem:[%s11687_s1 + $0x1a0] sm:$0xff] }
 0x894   :  { %v5877_v35 = vadd.f32 %v5813_v9, %v5747_v25  ;;  %6573 = vmatmul.msk.f32.gmra.mxu2 %vm420_vm0, %v4460_v6  ;;  %5371 = vrot.lane.b32.xlu1 %v4460_v6, %s6698_s19 }
 0x896   :  { %5941 = vst [vmem:[%s11696_s10 + $0x150] sm:$0xff] %v5877_v35  ;;  %v5350_v0 = vpop.permute.xlu2 %5349 }
 0x897   :  { %v5623_v8 = vsel %vm5574_vm1, %v10604_v5, %v5350_v0  ;;  %v4320_v23 = vpop.f32.mrf.mxu1  ;;  %v4806_v49 = vpop.f32.mrf.mxu2 }
 0x898   :  { %5687 = vst [vmem:[%s11697_s11 + $0x180] sm:$0xff] %v5623_v8  ;;  %v4392_v47 = vadd.f32 %v4320_v23, %v12465_v3  ;;  %v4807_v31 = vadd.f32 %v10822_v43, %v4806_v49  ;;  %v12468_v23 = vld [vmem:[#allocation62_spill] sm:$0xff] }
 0x89a   :  { %v4461_v16 = vadd.f32 %v11035_v46, %v4392_v47  ;;  %v5814_v5 = vmul.f32 %v10118_v17, %v4807_v31 }
 0x89c   :  { %v5878_v51 = vadd.f32 %v5814_v5, %v5748_v62  ;;  %5373 = vrot.lane.b32.xlu2 %v4461_v16, %s6698_s19  ;;  %6574 = vmatmul.msk.f32.gmra.mxu2 %vm420_vm0, %v4461_v16 }
 0x89e   :  { %5942 = vst [vmem:[%s11696_s10 + $0x158] sm:$0xff] %v5878_v51  ;;  %v5346_v53 = vpop.permute.xlu0 %5345  ;;  %v6664_v51 = vld [vmem:[%s11687_s1 + $0x180] sm:$0xff] }
 0x89f   :  { %v5621_v21 = vsel %vm5574_vm1, %v12466_v32, %v5346_v53  ;;  %v4323_v24 = vpop.f32.mrf.mxu1  ;;  %v4809_v12 = vpop.f32.mrf.mxu2  ;;  %v5753_v53 = vmul.f32 %v6664_v51, %v10092_v58 }
 0x8a0   :  { %5685 = vst [vmem:[%s11697_s11 + $0x170] sm:$0xff] %v5621_v21  ;;  %v4393_v20 = vadd.f32 %v4323_v24, %v10542_v38  ;;  %v4810_v4 = vadd.f32 %v10822_v43, %v4809_v12 }
 0x8a2   :  { %v4462_v28 = vadd.f32 %v11035_v46, %v4393_v20  ;;  %v5815_v45 = vmul.f32 %v10118_v17, %v4810_v4 }
 0x8a4   :  { %v5879_v57 = vadd.f32 %v5815_v45, %v5749_v18  ;;  %5375 = vrot.lane.b32.xlu0 %v4462_v28, %s6698_s19  ;;  %6575 = vmatmul.msk.f32.gmra.mxu2 %vm420_vm0, %v4462_v28  ;;  %v6665_v18 = vld [vmem:[%s11687_s1 + $0x188] sm:$0xff] }
 0x8a5   :  { %v5754_v20 = vmul.f32 %v6665_v18, %v10092_v58  ;;  %v6673_v18 = vld [vmem:[%s11687_s1 + $0x1c0] sm:$0xff] }
 0x8a6   :  { %5943 = vst [vmem:[%s11696_s10 + $0x160] sm:$0xff] %v5879_v57  ;;  %v5348_v22 = vpop.permute.xlu1 %5347 }
 0x8a7   :  { %v5622_v56 = vsel %vm5574_vm1, %v10566_v52, %v5348_v22  ;;  %v4326_v38 = vpop.f32.mrf.mxu1  ;;  %v4812_v7 = vpop.f32.mrf.mxu2 }
 0x8a8   :  { %5686 = vst [vmem:[%s11697_s11 + $0x178] sm:$0xff] %v5622_v56  ;;  %v4394_v30 = vadd.f32 %v4326_v38, %v12467_v55  ;;  %v4813_v61 = vadd.f32 %v10822_v43, %v4812_v7  ;;  %v6666_v56 = vld [vmem:[%s11687_s1 + $0x190] sm:$0xff] }
 0x8a9   :  { %v5755_v38 = vmul.f32 %v6666_v56, %v10092_v58 }
 0x8aa   :  { %v4463_v40 = vadd.f32 %v11035_v46, %v4394_v30  ;;  %v5816_v52 = vmul.f32 %v10118_v17, %v4813_v61  ;;  %v6667_v61 = vld [vmem:[%s11687_s1 + $0x198] sm:$0xff] }
 0x8ac   :  { %v5880_v19 = vadd.f32 %v5816_v52, %v5750_v63  ;;  %6576 = vmatmul.msk.f32.gmra.mxu2 %vm420_vm0, %v4463_v40  ;;  %5377 = vrot.lane.b32.xlu1 %v4463_v40, %s6698_s19  ;;  %v5756_v40 = vmul.f32 %v6667_v61, %v10092_v58 }
 0x8ae   :  { %5944 = vst [vmem:[%s11696_s10 + $0x168] sm:$0xff] %v5880_v19  ;;  %v5356_v60 = vpop.permute.xlu2 %5355 }
 0x8af   :  { %v5626_v54 = vsel %vm5574_vm1, %v10707_v1, %v5356_v60  ;;  %v4815_v25 = vpop.f32.mrf.mxu2 }
 0x8b0   :  { %5690 = vst [vmem:[%s11697_s11 + $0x198] sm:$0xff] %v5626_v54  ;;  %v4329_v29 = vpop.f32.mrf.mxu1  ;;  %v4816_v6 = vadd.f32 %v10822_v43, %v4815_v25 }
 0x8b1   :  { %v4395_v9 = vadd.f32 %v4329_v29, %v10619_v27  ;;  %v6663_v27 = vld [vmem:[%s11687_s1 + $0x178] sm:$0xff] }
 0x8b2   :  { %v5817_v35 = vmul.f32 %v10118_v17, %v4816_v6 }
 0x8b3   :  { %v4464_v1 = vadd.f32 %v11035_v46, %v4395_v9  ;;  %v5752_v46 = vmul.f32 %v6663_v27, %v10092_v58 }
 0x8b4   :  { %v5881_v0 = vadd.f32 %v5817_v35, %v5751_v10  ;;  %v5757_v10 = vmul.f32 %v6669_v11, %v10092_v58 }
 0x8b5   :  { %5379 = vrot.lane.b32.xlu2 %v4464_v1, %s6698_s19  ;;  %6577 = vmatmul.msk.f32.gmra.mxu2 %vm420_vm0, %v4464_v1 }
 0x8b6   :  { %5945 = vst [vmem:[%s11696_s10 + $0x170] sm:$0xff] %v5881_v0  ;;  %v5352_v8 = vpop.permute.xlu0 %5351  ;;  %v6670_v0 = vld [vmem:[%s11687_s1 + $0x1a8] sm:$0xff] }
 0x8b7   :  { %v5624_v49 = vsel %vm5574_vm1, %v12468_v23, %v5352_v8  ;;  %v4818_v59 = vpop.f32.mrf.mxu2  ;;  %v5758_v8 = vmul.f32 %v6670_v0, %v10092_v58 }
 0x8b8   :  { %5688 = vst [vmem:[%s11697_s11 + $0x188] sm:$0xff] %v5624_v49  ;;  %v4819_v62 = vadd.f32 %v10822_v43, %v4818_v59 }
 0x8ba   :  { %v5818_v3 = vmul.f32 %v10118_v17, %v4819_v62  ;;  %v6671_v62 = vld [vmem:[%s11687_s1 + $0x1b0] sm:$0xff] }
 0x8bc   :  { %v5882_v47 = vadd.f32 %v5818_v3, %v5752_v46  ;;  %v5759_v3 = vmul.f32 %v6671_v62, %v10092_v58 }
 0x8be   :  { %5946 = vst [vmem:[%s11696_s10 + $0x178] sm:$0xff] %v5882_v47  ;;  %v5354_v31 = vpop.permute.xlu1 %5353 }
 0x8bf   :  { %v5625_v16 = vsel %vm5574_vm1, %v10672_v50, %v5354_v31  ;;  %v4821_v5 = vpop.f32.mrf.mxu2 }
 0x8c0   :  { %5689 = vst [vmem:[%s11697_s11 + $0x190] sm:$0xff] %v5625_v16  ;;  %v4822_v32 = vadd.f32 %v10822_v43, %v4821_v5 }
 0x8c2   :  { %v5819_v21 = vmul.f32 %v10118_v17, %v4822_v32 }
 0x8c4   :  { %v5883_v24 = vadd.f32 %v5819_v21, %v5753_v53  ;;  %v6672_v53 = vld [vmem:[%s11687_s1 + $0x1b8] sm:$0xff] }
 0x8c5   :  { %v5760_v32 = vmul.f32 %v6672_v53, %v10092_v58 }
 0x8c6   :  { %5947 = vst [vmem:[%s11696_s10 + $0x180] sm:$0xff] %v5883_v24  ;;  %v5362_v50 = vpop.permute.xlu2 %5361 }
 0x8c7   :  { %v5629_v12 = vsel %vm5574_vm1, %v10797_v39, %v5362_v50  ;;  %v4824_v37 = vpop.f32.mrf.mxu2 }
 0x8c8   :  { %5693 = vst [vmem:[%s11697_s11 + $0x1b0] sm:$0xff] %v5629_v12  ;;  %v4825_v4 = vadd.f32 %v10822_v43, %v4824_v37 }
 0x8ca   :  { %v5820_v28 = vmul.f32 %v10118_v17, %v4825_v4 }
 0x8cc   :  { %v5884_v45 = vadd.f32 %v5820_v28, %v5754_v20  ;;  %v5761_v20 = vmul.f32 %v6673_v18, %v10092_v58 }
 0x8ce   :  { %5948 = vst [vmem:[%s11696_s10 + $0x188] sm:$0xff] %v5884_v45  ;;  %v5358_v39 = vpop.permute.xlu0 %5357 }
 0x8cf   :  { %v5627_v57 = vsel %vm5574_vm1, %v10642_v15, %v5358_v39  ;;  %v4827_v22 = vpop.f32.mrf.mxu2 }
 0x8d0   :  { %5691 = vst [vmem:[%s11697_s11 + $0x1a0] sm:$0xff] %v5627_v57  ;;  %v4828_v7 = vadd.f32 %v10822_v43, %v4827_v22  ;;  %v11526_v43 = vld [vmem:[%s11695_s9] ss:$0 sm:$0xff]  ;;  %v6674_v22 = vld [vmem:[%s11687_s1 + $0x1c8] sm:$0xff] }
 0x8d1   :  { %v5762_v56 = vmul.f32 %v6674_v22, %v10092_v58 }
 0x8d2   :  { %v5821_v36 = vmul.f32 %v10118_v17, %v4828_v7 }
 0x8d4   :  { %v5885_v63 = vadd.f32 %v5821_v36, %v5755_v38 }
 0x8d6   :  { %5949 = vst [vmem:[%s11696_s10 + $0x190] sm:$0xff] %v5885_v63  ;;  %v5360_v15 = vpop.permute.xlu1 %5359 }
 0x8d7   :  { %v5628_v55 = vsel %vm5574_vm1, %v10767_v2, %v5360_v15  ;;  %v4830_v30 = vpop.f32.mrf.mxu2  ;;  %v6675_v15 = vld [vmem:[%s11687_s1 + $0x1d0] sm:$0xff] }
 0x8d8   :  { %5692 = vst [vmem:[%s11697_s11 + $0x1a8] sm:$0xff] %v5628_v55  ;;  %v4831_v52 = vadd.f32 %v11526_v43, %v4830_v30  ;;  %v5763_v55 = vmul.f32 %v6675_v15, %v10092_v58 }
 0x8da   :  { %v5822_v2 = vmul.f32 %v10118_v17, %v4831_v52 }
 0x8dc   :  { %v5886_v19 = vadd.f32 %v5822_v2, %v5756_v40 }
 0x8de   :  { %5950 = vst [vmem:[%s11696_s10 + $0x198] sm:$0xff] %v5886_v19  ;;  %v5368_v60 = vpop.permute.xlu2 %5367 }
 0x8df   :  { %v5632_v54 = vsel %vm5574_vm1, %v10892_v41, %v5368_v60  ;;  %v4833_v25 = vpop.f32.mrf.mxu2 }
 0x8e0   :  { %5696 = vst [vmem:[%s11697_s11 + $0x1c8] sm:$0xff] %v5632_v54  ;;  %v4834_v29 = vadd.f32 %v11526_v43, %v4833_v25 }
 0x8e2   :  { %v5823_v6 = vmul.f32 %v10118_v17, %v4834_v29 }
 0x8e4   :  { %v5887_v9 = vadd.f32 %v5823_v6, %v5757_v10 }
 0x8e6   :  { %5951 = vst [vmem:[%s11696_s10 + $0x1a0] sm:$0xff] %v5887_v9  ;;  %v5364_v41 = vpop.permute.xlu0 %5363  ;;  %v6677_v9 = vld [vmem:[%s11687_s1 + $0x1e0] sm:$0xff] }
 0x8e7   :  { %v5630_v35 = vsel %vm5574_vm1, %v10737_v26, %v5364_v41  ;;  %v4836_v1 = vpop.f32.mrf.mxu2  ;;  %v5765_v41 = vmul.f32 %v6677_v9, %v10092_v58 }
 0x8e8   :  { %5694 = vst [vmem:[%s11697_s11 + $0x1b8] sm:$0xff] %v5630_v35  ;;  %v4837_v23 = vadd.f32 %v11526_v43, %v4836_v1 }
 0x8ea   :  { %v5824_v49 = vmul.f32 %v10118_v17, %v4837_v23 }
 0x8ec   :  { %v5888_v59 = vadd.f32 %v5824_v49, %v5758_v8  ;;  %v6678_v8 = vld [vmem:[%s11687_s1 + $0x1e8] sm:$0xff] }
 0x8ed   :  { %v5766_v23 = vmul.f32 %v6678_v8, %v10092_v58 }
 0x8ee   :  { %5952 = vst [vmem:[%s11696_s10 + $0x1a8] sm:$0xff] %v5888_v59  ;;  %v5366_v26 = vpop.permute.xlu1 %5365 }
 0x8ef   :  { %v5631_v27 = vsel %vm5574_vm1, %v10862_v13, %v5366_v26  ;;  %v4839_v46 = vpop.f32.mrf.mxu2 }
 0x8f0   :  { %5695 = vst [vmem:[%s11697_s11 + $0x1c0] sm:$0xff] %v5631_v27  ;;  %v4840_v47 = vadd.f32 %v11526_v43, %v4839_v46  ;;  %v6679_v46 = vld [vmem:[%s11687_s1 + $0x1f0] sm:$0xff] }
 0x8f1   :  { %v5767_v62 = vmul.f32 %v6679_v46, %v10092_v58 }
 0x8f2   :  { %v5825_v31 = vmul.f32 %v10118_v17, %v4840_v47 }
 0x8f4   :  { %v5889_v16 = vadd.f32 %v5825_v31, %v5759_v3 }
 0x8f6   :  { %5953 = vst [vmem:[%s11696_s10 + $0x1b0] sm:$0xff] %v5889_v16  ;;  %v5374_v13 = vpop.permute.xlu2 %5373 }
 0x8f7   :  { %v5635_v5 = vsel %vm5574_vm1, %v10982_v14, %v5374_v13  ;;  %v4842_v51 = vpop.f32.mrf.mxu2  ;;  %v6680_v13 = vld [vmem:[%s11687_s1 + $0x1f8] sm:$0xff] }
 0x8f8   :  { %5699 = vst [vmem:[%s11697_s11 + $0x1e0] sm:$0xff] %v5635_v5  ;;  %v4843_v21 = vadd.f32 %v11526_v43, %v4842_v51  ;;  %v5768_v5 = vmul.f32 %v6680_v13, %v10092_v58 }
 0x8fa   :  { %v5826_v24 = vmul.f32 %v10118_v17, %v4843_v21 }
 0x8fc   :  { %v5890_v50 = vadd.f32 %v5826_v24, %v5760_v32 }
 0x8fe   :  { %5954 = vst [vmem:[%s11696_s10 + $0x1b8] sm:$0xff] %v5890_v50  ;;  %v5370_v14 = vpop.permute.xlu0 %5369 }
 0x8ff   :  { %v5633_v12 = vsel %vm5574_vm1, %v10832_v48, %v5370_v14  ;;  %v4845_v37 = vpop.f32.mrf.mxu2 }
 0x900   :  { %5697 = vst [vmem:[%s11697_s11 + $0x1d0] sm:$0xff] %v5633_v12  ;;  %v4846_v4 = vadd.f32 %v11526_v43, %v4845_v37 }
 0x902   :  { %v5827_v28 = vmul.f32 %v10118_v17, %v4846_v4 }
 0x904   :  { %v5891_v45 = vadd.f32 %v5827_v28, %v5761_v20 }
 0x906   :  { %5955 = vst [vmem:[%s11696_s10 + $0x1c0] sm:$0xff] %v5891_v45  ;;  %v5372_v48 = vpop.permute.xlu1 %5371 }
 0x907   :  { %v5634_v39 = vsel %vm5574_vm1, %v10952_v44, %v5372_v48  ;;  %v4848_v57 = vpop.f32.mrf.mxu2 }
 0x908   :  { %5698 = vst [vmem:[%s11697_s11 + $0x1d8] sm:$0xff] %v5634_v39  ;;  %v4849_v38 = vadd.f32 %v11526_v43, %v4848_v57 }
 0x90a   :  { %v5828_v7 = vmul.f32 %v10118_v17, %v4849_v38 }
 0x90c   :  { %v5892_v36 = vadd.f32 %v5828_v7, %v5762_v56 }
 0x90e   :  { %5956 = vst [vmem:[%s11696_s10 + $0x1c8] sm:$0xff] %v5892_v36 }
 0x90f   :  { %v5380_v44 = vpop.permute.xlu2 %5379  ;;  %v4851_v63 = vpop.f32.mrf.mxu2 }
 0x910   :  { %v5638_v30 = vsel %vm5574_vm1, %v11071_v34, %v5380_v44  ;;  %v4852_v61 = vadd.f32 %v11526_v43, %v4851_v63  ;;  %v6676_v34 = vld [vmem:[%s11687_s1 + $0x1d8] sm:$0xff] }
 0x911   :  { %5702 = vst [vmem:[%s11697_s11 + $0x1f8] sm:$0xff] %v5638_v30  ;;  %v5764_v54 = vmul.f32 %v6676_v34, %v10092_v58 }
 0x912   :  { %v5829_v40 = vmul.f32 %v10118_v17, %v4852_v61 }
 0x914   :  { %v5893_v52 = vadd.f32 %v5829_v40, %v5763_v55 }
 0x916   :  { %5957 = vst [vmem:[%s11696_s10 + $0x1d0] sm:$0xff] %v5893_v52  ;;  %v5376_v2 = vpop.permute.xlu0 %5375 }
 0x917   :  { %v5636_v19 = vsel %vm5574_vm1, %v10922_v33, %v5376_v2  ;;  %v4854_v60 = vpop.f32.mrf.mxu2 }
 0x918   :  { %5700 = vst [vmem:[%s11697_s11 + $0x1e8] sm:$0xff] %v5636_v19  ;;  %v4855_v25 = vadd.f32 %v11526_v43, %v4854_v60 }
 0x91a   :  { %v5830_v11 = vmul.f32 %v10118_v17, %v4855_v25 }
 0x91c   :  { %v5894_v10 = vadd.f32 %v5830_v11, %v5764_v54 }
 0x91e   :  { %5958 = vst [vmem:[%s11696_s10 + $0x1d8] sm:$0xff] %v5894_v10  ;;  %v5378_v33 = vpop.permute.xlu1 %5377 }
 0x91f   :  { %v5637_v29 = vsel %vm5574_vm1, %v11041_v42, %v5378_v33  ;;  %v4857_v6 = vpop.f32.mrf.mxu2 }
 0x920   :  { %5701 = vst [vmem:[%s11697_s11 + $0x1f0] sm:$0xff] %v5637_v29  ;;  %v4858_v35 = vadd.f32 %v11526_v43, %v4857_v6 }
 0x922   :  { %v5831_v1 = vmul.f32 %v10118_v17, %v4858_v35 }
 0x924   :  { %v5895_v0 = vadd.f32 %v5831_v1, %v5765_v41 }
 0x926   :  { %5959 = vst [vmem:[%s11696_s10 + $0x1e0] sm:$0xff] %v5895_v0 }
 0x927   :  { %v4860_v42 = vpop.f32.mrf.mxu2 }
 0x928   :  { %v4861_v49 = vadd.f32 %v11526_v43, %v4860_v42 }
 0x92a   :  { %v5832_v59 = vmul.f32 %v10118_v17, %v4861_v49 }
 0x92c   :  { %v5896_v26 = vadd.f32 %v5832_v59, %v5766_v23 }
 0x92e   :  { %5960 = vst [vmem:[%s11696_s10 + $0x1e8] sm:$0xff] %v5896_v26 }
 0x92f   :  { %v4863_v27 = vpop.f32.mrf.mxu2 }
 0x930   :  { %v4864_v3 = vadd.f32 %v11526_v43, %v4863_v27 }
 0x932   :  { %v5833_v47 = vmul.f32 %v10118_v17, %v4864_v3 }
 0x934   :  { %v5897_v31 = vadd.f32 %v5833_v47, %v5767_v62 }
 0x936   :  { %5961 = vst [vmem:[%s11696_s10 + $0x1f0] sm:$0xff] %v5897_v31 }
 0x938   :  { %v4866_v16 = vpop.f32.mrf.mxu2 }
 0x939   :  { %v4867_v51 = vadd.f32 %v11526_v43, %v4866_v16 }
 0x93b   :  { %v5834_v53 = vmul.f32 %v10118_v17, %v4867_v51 }
 0x93d   :  { %v5898_v32 = vadd.f32 %v5834_v53, %v5768_v5 }
 0x93f   :  { %5962 = vst [vmem:[%s11696_s10 + $0x1f8] sm:$0xff] %v5898_v32 }
 0x940   :  { %5971 = vsyncpa [#allocation3], 1 }

</bundles_post_ra>
